<compile_context>
chip_gen: v7x
topology: tpu7x:2x2x1
jax: 0.10.0
libtpu: 0.0.40
codegen_flags: <defaults>
</compile_context>

<pallas_src>
import functools
import math

import jax
import jax.numpy as jnp
from jax.experimental import pallas as pl
from jax.experimental.pallas import tpu as pltpu


_VMEM_LIMIT = 48 * 1024 * 1024  # scoped-VMEM ceiling; actual use here is only a few MiB


def _round_up(n, m):
    return ((n + m - 1) // m) * m


# ----------------------------------------------------------------- fused decoder kernel
def _decoder_kernel(x_ref, w_b0_ref, w_dil_ref, w_pool_ref, w_proj_ref,
                    sca_ref, sha_ref, w3_ref, sch_ref, shh_ref, wf_ref, bf_ref,
                    o_ref, xpad_ref, apad_ref, *, H, W, P, dilations):
    """Entire DeepLabV3 decoder head for one batch element (ASPP + 3x3 + BN + ReLU + 1x1)."""
    Cin = x_ref.shape[-1]          # padded input channels (multiple of 128)
    Cm = w_b0_ref.shape[-1]        # 256
    Cop = wf_ref.shape[-1]         # classifier channels padded to a multiple of 128
    HW = H * W
    nd = len(dilations)
    f32, bf16 = jnp.float32, jnp.bfloat16

    def bn_relu(v, i):
        # folded inference BatchNorm + ReLU; scales/shifts are (1, Cm) rows of a stacked table
        return jnp.maximum(v * sca_ref[i:i + 1, :] + sha_ref[i:i + 1, :], 0.0)

    # ---- in-kernel spatial zero-padding: only the unpadded tensor crosses HBM -------------
    # Re-zero every step (not pl.when(step==0)) so the result is correct when the batch grid
    # axis is split across v7x's two TensorCores (each core owns its own scratch instance).
    xpad_ref[...] = jnp.zeros_like(xpad_ref)
    xpad_ref[P:P + H, P:P + W, :] = x_ref[0]               # P is a multiple of 8 -> aligned

    xc = x_ref[0].reshape(HW, Cin)                         # central window, bf16

    # ---- ASPP branch 0: 1x1 conv + BN + ReLU, folded straight into the 1x1 projection -----
    b0 = bn_relu(jnp.dot(xc, w_b0_ref[...], preferred_element_type=f32), 0)
    proj = jnp.dot(b0.astype(bf16), w_proj_ref[0], preferred_element_type=f32)

    # ---- dilated 3x3 branches: 9 taps concatenated along K -> one MXU dot per branch ------
    # NOTE: the kw offsets (multiples of the dilation) cannot all be 8-aligned, so each tap
    # slice is a small in-VMEM relayout copy; acceptable at these sizes.
    for bi, d in enumerate(dilations):
        taps = []
        for kh in range(3):
            for kw in range(3):
                h0 = P + (kh - 1) * d
                w0 = P + (kw - 1) * d
                taps.append(xpad_ref[h0:h0 + H, w0:w0 + W, :].reshape(HW, Cin))
        xcat = jnp.concatenate(taps, axis=1)               # (HW, 9*Cin) bf16
        bd = bn_relu(jnp.dot(xcat, w_dil_ref[bi], preferred_element_type=f32), 1 + bi)
        proj = proj + jnp.dot(bd.astype(bf16), w_proj_ref[1 + bi],
                              preferred_element_type=f32)

    # ---- global-average-pool branch: pool -> 1x1 conv -> BN -> ReLU -> broadcast ----------
    xmean = jnp.mean(xc.astype(f32), axis=0, keepdims=True)                     # (1, Cin)
    pooled = bn_relu(jnp.dot(xmean.astype(bf16), w_pool_ref[...],
                             preferred_element_type=f32), 1 + nd)               # (1, Cm)
    proj = proj + jnp.dot(pooled.astype(bf16), w_proj_ref[1 + nd],
                          preferred_element_type=f32)                           # row broadcast

    # ---- projection BN + ReLU (Dropout(0.5) is identity at inference) ---------------------
    aspp = bn_relu(proj, 2 + nd)                                                # (HW, Cm) f32

    # ---- head: 3x3 conv (pad=1, no bias) + BN + ReLU + final 1x1 classifier ---------------
    apad_ref[...] = jnp.zeros_like(apad_ref)
    apad_ref[1:1 + H, 1:1 + W, :] = aspp.reshape(H, W, Cm).astype(bf16)
    taps = [apad_ref[kh:kh + H, kw:kw + W, :].reshape(HW, Cm)
            for kh in range(3) for kw in range(3)]
    acat = jnp.concatenate(taps, axis=1)                                        # (HW, 9*Cm)
    y = jnp.dot(acat, w3_ref[...], preferred_element_type=f32)
    y = jnp.maximum(y * sch_ref[...] + shh_ref[...], 0.0)
    logits = jnp.dot(y.astype(bf16), wf_ref[...], preferred_element_type=f32) + bf_ref[...]
    o_ref[0] = logits.reshape(H, W, Cop).astype(o_ref.dtype)


def decoder_fused(x, params, H, W):
    """x: (B, H, W, Cin_padded) bf16 NHWC. Returns (B, H, W, Cop) f32 logits (lane-padded)."""
    B, _, _, Cin_p = x.shape
    Cm = params["w_b0"].shape[-1]
    Cop = params["wf"].shape[-1]
    dil = params["dilations"]
    P = _round_up(max(dil), 8)              # pad radius >= max dilation, 8-aligned interior
    Hp, Wp = H + 2 * P, W + 2 * P

    # Whole-array VMEM operands: single-buffered (block index never changes across the grid).
    wspec = pl.BlockSpec(memory_space=pltpu.MemorySpace.VMEM)
    kern = functools.partial(_decoder_kernel, H=H, W=W, P=P, dilations=tuple(dil))

    return pl.pallas_call(
        kern,
        out_shape=jax.ShapeDtypeStruct((B, H, W, Cop), jnp.float32),
        grid=(B,),
        in_specs=[
            pl.BlockSpec((1, H, W, Cin_p), lambda b: (b, 0, 0, 0)),   # feature (pipelined)
            wspec,   # w_b0
            wspec,   # w_dil   (nd, 9*Cin_p, Cm)
            wspec,   # w_pool
            wspec,   # w_proj  (nd+2, Cm, Cm)
            wspec,   # scales_aspp
            wspec,   # shifts_aspp
            wspec,   # w3      (9*Cm, Cm)
            wspec,   # scale_head
            wspec,   # shift_head
            wspec,   # wf      (Cm, Cop)
            wspec,   # bf      (1, Cop)
        ],
        out_specs=pl.BlockSpec((1, H, W, Cop), lambda b: (b, 0, 0, 0)),
        scratch_shapes=[
            pltpu.VMEM((Hp, Wp, Cin_p), jnp.bfloat16),    # zero-padded input slab
            pltpu.VMEM((H + 2, W + 2, Cm), jnp.bfloat16),  # zero-padded ASPP output slab
        ],
        compiler_params=pltpu.CompilerParams(
            dimension_semantics=("parallel",),            # batch splits across v7x's 2 TCs
            vmem_limit_bytes=_VMEM_LIMIT),
    )(x, params["w_b0"], params["w_dil"], params["w_pool"], params["w_proj"],
      params["scales_aspp"], params["shifts_aspp"], params["w3"],
      params["scale_head"], params["shift_head"], params["wf"], params["bf"])


# --------------------------------------------------------------------------- JAX glue
def _interp_matrix(out_size, in_size):
    """Row-stochastic bilinear interpolation matrix, PyTorch align_corners=False semantics."""
    scale = in_size / out_size
    i = jnp.arange(out_size, dtype=jnp.float32)
    src = jnp.maximum((i + 0.5) * scale - 0.5, 0.0)
    i0 = jnp.minimum(jnp.floor(src).astype(jnp.int32), in_size - 1)
    i1 = jnp.minimum(i0 + 1, in_size - 1)
    lam = src - i0.astype(jnp.float32)
    return (jax.nn.one_hot(i0, in_size, dtype=jnp.float32) * (1.0 - lam)[:, None]
            + jax.nn.one_hot(i1, in_size, dtype=jnp.float32) * lam[:, None])


def bilinear_resize_nchw(x, out_h, out_w):
    """Bilinear upsample (align_corners=False) as two small matmuls — no lane-axis gathers."""
    Lh = _interp_matrix(out_h, x.shape[2])            # (out_h, H)
    Lw = _interp_matrix(out_w, x.shape[3])            # (out_w, W)
    y = jnp.einsum('bchw,pw->bchp', x, Lw)            # contract W
    return jnp.einsum('qh,bchp->bcqp', Lh, y)         # contract H


def init_params(key, in_channel, out_channel, aspp_dilate=(6, 12, 18), cmid=256, eps=1e-5):
    Cin, Cm, Co = in_channel, cmid, out_channel
    Cin_p = _round_up(Cin, 128)                       # lane-pad input channels
    Cop = _round_up(Co, 128)                          # lane-pad classifier channels
    nd = len(aspp_dilate)
    ks = jax.random.split(key, 7)

    def he(k, shape, fan_in):
        return jax.random.normal(k, shape, jnp.float32) * math.sqrt(2.0 / fan_in)

    # ASPP weights, stored pre-transposed for x @ W, channel-padded (pad rows multiply zeros)
    w_b0 = jnp.zeros((Cin_p, Cm), jnp.float32).at[:Cin].set(he(ks[0], (Cin, Cm), Cin))
    w_dil = jnp.zeros((nd, 9, Cin_p, Cm), jnp.float32).at[:, :, :Cin].set(
        he(ks[1], (nd, 9, Cin, Cm), 9 * Cin)).reshape(nd, 9 * Cin_p, Cm)   # tap-major K
    w_pool = jnp.zeros((Cin_p, Cm), jnp.float32).at[:Cin].set(he(ks[2], (Cin, Cm), Cin))
    w_proj = he(ks[3], (nd + 2, Cm, Cm), (nd + 2) * Cm)                    # per-branch split

    # Head: 3x3 conv (tap-major K) + final 1x1 classifier (lane-padded output channels)
    w3 = he(ks[4], (9, Cm, Cm), 9 * Cm).reshape(9 * Cm, Cm)
    wf = jnp.zeros((Cm, Cop), jnp.float32).at[:, :Co].set(he(ks[5], (Cm, Co), Cm))
    bf = jnp.zeros((1, Cop), jnp.float32).at[:, :Co].set(
        jax.random.normal(ks[6], (Co,), jnp.float32) * 0.01)

    # Folded inference BatchNorm (gamma=1, beta=0, running_mean=0, running_var=1)
    bn_scale = 1.0 / math.sqrt(1.0 + eps)
    scales_aspp = jnp.full((nd + 3, Cm), bn_scale, jnp.float32)  # b0, dilated*, pool, project
    shifts_aspp = jnp.zeros((nd + 3, Cm), jnp.float32)
    scale_head = jnp.full((1, Cm), bn_scale, jnp.float32)
    shift_head = jnp.zeros((1, Cm), jnp.float32)

    bf16 = jnp.bfloat16
    return dict(
        w_b0=w_b0.astype(bf16), w_dil=w_dil.astype(bf16), w_pool=w_pool.astype(bf16),
        w_proj=w_proj.astype(bf16), w3=w3.astype(bf16), wf=wf.astype(bf16), bf=bf,
        scales_aspp=scales_aspp, shifts_aspp=shifts_aspp,
        scale_head=scale_head, shift_head=shift_head,
        out_channel=Co, cin_padded=Cin_p, dilations=tuple(aspp_dilate),
    )


def deeplabv3_decoder(feature, img_size, params):
    """Forward pass of DeepLabV3Decoder. Input NCHW feature map, output NCHW logits."""
    if isinstance(feature, (list, tuple)):
        feature = feature[-1]
    B, Cin, H, W = feature.shape
    Co = params["out_channel"]
    Cin_p = params["cin_padded"]

    # NCHW -> NHWC once at the boundary; lane-pad channels; bf16 halves HBM traffic.
    x = jnp.transpose(feature, (0, 2, 3, 1)).astype(jnp.bfloat16)
    if Cin_p != Cin:
        x = jnp.pad(x, ((0, 0), (0, 0), (0, 0), (0, Cin_p - Cin)))

    # One fused Pallas kernel: ASPP + projection + 3x3 head + BN + ReLU + 1x1 classifier.
    logits_p = decoder_fused(x, params, H, W)                    # (B, H, W, Cop) f32

    # Slice channel padding, transpose the SMALL pre-upsample tensor, then matmul-form
    # bilinear upsample to img_size (classifier stays before the upsample, as in the module).
    logits = jnp.transpose(logits_p[..., :Co], (0, 3, 1, 2))     # (B, Co, H, W)
    return bilinear_resize_nchw(logits, img_size[0], img_size[1])


if __name__ == "__main__":
    key = jax.random.PRNGKey(0)
    k_x, k_p = jax.random.split(key)

    B, Cin, H, W = 2, 32, 8, 8       # small backbone feature map
    out_channel = 21                 # e.g. Pascal-VOC classes
    img_size = (32, 32)              # target output resolution

    feature = jax.random.normal(k_x, (B, Cin, H, W), jnp.float32)   # NCHW, like PyTorch
    params = init_params(k_p, Cin, out_channel)

    out = deeplabv3_decoder(feature, img_size, params)
    jax.block_until_ready(out)
    assert out.shape == (B, out_channel, img_size[0], img_size[1]), out.shape
    assert bool(jnp.all(jnp.isfinite(out)))
    print("KERNEL_OK")
</pallas_src>

<mosaic_0001>
module attributes {stable_mosaic.version = 11 : i64} {
  func.func @_decoder_kernel(%arg0: i32, %arg1: memref<1x8x8x128xbf16, #tpu.memory_space<vmem>>, %arg2: memref<128x256xbf16, #tpu.memory_space<vmem>>, %arg3: memref<3x1152x256xbf16, #tpu.memory_space<vmem>>, %arg4: memref<128x256xbf16, #tpu.memory_space<vmem>>, %arg5: memref<5x256x256xbf16, #tpu.memory_space<vmem>>, %arg6: memref<6x256xf32, #tpu.memory_space<vmem>>, %arg7: memref<6x256xf32, #tpu.memory_space<vmem>>, %arg8: memref<2304x256xbf16, #tpu.memory_space<vmem>>, %arg9: memref<1x256xf32, #tpu.memory_space<vmem>>, %arg10: memref<1x256xf32, #tpu.memory_space<vmem>>, %arg11: memref<256x128xbf16, #tpu.memory_space<vmem>>, %arg12: memref<1x128xf32, #tpu.memory_space<vmem>>, %arg13: memref<1x8x8x128xf32, #tpu.memory_space<vmem>>, %arg14: memref<56x56x128xbf16, #tpu.memory_space<vmem>>, %arg15: memref<10x10x256xbf16, #tpu.memory_space<vmem>>) attributes {dimension_semantics = [#tpu.dimension_semantics<parallel>], iteration_bounds = array<i64: 2>, scalar_prefetch = 0 : i64, scratch_operands = 2 : i64, tpu.core_type = #tpu.core_type<tc>, window_params = [{transform_indices = @transform_0, window_bounds = array<i64: 1, 8, 8, 128>}, {pipeline_mode = #tpu.pipeline_mode<synchronous>, transform_indices = @transform_1, window_bounds = array<i64: 128, 256>}, {pipeline_mode = #tpu.pipeline_mode<synchronous>, transform_indices = @transform_2, window_bounds = array<i64: 3, 1152, 256>}, {pipeline_mode = #tpu.pipeline_mode<synchronous>, transform_indices = @transform_3, window_bounds = array<i64: 128, 256>}, {pipeline_mode = #tpu.pipeline_mode<synchronous>, transform_indices = @transform_4, window_bounds = array<i64: 5, 256, 256>}, {pipeline_mode = #tpu.pipeline_mode<synchronous>, transform_indices = @transform_5, window_bounds = array<i64: 6, 256>}, {pipeline_mode = #tpu.pipeline_mode<synchronous>, transform_indices = @transform_6, window_bounds = array<i64: 6, 256>}, {pipeline_mode = #tpu.pipeline_mode<synchronous>, transform_indices = @transform_7, window_bounds = array<i64: 2304, 256>}, {pipeline_mode = #tpu.pipeline_mode<synchronous>, transform_indices = @transform_8, window_bounds = array<i64: 1, 256>}, {pipeline_mode = #tpu.pipeline_mode<synchronous>, transform_indices = @transform_9, window_bounds = array<i64: 1, 256>}, {pipeline_mode = #tpu.pipeline_mode<synchronous>, transform_indices = @transform_10, window_bounds = array<i64: 256, 128>}, {pipeline_mode = #tpu.pipeline_mode<synchronous>, transform_indices = @transform_11, window_bounds = array<i64: 1, 128>}, {transform_indices = @transform_12, window_bounds = array<i64: 1, 8, 8, 128>}]} {
    %cst = arith.constant 0.000000e+00 : bf16
    %0 = vector.broadcast %cst : bf16 to vector<56x56x128xbf16>
    %c0 = arith.constant 0 : index
    %c0_0 = arith.constant 0 : index
    %c0_1 = arith.constant 0 : index
    %1 = vector.load %arg14[%c0, %c0_0, %c0_1] : memref<56x56x128xbf16, #tpu.memory_space<vmem>>, vector<56x56x128xbf16>
    tpu.vector_store %arg14[%c0, %c0_0, %c0_1], %0 {strides = array<i32>} : memref<56x56x128xbf16, #tpu.memory_space<vmem>>, vector<56x56x128xbf16>,
    %c0_2 = arith.constant 0 : index
    %c0_3 = arith.constant 0 : index
    %c0_4 = arith.constant 0 : index
    %c0_5 = arith.constant 0 : index
    %2 = vector.load %arg1[%c0_2, %c0_3, %c0_4, %c0_5] : memref<1x8x8x128xbf16, #tpu.memory_space<vmem>>, vector<1x8x8x128xbf16>
    %3 = vector.shape_cast %2 : vector<1x8x8x128xbf16> to vector<8x8x128xbf16>
    %c24 = arith.constant 24 : index
    %c24_6 = arith.constant 24 : index
    %c0_7 = arith.constant 0 : index
    %4 = vector.load %arg14[%c24, %c24_6, %c0_7] : memref<56x56x128xbf16, #tpu.memory_space<vmem>>, vector<8x8x128xbf16>
    tpu.vector_store %arg14[%c24, %c24_6, %c0_7], %3 {strides = array<i32>} : memref<56x56x128xbf16, #tpu.memory_space<vmem>>, vector<8x8x128xbf16>,
    %c0_8 = arith.constant 0 : index
    %c0_9 = arith.constant 0 : index
    %c0_10 = arith.constant 0 : index
    %c0_11 = arith.constant 0 : index
    %5 = vector.load %arg1[%c0_8, %c0_9, %c0_10, %c0_11] : memref<1x8x8x128xbf16, #tpu.memory_space<vmem>>, vector<1x8x8x128xbf16>
    %6 = vector.shape_cast %5 : vector<1x8x8x128xbf16> to vector<8x8x128xbf16>
    %7 = vector.shape_cast %6 : vector<8x8x128xbf16> to vector<64x128xbf16>
    %c0_12 = arith.constant 0 : index
    %c0_13 = arith.constant 0 : index
    %8 = vector.load %arg2[%c0_12, %c0_13] : memref<128x256xbf16, #tpu.memory_space<vmem>>, vector<128x256xbf16>
    %cst_14 = arith.constant dense<0.000000e+00> : vector<64x256xf32>
    %9 = tpu.matmul %7, %8, %cst_14 {dimension_numbers = #tpu.dot_dimension_numbers<[1], [0], [0], [1], [0, 0, 1, 1], [], []>} : vector<64x128xbf16>, vector<128x256xbf16>, vector<64x256xf32> -> vector<64x256xf32>
    %c0_15 = arith.constant 0 : index
    %c0_16 = arith.constant 0 : index
    %10 = vector.load %arg6[%c0_15, %c0_16] : memref<6x256xf32, #tpu.memory_space<vmem>>, vector<1x256xf32>
    %11 = vector.broadcast %10 : vector<1x256xf32> to vector<64x256xf32>
    %12 = arith.mulf %9, %11 : vector<64x256xf32>
    %c0_17 = arith.constant 0 : index
    %c0_18 = arith.constant 0 : index
    %13 = vector.load %arg7[%c0_17, %c0_18] : memref<6x256xf32, #tpu.memory_space<vmem>>, vector<1x256xf32>
    %14 = vector.broadcast %13 : vector<1x256xf32> to vector<64x256xf32>
    %15 = arith.addf %12, %14 : vector<64x256xf32>
    %cst_19 = arith.constant 0.000000e+00 : f32
    %16 = vector.broadcast %cst_19 : f32 to vector<64x256xf32>
    %17 = arith.maximumf %15, %16 : vector<64x256xf32>
    %18 = arith.truncf %17 : vector<64x256xf32> to vector<64x256xbf16>
    %c0_20 = arith.constant 0 : index
    %c0_21 = arith.constant 0 : index
    %c0_22 = arith.constant 0 : index
    %19 = vector.load %arg5[%c0_20, %c0_21, %c0_22] : memref<5x256x256xbf16, #tpu.memory_space<vmem>>, vector<1x256x256xbf16>
    %20 = vector.shape_cast %19 : vector<1x256x256xbf16> to vector<256x256xbf16>
    %cst_23 = arith.constant dense<0.000000e+00> : vector<64x256xf32>
    %21 = tpu.matmul %18, %20, %cst_23 {dimension_numbers = #tpu.dot_dimension_numbers<[1], [0], [0], [1], [0, 0, 1, 1], [], []>} : vector<64x256xbf16>, vector<256x256xbf16>, vector<64x256xf32> -> vector<64x256xf32>
    %c18 = arith.constant 18 : index
    %c18_24 = arith.constant 18 : index
    %c0_25 = arith.constant 0 : index
    %22 = vector.load %arg14[%c18, %c18_24, %c0_25] : memref<56x56x128xbf16, #tpu.memory_space<vmem>>, vector<8x8x128xbf16>
    %23 = vector.shape_cast %22 : vector<8x8x128xbf16> to vector<64x128xbf16>
    %c18_26 = arith.constant 18 : index
    %c24_27 = arith.constant 24 : index
    %c0_28 = arith.constant 0 : index
    %24 = vector.load %arg14[%c18_26, %c24_27, %c0_28] : memref<56x56x128xbf16, #tpu.memory_space<vmem>>, vector<8x8x128xbf16>
    %25 = vector.shape_cast %24 : vector<8x8x128xbf16> to vector<64x128xbf16>
    %c18_29 = arith.constant 18 : index
    %c30 = arith.constant 30 : index
    %c0_30 = arith.constant 0 : index
    %26 = vector.load %arg14[%c18_29, %c30, %c0_30] : memref<56x56x128xbf16, #tpu.memory_space<vmem>>, vector<8x8x128xbf16>
    %27 = vector.shape_cast %26 : vector<8x8x128xbf16> to vector<64x128xbf16>
    %c24_31 = arith.constant 24 : index
    %c18_32 = arith.constant 18 : index
    %c0_33 = arith.constant 0 : index
    %28 = vector.load %arg14[%c24_31, %c18_32, %c0_33] : memref<56x56x128xbf16, #tpu.memory_space<vmem>>, vector<8x8x128xbf16>
    %29 = vector.shape_cast %28 : vector<8x8x128xbf16> to vector<64x128xbf16>
    %c24_34 = arith.constant 24 : index
    %c24_35 = arith.constant 24 : index
    %c0_36 = arith.constant 0 : index
    %30 = vector.load %arg14[%c24_34, %c24_35, %c0_36] : memref<56x56x128xbf16, #tpu.memory_space<vmem>>, vector<8x8x128xbf16>
    %31 = vector.shape_cast %30 : vector<8x8x128xbf16> to vector<64x128xbf16>
    %c24_37 = arith.constant 24 : index
    %c30_38 = arith.constant 30 : index
    %c0_39 = arith.constant 0 : index
    %32 = vector.load %arg14[%c24_37, %c30_38, %c0_39] : memref<56x56x128xbf16, #tpu.memory_space<vmem>>, vector<8x8x128xbf16>
    %33 = vector.shape_cast %32 : vector<8x8x128xbf16> to vector<64x128xbf16>
    %c30_40 = arith.constant 30 : index
    %c18_41 = arith.constant 18 : index
    %c0_42 = arith.constant 0 : index
    %34 = vector.load %arg14[%c30_40, %c18_41, %c0_42] : memref<56x56x128xbf16, #tpu.memory_space<vmem>>, vector<8x8x128xbf16>
    %35 = vector.shape_cast %34 : vector<8x8x128xbf16> to vector<64x128xbf16>
    %c30_43 = arith.constant 30 : index
    %c24_44 = arith.constant 24 : index
    %c0_45 = arith.constant 0 : index
    %36 = vector.load %arg14[%c30_43, %c24_44, %c0_45] : memref<56x56x128xbf16, #tpu.memory_space<vmem>>, vector<8x8x128xbf16>
    %37 = vector.shape_cast %36 : vector<8x8x128xbf16> to vector<64x128xbf16>
    %c30_46 = arith.constant 30 : index
    %c30_47 = arith.constant 30 : index
    %c0_48 = arith.constant 0 : index
    %38 = vector.load %arg14[%c30_46, %c30_47, %c0_48] : memref<56x56x128xbf16, #tpu.memory_space<vmem>>, vector<8x8x128xbf16>
    %39 = vector.shape_cast %38 : vector<8x8x128xbf16> to vector<64x128xbf16>
    %40 = tpu.concatenate %23, %25, %27, %29, %31, %33, %35, %37, %39 in 1 : vector<64x128xbf16>, vector<64x128xbf16>, vector<64x128xbf16>, vector<64x128xbf16>, vector<64x128xbf16>, vector<64x128xbf16>, vector<64x128xbf16>, vector<64x128xbf16>, vector<64x128xbf16> -> vector<64x1152xbf16>
    %c0_49 = arith.constant 0 : index
    %c0_50 = arith.constant 0 : index
    %c0_51 = arith.constant 0 : index
    %41 = vector.load %arg3[%c0_49, %c0_50, %c0_51] : memref<3x1152x256xbf16, #tpu.memory_space<vmem>>, vector<1x1152x256xbf16>
    %42 = vector.shape_cast %41 : vector<1x1152x256xbf16> to vector<1152x256xbf16>
    %cst_52 = arith.constant dense<0.000000e+00> : vector<64x256xf32>
    %43 = tpu.matmul %40, %42, %cst_52 {dimension_numbers = #tpu.dot_dimension_numbers<[1], [0], [0], [1], [0, 0, 1, 1], [], []>} : vector<64x1152xbf16>, vector<1152x256xbf16>, vector<64x256xf32> -> vector<64x256xf32>
    %c1 = arith.constant 1 : index
    %c0_53 = arith.constant 0 : index
    %44 = vector.load %arg6[%c1, %c0_53] : memref<6x256xf32, #tpu.memory_space<vmem>>, vector<1x256xf32>
    %45 = vector.broadcast %44 : vector<1x256xf32> to vector<64x256xf32>
    %46 = arith.mulf %43, %45 : vector<64x256xf32>
    %c1_54 = arith.constant 1 : index
    %c0_55 = arith.constant 0 : index
    %47 = vector.load %arg7[%c1_54, %c0_55] : memref<6x256xf32, #tpu.memory_space<vmem>>, vector<1x256xf32>
    %48 = vector.broadcast %47 : vector<1x256xf32> to vector<64x256xf32>
    %49 = arith.addf %46, %48 : vector<64x256xf32>
    %cst_56 = arith.constant 0.000000e+00 : f32
    %50 = vector.broadcast %cst_56 : f32 to vector<64x256xf32>
    %51 = arith.maximumf %49, %50 : vector<64x256xf32>
    %52 = arith.truncf %51 : vector<64x256xf32> to vector<64x256xbf16>
    %c1_57 = arith.constant 1 : index
    %c0_58 = arith.constant 0 : index
    %c0_59 = arith.constant 0 : index
    %53 = vector.load %arg5[%c1_57, %c0_58, %c0_59] : memref<5x256x256xbf16, #tpu.memory_space<vmem>>, vector<1x256x256xbf16>
    %54 = vector.shape_cast %53 : vector<1x256x256xbf16> to vector<256x256xbf16>
    %cst_60 = arith.constant dense<0.000000e+00> : vector<64x256xf32>
    %55 = tpu.matmul %52, %54, %cst_60 {dimension_numbers = #tpu.dot_dimension_numbers<[1], [0], [0], [1], [0, 0, 1, 1], [], []>} : vector<64x256xbf16>, vector<256x256xbf16>, vector<64x256xf32> -> vector<64x256xf32>
    %56 = arith.addf %21, %55 : vector<64x256xf32>
    %c12 = arith.constant 12 : index
    %c12_61 = arith.constant 12 : index
    %c0_62 = arith.constant 0 : index
    %57 = vector.load %arg14[%c12, %c12_61, %c0_62] : memref<56x56x128xbf16, #tpu.memory_space<vmem>>, vector<8x8x128xbf16>
    %58 = vector.shape_cast %57 : vector<8x8x128xbf16> to vector<64x128xbf16>
    %c12_63 = arith.constant 12 : index
    %c24_64 = arith.constant 24 : index
    %c0_65 = arith.constant 0 : index
    %59 = vector.load %arg14[%c12_63, %c24_64, %c0_65] : memref<56x56x128xbf16, #tpu.memory_space<vmem>>, vector<8x8x128xbf16>
    %60 = vector.shape_cast %59 : vector<8x8x128xbf16> to vector<64x128xbf16>
    %c12_66 = arith.constant 12 : index
    %c36 = arith.constant 36 : index
    %c0_67 = arith.constant 0 : index
    %61 = vector.load %arg14[%c12_66, %c36, %c0_67] : memref<56x56x128xbf16, #tpu.memory_space<vmem>>, vector<8x8x128xbf16>
    %62 = vector.shape_cast %61 : vector<8x8x128xbf16> to vector<64x128xbf16>
    %c24_68 = arith.constant 24 : index
    %c12_69 = arith.constant 12 : index
    %c0_70 = arith.constant 0 : index
    %63 = vector.load %arg14[%c24_68, %c12_69, %c0_70] : memref<56x56x128xbf16, #tpu.memory_space<vmem>>, vector<8x8x128xbf16>
    %64 = vector.shape_cast %63 : vector<8x8x128xbf16> to vector<64x128xbf16>
    %c24_71 = arith.constant 24 : index
    %c24_72 = arith.constant 24 : index
    %c0_73 = arith.constant 0 : index
    %65 = vector.load %arg14[%c24_71, %c24_72, %c0_73] : memref<56x56x128xbf16, #tpu.memory_space<vmem>>, vector<8x8x128xbf16>
    %66 = vector.shape_cast %65 : vector<8x8x128xbf16> to vector<64x128xbf16>
    %c24_74 = arith.constant 24 : index
    %c36_75 = arith.constant 36 : index
    %c0_76 = arith.constant 0 : index
    %67 = vector.load %arg14[%c24_74, %c36_75, %c0_76] : memref<56x56x128xbf16, #tpu.memory_space<vmem>>, vector<8x8x128xbf16>
    %68 = vector.shape_cast %67 : vector<8x8x128xbf16> to vector<64x128xbf16>
    %c36_77 = arith.constant 36 : index
    %c12_78 = arith.constant 12 : index
    %c0_79 = arith.constant 0 : index
    %69 = vector.load %arg14[%c36_77, %c12_78, %c0_79] : memref<56x56x128xbf16, #tpu.memory_space<vmem>>, vector<8x8x128xbf16>
    %70 = vector.shape_cast %69 : vector<8x8x128xbf16> to vector<64x128xbf16>
    %c36_80 = arith.constant 36 : index
    %c24_81 = arith.constant 24 : index
    %c0_82 = arith.constant 0 : index
    %71 = vector.load %arg14[%c36_80, %c24_81, %c0_82] : memref<56x56x128xbf16, #tpu.memory_space<vmem>>, vector<8x8x128xbf16>
    %72 = vector.shape_cast %71 : vector<8x8x128xbf16> to vector<64x128xbf16>
    %c36_83 = arith.constant 36 : index
    %c36_84 = arith.constant 36 : index
    %c0_85 = arith.constant 0 : index
    %73 = vector.load %arg14[%c36_83, %c36_84, %c0_85] : memref<56x56x128xbf16, #tpu.memory_space<vmem>>, vector<8x8x128xbf16>
    %74 = vector.shape_cast %73 : vector<8x8x128xbf16> to vector<64x128xbf16>
    %75 = tpu.concatenate %58, %60, %62, %64, %66, %68, %70, %72, %74 in 1 : vector<64x128xbf16>, vector<64x128xbf16>, vector<64x128xbf16>, vector<64x128xbf16>, vector<64x128xbf16>, vector<64x128xbf16>, vector<64x128xbf16>, vector<64x128xbf16>, vector<64x128xbf16> -> vector<64x1152xbf16>
    %c1_86 = arith.constant 1 : index
    %c0_87 = arith.constant 0 : index
    %c0_88 = arith.constant 0 : index
    %76 = vector.load %arg3[%c1_86, %c0_87, %c0_88] : memref<3x1152x256xbf16, #tpu.memory_space<vmem>>, vector<1x1152x256xbf16>
    %77 = vector.shape_cast %76 : vector<1x1152x256xbf16> to vector<1152x256xbf16>
    %cst_89 = arith.constant dense<0.000000e+00> : vector<64x256xf32>
    %78 = tpu.matmul %75, %77, %cst_89 {dimension_numbers = #tpu.dot_dimension_numbers<[1], [0], [0], [1], [0, 0, 1, 1], [], []>} : vector<64x1152xbf16>, vector<1152x256xbf16>, vector<64x256xf32> -> vector<64x256xf32>
    %c2 = arith.constant 2 : index
    %c0_90 = arith.constant 0 : index
    %79 = vector.load %arg6[%c2, %c0_90] : memref<6x256xf32, #tpu.memory_space<vmem>>, vector<1x256xf32>
    %80 = vector.broadcast %79 : vector<1x256xf32> to vector<64x256xf32>
    %81 = arith.mulf %78, %80 : vector<64x256xf32>
    %c2_91 = arith.constant 2 : index
    %c0_92 = arith.constant 0 : index
    %82 = vector.load %arg7[%c2_91, %c0_92] : memref<6x256xf32, #tpu.memory_space<vmem>>, vector<1x256xf32>
    %83 = vector.broadcast %82 : vector<1x256xf32> to vector<64x256xf32>
    %84 = arith.addf %81, %83 : vector<64x256xf32>
    %cst_93 = arith.constant 0.000000e+00 : f32
    %85 = vector.broadcast %cst_93 : f32 to vector<64x256xf32>
    %86 = arith.maximumf %84, %85 : vector<64x256xf32>
    %87 = arith.truncf %86 : vector<64x256xf32> to vector<64x256xbf16>
    %c2_94 = arith.constant 2 : index
    %c0_95 = arith.constant 0 : index
    %c0_96 = arith.constant 0 : index
    %88 = vector.load %arg5[%c2_94, %c0_95, %c0_96] : memref<5x256x256xbf16, #tpu.memory_space<vmem>>, vector<1x256x256xbf16>
    %89 = vector.shape_cast %88 : vector<1x256x256xbf16> to vector<256x256xbf16>
    %cst_97 = arith.constant dense<0.000000e+00> : vector<64x256xf32>
    %90 = tpu.matmul %87, %89, %cst_97 {dimension_numbers = #tpu.dot_dimension_numbers<[1], [0], [0], [1], [0, 0, 1, 1], [], []>} : vector<64x256xbf16>, vector<256x256xbf16>, vector<64x256xf32> -> vector<64x256xf32>
    %91 = arith.addf %56, %90 : vector<64x256xf32>
    %c6 = arith.constant 6 : index
    %c6_98 = arith.constant 6 : index
    %c0_99 = arith.constant 0 : index
    %92 = vector.load %arg14[%c6, %c6_98, %c0_99] : memref<56x56x128xbf16, #tpu.memory_space<vmem>>, vector<8x8x128xbf16>
    %93 = vector.shape_cast %92 : vector<8x8x128xbf16> to vector<64x128xbf16>
    %c6_100 = arith.constant 6 : index
    %c24_101 = arith.constant 24 : index
    %c0_102 = arith.constant 0 : index
    %94 = vector.load %arg14[%c6_100, %c24_101, %c0_102] : memref<56x56x128xbf16, #tpu.memory_space<vmem>>, vector<8x8x128xbf16>
    %95 = vector.shape_cast %94 : vector<8x8x128xbf16> to vector<64x128xbf16>
    %c6_103 = arith.constant 6 : index
    %c42 = arith.constant 42 : index
    %c0_104 = arith.constant 0 : index
    %96 = vector.load %arg14[%c6_103, %c42, %c0_104] : memref<56x56x128xbf16, #tpu.memory_space<vmem>>, vector<8x8x128xbf16>
    %97 = vector.shape_cast %96 : vector<8x8x128xbf16> to vector<64x128xbf16>
    %c24_105 = arith.constant 24 : index
    %c6_106 = arith.constant 6 : index
    %c0_107 = arith.constant 0 : index
    %98 = vector.load %arg14[%c24_105, %c6_106, %c0_107] : memref<56x56x128xbf16, #tpu.memory_space<vmem>>, vector<8x8x128xbf16>
    %99 = vector.shape_cast %98 : vector<8x8x128xbf16> to vector<64x128xbf16>
    %c24_108 = arith.constant 24 : index
    %c24_109 = arith.constant 24 : index
    %c0_110 = arith.constant 0 : index
    %100 = vector.load %arg14[%c24_108, %c24_109, %c0_110] : memref<56x56x128xbf16, #tpu.memory_space<vmem>>, vector<8x8x128xbf16>
    %101 = vector.shape_cast %100 : vector<8x8x128xbf16> to vector<64x128xbf16>
    %c24_111 = arith.constant 24 : index
    %c42_112 = arith.constant 42 : index
    %c0_113 = arith.constant 0 : index
    %102 = vector.load %arg14[%c24_111, %c42_112, %c0_113] : memref<56x56x128xbf16, #tpu.memory_space<vmem>>, vector<8x8x128xbf16>
    %103 = vector.shape_cast %102 : vector<8x8x128xbf16> to vector<64x128xbf16>
    %c42_114 = arith.constant 42 : index
    %c6_115 = arith.constant 6 : index
    %c0_116 = arith.constant 0 : index
    %104 = vector.load %arg14[%c42_114, %c6_115, %c0_116] : memref<56x56x128xbf16, #tpu.memory_space<vmem>>, vector<8x8x128xbf16>
    %105 = vector.shape_cast %104 : vector<8x8x128xbf16> to vector<64x128xbf16>
    %c42_117 = arith.constant 42 : index
    %c24_118 = arith.constant 24 : index
    %c0_119 = arith.constant 0 : index
    %106 = vector.load %arg14[%c42_117, %c24_118, %c0_119] : memref<56x56x128xbf16, #tpu.memory_space<vmem>>, vector<8x8x128xbf16>
    %107 = vector.shape_cast %106 : vector<8x8x128xbf16> to vector<64x128xbf16>
    %c42_120 = arith.constant 42 : index
    %c42_121 = arith.constant 42 : index
    %c0_122 = arith.constant 0 : index
    %108 = vector.load %arg14[%c42_120, %c42_121, %c0_122] : memref<56x56x128xbf16, #tpu.memory_space<vmem>>, vector<8x8x128xbf16>
    %109 = vector.shape_cast %108 : vector<8x8x128xbf16> to vector<64x128xbf16>
    %110 = tpu.concatenate %93, %95, %97, %99, %101, %103, %105, %107, %109 in 1 : vector<64x128xbf16>, vector<64x128xbf16>, vector<64x128xbf16>, vector<64x128xbf16>, vector<64x128xbf16>, vector<64x128xbf16>, vector<64x128xbf16>, vector<64x128xbf16>, vector<64x128xbf16> -> vector<64x1152xbf16>
    %c2_123 = arith.constant 2 : index
    %c0_124 = arith.constant 0 : index
    %c0_125 = arith.constant 0 : index
    %111 = vector.load %arg3[%c2_123, %c0_124, %c0_125] : memref<3x1152x256xbf16, #tpu.memory_space<vmem>>, vector<1x1152x256xbf16>
    %112 = vector.shape_cast %111 : vector<1x1152x256xbf16> to vector<1152x256xbf16>
    %cst_126 = arith.constant dense<0.000000e+00> : vector<64x256xf32>
    %113 = tpu.matmul %110, %112, %cst_126 {dimension_numbers = #tpu.dot_dimension_numbers<[1], [0], [0], [1], [0, 0, 1, 1], [], []>} : vector<64x1152xbf16>, vector<1152x256xbf16>, vector<64x256xf32> -> vector<64x256xf32>
    %c3 = arith.constant 3 : index
    %c0_127 = arith.constant 0 : index
    %114 = vector.load %arg6[%c3, %c0_127] : memref<6x256xf32, #tpu.memory_space<vmem>>, vector<1x256xf32>
    %115 = vector.broadcast %114 : vector<1x256xf32> to vector<64x256xf32>
    %116 = arith.mulf %113, %115 : vector<64x256xf32>
    %c3_128 = arith.constant 3 : index
    %c0_129 = arith.constant 0 : index
    %117 = vector.load %arg7[%c3_128, %c0_129] : memref<6x256xf32, #tpu.memory_space<vmem>>, vector<1x256xf32>
    %118 = vector.broadcast %117 : vector<1x256xf32> to vector<64x256xf32>
    %119 = arith.addf %116, %118 : vector<64x256xf32>
    %cst_130 = arith.constant 0.000000e+00 : f32
    %120 = vector.broadcast %cst_130 : f32 to vector<64x256xf32>
    %121 = arith.maximumf %119, %120 : vector<64x256xf32>
    %122 = arith.truncf %121 : vector<64x256xf32> to vector<64x256xbf16>
    %c3_131 = arith.constant 3 : index
    %c0_132 = arith.constant 0 : index
    %c0_133 = arith.constant 0 : index
    %123 = vector.load %arg5[%c3_131, %c0_132, %c0_133] : memref<5x256x256xbf16, #tpu.memory_space<vmem>>, vector<1x256x256xbf16>
    %124 = vector.shape_cast %123 : vector<1x256x256xbf16> to vector<256x256xbf16>
    %cst_134 = arith.constant dense<0.000000e+00> : vector<64x256xf32>
    %125 = tpu.matmul %122, %124, %cst_134 {dimension_numbers = #tpu.dot_dimension_numbers<[1], [0], [0], [1], [0, 0, 1, 1], [], []>} : vector<64x256xbf16>, vector<256x256xbf16>, vector<64x256xf32> -> vector<64x256xf32>
    %126 = arith.addf %91, %125 : vector<64x256xf32>
    %127 = arith.extf %7 : vector<64x128xbf16> to vector<64x128xf32>
    %cst_135 = arith.constant dense<0.000000e+00> : vector<128xf32>
    %128 = vector.multi_reduction <add>, %127, %cst_135 [0] : vector<64x128xf32> to vector<128xf32>
    %129 = vector.shape_cast %128 : vector<128xf32> to vector<1x128xf32>
    %cst_136 = arith.constant 6.400000e+01 : f32
    %130 = vector.broadcast %cst_136 : f32 to vector<1x128xf32>
    %131 = arith.divf %129, %130 : vector<1x128xf32>
    %132 = arith.truncf %131 : vector<1x128xf32> to vector<1x128xbf16>
    %c0_137 = arith.constant 0 : index
    %c0_138 = arith.constant 0 : index
    %133 = vector.load %arg4[%c0_137, %c0_138] : memref<128x256xbf16, #tpu.memory_space<vmem>>, vector<128x256xbf16>
    %cst_139 = arith.constant dense<0.000000e+00> : vector<1x256xf32>
    %134 = tpu.matmul %132, %133, %cst_139 {dimension_numbers = #tpu.dot_dimension_numbers<[1], [0], [0], [1], [0, 0, 1, 1], [], []>} : vector<1x128xbf16>, vector<128x256xbf16>, vector<1x256xf32> -> vector<1x256xf32>
    %c4 = arith.constant 4 : index
    %c0_140 = arith.constant 0 : index
    %135 = vector.load %arg6[%c4, %c0_140] : memref<6x256xf32, #tpu.memory_space<vmem>>, vector<1x256xf32>
    %136 = arith.mulf %134, %135 : vector<1x256xf32>
    %c4_141 = arith.constant 4 : index
    %c0_142 = arith.constant 0 : index
    %137 = vector.load %arg7[%c4_141, %c0_142] : memref<6x256xf32, #tpu.memory_space<vmem>>, vector<1x256xf32>
    %138 = arith.addf %136, %137 : vector<1x256xf32>
    %cst_143 = arith.constant 0.000000e+00 : f32
    %139 = vector.broadcast %cst_143 : f32 to vector<1x256xf32>
    %140 = arith.maximumf %138, %139 : vector<1x256xf32>
    %141 = arith.truncf %140 : vector<1x256xf32> to vector<1x256xbf16>
    %c4_144 = arith.constant 4 : index
    %c0_145 = arith.constant 0 : index
    %c0_146 = arith.constant 0 : index
    %142 = vector.load %arg5[%c4_144, %c0_145, %c0_146] : memref<5x256x256xbf16, #tpu.memory_space<vmem>>, vector<1x256x256xbf16>
    %143 = vector.shape_cast %142 : vector<1x256x256xbf16> to vector<256x256xbf16>
    %cst_147 = arith.constant dense<0.000000e+00> : vector<1x256xf32>
    %144 = tpu.matmul %141, %143, %cst_147 {dimension_numbers = #tpu.dot_dimension_numbers<[1], [0], [0], [1], [0, 0, 1, 1], [], []>} : vector<1x256xbf16>, vector<256x256xbf16>, vector<1x256xf32> -> vector<1x256xf32>
    %145 = vector.broadcast %144 : vector<1x256xf32> to vector<64x256xf32>
    %146 = arith.addf %126, %145 : vector<64x256xf32>
    %c5 = arith.constant 5 : index
    %c0_148 = arith.constant 0 : index
    %147 = vector.load %arg6[%c5, %c0_148] : memref<6x256xf32, #tpu.memory_space<vmem>>, vector<1x256xf32>
    %148 = vector.broadcast %147 : vector<1x256xf32> to vector<64x256xf32>
    %149 = arith.mulf %146, %148 : vector<64x256xf32>
    %c5_149 = arith.constant 5 : index
    %c0_150 = arith.constant 0 : index
    %150 = vector.load %arg7[%c5_149, %c0_150] : memref<6x256xf32, #tpu.memory_space<vmem>>, vector<1x256xf32>
    %151 = vector.broadcast %150 : vector<1x256xf32> to vector<64x256xf32>
    %152 = arith.addf %149, %151 : vector<64x256xf32>
    %cst_151 = arith.constant 0.000000e+00 : f32
    %153 = vector.broadcast %cst_151 : f32 to vector<64x256xf32>
    %154 = arith.maximumf %152, %153 : vector<64x256xf32>
    %cst_152 = arith.constant 0.000000e+00 : bf16
    %155 = vector.broadcast %cst_152 : bf16 to vector<10x10x256xbf16>
    %c0_153 = arith.constant 0 : index
    %c0_154 = arith.constant 0 : index
    %c0_155 = arith.constant 0 : index
    %156 = vector.load %arg15[%c0_153, %c0_154, %c0_155] : memref<10x10x256xbf16, #tpu.memory_space<vmem>>, vector<10x10x256xbf16>
    tpu.vector_store %arg15[%c0_153, %c0_154, %c0_155], %155 {strides = array<i32>} : memref<10x10x256xbf16, #tpu.memory_space<vmem>>, vector<10x10x256xbf16>,
    %157 = vector.shape_cast %154 : vector<64x256xf32> to vector<8x8x256xf32>
    %158 = arith.truncf %157 : vector<8x8x256xf32> to vector<8x8x256xbf16>
    %c1_156 = arith.constant 1 : index
    %c1_157 = arith.constant 1 : index
    %c0_158 = arith.constant 0 : index
    %159 = vector.load %arg15[%c1_156, %c1_157, %c0_158] : memref<10x10x256xbf16, #tpu.memory_space<vmem>>, vector<8x8x256xbf16>
    tpu.vector_store %arg15[%c1_156, %c1_157, %c0_158], %158 {strides = array<i32>} : memref<10x10x256xbf16, #tpu.memory_space<vmem>>, vector<8x8x256xbf16>,
    %c0_159 = arith.constant 0 : index
    %c0_160 = arith.constant 0 : index
    %c0_161 = arith.constant 0 : index
    %160 = vector.load %arg15[%c0_159, %c0_160, %c0_161] : memref<10x10x256xbf16, #tpu.memory_space<vmem>>, vector<8x8x256xbf16>
    %161 = vector.shape_cast %160 : vector<8x8x256xbf16> to vector<64x256xbf16>
    %c0_162 = arith.constant 0 : index
    %c1_163 = arith.constant 1 : index
    %c0_164 = arith.constant 0 : index
    %162 = vector.load %arg15[%c0_162, %c1_163, %c0_164] : memref<10x10x256xbf16, #tpu.memory_space<vmem>>, vector<8x8x256xbf16>
    %163 = vector.shape_cast %162 : vector<8x8x256xbf16> to vector<64x256xbf16>
    %c0_165 = arith.constant 0 : index
    %c2_166 = arith.constant 2 : index
    %c0_167 = arith.constant 0 : index
    %164 = vector.load %arg15[%c0_165, %c2_166, %c0_167] : memref<10x10x256xbf16, #tpu.memory_space<vmem>>, vector<8x8x256xbf16>
    %165 = vector.shape_cast %164 : vector<8x8x256xbf16> to vector<64x256xbf16>
    %c1_168 = arith.constant 1 : index
    %c0_169 = arith.constant 0 : index
    %c0_170 = arith.constant 0 : index
    %166 = vector.load %arg15[%c1_168, %c0_169, %c0_170] : memref<10x10x256xbf16, #tpu.memory_space<vmem>>, vector<8x8x256xbf16>
    %167 = vector.shape_cast %166 : vector<8x8x256xbf16> to vector<64x256xbf16>
    %c1_171 = arith.constant 1 : index
    %c1_172 = arith.constant 1 : index
    %c0_173 = arith.constant 0 : index
    %168 = vector.load %arg15[%c1_171, %c1_172, %c0_173] : memref<10x10x256xbf16, #tpu.memory_space<vmem>>, vector<8x8x256xbf16>
    %169 = vector.shape_cast %168 : vector<8x8x256xbf16> to vector<64x256xbf16>
    %c1_174 = arith.constant 1 : index
    %c2_175 = arith.constant 2 : index
    %c0_176 = arith.constant 0 : index
    %170 = vector.load %arg15[%c1_174, %c2_175, %c0_176] : memref<10x10x256xbf16, #tpu.memory_space<vmem>>, vector<8x8x256xbf16>
    %171 = vector.shape_cast %170 : vector<8x8x256xbf16> to vector<64x256xbf16>
    %c2_177 = arith.constant 2 : index
    %c0_178 = arith.constant 0 : index
    %c0_179 = arith.constant 0 : index
    %172 = vector.load %arg15[%c2_177, %c0_178, %c0_179] : memref<10x10x256xbf16, #tpu.memory_space<vmem>>, vector<8x8x256xbf16>
    %173 = vector.shape_cast %172 : vector<8x8x256xbf16> to vector<64x256xbf16>
    %c2_180 = arith.constant 2 : index
    %c1_181 = arith.constant 1 : index
    %c0_182 = arith.constant 0 : index
    %174 = vector.load %arg15[%c2_180, %c1_181, %c0_182] : memref<10x10x256xbf16, #tpu.memory_space<vmem>>, vector<8x8x256xbf16>
    %175 = vector.shape_cast %174 : vector<8x8x256xbf16> to vector<64x256xbf16>
    %c2_183 = arith.constant 2 : index
    %c2_184 = arith.constant 2 : index
    %c0_185 = arith.constant 0 : index
    %176 = vector.load %arg15[%c2_183, %c2_184, %c0_185] : memref<10x10x256xbf16, #tpu.memory_space<vmem>>, vector<8x8x256xbf16>
    %177 = vector.shape_cast %176 : vector<8x8x256xbf16> to vector<64x256xbf16>
    %178 = tpu.concatenate %161, %163, %165, %167, %169, %171, %173, %175, %177 in 1 : vector<64x256xbf16>, vector<64x256xbf16>, vector<64x256xbf16>, vector<64x256xbf16>, vector<64x256xbf16>, vector<64x256xbf16>, vector<64x256xbf16>, vector<64x256xbf16>, vector<64x256xbf16> -> vector<64x2304xbf16>
    %c0_186 = arith.constant 0 : index
    %c0_187 = arith.constant 0 : index
    %179 = vector.load %arg8[%c0_186, %c0_187] : memref<2304x256xbf16, #tpu.memory_space<vmem>>, vector<2304x256xbf16>
    %cst_188 = arith.constant dense<0.000000e+00> : vector<64x256xf32>
    %180 = tpu.matmul %178, %179, %cst_188 {dimension_numbers = #tpu.dot_dimension_numbers<[1], [0], [0], [1], [0, 0, 1, 1], [], []>} : vector<64x2304xbf16>, vector<2304x256xbf16>, vector<64x256xf32> -> vector<64x256xf32>
    %c0_189 = arith.constant 0 : index
    %c0_190 = arith.constant 0 : index
    %181 = vector.load %arg9[%c0_189, %c0_190] : memref<1x256xf32, #tpu.memory_space<vmem>>, vector<1x256xf32>
    %182 = vector.broadcast %181 : vector<1x256xf32> to vector<64x256xf32>
    %183 = arith.mulf %180, %182 : vector<64x256xf32>
    %c0_191 = arith.constant 0 : index
    %c0_192 = arith.constant 0 : index
    %184 = vector.load %arg10[%c0_191, %c0_192] : memref<1x256xf32, #tpu.memory_space<vmem>>, vector<1x256xf32>
    %185 = vector.broadcast %184 : vector<1x256xf32> to vector<64x256xf32>
    %186 = arith.addf %183, %185 : vector<64x256xf32>
    %cst_193 = arith.constant 0.000000e+00 : f32
    %187 = vector.broadcast %cst_193 : f32 to vector<64x256xf32>
    %188 = arith.maximumf %186, %187 : vector<64x256xf32>
    %189 = arith.truncf %188 : vector<64x256xf32> to vector<64x256xbf16>
    %c0_194 = arith.constant 0 : index
    %c0_195 = arith.constant 0 : index
    %190 = vector.load %arg11[%c0_194, %c0_195] : memref<256x128xbf16, #tpu.memory_space<vmem>>, vector<256x128xbf16>
    %cst_196 = arith.constant dense<0.000000e+00> : vector<64x128xf32>
    %191 = tpu.matmul %189, %190, %cst_196 {dimension_numbers = #tpu.dot_dimension_numbers<[1], [0], [0], [1], [0, 0, 1, 1], [], []>} : vector<64x256xbf16>, vector<256x128xbf16>, vector<64x128xf32> -> vector<64x128xf32>
    %c0_197 = arith.constant 0 : index
    %c0_198 = arith.constant 0 : index
    %192 = vector.load %arg12[%c0_197, %c0_198] : memref<1x128xf32, #tpu.memory_space<vmem>>, vector<1x128xf32>
    %193 = vector.broadcast %192 : vector<1x128xf32> to vector<64x128xf32>
    %194 = arith.addf %191, %193 : vector<64x128xf32>
    %195 = vector.shape_cast %194 : vector<64x128xf32> to vector<8x8x128xf32>
    %c0_199 = arith.constant 0 : index
    %c0_200 = arith.constant 0 : index
    %c0_201 = arith.constant 0 : index
    %c0_202 = arith.constant 0 : index
    %196 = vector.load %arg13[%c0_199, %c0_200, %c0_201, %c0_202] : memref<1x8x8x128xf32, #tpu.memory_space<vmem>>, vector<1x8x8x128xf32>
    %197 = vector.shape_cast %196 : vector<1x8x8x128xf32> to vector<8x8x128xf32>
    %198 = vector.shape_cast %195 : vector<8x8x128xf32> to vector<1x8x8x128xf32>
    tpu.vector_store %arg13[%c0_199, %c0_200, %c0_201, %c0_202], %198 {strides = array<i32>} : memref<1x8x8x128xf32, #tpu.memory_space<vmem>>, vector<1x8x8x128xf32>,
    return
  }
  func.func @transform_0(%arg0: i32) -> (i32, i32, i32, i32) {
    %c0_i32 = arith.constant 0 : i32
    %c0_i32_0 = arith.constant 0 : i32
    %c0_i32_1 = arith.constant 0 : i32
    %c0_i32_2 = arith.constant 0 : i32
    return %arg0, %c0_i32, %c0_i32_0, %c0_i32_1 : i32, i32, i32, i32
  }
  func.func @transform_1(%arg0: i32) -> (i32, i32) {
    %c0_i32 = arith.constant 0 : i32
    %c0_i32_0 = arith.constant 0 : i32
    %c0_i32_1 = arith.constant 0 : i32
    return %c0_i32, %c0_i32_0 : i32, i32
  }
  func.func @transform_2(%arg0: i32) -> (i32, i32, i32) {
    %c0_i32 = arith.constant 0 : i32
    %c0_i32_0 = arith.constant 0 : i32
    %c0_i32_1 = arith.constant 0 : i32
    %c0_i32_2 = arith.constant 0 : i32
    return %c0_i32, %c0_i32_0, %c0_i32_1 : i32, i32, i32
  }
  func.func @transform_3(%arg0: i32) -> (i32, i32) {
    %c0_i32 = arith.constant 0 : i32
    %c0_i32_0 = arith.constant 0 : i32
    %c0_i32_1 = arith.constant 0 : i32
    return %c0_i32, %c0_i32_0 : i32, i32
  }
  func.func @transform_4(%arg0: i32) -> (i32, i32, i32) {
    %c0_i32 = arith.constant 0 : i32
    %c0_i32_0 = arith.constant 0 : i32
    %c0_i32_1 = arith.constant 0 : i32
    %c0_i32_2 = arith.constant 0 : i32
    return %c0_i32, %c0_i32_0, %c0_i32_1 : i32, i32, i32
  }
  func.func @transform_5(%arg0: i32) -> (i32, i32) {
    %c0_i32 = arith.constant 0 : i32
    %c0_i32_0 = arith.constant 0 : i32
    %c0_i32_1 = arith.constant 0 : i32
    return %c0_i32, %c0_i32_0 : i32, i32
  }
  func.func @transform_6(%arg0: i32) -> (i32, i32) {
    %c0_i32 = arith.constant 0 : i32
    %c0_i32_0 = arith.constant 0 : i32
    %c0_i32_1 = arith.constant 0 : i32
    return %c0_i32, %c0_i32_0 : i32, i32
  }
  func.func @transform_7(%arg0: i32) -> (i32, i32) {
    %c0_i32 = arith.constant 0 : i32
    %c0_i32_0 = arith.constant 0 : i32
    %c0_i32_1 = arith.constant 0 : i32
    return %c0_i32, %c0_i32_0 : i32, i32
  }
  func.func @transform_8(%arg0: i32) -> (i32, i32) {
    %c0_i32 = arith.constant 0 : i32
    %c0_i32_0 = arith.constant 0 : i32
    %c0_i32_1 = arith.constant 0 : i32
    return %c0_i32, %c0_i32_0 : i32, i32
  }
  func.func @transform_9(%arg0: i32) -> (i32, i32) {
    %c0_i32 = arith.constant 0 : i32
    %c0_i32_0 = arith.constant 0 : i32
    %c0_i32_1 = arith.constant 0 : i32
    return %c0_i32, %c0_i32_0 : i32, i32
  }
  func.func @transform_10(%arg0: i32) -> (i32, i32) {
    %c0_i32 = arith.constant 0 : i32
    %c0_i32_0 = arith.constant 0 : i32
    %c0_i32_1 = arith.constant 0 : i32
    return %c0_i32, %c0_i32_0 : i32, i32
  }
  func.func @transform_11(%arg0: i32) -> (i32, i32) {
    %c0_i32 = arith.constant 0 : i32
    %c0_i32_0 = arith.constant 0 : i32
    %c0_i32_1 = arith.constant 0 : i32
    return %c0_i32, %c0_i32_0 : i32, i32
  }
  func.func @transform_12(%arg0: i32) -> (i32, i32, i32, i32) {
    %c0_i32 = arith.constant 0 : i32
    %c0_i32_0 = arith.constant 0 : i32
    %c0_i32_1 = arith.constant 0 : i32
    %c0_i32_2 = arith.constant 0 : i32
    return %arg0, %c0_i32, %c0_i32_0, %c0_i32_1 : i32, i32, i32, i32
  }
}

</mosaic_0001>

<bundles_post_ra>
// kernel: tpu_custom_call.1
= control target key start
LH: loop header
LB: loop body
LE: loop exit
PB: predicated region body
PF: predicated region fallthrough
CT: control target
= control target key end

     0   :  { %s18532_s0 = inlined_call_operand.hbm [shape: bf16[2,8,8,128], index: 0, kind: input, shape index: {}]   ;;  %s18533_s1 = inlined_call_operand.hbm [shape: bf16[128,256], index: 1, kind: input, shape index: {}]   ;;  %s18534_s2 = inlined_call_operand.hbm [shape: bf16[3,1152,256], index: 2, kind: input, shape index: {}]   ;;  %s18535_s3 = inlined_call_operand.hbm [shape: bf16[128,256], index: 3, kind: input, shape index: {}]   ;;  %s18536_s4 = inlined_call_operand.hbm [shape: bf16[5,256,256], index: 4, kind: input, shape index: {}]   ;;  %s18537_s5 = inlined_call_operand.hbm [shape: f32[6,256], index: 5, kind: input, shape index: {}]   ;;  %s18538_s6 = inlined_call_operand.hbm [shape: f32[6,256], index: 6, kind: input, shape index: {}]   ;;  %s18539_s7 = inlined_call_operand.hbm [shape: bf16[2304,256], index: 7, kind: input, shape index: {}]   ;;  %s18540_s8 = inlined_call_operand.hbm [shape: f32[1,256], index: 8, kind: input, shape index: {}]   ;;  %s18541_s9 = inlined_call_operand.hbm [shape: f32[1,256], index: 9, kind: input, shape index: {}]   ;;  %s18542_s10 = inlined_call_operand.hbm [shape: bf16[256,128], index: 10, kind: input, shape index: {}]   ;;  %s18543_s11 = inlined_call_operand.hbm [shape: f32[1,128], index: 11, kind: input, shape index: {}]   ;;  %s18544_s12 = inlined_call_operand.hbm [shape: f32[2,8,8,128], index: 12, kind: output, shape index: {}]  }
   0x1   :  { %18577 = sst [smem:[#allocation45_spill]] %s18532_s0 }
   0x2   :  { %18578 = sst [smem:[#allocation46_spill]] %s18533_s1 }
   0x3   :  { %18579 = sst [smem:[#allocation47_spill]] %s18534_s2 }
   0x4   :  { %18580 = sst [smem:[#allocation48_spill]] %s18544_s12 }
   0x5   :  { %17 = vsyncpa [#allocation5], 0 }
   0x6   :  { %19 = vsyncpa [#allocation5 + $0x1], 0 }
   0x7   :  { %20 = vsyncpa [#allocation8], 0 }
   0x8   :  { %21 = vsyncpa [#allocation11], 0 }
   0x9   :  { %22 = vsyncpa [#allocation14], 0 }
   0xa   :  { %23 = vsyncpa [#allocation17], 0 }
   0xb   :  { %24 = vsyncpa [#allocation20], 0 }
   0xc   :  { %25 = vsyncpa [#allocation23], 0 }
   0xd   :  { %26 = vsyncpa [#allocation6], 0 }
   0xe   :  { %28 = vsyncpa [#allocation6 + $0x1], 0  ;;  %s16319_s21 = smov 0   ;;  %s16321_s22 = smov 0  }
   0xf   :  { %s16323_s23 = smov 0   ;;  %s16325_s24 = smov 0  }
  0x10 LB: > { %s16234_s25 = smov [#allocation7]   ;;  %s16340_s27 = sadd.s32 4294967295, %s16232_s24   ;;  %s16232_s24 = sphi %s16325_s24, %s18706_s24   ;;  %s16228_s23 = sphi %s16323_s23, %s18705_s23   ;;  %s16224_s22 = sphi %s16321_s22, %s18704_s22   ;;  %s16220_s21 = sphi %s16319_s21, %s18703_s21  }
  0x11   : > { %s334_s26 = sshll.u32 %s16234_s25, 4  ;;  %18581 = sst [smem:[#allocation33_spill]] %s16340_s27  ;;  %s16345_s26 = int_to_ptr.vmem [resolvable:$true] %s334_s26 }
  0x12   : > { %p12460_p0 = scmp.ge.s32.totalorder %s16232_s24, 1  ;;  %p18553_p1 = scmp.eq.s32.totalorder %s16340_s27, 0 }
  0x13   : > { %p322_p2 = scmp.lt.s32.totalorder %s16232_s24, 3  ;;  %s16235_s29 = smov [#allocation10]  }
  0x14   : > { %s360_s30 = sshll.u32 %s16235_s29, 4  ;;  %s16236_s14 = smov [#allocation13]   ;;  %s16360_s30 = int_to_ptr.vmem [resolvable:$true] %s360_s30 }
  0x15   : > { %p16347_p3 = pnand %p12460_p0, %p322_p2  ;;  %s387_s15 = sshll.u32 %s16236_s14, 4  ;;  %s16362_s15 = int_to_ptr.vmem [resolvable:$true] %s387_s15 }
  0x16   : > { %s18585_s1 = sld [smem:[#allocation46_spill]] }
  0x17   : > { %s18582_s28 = scalar_select %p16347_p3, 1, 0 }
  0x18   : > { %p14242_p5 = pneg %p16347_p3 }
  0x19   : > { %18583 = sst [smem:[#allocation34_spill]] %s18582_s28 }
  0x1a   : > { %p16356_p6 = pnand %p14242_p5, %p18553_p1 }
  0x1c   : > { %s15804_s18 = scalar_lea.hbm %s18585_s1, 2048  ;;  %p16372_p8 = pneg %p16356_p6 }
  0x1d   : > { %p15805_p7 = scmp.ne.s32.totalorder %s18585_s1, %s15804_s18  ;;  %p15811_p11 = scmp.lt.u32.totalorder %s15804_s18, %s18585_s1 }
  0x1f   : > { %p15807_p9 = pnand %p16372_p8, %p15805_p7 }
  0x21   : > { %p15808_p10 = pneg %p15807_p9 }
  0x23   : > { %p15813_p12 = pnand %p15811_p11, %p15808_p10 }
  0x25   : > { %15816 = shalt.err (!%p15813_p12)
}
  0x26   : > { %s15817_s16 = scalar_lea.vmem %s16345_s26, 2048  ;;  %p15825_p5 = scmp.lt.s32.totalorder %s16345_s26, %s16345_s26 }
  0x27   : > { %p15818_p13 = scmp.ne.s32.totalorder %s16345_s26, %s15817_s16  ;;  %p15826_p4 = scmp.lt.s32.totalorder %s15817_s16, %s15817_s16 }
  0x29   : > { %p15820_p0 = pnand %p15818_p13, %p16372_p8  ;;  %p15827_p7 = por %p15826_p4, %p15825_p5 }
  0x2b   : > { %p15821_p2 = pneg %p15820_p0 }
  0x2d   : > { %p15828_p9 = pnand %p15827_p7, %p15821_p2 }
  0x2f   : > { %15831 = shalt.err (!%p15828_p9)
}
  0x30   : > { %s18551_s17 = smov 128   ;;  %s18555_s18 = smov 8  }
  0x31   : > { %14245 = dma.hbm_to_vmem [thread:$0]  (!%p16356_p6), %s18585_s1, 2048, %s16345_s26, [#allocation8], %s18551_s17, %s18551_s17, %s18555_s18  }
  0x32   : > { %s15832_s16 = scalar_lea.hbm %s18535_s3, 2048 }
  0x33   : > { %p15833_p4 = scmp.ne.s32.totalorder %s18535_s3, %s15832_s16  ;;  %p15839_p12 = scmp.lt.u32.totalorder %s15832_s16, %s18535_s3 }
  0x35   : > { %p15835_p10 = pnand %p15833_p4, %p16372_p8 }
  0x37   : > { %p15836_p11 = pneg %p15835_p10 }
  0x39   : > { %p15841_p13 = pnand %p15839_p12, %p15836_p11 }
  0x3b   : > { %15844 = shalt.err (!%p15841_p13)
}
  0x3c   : > { %s15845_s26 = scalar_lea.vmem %s16360_s30, 2048  ;;  %p15853_p7 = scmp.lt.s32.totalorder %s16360_s30, %s16360_s30 }
  0x3d   : > { %p15846_p0 = scmp.ne.s32.totalorder %s16360_s30, %s15845_s26  ;;  %p15854_p9 = scmp.lt.s32.totalorder %s15845_s26, %s15845_s26 }
  0x3f   : > { %p15848_p2 = pnand %p15846_p0, %p16372_p8  ;;  %p15855_p4 = por %p15854_p9, %p15853_p7 }
  0x41   : > { %p15849_p5 = pneg %p15848_p2 }
  0x43   : > { %p15856_p10 = pnand %p15855_p4, %p15849_p5 }
  0x45   : > { %15859 = shalt.err (!%p15856_p10)
}
  0x46   : > { %14251 = dma.hbm_to_vmem [thread:$0]  (!%p16356_p6), %s18535_s3, 2048, %s16360_s30, [#allocation11], %s18551_s17, %s18551_s17, %s18555_s18  }
  0x47   : > { %s15860_s19 = scalar_lea.hbm %s18537_s5, 256 }
  0x48   : > { %p15861_p11 = scmp.ne.s32.totalorder %s18537_s5, %s15860_s19  ;;  %p15867_p0 = scmp.lt.u32.totalorder %s15860_s19, %s18537_s5 }
  0x4a   : > { %p15863_p12 = pnand %p15861_p11, %p16372_p8 }
  0x4c   : > { %p15864_p13 = pneg %p15863_p12 }
  0x4e   : > { %p15869_p2 = pnand %p15867_p0, %p15864_p13 }
  0x50   : > { %15872 = shalt.err (!%p15869_p2)
}
  0x51   : > { %s15873_s30 = scalar_lea.vmem %s16362_s15, 256  ;;  %p15881_p4 = scmp.lt.s32.totalorder %s16362_s15, %s16362_s15 }
  0x52   : > { %p15874_p5 = scmp.ne.s32.totalorder %s16362_s15, %s15873_s30  ;;  %p15882_p10 = scmp.lt.s32.totalorder %s15873_s30, %s15873_s30 }
  0x54   : > { %p15876_p7 = pnand %p15874_p5, %p16372_p8  ;;  %p15883_p11 = por %p15882_p10, %p15881_p4 }
  0x56   : > { %p15877_p9 = pneg %p15876_p7 }
  0x58   : > { %p15884_p12 = pnand %p15883_p11, %p15877_p9 }
  0x5a   : > { %15887 = shalt.err (!%p15884_p12)
}
  0x5b   : > { %14257 = dma.hbm_to_vmem [thread:$0]  (!%p16356_p6), %s18537_s5, 256, %s16362_s15, [#allocation14]  }
  0x5c   : > { %s16239_s12 = smov [#allocation16]   ;;  %s16240_s28 = smov [#allocation19]  }
  0x5d   : > { %s408_s27 = sshll.u32 %s16239_s12, 4  ;;  %s433_s19 = sshll.u32 %s16240_s28, 4  ;;  %s409_s27 = int_to_ptr.vmem [resolvable:$true] %s408_s27  ;;  %s434_s19 = int_to_ptr.vmem [resolvable:$true] %s433_s19 }
  0x5e   : > { %s15888_s14 = scalar_lea.hbm %s18539_s7, 36864 }
  0x5f   : > { %p15889_p13 = scmp.ne.s32.totalorder %s18539_s7, %s15888_s14  ;;  %p15895_p5 = scmp.lt.u32.totalorder %s15888_s14, %s18539_s7 }
  0x61   : > { %p15891_p0 = pnand %p15889_p13, %p16372_p8 }
  0x63   : > { %p15892_p2 = pneg %p15891_p0 }
  0x65   : > { %p15897_p7 = pnand %p15895_p5, %p15892_p2 }
  0x67   : > { %15900 = shalt.err (!%p15897_p7)
}
  0x68   : > { %s15901_s15 = scalar_lea.vmem %s409_s27, 36864  ;;  %p15909_p11 = scmp.lt.s32.totalorder %s409_s27, %s409_s27 }
  0x69   : > { %p15902_p9 = scmp.ne.s32.totalorder %s409_s27, %s15901_s15  ;;  %p15910_p12 = scmp.lt.s32.totalorder %s15901_s15, %s15901_s15 }
  0x6b   : > { %p15904_p4 = pnand %p15902_p9, %p16372_p8  ;;  %p15911_p1 = por %p15910_p12, %p15909_p11 }
  0x6d   : > { %p15905_p10 = pneg %p15904_p4 }
  0x6f   : > { %p15912_p3 = pnand %p15911_p1, %p15905_p10 }
  0x71   : > { %15915 = shalt.err (!%p15912_p3)
}
  0x72   : > { %s18587_s0 = smov 128   ;;  %s15916_s29 = scalar_lea.hbm %s18541_s9, 32 }
  0x73   : > { %14263 = dma.hbm_to_vmem [thread:$0]  (!%p16356_p6), %s18539_s7, 36864, %s409_s27, [#allocation17], %s18587_s0, %s18587_s0, %s18555_s18  }
  0x74   : > { %p15917_p1 = scmp.ne.s32.totalorder %s18541_s9, %s15916_s29  ;;  %p15923_p0 = scmp.lt.u32.totalorder %s15916_s29, %s18541_s9 }
  0x76   : > { %p15919_p3 = pnand %p15917_p1, %p16372_p8 }
  0x78   : > { %p15920_p13 = pneg %p15919_p3 }
  0x7a   : > { %p15925_p2 = pnand %p15923_p0, %p15920_p13 }
  0x7c   : > { %15928 = shalt.err (!%p15925_p2)
}
  0x7d   : > { %s15929_s15 = scalar_lea.vmem %s434_s19, 32  ;;  %p15937_p4 = scmp.lt.s32.totalorder %s434_s19, %s434_s19 }
  0x7e   : > { %p15930_p5 = scmp.ne.s32.totalorder %s434_s19, %s15929_s15  ;;  %p15938_p10 = scmp.lt.s32.totalorder %s15929_s15, %s15929_s15 }
  0x80   : > { %p15932_p7 = pnand %p15930_p5, %p16372_p8  ;;  %p15939_p11 = por %p15938_p10, %p15937_p4 }
  0x82   : > { %p15933_p9 = pneg %p15932_p7 }
  0x84   : > { %p15940_p12 = pnand %p15939_p11, %p15933_p9 }
  0x86   : > { %15943 = shalt.err (!%p15940_p12)
}
  0x87   : > { %14269 = dma.hbm_to_vmem [thread:$0]  (!%p16356_p6), %s18541_s9, 32, %s434_s19, [#allocation20]  }
  0x88   : > { %s16241_s12 = smov [#allocation9]   ;;  %s16242_s20 = smov [#allocation12]  }
  0x89   : > { %s347_s28 = sshll.u32 %s16241_s12, 4  ;;  %s373_s29 = sshll.u32 %s16242_s20, 4  ;;  %s348_s28 = int_to_ptr.vmem [resolvable:$true] %s347_s28  ;;  %s374_s29 = int_to_ptr.vmem [resolvable:$true] %s373_s29 }
  0x8a   : > { %s18588_s2 = sld [smem:[#allocation47_spill]] }
  0x90   : > { %s15944_s30 = scalar_lea.hbm %s18588_s2, 55296 }
  0x91   : > { %p15945_p1 = scmp.ne.s32.totalorder %s18588_s2, %s15944_s30  ;;  %p15951_p0 = scmp.lt.u32.totalorder %s15944_s30, %s18588_s2 }
  0x93   : > { %p15947_p3 = pnand %p15945_p1, %p16372_p8 }
  0x95   : > { %p15948_p13 = pneg %p15947_p3 }
  0x97   : > { %p15953_p2 = pnand %p15951_p0, %p15948_p13 }
  0x99   : > { %15956 = shalt.err (!%p15953_p2)
}
  0x9a   : > { %s15957_s19 = scalar_lea.vmem %s348_s28, 55296  ;;  %p15965_p4 = scmp.lt.s32.totalorder %s348_s28, %s348_s28 }
  0x9b   : > { %p15958_p5 = scmp.ne.s32.totalorder %s348_s28, %s15957_s19  ;;  %p15966_p10 = scmp.lt.s32.totalorder %s15957_s19, %s15957_s19 }
  0x9d   : > { %p15960_p7 = pnand %p15958_p5, %p16372_p8  ;;  %p15967_p11 = por %p15966_p10, %p15965_p4 }
  0x9f   : > { %p15961_p9 = pneg %p15960_p7 }
  0xa1   : > { %p15968_p12 = pnand %p15967_p11, %p15961_p9 }
  0xa3   : > { %15971 = shalt.err (!%p15968_p12)
}
  0xa4   : > { %s18589_s17 = smov 8   ;;  %s15972_s16 = scalar_lea.hbm %s18536_s4, 20480 }
  0xa5   : > { %14248 = dma.hbm_to_vmem [thread:$0]  (!%p16356_p6), %s18588_s2, 55296, %s348_s28, [#allocation8], %s18587_s0, %s18587_s0, %s18589_s17  }
  0xa6   : > { %p15973_p1 = scmp.ne.s32.totalorder %s18536_s4, %s15972_s16  ;;  %p15979_p0 = scmp.lt.u32.totalorder %s15972_s16, %s18536_s4 }
  0xa8   : > { %p15975_p3 = pnand %p15973_p1, %p16372_p8 }
  0xaa   : > { %p15976_p13 = pneg %p15975_p3 }
  0xac   : > { %p15981_p2 = pnand %p15979_p0, %p15976_p13 }
  0xae   : > { %15984 = shalt.err (!%p15981_p2)
}
  0xaf   : > { %s15985_s19 = scalar_lea.vmem %s374_s29, 20480  ;;  %p15993_p4 = scmp.lt.s32.totalorder %s374_s29, %s374_s29 }
  0xb0   : > { %p15986_p5 = scmp.ne.s32.totalorder %s374_s29, %s15985_s19  ;;  %p15994_p10 = scmp.lt.s32.totalorder %s15985_s19, %s15985_s19 }
  0xb2   : > { %p15988_p7 = pnand %p15986_p5, %p16372_p8  ;;  %p15995_p11 = por %p15994_p10, %p15993_p4 }
  0xb4   : > { %p15989_p9 = pneg %p15988_p7 }
  0xb6   : > { %p15996_p12 = pnand %p15995_p11, %p15989_p9 }
  0xb8   : > { %15999 = shalt.err (!%p15996_p12)
}
  0xb9   : > { %14254 = dma.hbm_to_vmem [thread:$0]  (!%p16356_p6), %s18536_s4, 20480, %s374_s29, [#allocation11], %s18587_s0, %s18587_s0, %s18589_s17  }
  0xba   : > { %s16243_s12 = smov [#allocation15]   ;;  %s16244_s14 = smov [#allocation18]  }
  0xbb   : > { %s398_s20 = sshll.u32 %s16243_s12, 4  ;;  %s422_s16 = sshll.u32 %s16244_s14, 4  ;;  %s399_s20 = int_to_ptr.vmem [resolvable:$true] %s398_s20  ;;  %s423_s16 = int_to_ptr.vmem [resolvable:$true] %s422_s16 }
  0xbc   : > { %s16000_s15 = scalar_lea.hbm %s18538_s6, 256 }
  0xbd   : > { %p16001_p1 = scmp.ne.s32.totalorder %s18538_s6, %s16000_s15  ;;  %p16007_p0 = scmp.lt.u32.totalorder %s16000_s15, %s18538_s6 }
  0xbf   : > { %p16003_p3 = pnand %p16001_p1, %p16372_p8 }
  0xc1   : > { %p16004_p13 = pneg %p16003_p3 }
  0xc3   : > { %p16009_p2 = pnand %p16007_p0, %p16004_p13 }
  0xc5   : > { %16012 = shalt.err (!%p16009_p2)
}
  0xc6   : > { %s16013_s0 = scalar_lea.vmem %s399_s20, 256  ;;  %p16021_p4 = scmp.lt.s32.totalorder %s399_s20, %s399_s20 }
  0xc7   : > { %p16014_p5 = scmp.ne.s32.totalorder %s399_s20, %s16013_s0  ;;  %p16022_p10 = scmp.lt.s32.totalorder %s16013_s0, %s16013_s0 }
  0xc9   : > { %p16016_p7 = pnand %p16014_p5, %p16372_p8  ;;  %p16023_p11 = por %p16022_p10, %p16021_p4 }
  0xcb   : > { %p16017_p9 = pneg %p16016_p7 }
  0xcd   : > { %p16024_p12 = pnand %p16023_p11, %p16017_p9 }
  0xcf   : > { %16027 = shalt.err (!%p16024_p12)
}
  0xd0   : > { %14260 = dma.hbm_to_vmem [thread:$0]  (!%p16356_p6), %s18538_s6, 256, %s399_s20, [#allocation14]  }
  0xd1   : > { %s16028_s12 = scalar_lea.hbm %s18540_s8, 32 }
  0xd2   : > { %p16029_p1 = scmp.ne.s32.totalorder %s18540_s8, %s16028_s12  ;;  %p16035_p0 = scmp.lt.u32.totalorder %s16028_s12, %s18540_s8 }
  0xd4   : > { %p16031_p3 = pnand %p16029_p1, %p16372_p8 }
  0xd6   : > { %p16032_p13 = pneg %p16031_p3 }
  0xd8   : > { %p16037_p2 = pnand %p16035_p0, %p16032_p13 }
  0xda   : > { %16040 = shalt.err (!%p16037_p2)
}
  0xdb   : > { %s16041_s27 = scalar_lea.vmem %s423_s16, 32  ;;  %p16049_p4 = scmp.lt.s32.totalorder %s423_s16, %s423_s16 }
  0xdc   : > { %p16042_p5 = scmp.ne.s32.totalorder %s423_s16, %s16041_s27  ;;  %p16050_p10 = scmp.lt.s32.totalorder %s16041_s27, %s16041_s27 }
  0xde   : > { %p16044_p7 = pnand %p16042_p5, %p16372_p8  ;;  %p16051_p11 = por %p16050_p10, %p16049_p4 }
  0xe0   : > { %p16045_p9 = pneg %p16044_p7 }
  0xe2   : > { %p16052_p12 = pnand %p16051_p11, %p16045_p9 }
  0xe4   : > { %16055 = shalt.err (!%p16052_p12)
}
  0xe5   : > { %14266 = dma.hbm_to_vmem [thread:$0]  (!%p16356_p6), %s18540_s8, 32, %s423_s16, [#allocation17]  }
  0xe6   : > { %s16245_s28 = smov [#allocation21]   ;;  %s16056_s1 = scalar_lea.hbm %s18542_s10, 2048 }
  0xe7   : > { %s443_s0 = sshll.u32 %s16245_s28, 4  ;;  %p16057_p1 = scmp.ne.s32.totalorder %s18542_s10, %s16056_s1  ;;  %s444_s0 = int_to_ptr.vmem [resolvable:$true] %s443_s0 }
  0xe8   : > { %p16063_p0 = scmp.lt.u32.totalorder %s16056_s1, %s18542_s10 }
  0xe9   : > { %p16059_p3 = pnand %p16057_p1, %p16372_p8 }
  0xeb   : > { %p16060_p13 = pneg %p16059_p3 }
  0xed   : > { %p16065_p2 = pnand %p16063_p0, %p16060_p13 }
  0xef   : > { %16068 = shalt.err (!%p16065_p2)
}
  0xf0   : > { %s16069_s16 = scalar_lea.vmem %s444_s0, 2048  ;;  %p16077_p4 = scmp.lt.s32.totalorder %s444_s0, %s444_s0 }
  0xf1   : > { %p16070_p5 = scmp.ne.s32.totalorder %s444_s0, %s16069_s16  ;;  %p16078_p10 = scmp.lt.s32.totalorder %s16069_s16, %s16069_s16 }
  0xf3   : > { %p16072_p7 = pnand %p16070_p5, %p16372_p8  ;;  %p16079_p11 = por %p16078_p10, %p16077_p4 }
  0xf5   : > { %p16073_p9 = pneg %p16072_p7 }
  0xf7   : > { %p16080_p12 = pnand %p16079_p11, %p16073_p9 }
  0xf9   : > { %16083 = shalt.err (!%p16080_p12)
}
  0xfa   : > { %s18557_s26 = smov 64   ;;  %s18558_s15 = smov 4  }
  0xfb   : > { %14272 = dma.hbm_to_vmem [thread:$0]  (!%p16356_p6), %s18542_s10, 2048, %s444_s0, [#allocation20], %s18557_s26, %s18557_s26, %s18558_s15  }
  0xfc   : > { %s16248_s19 = smov [#allocation22]   ;;  %s16084_s1 = scalar_lea.hbm %s18543_s11, 16 }
  0xfd   : > { %s457_s28 = sshll.u32 %s16248_s19, 4  ;;  %p16085_p1 = scmp.ne.s32.totalorder %s18543_s11, %s16084_s1  ;;  %s458_s28 = int_to_ptr.vmem [resolvable:$true] %s457_s28 }
  0xfe   : > { %p16091_p0 = scmp.lt.u32.totalorder %s16084_s1, %s18543_s11 }
  0xff   : > { %p16087_p3 = pnand %p16085_p1, %p16372_p8 }
 0x101   : > { %p16088_p13 = pneg %p16087_p3 }
 0x103   : > { %p16093_p2 = pnand %p16091_p0, %p16088_p13 }
 0x105   : > { %16096 = shalt.err (!%p16093_p2)
}
 0x106   : > { %s16097_s0 = scalar_lea.vmem %s458_s28, 16  ;;  %s16104_s16 = scalar_lea.vmem %s458_s28, 32 }
 0x107   : > { %p16098_p5 = scmp.ne.s32.totalorder %s458_s28, %s16097_s0  ;;  %p16105_p4 = scmp.lt.s32.totalorder %s458_s28, %s458_s28 }
 0x108   : > { %p16106_p10 = scmp.lt.s32.totalorder %s16104_s16, %s16097_s0 }
 0x109   : > { %p16100_p7 = pnand %p16098_p5, %p16372_p8 }
 0x10a   : > { %p16107_p11 = por %p16106_p10, %p16105_p4 }
 0x10b   : > { %p16101_p9 = pneg %p16100_p7 }
 0x10d   : > { %p16108_p12 = pnand %p16107_p11, %p16101_p9 }
 0x10f   : > { %16111 = shalt.err (!%p16108_p12)
}
 0x110   : > { %s18590_s25 = sld [smem:[#allocation33_spill]]  ;;  %s12459_s19 = sadd.s32 4294967294, %s16232_s24  }
 0x111   : > { %14275 = dma.hbm_to_vmem [thread:$0]  (!%p16356_p6), %s18543_s11, 16, %s458_s28, [#allocation23]  }
 0x112   : > { %s16603_s13 = sadd.s32 1, %s16232_s24   ;;  %s41_s29 = sadd.s32 1, %s16228_s23 }
 0x113   : > { %s38_s17 = ssub.s32 %s16232_s24, %s16603_s13  ;;  %p48_p8 = scmp.ne.s32.totalorder %s16228_s23, %s16224_s22 }
 0x114   : > { %p39_p1 = scmp.eq.s32.totalorder %s38_s17, 0  ;;  %p49_p3 = scmp.eq.s32.totalorder %s16232_s24, 0 }
 0x115   : > { %p54_p13 = scmp.ne.s32.totalorder %s16224_s22, %s16220_s21  ;;  %p315_p9 = scmp.eq.s32.totalorder %s12459_s19, 1 }
 0x116   : > { %p309_p0 = scmp.eq.s32.totalorder %s18590_s25, 1  ;;  %p50_p2 = por %p49_p3, %p48_p8 }
 0x117   : > { %s16615_s1 = scalar_select %p39_p1, %s16228_s23, %s41_s29  }
 0x118   : > { %p18591_p5 = scmp.eq.s32.totalorder %s18590_s25, 0  ;;  %p16623_p6 = por %p309_p0, %p48_p8 }
 0x119   : > { %p14295_p4 = scmp.lt.s32.totalorder %s16232_s24, 2  ;;  %s468_s12 = sand.u32 1, %s16228_s23  }
 0x11a   : > { %p16619_p7 = por %p18591_p5, %p54_p13  ;;  %p16629_p10 = por %p315_p9, %p54_p13 }
 0x11b   : > { %s18593_s28 = scalar_select %p16623_p6, 1, 0 }
 0x11c   : > { %s18594_s14 = scalar_select %p16629_p10, 1, 0 }
 0x11d   : > { %s12473_s30 = sshll.u32 %s468_s12, 5  ;;  %s13776_s0 = sshll.u32 %s16232_s24, 9 }
 0x11e   : > { %s18595_s20 = sld [smem:[#allocation45_spill]]  ;;  %s472_s29 = scalar_lea.vmem [#allocation4], %s12473_s30 }
 0x11f   : > { %s479_s17 = sshll.u32 %s472_s29, 4  ;;  %p16639_p11 = pnand %p14295_p4, %p50_p2  ;;  %s16643_s17 = int_to_ptr.vmem [resolvable:$true] %s479_s17 }
 0x120   : > { %s16645_s26 = scalar_lea.sflag [#allocation5], %s468_s12 }
 0x121   : > { %p16114_p8 = pneg %p16639_p11 }
 0x124   : > { %s16637_s25 = scalar_lea.hbm %s18595_s20, %s13776_s0  ;;  %s16117_s16 = scalar_lea.hbm %s18595_s20, 1024 }
 0x125   : > { %s16112_s15 = scalar_lea.hbm %s16637_s25, 512  ;;  %p16118_p13 = scmp.lt.u32.totalorder %s16637_s25, %s18595_s20 }
 0x126   : > { %p16113_p12 = scmp.ne.s32.totalorder %s16637_s25, %s16112_s15  ;;  %p16119_p0 = scmp.lt.u32.totalorder %s16117_s16, %s16112_s15 }
 0x127   : > { %p16121_p5 = scmp.lt.u32.totalorder %s16112_s15, %s16637_s25 }
 0x128   : > { %p16115_p1 = pnand %p16114_p8, %p16113_p12  ;;  %p16120_p2 = por %p16119_p0, %p16118_p13 }
 0x12a   : > { %p16116_p3 = pneg %p16115_p1  ;;  %p16122_p9 = por %p16121_p5, %p16120_p2 }
 0x12c   : > { %p16123_p4 = pnand %p16122_p9, %p16116_p3 }
 0x12e   : > { %16126 = shalt.err (!%p16123_p4)
}
 0x12f   : > { %s16127_s12 = scalar_lea.vmem %s16643_s17, 512  ;;  %s16249_s30 = smov [#allocation4]  }
 0x130   : > { %p16128_p12 = scmp.ne.s32.totalorder %s16643_s17, %s16127_s12  ;;  %s16132_s0 = sshll.u32 %s16249_s30, 4  ;;  %s16133_s0 = int_to_ptr.vmem [resolvable:$false] %s16132_s0 }
 0x131   : > { %s16134_s27 = scalar_lea.vmem %s16133_s0, 1024  ;;  %p16135_p6 = scmp.lt.s32.totalorder %s16643_s17, %s16133_s0 }
 0x132   : > { %p16130_p1 = pnand %p16128_p12, %p16114_p8  ;;  %p16136_p13 = scmp.lt.s32.totalorder %s16134_s27, %s16127_s12 }
 0x134   : > { %p16131_p10 = pneg %p16130_p1  ;;  %p16137_p0 = por %p16136_p13, %p16135_p6 }
 0x136   : > { %p16138_p2 = pnand %p16137_p0, %p16131_p10 }
 0x138   : > { %16141 = shalt.err (!%p16138_p2)
}
 0x139   : > { %s18597_s15 = smov 4   ;;  %s18598_s16 = smov 64  }
 0x13a   : > { %14279 = dma.hbm_to_vmem [thread:$0]  (!%p16639_p11), %s16637_s25, 512, %s16643_s17, %s16645_s26, %s18598_s16, %s18598_s16, %s18597_s15  }
 0x13b   : > { %s18599_s29 = sld [smem:[#allocation34_spill]] }
 0x141   : > { %p18600_p8 = scmp.ne.s32.totalorder %s18599_s29, 0 }
 0x143   : > { %491 = sbr.rel (%p18600_p8) target bundleno = 3130 (0xc3a), region = 68 }
 0x14a   : > { %s16679_s30 = sand.u32 1, %s16224_s22  }
 0x14b   : > { %s12477_s12 = sshll.u32 %s16679_s30, 5  ;;  %s494_s0 = scalar_lea.sflag [#allocation5], %s16679_s30 }
 0x14c   : > { %s16683_s27 = scalar_lea.vmem [#allocation4], %s12477_s12 }
 0x14d   : > { %16187 = dma.done.wait (%p16619_p7), %s494_s0, 512  }
 0x14e   : > { %16189 = vsyncadd (%p16619_p7), %s494_s0, 4294966784  ;;  %s18601_s19 = sld [smem:[#allocation33_spill]] }
 0x154   : > { %p18602_p6 = scmp.eq.s32.totalorder %s18601_s19, 0 }
 0x156   : > { %16191 = dma.done.wait (%p18602_p6), [#allocation8], 57344   ;;  %p18603_p10 = pmov %p18602_p6 }
 0x157   : > { %p18604_p11 = pmov %p18602_p6 }
 0x158   : > { %16193 = vsyncadd (%p18603_p10), [#allocation8], 4294909952 }
 0x159   : > { %16195 = dma.done.wait (%p18604_p11), [#allocation11], 22528   ;;  %p18605_p3 = pmov %p18602_p6 }
 0x15b   : > { %16197 = vsyncadd (%p18605_p3), [#allocation11], 4294944768  ;;  %p18606_p5 = pmov %p18605_p3 }
 0x15c   : > { %p18607_p9 = pmov %p18605_p3 }
 0x15d   : > { %16199 = dma.done.wait (%p18606_p5), [#allocation14], 512  }
 0x15e   : > { %16201 = vsyncadd (%p18607_p9), [#allocation14], 4294966784  ;;  %p18608_p7 = pmov %p18605_p3 }
 0x15f   : > { %p18609_p4 = pmov %p18605_p3 }
 0x160   : > { %16203 = dma.done.wait (%p18608_p7), [#allocation17], 36896  }
 0x161   : > { %16205 = vsyncadd (%p18609_p4), [#allocation17], 4294930400  ;;  %p18610_p12 = pmov %p18605_p3 }
 0x162   : > { %p18611_p1 = pmov %p18605_p3 }
 0x163   : > { %16207 = dma.done.wait (%p18610_p12), [#allocation20], 2080  }
 0x164   : > { %16209 = vsyncadd (%p18611_p1), [#allocation20], 4294965216  ;;  %p18612_p13 = pmov %p18611_p1 }
 0x165   : > { %p18613_p0 = pmov %p18611_p1 }
 0x166   : > { %16211 = dma.done.wait (%p18612_p13), [#allocation23], 16  }
 0x167   : > { %16213 = vsyncadd (%p18613_p0), [#allocation23], 4294967280  ;;  %v16250_v0 = vmov 0   ;;  %v14358_v1 = vld [vmem:[#allocation9 + $0x4] ss:$8 sps:$4 sm:$0xff]   ;;  %vm1338_vm0 = vcmask 1042432  }
 0x168   : > { %625 = vst [vmem:[#allocation2 + $0xa8] sm:$0xf] %v16250_v0  ;;  %626 = vst [vmem:[#allocation2 + $0xac] sm:$0xf] %v16250_v0  ;;  %1152 = vmatprep.mubr.bf16.mxu0 %v16250_v0  ;;  %v14360_v2 = vld [vmem:[#allocation9] ss:$8 sps:$4 sm:$0xff]   ;;  %2753 = vmatprep.subr.bf16.mxu1 %v14358_v1 }
 0x169   : > { %628 = vst [vmem:[#allocation2 + $0xb4] sm:$0xf] %v16250_v0  ;;  %630 = vst [vmem:[#allocation2 + $0xbc] sm:$0xf] %v16250_v0  ;;  %v14361_v3 = vld [vmem:[#allocation9 + $0x14] ss:$8 sps:$4 sm:$0xff]   ;;  %2754 = vmatpush1.bf16.msra.mxu1 %v14360_v2 }
 0x16a   : > { %631 = vst [vmem:[#allocation2 + $0xc0] sm:$0xf] %v16250_v0  ;;  %632 = vst [vmem:[#allocation2 + $0xc4] sm:$0xf] %v16250_v0  ;;  %v14363_v4 = vld [vmem:[#allocation9 + $0x10] ss:$8 sps:$4 sm:$0xff]   ;;  %2755 = vmatprep.subr.bf16.mxu1 %v14361_v3 }
 0x16b   : > { %633 = vst [vmem:[#allocation2 + $0xc8] sm:$0xf] %v16250_v0  ;;  %635 = vst [vmem:[#allocation2 + $0xd0] sm:$0xf] %v16250_v0  ;;  %v14364_v5 = vld [vmem:[#allocation9 + $0x24] ss:$8 sps:$4 sm:$0xff]  }
 0x16c   : > { %637 = vst [vmem:[#allocation2 + $0xd8] sm:$0xf] %v16250_v0  ;;  %638 = vst [vmem:[#allocation2 + $0xdc] sm:$0xf] %v16250_v0  ;;  %v14366_v6 = vld [vmem:[#allocation9 + $0x20] ss:$8 sps:$4 sm:$0xff]  }
 0x16d   : > { %639 = vst [vmem:[#allocation2 + $0xe0] sm:$0xf] %v16250_v0  ;;  %640 = vst [vmem:[#allocation2 + $0xe4] sm:$0xf] %v16250_v0  ;;  %2756 = vmatpush1.bf16.msra.mxu1 %v14363_v4  ;;  %v14367_v7 = vld [vmem:[#allocation9 + $0x34] ss:$8 sps:$4 sm:$0xff]  }
 0x16e   : > { %642 = vst [vmem:[#allocation2 + $0xec] sm:$0xf] %v16250_v0  ;;  %644 = vst [vmem:[#allocation2 + $0xf4] sm:$0xf] %v16250_v0  ;;  %2757 = vmatprep.subr.bf16.mxu1 %v14364_v5  ;;  %v14369_v8 = vld [vmem:[#allocation9 + $0x30] ss:$8 sps:$4 sm:$0xff]  }
 0x16f   : > { %645 = vst [vmem:[#allocation2 + $0xf8] sm:$0xf] %v16250_v0  ;;  %646 = vst [vmem:[#allocation2 + $0xfc] sm:$0xf] %v16250_v0  ;;  %v14370_v9 = vld [vmem:[#allocation9 + $0x44] ss:$8 sps:$4 sm:$0xff]  }
 0x170   : > { %647 = vst [vmem:[#allocation2 + $0x100] sm:$0xf] %v16250_v0  ;;  %649 = vst [vmem:[#allocation2 + $0x108] sm:$0xf] %v16250_v0  ;;  %v14372_v10 = vld [vmem:[#allocation9 + $0x40] ss:$8 sps:$4 sm:$0xff]  }
 0x171   : > { %651 = vst [vmem:[#allocation2 + $0x110] sm:$0xf] %v16250_v0  ;;  %652 = vst [vmem:[#allocation2 + $0x114] sm:$0xf] %v16250_v0  ;;  %2758 = vmatpush1.bf16.msra.mxu1 %v14366_v6  ;;  %v14373_v11 = vld [vmem:[#allocation9 + $0x54] ss:$8 sps:$4 sm:$0xff]  }
 0x172   : > { %653 = vst [vmem:[#allocation2 + $0x118] sm:$0xf] %v16250_v0  ;;  %654 = vst [vmem:[#allocation2 + $0x11c] sm:$0xf] %v16250_v0  ;;  %2759 = vmatprep.subr.bf16.mxu1 %v14367_v7  ;;  %v14375_v12 = vld [vmem:[#allocation9 + $0x50] ss:$8 sps:$4 sm:$0xff]  }
 0x173   : > { %656 = vst [vmem:[#allocation2 + $0x124] sm:$0xf] %v16250_v0  ;;  %658 = vst [vmem:[#allocation2 + $0x12c] sm:$0xf] %v16250_v0  ;;  %v14376_v13 = vld [vmem:[#allocation9 + $0x64] ss:$8 sps:$4 sm:$0xff]  }
 0x174   : > { %659 = vst [vmem:[#allocation2 + $0x130] sm:$0xf] %v16250_v0  ;;  %660 = vst [vmem:[#allocation2 + $0x134] sm:$0xf] %v16250_v0  ;;  %v14378_v15 = vld [vmem:[#allocation9 + $0x60] ss:$8 sps:$4 sm:$0xff]  }
 0x175   : > { %661 = vst [vmem:[#allocation2 + $0x138] sm:$0xf] %v16250_v0  ;;  %663 = vst [vmem:[#allocation2 + $0x140] sm:$0xf] %v16250_v0  ;;  %2760 = vmatpush1.bf16.msra.mxu1 %v14369_v8  ;;  %v14379_v16 = vld [vmem:[#allocation9 + $0x74] ss:$8 sps:$4 sm:$0xff]  }
 0x176   : > { %665 = vst [vmem:[#allocation2 + $0x148] sm:$0xf] %v16250_v0  ;;  %666 = vst [vmem:[#allocation2 + $0x14c] sm:$0xf] %v16250_v0  ;;  %2761 = vmatprep.subr.bf16.mxu1 %v14370_v9  ;;  %v14381_v17 = vld [vmem:[#allocation9 + $0x70] ss:$8 sps:$4 sm:$0xff]  }
 0x177   : > { %667 = vst [vmem:[#allocation2 + $0x150] sm:$0xf] %v16250_v0  ;;  %668 = vst [vmem:[#allocation2 + $0x154] sm:$0xf] %v16250_v0  ;;  %v14382_v18 = vld [vmem:[#allocation9 + $0x84] ss:$8 sps:$4 sm:$0xff]  }
 0x178   : > { %669 = vst [vmem:[#allocation2 + $0x158] sm:$0xf] %v16250_v0  ;;  %670 = vst [vmem:[#allocation2 + $0x15c] sm:$0xf] %v16250_v0  ;;  %v14384_v19 = vld [vmem:[#allocation9 + $0x80] ss:$8 sps:$4 sm:$0xff]  }
 0x179   : > { %671 = vst [vmem:[#allocation2 + $0x160] sm:$0xf] %v16250_v0  ;;  %672 = vst [vmem:[#allocation2 + $0x164] sm:$0xf] %v16250_v0  ;;  %2762 = vmatpush1.bf16.msra.mxu1 %v14372_v10  ;;  %v14385_v20 = vld [vmem:[#allocation9 + $0x94] ss:$8 sps:$4 sm:$0xff]  }
 0x17a   : > { %673 = vst [vmem:[#allocation2 + $0x168] sm:$0xf] %v16250_v0  ;;  %674 = vst [vmem:[#allocation2 + $0x16c] sm:$0xf] %v16250_v0  ;;  %2763 = vmatprep.subr.bf16.mxu1 %v14373_v11  ;;  %v14387_v21 = vld [vmem:[#allocation9 + $0x90] ss:$8 sps:$4 sm:$0xff]  }
 0x17b   : > { %675 = vst [vmem:[#allocation2 + $0x170] sm:$0xf] %v16250_v0  ;;  %676 = vst [vmem:[#allocation2 + $0x174] sm:$0xf] %v16250_v0  ;;  %v14388_v22 = vld [vmem:[#allocation9 + $0xa4] ss:$8 sps:$4 sm:$0xff]  }
 0x17c   : > { %677 = vst [vmem:[#allocation2 + $0x178] sm:$0xf] %v16250_v0  ;;  %678 = vst [vmem:[#allocation2 + $0x17c] sm:$0xf] %v16250_v0  ;;  %v14390_v23 = vld [vmem:[#allocation9 + $0xa0] ss:$8 sps:$4 sm:$0xff]  }
 0x17d   : > { %679 = vst [vmem:[#allocation2 + $0x180] sm:$0xf] %v16250_v0  ;;  %680 = vst [vmem:[#allocation2 + $0x184] sm:$0xf] %v16250_v0  ;;  %2764 = vmatpush1.bf16.msra.mxu1 %v14375_v12  ;;  %v14391_v24 = vld [vmem:[#allocation9 + $0xb4] ss:$8 sps:$4 sm:$0xff]  }
 0x17e   : > { %682 = vst [vmem:[#allocation2 + $0x18c] sm:$0xf] %v16250_v0  ;;  %683 = vst [vmem:[#allocation2 + $0x190] sm:$0xf] %v16250_v0  ;;  %2765 = vmatprep.subr.bf16.mxu1 %v14376_v13  ;;  %v14393_v25 = vld [vmem:[#allocation9 + $0xb0] ss:$8 sps:$4 sm:$0xff]  }
 0x17f   : > { %684 = vst [vmem:[#allocation2 + $0x194] sm:$0xf] %v16250_v0  ;;  %685 = vst [vmem:[#allocation2 + $0x198] sm:$0xf] %v16250_v0  ;;  %v14394_v26 = vld [vmem:[#allocation9 + $0xc4] ss:$8 sps:$4 sm:$0xff]  }
 0x180   : > { %686 = vst [vmem:[#allocation2 + $0x19c] sm:$0xf] %v16250_v0  ;;  %689 = vst [vmem:[#allocation2 + $0x1a8] sm:$0xf] %v16250_v0  ;;  %v14396_v27 = vld [vmem:[#allocation9 + $0xc0] ss:$8 sps:$4 sm:$0xff]  }
 0x181   : > { %690 = vst [vmem:[#allocation2 + $0x1ac] sm:$0xf] %v16250_v0  ;;  %691 = vst [vmem:[#allocation2 + $0x1b0] sm:$0xf] %v16250_v0  ;;  %2766 = vmatpush1.bf16.msra.mxu1 %v14378_v15  ;;  %v14397_v28 = vld [vmem:[#allocation9 + $0xd4] ss:$8 sps:$4 sm:$0xff]  }
 0x182   : > { %692 = vst [vmem:[#allocation2 + $0x1b4] sm:$0xf] %v16250_v0  ;;  %693 = vst [vmem:[#allocation2 + $0x1b8] sm:$0xf] %v16250_v0  ;;  %2767 = vmatprep.subr.bf16.mxu1 %v14379_v16  ;;  %v975_v29 = vld [vmem:[%s16683_s27] sm:$0xf] }
 0x183   : > { %696 = vst [vmem:[#allocation2 + $0x1c4] sm:$0xf] %v16250_v0  ;;  %697 = vst [vmem:[#allocation2 + $0x1c8] sm:$0xf] %v16250_v0  ;;  %v976_v30 = vld [vmem:[%s16683_s27 + $0x4] sm:$0xf] }
 0x184   : > { %698 = vst [vmem:[#allocation2 + $0x1cc] sm:$0xf] %v16250_v0  ;;  %699 = vst [vmem:[#allocation2 + $0x1d0] sm:$0xf] %v16250_v0  ;;  %v14399_v31 = vld [vmem:[#allocation9 + $0xd0] ss:$8 sps:$4 sm:$0xff]  }
 0x185   : > { %700 = vst [vmem:[#allocation2 + $0x1d4] sm:$0xf] %v16250_v0  ;;  %703 = vst [vmem:[#allocation2 + $0x1e0] sm:$0xf] %v16250_v0  ;;  %2768 = vmatpush1.bf16.msra.mxu1 %v14381_v17  ;;  %v14400_v32 = vld [vmem:[#allocation9 + $0xe4] ss:$8 sps:$4 sm:$0xff]  }
 0x186   : > { %704 = vst [vmem:[#allocation2 + $0x1e4] sm:$0xf] %v16250_v0  ;;  %705 = vst [vmem:[#allocation2 + $0x1e8] sm:$0xf] %v16250_v0  ;;  %2769 = vmatprep.subr.bf16.mxu1 %v14382_v18  ;;  %vm1339_vm1 = vcmask 1046532   ;;  %vm1413_vm3 = vcmask 1040384  }
 0x187   : > { %706 = vst [vmem:[#allocation2 + $0x1ec] sm:$0xf] %v16250_v0  ;;  %707 = vst [vmem:[#allocation2 + $0x1f0] sm:$0xf] %v16250_v0  ;;  %v14402_v37 = vld [vmem:[#allocation9 + $0xe0] ss:$8 sps:$4 sm:$0xff]  }
 0x188   : > { %710 = vst [vmem:[#allocation2 + $0x1fc] sm:$0xf] %v16250_v0  ;;  %711 = vst [vmem:[#allocation2 + $0x200] sm:$0xf] %v16250_v0  ;;  %v14403_v43 = vld [vmem:[#allocation9 + $0xf4] ss:$8 sps:$4 sm:$0xff]  }
 0x189   : > { %712 = vst [vmem:[#allocation2 + $0x204] sm:$0xf] %v16250_v0  ;;  %713 = vst [vmem:[#allocation2 + $0x208] sm:$0xf] %v16250_v0  ;;  %2770 = vmatpush1.bf16.msra.mxu1 %v14384_v19  ;;  %v14405_v44 = vld [vmem:[#allocation9 + $0xf0] ss:$8 sps:$4 sm:$0xff]  }
 0x18a   : > { %714 = vst [vmem:[#allocation2 + $0x20c] sm:$0xf] %v16250_v0  ;;  %717 = vst [vmem:[#allocation2 + $0x218] sm:$0xf] %v16250_v0  ;;  %2771 = vmatprep.subr.bf16.mxu1 %v14385_v20  ;;  %v14409_v45 = vld [vmem:[#allocation9 + $0x104] ss:$8 sps:$4 sm:$0xff]  }
 0x18b   : > { %718 = vst [vmem:[#allocation2 + $0x21c] sm:$0xf] %v16250_v0  ;;  %719 = vst [vmem:[#allocation2 + $0x220] sm:$0xf] %v16250_v0  ;;  %v14407_v52 = vld [vmem:[#allocation9 + $0x100] ss:$8 sps:$4 sm:$0xff]  }
 0x18c   : > { %720 = vst [vmem:[#allocation2 + $0x224] sm:$0xf] %v16250_v0  ;;  %721 = vst [vmem:[#allocation2 + $0x228] sm:$0xf] %v16250_v0  ;;  %v14412_v59 = vld [vmem:[#allocation9 + $0x114] ss:$8 sps:$4 sm:$0xff]  }
 0x18d   : > { %725 = vst [vmem:[#allocation2 + $0x238] sm:$0xf] %v16250_v0  ;;  %726 = vst [vmem:[#allocation2 + $0x23c] sm:$0xf] %v16250_v0  ;;  %2772 = vmatpush1.bf16.msra.mxu1 %v14387_v21  ;;  %v14410_v60 = vld [vmem:[#allocation9 + $0x110] ss:$8 sps:$4 sm:$0xff]  }
 0x18e   : > { %727 = vst [vmem:[#allocation2 + $0x240] sm:$0xf] %v16250_v0  ;;  %732 = vst [vmem:[#allocation2 + $0x254] sm:$0xf] %v16250_v0  ;;  %2773 = vmatprep.subr.bf16.mxu1 %v14388_v22  ;;  %v14415_v61 = vld [vmem:[#allocation9 + $0x124] ss:$8 sps:$4 sm:$0xff]  }
 0x18f   : > { %733 = vst [vmem:[#allocation2 + $0x258] sm:$0xf] %v16250_v0  ;;  %734 = vst [vmem:[#allocation2 + $0x25c] sm:$0xf] %v16250_v0  ;;  %v1306_v33 = vld [vmem:[#allocation2 + $0x200] sm:$0xe] }
 0x190   : > { %739 = vst [vmem:[#allocation2 + $0x270] sm:$0xf] %v16250_v0  ;;  %740 = vst [vmem:[#allocation2 + $0x274] sm:$0xf] %v16250_v0  ;;  %v1307_v34 = vld [vmem:[#allocation2 + $0x204] sm:$0x1] }
 0x191   : > { %741 = vst [vmem:[#allocation2 + $0x278] sm:$0xf] %v16250_v0  ;;  %746 = vst [vmem:[#allocation2 + $0x28c] sm:$0xf] %v16250_v0  ;;  %2774 = vmatpush1.bf16.msra.mxu1 %v14390_v23  ;;  %v12510_v39 = vrot.slane %v1306_v33, 9  ;;  %v1343_v40 = vrot.slane %v1307_v34, 5 }
 0x192   : > { %747 = vst [vmem:[#allocation2 + $0x290] sm:$0xf] %v16250_v0  ;;  %748 = vst [vmem:[#allocation2 + $0x294] sm:$0xf] %v16250_v0  ;;  %v14406_v14 = vld [vmem:[#allocation2 + $0x204] ss:$28 sps:$4 sm:$0xff]   ;;  %2775 = vmatprep.subr.bf16.mxu1 %v14391_v24 }
 0x193   : > { %751 = vst [vmem:[#allocation2 + $0x2a0] sm:$0xf] %v16250_v0  ;;  %752 = vst [vmem:[#allocation2 + $0x2a4] sm:$0xf] %v16250_v0  ;;  %2785 = vmatprep.mubr.bf16.mxu1 %v14406_v14  ;;  %v1308_v35 = vld [vmem:[#allocation2 + $0x21c] sm:$0xe] }
 0x194   : > { %753 = vst [vmem:[#allocation2 + $0x2a8] sm:$0xf] %v16250_v0  ;;  %754 = vst [vmem:[#allocation2 + $0x2ac] sm:$0xf] %v16250_v0  ;;  %v1309_v36 = vld [vmem:[#allocation2 + $0x220] sm:$0x1] }
 0x195   : > { %755 = vst [vmem:[#allocation2 + $0x2b0] sm:$0xf] %v16250_v0  ;;  %756 = vst [vmem:[#allocation2 + $0x2b4] sm:$0xf] %v16250_v0  ;;  %2776 = vmatpush1.bf16.msra.mxu1 %v14393_v25  ;;  %v12511_v41 = vrot.slane %v1308_v35, 9  ;;  %v1347_v42 = vrot.slane %v1309_v36, 5 }
 0x196   : > { %757 = vst [vmem:[#allocation2 + $0x2b8] sm:$0xf] %v16250_v0  ;;  %758 = vst [vmem:[#allocation2 + $0x2bc] sm:$0xf] %v16250_v0  ;;  %2777 = vmatprep.subr.bf16.mxu1 %v14394_v26  ;;  %v1310_v46 = vld [vmem:[#allocation2 + $0x238] sm:$0xe] }
 0x197   : > { %759 = vst [vmem:[#allocation2 + $0x2c0] sm:$0xf] %v16250_v0  ;;  %760 = vst [vmem:[#allocation2 + $0x2c4] sm:$0xf] %v16250_v0  ;;  %v1311_v49 = vld [vmem:[#allocation2 + $0x23c] sm:$0x1] }
 0x198   : > { %761 = vst [vmem:[#allocation2 + $0x2c8] sm:$0xf] %v16250_v0  ;;  %762 = vst [vmem:[#allocation2 + $0x2cc] sm:$0xf] %v16250_v0  ;;  %v1312_v50 = vld [vmem:[#allocation2 + $0x254] sm:$0xe] }
 0x199   : > { %763 = vst [vmem:[#allocation2 + $0x2d0] sm:$0xf] %v16250_v0  ;;  %764 = vst [vmem:[#allocation2 + $0x2d4] sm:$0xf] %v16250_v0  ;;  %2778 = vmatpush1.bf16.msra.mxu1 %v14396_v27  ;;  %v1313_v51 = vld [vmem:[#allocation2 + $0x258] sm:$0x1] }
 0x19a   : > { %765 = vst [vmem:[#allocation2 + $0x2d8] sm:$0xf] %v16250_v0  ;;  %766 = vst [vmem:[#allocation2 + $0x2dc] sm:$0xf] %v16250_v0  ;;  %2779 = vmatprep.subr.bf16.mxu1 %v14397_v28  ;;  %v14437_v54 = vld [vmem:[#allocation2 + $0x23c] ss:$28 sps:$4 sm:$0xff]  }
 0x19b   : > { %767 = vst [vmem:[#allocation2 + $0x2e0] sm:$0xf] %v16250_v0  ;;  %768 = vst [vmem:[#allocation2 + $0x2e4] sm:$0xf] %v16250_v0  ;;  %v12512_v55 = vrot.slane %v1310_v46, 9  ;;  %v1351_v56 = vrot.slane %v1311_v49, 5 }
 0x19c   : > { %769 = vst [vmem:[#allocation2 + $0x2e8] sm:$0xf] %v16250_v0  ;;  %770 = vst [vmem:[#allocation2 + $0x2ec] sm:$0xf] %v16250_v0  ;;  %v12513_v57 = vrot.slane %v1312_v50, 9  ;;  %v1355_v58 = vrot.slane %v1313_v51, 5 }
 0x19d   : > { %771 = vst [vmem:[#allocation2 + $0x2f0] sm:$0xf] %v16250_v0  ;;  %772 = vst [vmem:[#allocation2 + $0x2f4] sm:$0xf] %v16250_v0  ;;  %2780 = vmatpush1.bf16.msra.mxu1 %v14399_v31  ;;  %v1314_v62 = vld [vmem:[#allocation2 + $0x270] sm:$0xe] }
 0x19e   : > { %773 = vst [vmem:[#allocation2 + $0x2f8] sm:$0xf] %v16250_v0  ;;  %774 = vst [vmem:[#allocation2 + $0x2fc] sm:$0xf] %v16250_v0  ;;  %2781 = vmatprep.subr.bf16.mxu1 %v14400_v32  ;;  %v1315_v1 = vld [vmem:[#allocation2 + $0x274] sm:$0x1] }
 0x19f   : > { %775 = vst [vmem:[#allocation2 + $0x300] sm:$0xf] %v16250_v0  ;;  %776 = vst [vmem:[#allocation2 + $0x304] sm:$0xf] %v16250_v0  ;;  %v1316_v2 = vld [vmem:[#allocation2 + $0x28c] sm:$0xe] }
 0x1a0   : > { %777 = vst [vmem:[#allocation2 + $0x308] sm:$0xf] %v16250_v0  ;;  %778 = vst [vmem:[#allocation2 + $0x30c] sm:$0xf] %v16250_v0  ;;  %v1317_v3 = vld [vmem:[#allocation2 + $0x290] sm:$0x1] }
 0x1a1   : > { %779 = vst [vmem:[#allocation2 + $0x310] sm:$0xf] %v16250_v0  ;;  %780 = vst [vmem:[#allocation2 + $0x314] sm:$0xf] %v16250_v0  ;;  %2782 = vmatpush1.bf16.msra.mxu1 %v14402_v37  ;;  %v14413_v4 = vld [vmem:[#allocation9 + $0x120] ss:$8 sps:$4 sm:$0xff]  }
 0x1a2   : > { %781 = vst [vmem:[#allocation2 + $0x318] sm:$0xf] %v16250_v0  ;;  %782 = vst [vmem:[#allocation2 + $0x31c] sm:$0xf] %v16250_v0  ;;  %2783 = vmatprep.subr.bf16.mxu1 %v14403_v43  ;;  %v14444_v6 = vld [vmem:[#allocation2 + $0x274] ss:$28 sps:$4 sm:$0xff]  }
 0x1a3   : > { %783 = vst [vmem:[#allocation2 + $0x320] sm:$0xf] %v16250_v0  ;;  %784 = vst [vmem:[#allocation2 + $0x324] sm:$0xf] %v16250_v0  ;;  %v977_v7 = vld [vmem:[%s16683_s27 + $0x8] sm:$0xf] }
 0x1a4   : > { %785 = vst [vmem:[#allocation2 + $0x328] sm:$0xf] %v16250_v0  ;;  %786 = vst [vmem:[#allocation2 + $0x32c] sm:$0xf] %v16250_v0  ;;  %v12514_v8 = vrot.slane %v1314_v62, 9  ;;  %v1359_v9 = vrot.slane %v1315_v1, 5 }
 0x1a5   : > { %787 = vst [vmem:[#allocation2 + $0x330] sm:$0xf] %v16250_v0  ;;  %788 = vst [vmem:[#allocation2 + $0x334] sm:$0xf] %v16250_v0  ;;  %2784 = vmatpush1.bf16.msra.mxu1 %v14405_v44  ;;  %v12515_v10 = vrot.slane %v1316_v2, 9  ;;  %v1363_v11 = vrot.slane %v1317_v3, 5 }
 0x1a6   : > { %789 = vst [vmem:[#allocation2 + $0x338] sm:$0xf] %v16250_v0  ;;  %790 = vst [vmem:[#allocation2 + $0x33c] sm:$0xf] %v16250_v0  ;;  %2826 = vmatprep.subr.bf16.mxu1 %v14409_v45  ;;  %v978_v12 = vld [vmem:[%s16683_s27 + $0xc] sm:$0xf] }
 0x1a7   : > { %791 = vst [vmem:[#allocation2 + $0x340] sm:$0xf] %v16250_v0  ;;  %792 = vst [vmem:[#allocation2 + $0x344] sm:$0xf] %v16250_v0  ;;  %v14418_v13 = vld [vmem:[#allocation9 + $0x134] ss:$8 sps:$4 sm:$0xff]  }
 0x1a8   : > { %793 = vst [vmem:[#allocation2 + $0x348] sm:$0xf] %v16250_v0  ;;  %794 = vst [vmem:[#allocation2 + $0x34c] sm:$0xf] %v16250_v0  ;;  %v14416_v14 = vld [vmem:[#allocation9 + $0x130] ss:$8 sps:$4 sm:$0xff]  }
 0x1a9   : > { %795 = vst [vmem:[#allocation2 + $0x350] sm:$0xf] %v16250_v0  ;;  %796 = vst [vmem:[#allocation2 + $0x354] sm:$0xf] %v16250_v0  ;;  %v14421_v15 = vld [vmem:[#allocation9 + $0x144] ss:$8 sps:$4 sm:$0xff]  }
 0x1aa   : > { %797 = vst [vmem:[#allocation2 + $0x358] sm:$0xf] %v16250_v0  ;;  %798 = vst [vmem:[#allocation2 + $0x35c] sm:$0xf] %v16250_v0  ;;  %v1318_v16 = vld [vmem:[#allocation2 + $0x2a8] sm:$0xe] }
 0x1ab   : > { %799 = vst [vmem:[#allocation2 + $0x360] sm:$0xf] %v16250_v0  ;;  %800 = vst [vmem:[#allocation2 + $0x364] sm:$0xf] %v16250_v0  ;;  %v1320_v17 = vld [vmem:[#allocation2 + $0x2c4] sm:$0xe] }
 0x1ac   : > { %801 = vst [vmem:[#allocation2 + $0x368] sm:$0xf] %v16250_v0  ;;  %802 = vst [vmem:[#allocation2 + $0x36c] sm:$0xf] %v16250_v0  ;;  %v1448_v21 = vld [vmem:[#allocation2 + $0x2a8] sm:$0xe] }
 0x1ad   : > { %803 = vst [vmem:[#allocation2 + $0x370] sm:$0xf] %v16250_v0  ;;  %804 = vst [vmem:[#allocation2 + $0x374] sm:$0xf] %v16250_v0  ;;  %v1450_v22 = vld [vmem:[#allocation2 + $0x2c4] sm:$0xe] }
 0x1ae   : > { %805 = vst [vmem:[#allocation2 + $0x378] sm:$0xf] %v16250_v0  ;;  %806 = vst [vmem:[#allocation2 + $0x37c] sm:$0xf] %v16250_v0  ;;  %v979_v24 = vld [vmem:[%s16683_s27 + $0x10] sm:$0xf] }
 0x1af   : > { %809 = vst [vmem:[#allocation2 + $0x388] sm:$0xf] %v16250_v0  ;;  %810 = vst [vmem:[#allocation2 + $0x38c] sm:$0xf] %v16250_v0  ;;  %v980_v25 = vld [vmem:[%s16683_s27 + $0x14] sm:$0xf] }
 0x1b0   : > { %811 = vst [vmem:[#allocation2 + $0x390] sm:$0xf] %v16250_v0  ;;  %816 = vst [vmem:[#allocation2 + $0x3a4] sm:$0xf] %v16250_v0  ;;  %v14419_v26 = vld [vmem:[#allocation9 + $0x140] ss:$8 sps:$4 sm:$0xff]  }
 0x1b1   : > { %817 = vst [vmem:[#allocation2 + $0x3a8] sm:$0xf] %v16250_v0  ;;  %818 = vst [vmem:[#allocation2 + $0x3ac] sm:$0xf] %v16250_v0  ;;  %v12516_v31 = vrot.slane %v1318_v16, 9  ;;  %v12517_v34 = vrot.slane %v1320_v17, 9 }
 0x1b2   : > { %823 = vst [vmem:[#allocation2 + $0x3c0] sm:$0xf] %v16250_v0  ;;  %824 = vst [vmem:[#allocation2 + $0x3c4] sm:$0xf] %v16250_v0  ;;  %v12526_v36 = vrot.slane %v1448_v21, 9  ;;  %vm1414_vm4 = vcmask 1044484  }
 0x1b3   : > { %825 = vst [vmem:[#allocation2 + $0x3c8] sm:$0xf] %v16250_v0  ;;  %830 = vst [vmem:[#allocation2 + $0x3dc] sm:$0xf] %v16250_v0  ;;  %v981_v44 = vld [vmem:[%s16683_s27 + $0x18] sm:$0xf] }
 0x1b4   : > { %831 = vst [vmem:[#allocation2 + $0x3e0] sm:$0xf] %v16250_v0  ;;  %832 = vst [vmem:[#allocation2 + $0x3e4] sm:$0xf] %v16250_v0  ;;  %v14427_v45 = vld [vmem:[#allocation9 + $0x164] ss:$8 sps:$4 sm:$0xff]  }
 0x1b5   : > { %836 = vst [vmem:[#allocation2 + $0x3f4] sm:$0xf] %v16250_v0  ;;  %837 = vst [vmem:[#allocation2 + $0x3f8] sm:$0xf] %v16250_v0  ;;  %v14425_v50 = vld [vmem:[#allocation9 + $0x160] ss:$8 sps:$4 sm:$0xff]  }
 0x1b6   : > { %838 = vst [vmem:[#allocation2 + $0x3fc] sm:$0xf] %v16250_v0  ;;  %839 = vst [vmem:[#allocation2 + $0x400] sm:$0xf] %v16250_v0  ;;  %v14447_v62 = vld [vmem:[#allocation9 + $0x1c4] ss:$8 sps:$4 sm:$0xff]  }
 0x1b7   : > { %840 = vst [vmem:[#allocation2 + $0x404] sm:$0xf] %v16250_v0  ;;  %843 = vst [vmem:[#allocation2 + $0x410] sm:$0xf] %v16250_v0  ;;  %v14448_v1 = vld [vmem:[#allocation9 + $0x1d0] ss:$8 sps:$4 sm:$0xff]  }
 0x1b8   : > { %844 = vst [vmem:[#allocation2 + $0x414] sm:$0xf] %v16250_v0  ;;  %845 = vst [vmem:[#allocation2 + $0x418] sm:$0xf] %v16250_v0  ;;  %v1381_v2 = vld [vmem:[#allocation2 + $0x204] sm:$0x8] }
 0x1b9   : > { %846 = vst [vmem:[#allocation2 + $0x41c] sm:$0xf] %v16250_v0  ;;  %847 = vst [vmem:[#allocation2 + $0x420] sm:$0xf] %v16250_v0  ;;  %v1382_v3 = vld [vmem:[#allocation2 + $0x208] sm:$0x7] }
 0x1ba   : > { %850 = vst [vmem:[#allocation2 + $0x42c] sm:$0xf] %v16250_v0  ;;  %851 = vst [vmem:[#allocation2 + $0x430] sm:$0xf] %v16250_v0  ;;  %vm3732_vm6 = vcmask 1041408   ;;  %vm3733_vm7 = vcmask 1045508  }
 0x1bb   : > { %852 = vst [vmem:[#allocation2 + $0x434] sm:$0xf] %v16250_v0  ;;  %853 = vst [vmem:[#allocation2 + $0x438] sm:$0xf] %v16250_v0  ;;  %v15203_v16 = vld [vmem:[#allocation9 + $0xd70] ss:$8 sps:$4 sm:$0xff]  }
 0x1bc   : > { %854 = vst [vmem:[#allocation2 + $0x43c] sm:$0xf] %v16250_v0  ;;  %857 = vst [vmem:[#allocation2 + $0x448] sm:$0xf] %v16250_v0  ;;  %vm8742_vm9 = vsmask.f32 3328 }
 0x1bd   : > { %858 = vst [vmem:[#allocation2 + $0x44c] sm:$0xf] %v16250_v0  ;;  %859 = vst [vmem:[#allocation2 + $0x450] sm:$0xf] %v16250_v0  ;;  %vm8743_vm10 = vsmask.f32 7440 }
 0x1be   : > { %860 = vst [vmem:[#allocation2 + $0x454] sm:$0xf] %v16250_v0  ;;  %861 = vst [vmem:[#allocation2 + $0x458] sm:$0xf] %v16250_v0  ;;  %vm8666_vm12 = vcmask 1043456   ;;  %vm8669_vm14 = vcmask 1047556  }
 0x1bf   : > { %864 = vst [vmem:[#allocation2 + $0x464] sm:$0xf] %v16250_v0  ;;  %865 = vst [vmem:[#allocation2 + $0x468] sm:$0xf] %v16250_v0  ;;  %vm8667_vm13 = vsmask.f32 7938 }
 0x1c0   : > { %866 = vst [vmem:[#allocation2 + $0x46c] sm:$0xf] %v16250_v0  ;;  %867 = vst [vmem:[#allocation2 + $0x470] sm:$0xf] %v16250_v0  ;;  %vm8670_vm15 = vsmask.f32 7954 }
 0x1c1   : > { %868 = vst [vmem:[#allocation2 + $0x474] sm:$0xf] %v16250_v0  ;;  %871 = vst [vmem:[#allocation2 + $0x480] sm:$0xf] %v16250_v0  ;;  %v15437_v38 = vld [vmem:[#allocation16 + $0x250] ss:$8 sps:$4 sm:$0xff]  }
 0x1c2   : > { %872 = vst [vmem:[#allocation2 + $0x484] sm:$0xf] %v16250_v0  ;;  %873 = vst [vmem:[#allocation2 + $0x488] sm:$0xf] %v16250_v0  ;;  %s12489_s26 = sshll.u32 %s16679_s30, 6  ;;  %s13785_s17 = sshll.u32 %s18601_s19, 10 }
 0x1c3   : > { %874 = vst [vmem:[#allocation2 + $0x48c] sm:$0xf] %v16250_v0  ;;  %875 = vst [vmem:[#allocation2 + $0x490] sm:$0xf] %v16250_v0  ;;  %s18471_s18 = scalar_lea.vmem [#allocation24], %s12489_s26  ;;  %s18699_s29 = sld [smem:[#allocation48_spill]] }
 0x1c4   : > { %877 = vst [vmem:[#allocation2 + $0x498] sm:$0xf] %v16250_v0  ;;  %878 = vst [vmem:[#allocation2 + $0x49c] sm:$0xf] %v16250_v0  ;;  %s12281_s25 = sshll.u32 %s18471_s18, 4  ;;  %s12268_s0 = scalar_lea.sflag [#allocation6], %s16679_s30  ;;  %s18481_s25 = int_to_ptr.vmem [resolvable:$true] %s12281_s25 }
 0x1c5   : > { %879 = vst [vmem:[#allocation2 + $0x4a0] sm:$0xf] %v16250_v0  ;;  %880 = vst [vmem:[#allocation2 + $0x4a4] sm:$0xf] %v16250_v0  ;;  %p18700_p8 = scmp.ne.s32.totalorder %s18593_s28, 0  ;;  %s16251_s19 = smov [#allocation24]  }
 0x1c6   : > { %881 = vst [vmem:[#allocation2 + $0x4a8] sm:$0xf] %v16250_v0  ;;  %882 = vst [vmem:[#allocation2 + $0x4ac] sm:$0xf] %v16250_v0  ;;  %s16146_s26 = sshll.u32 %s16251_s19, 4  ;;  %s16147_s26 = int_to_ptr.vmem [resolvable:$false] %s16146_s26 }
 0x1c7   : > { %883 = vst [vmem:[#allocation2 + $0x4b0] sm:$0xf] %v16250_v0  ;;  %884 = vst [vmem:[#allocation2 + $0x4b4] sm:$0xf] %v16250_v0  ;;  %s16148_s2 = scalar_lea.vmem %s16147_s26, 2048  ;;  %p16149_p11 = scmp.lt.s32.totalorder %s18481_s25, %s16147_s26 }
 0x1c8   : > { %885 = vst [vmem:[#allocation2 + $0x4b8] sm:$0xf] %v16250_v0  ;;  %886 = vst [vmem:[#allocation2 + $0x4bc] sm:$0xf] %v16250_v0 }
 0x1c9   : > { %887 = vst [vmem:[#allocation2 + $0x4c0] sm:$0xf] %v16250_v0  ;;  %888 = vst [vmem:[#allocation2 + $0x4c4] sm:$0xf] %v16250_v0  ;;  %s18486_s12 = scalar_lea.hbm %s18699_s29, %s13785_s17 }
 0x1ca   : > { %889 = vst [vmem:[#allocation2 + $0x4c8] sm:$0xf] %v16250_v0  ;;  %890 = vst [vmem:[#allocation2 + $0x4cc] sm:$0xf] %v16250_v0 }
 0x1cb   : > { %891 = vst [vmem:[#allocation2 + $0x4d0] sm:$0xf] %v16250_v0  ;;  %892 = vst [vmem:[#allocation2 + $0x4d4] sm:$0xf] %v16250_v0 }
 0x1cc   : > { %894 = vst [vmem:[#allocation2 + $0x4dc] sm:$0xf] %v16250_v0  ;;  %896 = vst [vmem:[#allocation2 + $0x4e4] sm:$0xf] %v16250_v0 }
 0x1cd   : > { %897 = vst [vmem:[#allocation2 + $0x4e8] sm:$0xf] %v16250_v0  ;;  %898 = vst [vmem:[#allocation2 + $0x4ec] sm:$0xf] %v16250_v0 }
 0x1ce   : > { %899 = vst [vmem:[#allocation2 + $0x4f0] sm:$0xf] %v16250_v0  ;;  %901 = vst [vmem:[#allocation2 + $0x4f8] sm:$0xf] %v16250_v0 }
 0x1cf   : > { %903 = vst [vmem:[#allocation2 + $0x500] sm:$0xf] %v16250_v0  ;;  %904 = vst [vmem:[#allocation2 + $0x504] sm:$0xf] %v16250_v0 }
 0x1d0   : > { %905 = vst [vmem:[#allocation2 + $0x508] sm:$0xf] %v16250_v0  ;;  %906 = vst [vmem:[#allocation2 + $0x50c] sm:$0xf] %v16250_v0 }
 0x1d1   : > { %908 = vst [vmem:[#allocation2 + $0x514] sm:$0xf] %v16250_v0  ;;  %910 = vst [vmem:[#allocation2 + $0x51c] sm:$0xf] %v16250_v0 }
 0x1d2   : > { %911 = vst [vmem:[#allocation2 + $0x520] sm:$0xf] %v16250_v0  ;;  %912 = vst [vmem:[#allocation2 + $0x524] sm:$0xf] %v16250_v0 }
 0x1d3   : > { %913 = vst [vmem:[#allocation2 + $0x528] sm:$0xf] %v16250_v0  ;;  %915 = vst [vmem:[#allocation2 + $0x530] sm:$0xf] %v16250_v0 }
 0x1d4   : > { %917 = vst [vmem:[#allocation2 + $0x538] sm:$0xf] %v16250_v0  ;;  %918 = vst [vmem:[#allocation2 + $0x53c] sm:$0xf] %v16250_v0 }
 0x1d5   : > { %919 = vst [vmem:[#allocation2 + $0x540] sm:$0xf] %v16250_v0  ;;  %920 = vst [vmem:[#allocation2 + $0x544] sm:$0xf] %v16250_v0 }
 0x1d6   : > { %922 = vst [vmem:[#allocation2 + $0x54c] sm:$0xf] %v16250_v0  ;;  %924 = vst [vmem:[#allocation2 + $0x554] sm:$0xf] %v16250_v0 }
 0x1d7   : > { %925 = vst [vmem:[#allocation2 + $0x558] sm:$0xf] %v16250_v0  ;;  %926 = vst [vmem:[#allocation2 + $0x55c] sm:$0xf] %v16250_v0 }
 0x1d8   : > { %927 = vst [vmem:[#allocation2 + $0x560] sm:$0xf] %v16250_v0  ;;  %929 = vst [vmem:[#allocation2 + $0x568] sm:$0xf] %v16250_v0 }
 0x1d9   : > { %931 = vst [vmem:[#allocation2 + $0x570] sm:$0xf] %v16250_v0  ;;  %932 = vst [vmem:[#allocation2 + $0x574] sm:$0xf] %v16250_v0 }
 0x1da   : > { %8509 = vst [vmem:[#allocation3] sm:$0xff] %v16250_v0  ;;  %8510 = vst [vmem:[#allocation3 + $0x8] sm:$0x11] %v16250_v0 }
 0x1db   : > { %8512 = vst [vmem:[#allocation3 + $0x18] sm:$0x11] %v16250_v0  ;;  %8514 = vst [vmem:[#allocation3 + $0x28] sm:$0x11] %v16250_v0 }
 0x1dc   : > { %8516 = vst [vmem:[#allocation3 + $0x38] sm:$0x11] %v16250_v0  ;;  %8518 = vst [vmem:[#allocation3 + $0x48] sm:$0x11] %v16250_v0 }
 0x1dd   : > { %8520 = vst [vmem:[#allocation3 + $0x58] sm:$0x11] %v16250_v0  ;;  %8522 = vst [vmem:[#allocation3 + $0x68] sm:$0x11] %v16250_v0 }
 0x1de   : > { %8524 = vst [vmem:[#allocation3 + $0x78] sm:$0x11] %v16250_v0  ;;  %8526 = vst [vmem:[#allocation3 + $0x88] sm:$0x11] %v16250_v0 }
 0x1df   : > { %8527 = vst [vmem:[#allocation3 + $0x90] sm:$0xff] %v16250_v0  ;;  %8528 = vst [vmem:[#allocation3 + $0x98] sm:$0x11] %v16250_v0 }
 0x1e0   : > { %984 = vst [vmem:[#allocation2 + $0x2ac] sm:$0xf] %v975_v29  ;;  %985 = vst [vmem:[#allocation2 + $0x2c8] sm:$0xf] %v976_v30  ;;  %v14424_v29 = vld [vmem:[#allocation9 + $0x154] ss:$8 sps:$4 sm:$0xff]  }
 0x1e1   : > { %vm16956_vm2 = vmor %vm1338_vm0, %vm1339_vm1  ;;  %986 = vst [vmem:[#allocation2 + $0x2e4] sm:$0xf] %v977_v7  ;;  %v1452_v7 = vld [vmem:[#allocation2 + $0x2e0] sm:$0xe]  ;;  %vm8676_vm0 = vsmask.f32 256 }
 0x1e2   : > { %v1344_v47 = vsel %vm16956_vm2, %v12510_v39, %v1343_v40  ;;  %v1348_v48 = vsel %vm16956_vm2, %v12511_v41, %v1347_v42  ;;  %v1352_v63 = vsel %vm16956_vm2, %v12512_v55, %v1351_v56  ;;  %v1356_v0 = vsel %vm16956_vm2, %v12513_v57, %v1355_v58  ;;  %987 = vst [vmem:[#allocation2 + $0x300] sm:$0xf] %v978_v12  ;;  %v14422_v41 = vld [vmem:[#allocation9 + $0x150] ss:$8 sps:$4 sm:$0xff]   ;;  %v14431_v55 = vld [vmem:[#allocation9 + $0x180] ss:$8 sps:$4 sm:$0xff]   ;;  %vm16988_vm5 = vmor %vm1413_vm3, %vm1414_vm4 }
 0x1e3   : > { %v12558_v53 = vcombine.low %v1344_v47, %v1348_v48  ;;  %v12559_v5 = vcombine.low %v1352_v63, %v1356_v0  ;;  %v1360_v18 = vsel %vm16956_vm2, %v12514_v8, %v1359_v9  ;;  %v1364_v19 = vsel %vm16956_vm2, %v12515_v10, %v1363_v11  ;;  %988 = vst [vmem:[#allocation2 + $0x31c] sm:$0xf] %v979_v24  ;;  %v982_v48 = vld [vmem:[%s16683_s27 + $0x1c] sm:$0xf]  ;;  %v14434_v57 = vld [vmem:[#allocation9 + $0x190] ss:$8 sps:$4 sm:$0xff]   ;;  %vm17167_vm8 = vmor %vm3732_vm6, %vm3733_vm7 }
 0x1e4   : > { %989 = vst [vmem:[#allocation2 + $0x338] sm:$0xf] %v980_v25  ;;  %v12560_v30 = vcombine.low %v1360_v18, %v1364_v19  ;;  %v12527_v39 = vrot.slane %v1450_v22, 9  ;;  %990 = vst [vmem:[#allocation2 + $0x354] sm:$0xf] %v981_v44  ;;  %v12528_v18 = vrot.slane %v1452_v7, 9 }
 0x1e5   : > { %2786 = vmatmul.mubr.bf16.vlgmr.msra.gmra.mrb[0].mxu1 %v12558_v53  ;;  %991 = vst [vmem:[#allocation2 + $0x370] sm:$0xf] %v982_v48  ;;  %v14428_v53 = vld [vmem:[#allocation9 + $0x170] ss:$8 sps:$4 sm:$0xff]   ;;  %v14436_v56 = vld [vmem:[#allocation9 + $0x194] ss:$8 sps:$4 sm:$0xff]   ;;  %vm17655_vm11 = vmor %vm8742_vm9, %vm8743_vm10 }
 0x1e6   : > { %2827 = vmatpush1.bf16.msra.mxu1 %v14407_v52  ;;  %2795 = vmatprep.mubr.bf16.mxu1 %v14437_v54  ;;  %v14430_v52 = vld [vmem:[#allocation9 + $0x174] ss:$8 sps:$4 sm:$0xff]   ;;  %v14433_v54 = vld [vmem:[#allocation9 + $0x184] ss:$8 sps:$4 sm:$0xff]   ;;  %v14445_v63 = vld [vmem:[#allocation9 + $0x1c0] ss:$8 sps:$4 sm:$0xff]  }
 0x1e7   : > { %2828 = vmatprep.subr.bf16.mxu1 %v14412_v59  ;;  %v1319_v20 = vld [vmem:[#allocation2 + $0x2ac] sm:$0x1]  ;;  %v1321_v23 = vld [vmem:[#allocation2 + $0x2c8] sm:$0x1]  ;;  %v14450_v0 = vld [vmem:[#allocation9 + $0x1d4] ss:$8 sps:$4 sm:$0xff]  }
 0x1e8   : > { %v1449_v27 = vld [vmem:[#allocation2 + $0x2ac] sm:$0x1]  ;;  %v1451_v28 = vld [vmem:[#allocation2 + $0x2c8] sm:$0x1]  ;;  %v1367_v33 = vrot.slane %v1319_v20, 5  ;;  %v1371_v35 = vrot.slane %v1321_v23, 5  ;;  %vm17701_vm1 = vmand %vm8666_vm12, %vm8667_vm13 }
 0x1e9   : > { %v14451_v32 = vld [vmem:[#allocation2 + $0x2ac] ss:$28 sps:$4 sm:$0xff]   ;;  %v1482_v37 = vrot.slane %v1449_v27, 5  ;;  %v1486_v40 = vrot.slane %v1451_v28, 5  ;;  %v1453_v8 = vld [vmem:[#allocation2 + $0x2e4] sm:$0x1]  ;;  %vm8671_vm6 = vmand %vm8669_vm14, %vm8670_vm15 }
 0x1ea   : > { %2829 = vmatpush1.bf16.msra.mxu1 %v14410_v60  ;;  %v1368_v42 = vsel %vm16956_vm2, %v12516_v31, %v1367_v33  ;;  %v1372_v43 = vsel %vm16956_vm2, %v12517_v34, %v1371_v35  ;;  %v14440_v58 = vld [vmem:[#allocation9 + $0x1a4] ss:$8 sps:$4 sm:$0xff]   ;;  %v14438_v59 = vld [vmem:[#allocation9 + $0x1a0] ss:$8 sps:$4 sm:$0xff]   ;;  %v14443_v60 = vld [vmem:[#allocation9 + $0x1b4] ss:$8 sps:$4 sm:$0xff]  }
 0x1eb   : > { %2830 = vmatprep.subr.bf16.mxu1 %v14415_v61  ;;  %v1483_v46 = vsel %vm16956_vm2, %v12526_v36, %v1482_v37  ;;  %v1487_v47 = vsel %vm16956_vm2, %v12527_v39, %v1486_v40  ;;  %v12561_v49 = vcombine.low %v1368_v42, %v1372_v43  ;;  %v14441_v61 = vld [vmem:[#allocation9 + $0x1b0] ss:$8 sps:$4 sm:$0xff]   ;;  %v1454_v9 = vld [vmem:[#allocation2 + $0x2fc] sm:$0xe]  ;;  %v14452_v10 = vld [vmem:[#allocation9 + $0x1e0] ss:$8 sps:$4 sm:$0xff]  }
 0x1ec   : > { %v12570_v51 = vcombine.low %v1483_v46, %v1487_v47  ;;  %v1455_v11 = vld [vmem:[#allocation2 + $0x300] sm:$0x1]  ;;  %v14457_v12 = vld [vmem:[#allocation9 + $0x1f4] ss:$8 sps:$4 sm:$0xff]   ;;  %v1490_v19 = vrot.slane %v1453_v8, 5  ;;  %v12529_v20 = vrot.slane %v1454_v9, 9  ;;  %vm17728_vm7 = vmor %vm8671_vm6, %vm17701_vm1 }
 0x1ed   : > { %2796 = vmatmul.mubr.bf16.gmra.mrb[4].mxu1 %v12559_v5  ;;  %v14454_v5 = vld [vmem:[#allocation9 + $0x1e4] ss:$8 sps:$4 sm:$0xff]   ;;  %v1494_v21 = vrot.slane %v1455_v11, 5  ;;  %v14455_v22 = vld [vmem:[#allocation9 + $0x1f0] ss:$8 sps:$4 sm:$0xff]  }
 0x1ee   : > { %2831 = vmatpush1.bf16.msra.mxu1 %v14413_v4  ;;  %2805 = vmatprep.mubr.bf16.mxu1 %v14444_v6  ;;  %v1383_v4 = vld [vmem:[#allocation2 + $0x220] sm:$0x8]  ;;  %v1384_v6 = vld [vmem:[#allocation2 + $0x224] sm:$0x7]  ;;  %v1385_v23 = vld [vmem:[#allocation2 + $0x23c] sm:$0x8] }
 0x1ef   : > { %2832 = vmatprep.subr.bf16.mxu1 %v14418_v13  ;;  %v12518_v13 = vrot.slane %v1381_v2, 11  ;;  %v1422_v17 = vrot.slane %v1384_v6, 7  ;;  %v14460_v24 = vld [vmem:[#allocation9 + $0x204] ss:$8 sps:$4 sm:$0xff]   ;;  %v1386_v27 = vld [vmem:[#allocation2 + $0x240] sm:$0x7] }
 0x1f0   : > { %v1387_v28 = vld [vmem:[#allocation2 + $0x258] sm:$0x8]  ;;  %v1388_v31 = vld [vmem:[#allocation2 + $0x25c] sm:$0x7]  ;;  %v1458_v33 = vld [vmem:[#allocation2 + $0x334] sm:$0xe] }
 0x1f1   : > { %v14458_v34 = vld [vmem:[#allocation9 + $0x200] ss:$8 sps:$4 sm:$0xff]   ;;  %v1457_v35 = vld [vmem:[#allocation2 + $0x31c] sm:$0x1]  ;;  %v1459_v36 = vld [vmem:[#allocation2 + $0x338] sm:$0x1] }
 0x1f2   : > { %2833 = vmatpush1.bf16.msra.mxu1 %v14416_v14  ;;  %v1418_v14 = vrot.slane %v1382_v3, 7  ;;  %v14463_v39 = vld [vmem:[#allocation9 + $0x214] ss:$8 sps:$4 sm:$0xff]   ;;  %v12520_v40 = vrot.slane %v1385_v23, 11  ;;  %v12521_v43 = vrot.slane %v1387_v28, 11  ;;  %v1430_v44 = vrot.slane %v1388_v31, 7 }
 0x1f3   : > { %2834 = vmatprep.subr.bf16.mxu1 %v14421_v15  ;;  %v12519_v15 = vrot.slane %v1383_v4, 11  ;;  %v1498_v46 = vrot.slane %v1457_v35, 5  ;;  %v12531_v47 = vrot.slane %v1458_v33, 9  ;;  %v1502_v48 = vrot.slane %v1459_v36, 5  ;;  %v14467_v11 = vld [vmem:[#allocation9 + $0x230] ss:$8 sps:$4 sm:$0xff]  }
 0x1f4   : > { %v1419_v25 = vsel %vm16988_vm5, %v12518_v13, %v1418_v14  ;;  %v14472_v13 = vld [vmem:[#allocation9 + $0x244] ss:$8 sps:$4 sm:$0xff]   ;;  %v1521_v23 = vld [vmem:[#allocation2 + $0x2b0] sm:$0x7] }
 0x1f5   : > { %2806 = vmatmul.mubr.bf16.gmra.mrb[8].mxu1 %v12560_v30  ;;  %v1495_v30 = vsel %vm16956_vm2, %v12529_v20, %v1494_v21  ;;  %v1396_v21 = vld [vmem:[#allocation2 + $0x2cc] sm:$0x7]  ;;  %v1554_v35 = vrot.slane %v1521_v23, 7 }
 0x1f6   : > { %2835 = vmatpush1.bf16.msra.mxu1 %v14419_v26  ;;  %2815 = vmatprep.mubr.bf16.mxu1 %v14451_v32  ;;  %v1423_v26 = vsel %vm16988_vm5, %v12519_v15, %v1422_v17  ;;  %v1456_v32 = vld [vmem:[#allocation2 + $0x318] sm:$0xe]  ;;  %v1394_v17 = vld [vmem:[#allocation2 + $0x2b0] sm:$0x7]  ;;  %v1446_v33 = vrot.slane %v1396_v21, 7 }
 0x1f7   : > { %2836 = vmatprep.subr.bf16.mxu1 %v14424_v29  ;;  %v1491_v29 = vsel %vm16956_vm2, %v12528_v18, %v1490_v19  ;;  %v12566_v37 = vcombine.low %v1419_v25, %v1423_v26  ;;  %v1395_v18 = vld [vmem:[#allocation2 + $0x2c8] sm:$0x8]  ;;  %v1523_v26 = vld [vmem:[#allocation2 + $0x2cc] sm:$0x7]  ;;  %v1442_v31 = vrot.slane %v1394_v17, 7 }
 0x1f8   : > { %v12571_v42 = vcombine.low %v1491_v29, %v1495_v30  ;;  %v1522_v25 = vld [vmem:[#allocation2 + $0x2c8] sm:$0x8]  ;;  %v1528_v17 = vld [vmem:[#allocation2 + $0x31c] sm:$0x8]  ;;  %v14591_v21 = vld [vmem:[#allocation7 + $0x10] ss:$8 sps:$4 sm:$0xff]  }
 0x1f9   : > { %v12535_v36 = vrot.slane %v1522_v25, 11  ;;  %v14592_v23 = vld [vmem:[#allocation7 + $0x24] ss:$8 sps:$4 sm:$0xff]  }
 0x1fa   : > { %2837 = vmatpush1.bf16.msra.mxu1 %v14422_v41  ;;  %v1426_v41 = vrot.slane %v1386_v27, 7  ;;  %v14475_v27 = vld [vmem:[#allocation9 + $0x254] ss:$8 sps:$4 sm:$0xff]  }
 0x1fb   : > { %2838 = vmatprep.subr.bf16.mxu1 %v14427_v45  ;;  %v12530_v45 = vrot.slane %v1456_v32, 9  ;;  %v12525_v32 = vrot.slane %v1395_v18, 11  ;;  %v1529_v18 = vld [vmem:[#allocation2 + $0x320] sm:$0x7] }
 0x1fd   : > { %2816 = vmatmul.mubr.bf16.gmra.mrb[12].mxu1 %v12561_v49  ;;  %v14461_v49 = vld [vmem:[#allocation9 + $0x210] ss:$8 sps:$4 sm:$0xff]  }
 0x1fe   : > { %2839 = vmatpush1.bf16.msra.mxu1 %v14425_v50  ;;  %2858 = vmatprep.mubr.bf16.mxu1 %v12570_v51  ;;  %v1389_v50 = vld [vmem:[#allocation2 + $0x274] sm:$0x8]  ;;  %v14466_v51 = vld [vmem:[#allocation9 + $0x224] ss:$8 sps:$4 sm:$0xff]  }
 0x1ff   : > { %2840 = vmatprep.subr.bf16.mxu1 %v14430_v52  ;;  %v1427_v52 = vsel %vm16988_vm5, %v12520_v40, %v1426_v41  ;;  %v12522_v2 = vrot.slane %v1389_v50, 11  ;;  %v1447_v41 = vsel %vm16988_vm5, %v12525_v32, %v1446_v33  ;;  %v14484_v50 = vld [vmem:[#allocation9 + $0x284] ss:$8 sps:$4 sm:$0xff]  }
 0x202   : > { %2841 = vmatpush1.bf16.msra.mxu1 %v14428_v53  ;;  %v1431_v53 = vsel %vm16988_vm5, %v12521_v43, %v1430_v44 }
 0x203   : > { %2842 = vmatprep.subr.bf16.mxu1 %v14433_v54  ;;  %v1390_v54 = vld [vmem:[#allocation2 + $0x278] sm:$0x7] }
 0x204   : > { %v1434_v4 = vrot.slane %v1390_v54, 7  ;;  %v14490_v54 = vld [vmem:[#allocation9 + $0x2a4] ss:$8 sps:$4 sm:$0xff]  }
 0x206   : > { %2843 = vmatpush1.bf16.msra.mxu1 %v14431_v55  ;;  %v1391_v55 = vld [vmem:[#allocation2 + $0x290] sm:$0x8]  ;;  %v1435_v14 = vsel %vm16988_vm5, %v12522_v2, %v1434_v4  ;;  %v1527_v2 = vld [vmem:[#allocation2 + $0x304] sm:$0x7]  ;;  %v14505_v4 = vld [vmem:[#allocation9 + $0x2f4] ss:$8 sps:$4 sm:$0xff]  }
 0x207   : > { %2844 = vmatprep.subr.bf16.mxu1 %v14436_v56  ;;  %v1499_v56 = vsel %vm16956_vm2, %v12530_v45, %v1498_v46  ;;  %v14476_v46 = vld [vmem:[#allocation9 + $0x260] ss:$8 sps:$4 sm:$0xff]  }
 0x20a   : > { %2845 = vmatpush1.bf16.msra.mxu1 %v14434_v57  ;;  %v1503_v57 = vsel %vm16956_vm2, %v12531_v47, %v1502_v48  ;;  %v14481_v48 = vld [vmem:[#allocation9 + $0x274] ss:$8 sps:$4 sm:$0xff]  }
 0x20b   : > { %2846 = vmatprep.subr.bf16.mxu1 %v14440_v58  ;;  %v1392_v58 = vld [vmem:[#allocation2 + $0x294] sm:$0x7]  ;;  %v12572_v3 = vcombine.low %v1499_v56, %v1503_v57  ;;  %v14491_v57 = vld [vmem:[#allocation9 + $0x2b0] ss:$8 sps:$4 sm:$0xff]  }
 0x20c   : > { %v1438_v6 = vrot.slane %v1392_v58, 7  ;;  %v14493_v56 = vld [vmem:[#allocation9 + $0x2b4] ss:$8 sps:$4 sm:$0xff]   ;;  %v14496_v58 = vld [vmem:[#allocation9 + $0x2c4] ss:$8 sps:$4 sm:$0xff]  }
 0x20e   : > { %2847 = vmatpush1.bf16.msra.mxu1 %v14438_v59  ;;  %v1460_v59 = vld [vmem:[#allocation2 + $0x350] sm:$0xe] }
 0x20f   : > { %2848 = vmatprep.subr.bf16.mxu1 %v14443_v60  ;;  %v1462_v60 = vld [vmem:[#allocation2 + $0x36c] sm:$0xe]  ;;  %v12532_v7 = vrot.slane %v1460_v59, 9  ;;  %v14494_v59 = vld [vmem:[#allocation9 + $0x2c0] ss:$8 sps:$4 sm:$0xff]  }
 0x210   : > { %v12533_v9 = vrot.slane %v1462_v60, 9  ;;  %v14499_v60 = vld [vmem:[#allocation9 + $0x2d4] ss:$8 sps:$4 sm:$0xff]  }
 0x212   : > { %2849 = vmatpush1.bf16.msra.mxu1 %v14441_v61  ;;  %v14464_v61 = vld [vmem:[#allocation9 + $0x220] ss:$8 sps:$4 sm:$0xff]  }
 0x213   : > { %2850 = vmatprep.subr.bf16.mxu1 %v14447_v62  ;;  %v1461_v62 = vld [vmem:[#allocation2 + $0x354] sm:$0x1] }
 0x214   : > { %v1506_v8 = vrot.slane %v1461_v62, 5  ;;  %v14502_v62 = vld [vmem:[#allocation9 + $0x2e4] ss:$8 sps:$4 sm:$0xff]  }
 0x216   : > { %2851 = vmatpush1.bf16.msra.mxu1 %v14445_v63  ;;  %v1463_v63 = vld [vmem:[#allocation2 + $0x370] sm:$0x1]  ;;  %v1507_v19 = vsel %vm16956_vm2, %v12532_v7, %v1506_v8  ;;  %v1566_v8 = vrot.slane %v1527_v2, 7  ;;  %v14601_v2 = vld [vmem:[#allocation7 + $0x54] ss:$8 sps:$4 sm:$0xff]  }
 0x217   : > { %2852 = vmatprep.subr.bf16.mxu1 %v14450_v0  ;;  %v14469_v0 = vld [vmem:[#allocation9 + $0x234] ss:$8 sps:$4 sm:$0xff]  }
 0x21a   : > { %2853 = vmatpush1.bf16.msra.mxu1 %v14448_v1  ;;  %v12567_v1 = vcombine.low %v1427_v52, %v1431_v53  ;;  %v14487_v52 = vld [vmem:[#allocation9 + $0x294] ss:$8 sps:$4 sm:$0xff]   ;;  %v14485_v53 = vld [vmem:[#allocation9 + $0x290] ss:$8 sps:$4 sm:$0xff]  }
 0x21b   : > { %2854 = vmatprep.subr.bf16.mxu1 %v14454_v5  ;;  %v12523_v5 = vrot.slane %v1391_v55, 11  ;;  %v14488_v55 = vld [vmem:[#allocation9 + $0x2a0] ss:$8 sps:$4 sm:$0xff]  }
 0x21d   : > { %v1439_v15 = vsel %vm16988_vm5, %v12523_v5, %v1438_v6 }
 0x21e   : > { %2855 = vmatpush1.bf16.msra.mxu1 %v14452_v10  ;;  %v1510_v10 = vrot.slane %v1463_v63, 5  ;;  %v12568_v28 = vcombine.low %v1435_v14, %v1439_v15  ;;  %v1524_v63 = vld [vmem:[#allocation2 + $0x2e4] sm:$0x8] }
 0x21f   : > { %2856 = vmatprep.subr.bf16.mxu1 %v14457_v12  ;;  %v1393_v12 = vld [vmem:[#allocation2 + $0x2ac] sm:$0x8]  ;;  %v12536_v5 = vrot.slane %v1524_v63, 11  ;;  %v17048_v63 = vld [vmem:[%s16683_s27 + $0x18] sm:$0xff]  }
 0x220   : > { %v1511_v20 = vsel %vm16956_vm2, %v12533_v9, %v1510_v10  ;;  %v12524_v29 = vrot.slane %v1393_v12, 11  ;;  %v14586_v9 = vld [vmem:[#allocation7 + $0x4] ss:$8 sps:$4 sm:$0xff]   ;;  %v14588_v10 = vld [vmem:[#allocation7] ss:$8 sps:$4 sm:$0xff]  }
 0x221   : > { %v12573_v30 = vcombine.low %v1507_v19, %v1511_v20  ;;  %v14503_v12 = vld [vmem:[#allocation9 + $0x2f0] ss:$8 sps:$4 sm:$0xff]   ;;  %1120 = vmatprep.subr.bf16.mxu0 %v14586_v9  ;;  %v1531_v20 = vld [vmem:[#allocation2 + $0x33c] sm:$0x7] }
 0x222   : > { %2857 = vmatpush1.bf16.msra.mxu1 %v14455_v22  ;;  %v1520_v22 = vld [vmem:[#allocation2 + $0x2ac] sm:$0x8]  ;;  %v1443_v40 = vsel %vm16988_vm5, %v12524_v29, %v1442_v31  ;;  %v1530_v19 = vld [vmem:[#allocation2 + $0x338] sm:$0x8]  ;;  %1121 = vmatpush1.bf16.msra.mxu0 %v14588_v10  ;;  %v14512_v29 = vld [vmem:[#allocation9 + $0x314] ss:$8 sps:$4 sm:$0xff]  }
 0x223   : > { %2899 = vmatprep.subr.bf16.mxu1 %v14460_v24  ;;  %v14470_v24 = vld [vmem:[#allocation9 + $0x240] ss:$8 sps:$4 sm:$0xff]   ;;  %v12569_v45 = vcombine.low %v1443_v40, %v1447_v41  ;;  %v1574_v31 = vrot.slane %v1531_v20, 7  ;;  %v14510_v41 = vld [vmem:[#allocation9 + $0x310] ss:$8 sps:$4 sm:$0xff]  }
 0x224   : > { %v14603_v9 = vld [vmem:[#allocation7 + $0x50] ss:$8 sps:$4 sm:$0xff]   ;;  %v14606_v20 = vld [vmem:[#allocation7 + $0x60] ss:$8 sps:$4 sm:$0xff]  }
 0x225   : > { %2859 = vmatmul.mubr.bf16.vlgmr.msra.gmra.mrb[0].mxu1 %v12566_v37  ;;  %v1558_v37 = vrot.slane %v1523_v26, 7  ;;  %v12538_v26 = vrot.slane %v1528_v17, 11  ;;  %v14544_v10 = vld [vmem:[#allocation2 + $0x31c] ss:$28 sps:$4 sm:$0xff]  }
 0x226   : > { %2900 = vmatpush1.bf16.msra.mxu1 %v14458_v34  ;;  %2868 = vmatprep.mubr.bf16.mxu1 %v12571_v42  ;;  %v12534_v34 = vrot.slane %v1520_v22, 11  ;;  %v14478_v42 = vld [vmem:[#allocation9 + $0x264] ss:$8 sps:$4 sm:$0xff]  }
 0x227   : > { %2901 = vmatprep.subr.bf16.mxu1 %v14463_v39  ;;  %v14473_v39 = vld [vmem:[#allocation9 + $0x250] ss:$8 sps:$4 sm:$0xff]   ;;  %v1559_v44 = vsel %vm16988_vm5, %v12535_v36, %v1558_v37  ;;  %v14509_v22 = vld [vmem:[#allocation2 + $0x2ac] ss:$28 sps:$4 sm:$0xff]   ;;  %v14595_v37 = vld [vmem:[#allocation7 + $0x34] ss:$8 sps:$4 sm:$0xff]  }
 0x228   : > { %v1555_v43 = vsel %vm16988_vm5, %v12534_v34, %v1554_v35  ;;  %v17034_v34 = vld [vmem:[%s16683_s27 + $0x8] sm:$0xff]  }
 0x229   : > { %v12578_v47 = vcombine.low %v1555_v43, %v1559_v44  ;;  %v14594_v35 = vld [vmem:[#allocation7 + $0x20] ss:$8 sps:$4 sm:$0xff]   ;;  %v7984_v36 = vunpack.c.l.bf16 %v17034_v34  ;;  %v7985_v40 = vunpack.c.h.bf16 %v17034_v34  ;;  %v14515_v43 = vld [vmem:[#allocation9 + $0x324] ss:$8 sps:$4 sm:$0xff]  }
 0x22a   : > { %2902 = vmatpush1.bf16.msra.mxu1 %v14461_v49  ;;  %v14479_v49 = vld [vmem:[#allocation9 + $0x270] ss:$8 sps:$4 sm:$0xff]  }
 0x22b   : > { %2903 = vmatprep.subr.bf16.mxu1 %v14466_v51  ;;  %v14482_v51 = vld [vmem:[#allocation9 + $0x280] ss:$8 sps:$4 sm:$0xff]  }
 0x22d   : > { %2869 = vmatmul.mubr.bf16.gmra.mrb[4].mxu1 %v12567_v1  ;;  %v1526_v1 = vld [vmem:[#allocation2 + $0x300] sm:$0x8] }
 0x22e   : > { %2904 = vmatpush1.bf16.msra.mxu1 %v14464_v61  ;;  %2878 = vmatprep.mubr.bf16.mxu1 %v12572_v3  ;;  %v14497_v61 = vld [vmem:[#allocation9 + $0x2d0] ss:$8 sps:$4 sm:$0xff]   ;;  %v14500_v3 = vld [vmem:[#allocation9 + $0x2e0] ss:$8 sps:$4 sm:$0xff]   ;;  %v12537_v7 = vrot.slane %v1526_v1, 11 }
 0x22f   : > { %2905 = vmatprep.subr.bf16.mxu1 %v14469_v0  ;;  %v1525_v0 = vld [vmem:[#allocation2 + $0x2e8] sm:$0x7] }
 0x230   : > { %v1562_v6 = vrot.slane %v1525_v0, 7  ;;  %v1567_v15 = vsel %vm16988_vm5, %v12537_v7, %v1566_v8  ;;  %v7989_v7 = vunpack.c.h.bf16 %v17048_v63  ;;  %v14521_v8 = vld [vmem:[#allocation9 + $0x344] ss:$8 sps:$4 sm:$0xff]  }
 0x232   : > { %2906 = vmatpush1.bf16.msra.mxu1 %v14467_v11  ;;  %v14589_v11 = vld [vmem:[#allocation7 + $0x14] ss:$8 sps:$4 sm:$0xff]   ;;  %v1563_v14 = vsel %vm16988_vm5, %v12536_v5, %v1562_v6  ;;  %v14516_v5 = vld [vmem:[#allocation9 + $0x330] ss:$8 sps:$4 sm:$0xff]  }
 0x233   : > { %2907 = vmatprep.subr.bf16.mxu1 %v14472_v13  ;;  %v14508_v13 = vld [vmem:[#allocation9 + $0x304] ss:$8 sps:$4 sm:$0xff]   ;;  %1122 = vmatprep.subr.bf16.mxu0 %v14589_v11  ;;  %v12579_v25 = vcombine.low %v1563_v14, %v1567_v15  ;;  %v14519_v15 = vld [vmem:[#allocation9 + $0x340] ss:$8 sps:$4 sm:$0xff]  }
 0x234   : > { %1123 = vmatpush1.bf16.msra.mxu0 %v14591_v21  ;;  %v14607_v21 = vld [vmem:[#allocation7 + $0x74] ss:$8 sps:$4 sm:$0xff]  }
 0x235   : > { %2879 = vmatmul.mubr.bf16.gmra.mrb[8].mxu1 %v12568_v28  ;;  %v17029_v28 = vld [vmem:[%s16683_s27] sm:$0xff]   ;;  %1124 = vmatprep.subr.bf16.mxu0 %v14592_v23 }
 0x236   : > { %2908 = vmatpush1.bf16.msra.mxu1 %v14470_v24  ;;  %2888 = vmatprep.mubr.bf16.mxu1 %v12573_v30  ;;  %v14506_v24 = vld [vmem:[#allocation9 + $0x300] ss:$8 sps:$4 sm:$0xff]   ;;  %v12539_v30 = vrot.slane %v1530_v19, 11  ;;  %v7982_v32 = vunpack.c.l.bf16 %v17029_v28  ;;  %v7983_v33 = vunpack.c.h.bf16 %v17029_v28  ;;  %v14527_v23 = vld [vmem:[#allocation9 + $0x364] ss:$8 sps:$4 sm:$0xff]  }
 0x237   : > { %2909 = vmatprep.subr.bf16.mxu1 %v14475_v27  ;;  %v1570_v27 = vrot.slane %v1529_v18, 7  ;;  %v14524_v18 = vld [vmem:[#allocation9 + $0x354] ss:$8 sps:$4 sm:$0xff]  }
 0x238   : > { %1125 = vmatpush1.bf16.msra.mxu0 %v14594_v35  ;;  %v14536_v35 = vld [vmem:[#allocation9 + $0x394] ss:$8 sps:$4 sm:$0xff]  }
 0x239   : > { %v1571_v44 = vsel %vm16988_vm5, %v12538_v26, %v1570_v27  ;;  %1126 = vmatprep.subr.bf16.mxu0 %v14595_v37  ;;  %v14525_v26 = vld [vmem:[#allocation9 + $0x360] ss:$8 sps:$4 sm:$0xff]   ;;  %v14558_v27 = vld [vmem:[#allocation2 + $0x354] ss:$28 sps:$4 sm:$0xff]   ;;  %v14540_v37 = vld [vmem:[#allocation9 + $0x3a4] ss:$8 sps:$4 sm:$0xff]  }
 0x23a   : > { %2910 = vmatpush1.bf16.msra.mxu1 %v14473_v39  ;;  %v7990_v39 = vadd.f32 %v7983_v33, %v7982_v32  ;;  %v14531_v32 = vld [vmem:[#allocation9 + $0x380] ss:$8 sps:$4 sm:$0xff]  }
 0x23b   : > { %2911 = vmatprep.subr.bf16.mxu1 %v14478_v42  ;;  %v17039_v42 = vld [vmem:[%s16683_s27 + $0x10] sm:$0xff]   ;;  %v17059_v33 = vld [vmem:[#allocation3] sm:$0xff]  ;;  %s16142_s27 = scalar_lea.vmem %s18481_s25, 1024 }
 0x23c   : > { %p16143_p2 = scmp.ne.s32.totalorder %s18481_s25, %s16142_s27  ;;  %p16150_p3 = scmp.lt.s32.totalorder %s16148_s2, %s16142_s27 }
 0x23d   : > { %2889 = vmatmul.mubr.bf16.gmra.mrb[12].mxu1 %v12569_v45  ;;  %v1575_v45 = vsel %vm16988_vm5, %v12539_v30, %v1574_v31  ;;  %v14528_v30 = vld [vmem:[#allocation9 + $0x370] ss:$8 sps:$4 sm:$0xff]   ;;  %v14533_v31 = vld [vmem:[#allocation9 + $0x384] ss:$8 sps:$4 sm:$0xff]  }
 0x23e   : > { %2912 = vmatpush1.bf16.msra.mxu1 %v14476_v46  ;;  %2931 = vmatprep.mubr.bf16.mxu1 %v12578_v47  ;;  %v1532_v46 = vld [vmem:[#allocation2 + $0x354] sm:$0x8]  ;;  %v1533_v47 = vld [vmem:[#allocation2 + $0x358] sm:$0x7]  ;;  %p16144_p6 = pnand %p16143_p2, %p18700_p8  ;;  %p16151_p5 = por %p16150_p3, %p16149_p11 }
 0x23f   : > { %2913 = vmatprep.subr.bf16.mxu1 %v14481_v48  ;;  %v7991_v48 = vadd.f32 %v7990_v39, %v7984_v36  ;;  %v14534_v36 = vld [vmem:[#allocation9 + $0x390] ss:$8 sps:$4 sm:$0xff]   ;;  %v14538_v39 = vld [vmem:[#allocation9 + $0x3a0] ss:$8 sps:$4 sm:$0xff]  }
 0x240   : > { %p16145_p10 = pneg %p16144_p6 }
 0x242   : > { %2914 = vmatpush1.bf16.msra.mxu1 %v14479_v49  ;;  %v7986_v49 = vunpack.c.l.bf16 %v17039_v42  ;;  %p16152_p9 = pnand %p16151_p5, %p16145_p10 }
 0x243   : > { %2915 = vmatprep.subr.bf16.mxu1 %v14484_v50  ;;  %v14513_v50 = vld [vmem:[#allocation9 + $0x320] ss:$8 sps:$4 sm:$0xff]  }
 0x246   : > { %2916 = vmatpush1.bf16.msra.mxu1 %v14482_v51  ;;  %v1534_v51 = vld [vmem:[#allocation2 + $0x370] sm:$0x8] }
 0x247   : > { %2917 = vmatprep.subr.bf16.mxu1 %v14487_v52  ;;  %v1535_v52 = vld [vmem:[#allocation2 + $0x374] sm:$0x7]  ;;  %v12541_v0 = vrot.slane %v1534_v51, 11 }
 0x248   : > { %v1582_v1 = vrot.slane %v1535_v52, 7  ;;  %v14557_v51 = vld [vmem:[#allocation9 + $0x3f4] ss:$8 sps:$4 sm:$0xff]  }
 0x24a   : > { %2918 = vmatpush1.bf16.msra.mxu1 %v14485_v53  ;;  %v14597_v53 = vld [vmem:[#allocation7 + $0x30] ss:$8 sps:$4 sm:$0xff]  }
 0x24b   : > { %2919 = vmatprep.subr.bf16.mxu1 %v14490_v54  ;;  %v14518_v54 = vld [vmem:[#allocation9 + $0x334] ss:$8 sps:$4 sm:$0xff]   ;;  %1127 = vmatpush1.bf16.msra.mxu0 %v14597_v53 }
 0x24e   : > { %2920 = vmatpush1.bf16.msra.mxu1 %v14488_v55  ;;  %v14537_v55 = vld [vmem:[#allocation2 + $0x2e4] ss:$28 sps:$4 sm:$0xff]  }
 0x24f   : > { %2921 = vmatprep.subr.bf16.mxu1 %v14493_v56  ;;  %v14598_v56 = vld [vmem:[#allocation7 + $0x44] ss:$8 sps:$4 sm:$0xff]  }
 0x250   : > { %1128 = vmatprep.subr.bf16.mxu0 %v14598_v56  ;;  %v1589_v56 = vld [vmem:[#allocation2 + $0x388] sm:$0xe] }
 0x252   : > { %2922 = vmatpush1.bf16.msra.mxu1 %v14491_v57  ;;  %v7992_v57 = vadd.f32 %v7991_v48, %v7985_v40  ;;  %v14543_v40 = vld [vmem:[#allocation9 + $0x3b4] ss:$8 sps:$4 sm:$0xff]   ;;  %v1587_v48 = vld [vmem:[#allocation2 + $0x36c] sm:$0xe] }
 0x253   : > { %2923 = vmatprep.subr.bf16.mxu1 %v14496_v58  ;;  %v7987_v58 = vunpack.c.h.bf16 %v17039_v42  ;;  %v12543_v53 = vrot.slane %v1587_v48, 9  ;;  %v1659_v48 = vld [vmem:[#allocation2 + $0x370] sm:$0x8] }
 0x256   : > { %2924 = vmatpush1.bf16.msra.mxu1 %v14494_v59  ;;  %v12580_v59 = vcombine.low %v1571_v44, %v1575_v45  ;;  %v14550_v44 = vld [vmem:[#allocation9 + $0x3d4] ss:$8 sps:$4 sm:$0xff]   ;;  %v14548_v45 = vld [vmem:[#allocation9 + $0x3d0] ss:$8 sps:$4 sm:$0xff]  }
 0x257   : > { %2925 = vmatprep.subr.bf16.mxu1 %v14499_v60  ;;  %v12540_v60 = vrot.slane %v1532_v46, 11  ;;  %v14554_v46 = vld [vmem:[#allocation9 + $0x3e4] ss:$8 sps:$4 sm:$0xff]  }
 0x25a   : > { %2926 = vmatpush1.bf16.msra.mxu1 %v14497_v61  ;;  %v1578_v61 = vrot.slane %v1533_v47, 7  ;;  %v1586_v47 = vld [vmem:[#allocation2 + $0x354] sm:$0x1] }
 0x25b   : > { %2927 = vmatprep.subr.bf16.mxu1 %v14502_v62  ;;  %v14600_v62 = vld [vmem:[#allocation7 + $0x40] ss:$8 sps:$4 sm:$0xff]  }
 0x25c   : > { %v1579_v11 = vsel %vm16988_vm5, %v12540_v60, %v1578_v61  ;;  %1129 = vmatpush1.bf16.msra.mxu0 %v14600_v62  ;;  %v1592_v60 = vld [vmem:[#allocation2 + $0x3a8] sm:$0x1] }
 0x25d   : > { %1130 = vmatprep.subr.bf16.mxu0 %v14601_v2  ;;  %v14564_v2 = vld [vmem:[#allocation9 + $0x414] ss:$8 sps:$4 sm:$0xff]  }
 0x25e   : > { %2928 = vmatpush1.bf16.msra.mxu1 %v14500_v3  ;;  %v7993_v3 = vadd.f32 %v7992_v57, %v7986_v49  ;;  %v1588_v49 = vld [vmem:[#allocation2 + $0x370] sm:$0x1]  ;;  %v14561_v57 = vld [vmem:[#allocation9 + $0x404] ss:$8 sps:$4 sm:$0xff]  }
 0x25f   : > { %2929 = vmatprep.subr.bf16.mxu1 %v14505_v4  ;;  %v7988_v4 = vunpack.c.l.bf16 %v17048_v63 }
 0x260   : > { %v7994_v6 = vadd.f32 %v7993_v3, %v7987_v58  ;;  %1131 = vmatpush1.bf16.msra.mxu0 %v14603_v9  ;;  %v1590_v58 = vld [vmem:[#allocation2 + $0x38c] sm:$0x1]  ;;  %v12544_v3 = vrot.slane %v1589_v56, 9  ;;  %v12551_v56 = vrot.slane %v1659_v48, 11  ;;  %v14632_v48 = vld [vmem:[#allocation12 + $0x160] ss:$8 sps:$4 sm:$0xff]  }
 0x261   : > { %v14568_v9 = vld [vmem:[#allocation9 + $0x424] ss:$8 sps:$4 sm:$0xff]  }
 0x262   : > { %2930 = vmatpush1.bf16.msra.mxu1 %v14503_v12  ;;  %v1583_v12 = vsel %vm16988_vm5, %v12541_v0, %v1582_v1  ;;  %v7995_v14 = vadd.f32 %v7994_v6, %v7988_v4  ;;  %v14565_v0 = vld [vmem:[#allocation2 + $0x38c] ss:$28 sps:$4 sm:$0xff]   ;;  %v1627_v4 = vrot.slane %v1590_v58, 5  ;;  %v1631_v6 = vrot.slane %v1592_v60, 5  ;;  %v14583_v58 = vld [vmem:[#allocation9 + $0x470] ss:$8 sps:$4 sm:$0xff]  }
 0x263   : > { %2972 = vmatprep.subr.bf16.mxu1 %v14508_v13  ;;  %v14604_v13 = vld [vmem:[#allocation7 + $0x64] ss:$8 sps:$4 sm:$0xff]   ;;  %v12581_v19 = vcombine.low %v1579_v11, %v1583_v12  ;;  %v1595_v11 = vld [vmem:[#allocation2 + $0x3dc] sm:$0xe]  ;;  %v1596_v12 = vld [vmem:[#allocation2 + $0x3e0] sm:$0x1] }
 0x264   : > { %v17056_v17 = vadd.f32 %v7995_v14, %v7989_v7  ;;  %1132 = vmatprep.subr.bf16.mxu0 %v14604_v13  ;;  %v14562_v7 = vld [vmem:[#allocation9 + $0x410] ss:$8 sps:$4 sm:$0xff]   ;;  %v1628_v13 = vsel %vm16956_vm2, %v12544_v3, %v1627_v4 }
 0x265   : > { %2932 = vmatmul.mubr.bf16.vlgmr.msra.gmra.mrb[0].mxu1 %v14509_v22  ;;  %v14522_v22 = vld [vmem:[#allocation9 + $0x350] ss:$8 sps:$4 sm:$0xff]   ;;  %1133 = vmatpush1.bf16.msra.mxu0 %v14606_v20  ;;  %v14571_v20 = vld [vmem:[#allocation9 + $0x434] ss:$8 sps:$4 sm:$0xff]  }
 0x266   : > { %2973 = vmatpush1.bf16.msra.mxu1 %v14506_v24  ;;  %2941 = vmatprep.mubr.bf16.mxu1 %v12579_v25  ;;  %v14609_v24 = vld [vmem:[#allocation7 + $0x70] ss:$8 sps:$4 sm:$0xff]  }
 0x267   : > { %2974 = vmatprep.subr.bf16.mxu1 %v14512_v29  ;;  %v14551_v25 = vld [vmem:[#allocation2 + $0x354] ss:$28 sps:$4 sm:$0xff]   ;;  %1134 = vmatprep.subr.bf16.mxu0 %v14607_v21 }
 0x268   : > { %v14530_v29 = vld [vmem:[#allocation9 + $0x374] ss:$8 sps:$4 sm:$0xff]   ;;  %v1662_v60 = vld [vmem:[#allocation2 + $0x390] sm:$0x7] }
 0x269   : > { %1135 = vmatpush1.bf16.msra.mxu0 %v14609_v24  ;;  %v1639_v24 = vrot.slane %v1596_v12, 5  ;;  %v1667_v12 = vld [vmem:[#allocation2 + $0x3e0] sm:$0x8] }
 0x26a   : > { %2975 = vmatpush1.bf16.msra.mxu1 %v14510_v41  ;;  %v14547_v41 = vld [vmem:[#allocation9 + $0x3c4] ss:$8 sps:$4 sm:$0xff]  }
 0x26b   : > { %2976 = vmatprep.subr.bf16.mxu1 %v14515_v43  ;;  %v14545_v43 = vld [vmem:[#allocation9 + $0x3c0] ss:$8 sps:$4 sm:$0xff]  }
 0x26c   : > { %1153 = vmatmul.mubr.bf16.vlgmr.msra.gmra.mrb[0].mxu0 %v17029_v28  ;;  %v14541_v28 = vld [vmem:[#allocation9 + $0x3b0] ss:$8 sps:$4 sm:$0xff]  }
 0x26d   : > { %2942 = vmatmul.mubr.bf16.gmra.mrb[4].mxu1 %v14537_v55  ;;  %1162 = vmatprep.mubr.bf16.mxu0 %v17059_v33  ;;  %v14555_v55 = vld [vmem:[#allocation9 + $0x3f0] ss:$8 sps:$4 sm:$0xff]  }
 0x26e   : > { %2977 = vmatpush1.bf16.msra.mxu1 %v14513_v50  ;;  %2951 = vmatprep.mubr.bf16.mxu1 %v12580_v59  ;;  %v14552_v50 = vld [vmem:[#allocation9 + $0x3e0] ss:$8 sps:$4 sm:$0xff]   ;;  %v1591_v59 = vld [vmem:[#allocation2 + $0x3a4] sm:$0xe] }
 0x26f   : > { %2978 = vmatprep.subr.bf16.mxu1 %v14518_v54  ;;  %v1623_v54 = vrot.slane %v1588_v49, 5  ;;  %v1660_v49 = vld [vmem:[#allocation2 + $0x374] sm:$0x7] }
 0x271   : > { %v1624_v62 = vsel %vm16956_vm2, %v12543_v53, %v1623_v54  ;;  %v14585_v53 = vld [vmem:[#allocation9 + $0x474] ss:$8 sps:$4 sm:$0xff]  }
 0x272   : > { %2979 = vmatpush1.bf16.msra.mxu1 %v14516_v5  ;;  %v12545_v5 = vrot.slane %v1591_v59, 9  ;;  %v1661_v59 = vld [vmem:[#allocation2 + $0x38c] sm:$0x8] }
 0x273   : > { %2980 = vmatprep.subr.bf16.mxu1 %v14521_v8  ;;  %v1593_v8 = vld [vmem:[#allocation2 + $0x3c0] sm:$0xe]  ;;  %v12552_v4 = vrot.slane %v1661_v59, 11 }
 0x274   : > { %1163 = vmatmul.mubr.bf16.gmra.mrb[4].mxu0 %v17034_v34  ;;  %v1585_v34 = vld [vmem:[#allocation2 + $0x350] sm:$0xe]  ;;  %v1632_v14 = vsel %vm16956_vm2, %v12545_v5, %v1631_v6  ;;  %v12546_v21 = vrot.slane %v1593_v8, 9  ;;  %v14619_v5 = vld [vmem:[#allocation12 + $0x114] ss:$8 sps:$4 sm:$0xff]   ;;  %v1699_v6 = vrot.slane %v1662_v60, 7 }
 0x275   : > { %2952 = vmatmul.mubr.bf16.gmra.mrb[8].mxu1 %v14544_v10  ;;  %1172 = vmatprep.mubr.bf16.mxu0 %v17059_v33  ;;  %v12542_v52 = vrot.slane %v1585_v34, 9  ;;  %v1594_v10 = vld [vmem:[#allocation2 + $0x3c4] sm:$0x1]  ;;  %v1657_v34 = vld [vmem:[#allocation2 + $0x354] sm:$0x8] }
 0x276   : > { %2981 = vmatpush1.bf16.msra.mxu1 %v14519_v15  ;;  %2961 = vmatprep.mubr.bf16.mxu1 %v12581_v19  ;;  %v14566_v15 = vld [vmem:[#allocation9 + $0x420] ss:$8 sps:$4 sm:$0xff]   ;;  %v12583_v19 = vcombine.low %v1628_v13, %v1632_v14  ;;  %v12550_v54 = vrot.slane %v1657_v34, 11  ;;  %v1668_v13 = vld [vmem:[#allocation2 + $0x3e4] sm:$0x7] }
 0x277   : > { %2982 = vmatprep.subr.bf16.mxu1 %v14524_v18  ;;  %v14572_v18 = vld [vmem:[#allocation2 + $0x3c4] ss:$28 sps:$4 sm:$0xff]   ;;  %v14655_v60 = vld [vmem:[#allocation12 + $0x1d4] ss:$8 sps:$4 sm:$0xff]  }
 0x278   : > { %v14622_v14 = vld [vmem:[#allocation12 + $0x124] ss:$8 sps:$4 sm:$0xff]   ;;  %v14650_v59 = vld [vmem:[#allocation12 + $0x1c0] ss:$8 sps:$4 sm:$0xff]  }
 0x279   : > { %v14634_v34 = vld [vmem:[#allocation12 + $0x164] ss:$8 sps:$4 sm:$0xff]  }
 0x27a   : > { %2983 = vmatpush1.bf16.msra.mxu1 %v14522_v22  ;;  %v1635_v22 = vrot.slane %v1594_v10, 5  ;;  %v14617_v10 = vld [vmem:[#allocation12 + $0x110] ss:$8 sps:$4 sm:$0xff]  }
 0x27b   : > { %2984 = vmatprep.subr.bf16.mxu1 %v14527_v23  ;;  %v12547_v23 = vrot.slane %v1595_v11, 9  ;;  %v1666_v11 = vld [vmem:[#allocation2 + $0x3c8] sm:$0x7] }
 0x27c   : > { %1173 = vmatmul.mubr.bf16.gmra.mrb[8].mxu0 %v17039_v42  ;;  %v1619_v42 = vrot.slane %v1586_v47, 5  ;;  %v1658_v47 = vld [vmem:[#allocation2 + $0x358] sm:$0x7] }
 0x27d   : > { %2962 = vmatmul.mubr.bf16.gmra.mrb[12].mxu1 %v14551_v25  ;;  %1182 = vmatprep.mubr.bf16.mxu0 %v17059_v33  ;;  %v14569_v25 = vld [vmem:[#allocation9 + $0x430] ss:$8 sps:$4 sm:$0xff]  }
 0x27e   : > { %2985 = vmatpush1.bf16.msra.mxu1 %v14525_v26  ;;  %3004 = vmatprep.mubr.bf16.mxu1 %v14558_v27  ;;  %v1620_v61 = vsel %vm16956_vm2, %v12542_v52, %v1619_v42  ;;  %v1597_v26 = vld [vmem:[#allocation2 + $0x3f8] sm:$0xe]  ;;  %v14575_v27 = vld [vmem:[#allocation9 + $0x444] ss:$8 sps:$4 sm:$0xff]   ;;  %v14580_v52 = vld [vmem:[#allocation9 + $0x460] ss:$8 sps:$4 sm:$0xff]  }
 0x27f   : > { %2986 = vmatprep.subr.bf16.mxu1 %v14530_v29  ;;  %v12582_v1 = vcombine.low %v1620_v61, %v1624_v62  ;;  %v1598_v29 = vld [vmem:[#allocation2 + $0x3fc] sm:$0x1]  ;;  %v1663_v61 = vld [vmem:[#allocation2 + $0x3a8] sm:$0x8]  ;;  %v1664_v62 = vld [vmem:[#allocation2 + $0x3ac] sm:$0x7] }
 0x280   : > { %v1703_v8 = vrot.slane %v1664_v62, 7  ;;  %v14658_v62 = vld [vmem:[#allocation12 + $0x1e4] ss:$8 sps:$4 sm:$0xff]  }
 0x282   : > { %2987 = vmatpush1.bf16.msra.mxu1 %v14528_v30  ;;  %v1599_v30 = vld [vmem:[#allocation2 + $0x414] sm:$0xe] }
 0x283   : > { %2988 = vmatprep.subr.bf16.mxu1 %v14533_v31  ;;  %v1600_v31 = vld [vmem:[#allocation2 + $0x418] sm:$0x1] }
 0x284   : > { %1183 = vmatmul.mubr.bf16.gmra.mrb[12].mxu0 %v17048_v63  ;;  %v14559_v63 = vld [vmem:[#allocation9 + $0x400] ss:$8 sps:$4 sm:$0xff]  }
 0x286   : > { %2989 = vmatpush1.bf16.msra.mxu1 %v14531_v32  ;;  %v1636_v32 = vsel %vm16956_vm2, %v12546_v21, %v1635_v22  ;;  %v14625_v22 = vld [vmem:[#allocation12 + $0x134] ss:$8 sps:$4 sm:$0xff]  }
 0x287   : > { %2990 = vmatprep.subr.bf16.mxu1 %v14536_v35  ;;  %v1640_v35 = vsel %vm16956_vm2, %v12547_v23, %v1639_v24  ;;  %v1707_v23 = vrot.slane %v1666_v11, 7  ;;  %v12555_v24 = vrot.slane %v1667_v12, 11  ;;  %v14707_v11 = vld [vmem:[#allocation9 + $0x6b0] ss:$8 sps:$4 sm:$0xff]   ;;  %v14709_v12 = vld [vmem:[#allocation9 + $0x6b4] ss:$8 sps:$4 sm:$0xff]  }
 0x28a   : > { %2991 = vmatpush1.bf16.msra.mxu1 %v14534_v36  ;;  %v14573_v36 = vld [vmem:[#allocation9 + $0x440] ss:$8 sps:$4 sm:$0xff]  }
 0x28b   : > { %2992 = vmatprep.subr.bf16.mxu1 %v14540_v37  ;;  %v14579_v37 = vld [vmem:[#allocation2 + $0x3fc] ss:$28 sps:$4 sm:$0xff]  }
 0x28e   : > { %2993 = vmatpush1.bf16.msra.mxu1 %v14538_v39  ;;  %v12584_v39 = vcombine.low %v1636_v32, %v1640_v35  ;;  %v14628_v32 = vld [vmem:[#allocation12 + $0x144] ss:$8 sps:$4 sm:$0xff]  }
 0x28f   : > { %2994 = vmatprep.subr.bf16.mxu1 %v14543_v40  ;;  %v14578_v40 = vld [vmem:[#allocation9 + $0x454] ss:$8 sps:$4 sm:$0xff]  }
 0x292   : > { %2995 = vmatpush1.bf16.msra.mxu1 %v14541_v28  ;;  %v12548_v28 = vrot.slane %v1597_v26, 9  ;;  %v1669_v26 = vld [vmem:[#allocation2 + $0x3fc] sm:$0x8] }
 0x293   : > { %2996 = vmatprep.subr.bf16.mxu1 %v14547_v41  ;;  %v1643_v41 = vrot.slane %v1598_v29, 5  ;;  %v14623_v29 = vld [vmem:[#allocation12 + $0x130] ss:$8 sps:$4 sm:$0xff]  }
 0x296   : > { %2997 = vmatpush1.bf16.msra.mxu1 %v14545_v43  ;;  %v12549_v43 = vrot.slane %v1599_v30, 9  ;;  %v1671_v30 = vld [vmem:[#allocation2 + $0x418] sm:$0x8] }
 0x297   : > { %2998 = vmatprep.subr.bf16.mxu1 %v14550_v44  ;;  %v1647_v44 = vrot.slane %v1600_v31, 5  ;;  %v1672_v31 = vld [vmem:[#allocation2 + $0x41c] sm:$0x7] }
 0x29a   : > { %2999 = vmatpush1.bf16.msra.mxu1 %v14548_v45  ;;  %v14576_v45 = vld [vmem:[#allocation9 + $0x450] ss:$8 sps:$4 sm:$0xff]  }
 0x29b   : > { %3000 = vmatprep.subr.bf16.mxu1 %v14554_v46  ;;  %v14582_v46 = vld [vmem:[#allocation9 + $0x464] ss:$8 sps:$4 sm:$0xff]  }
 0x29e   : > { %3001 = vmatpush1.bf16.msra.mxu1 %v14552_v50  ;;  %v1644_v50 = vsel %vm16956_vm2, %v12548_v28, %v1643_v41  ;;  %v14631_v41 = vld [vmem:[#allocation12 + $0x154] ss:$8 sps:$4 sm:$0xff]  }
 0x29f   : > { %3002 = vmatprep.subr.bf16.mxu1 %v14557_v51  ;;  %v1648_v51 = vsel %vm16956_vm2, %v12549_v43, %v1647_v44  ;;  %v12557_v43 = vrot.slane %v1671_v30, 11  ;;  %v1719_v44 = vrot.slane %v1672_v31, 7  ;;  %v14719_v30 = vld [vmem:[#allocation9 + $0x6d0] ss:$8 sps:$4 sm:$0xff]   ;;  %v14721_v31 = vld [vmem:[#allocation9 + $0x6d4] ss:$8 sps:$4 sm:$0xff]  }
 0x2a0   : > { %v12585_v42 = vcombine.low %v1644_v50, %v1648_v51  ;;  %v14637_v50 = vld [vmem:[#allocation12 + $0x174] ss:$8 sps:$4 sm:$0xff]   ;;  %v14635_v51 = vld [vmem:[#allocation12 + $0x170] ss:$8 sps:$4 sm:$0xff]  }
 0x2a2   : > { %3003 = vmatpush1.bf16.msra.mxu1 %v14555_v55  ;;  %v1691_v55 = vrot.slane %v1658_v47, 7  ;;  %v1720_v47 = vsel %vm16988_vm5, %v12557_v43, %v1719_v44  ;;  %v14725_v44 = vld [vmem:[#allocation9 + $0x6e0] ss:$8 sps:$4 sm:$0xff]  }
 0x2a3   : > { %3045 = vmatprep.subr.bf16.mxu1 %v14561_v57  ;;  %v1695_v57 = vrot.slane %v1660_v49, 7 }
 0x2a5   : > { %3005 = vmatmul.mubr.bf16.vlgmr.msra.gmra.mrb[0].mxu1 %v12582_v1  ;;  %v1696_v1 = vsel %vm16988_vm5, %v12551_v56, %v1695_v57  ;;  %v14649_v56 = vld [vmem:[#allocation12 + $0x1b4] ss:$8 sps:$4 sm:$0xff]   ;;  %v14647_v57 = vld [vmem:[#allocation12 + $0x1b0] ss:$8 sps:$4 sm:$0xff]  }
 0x2a6   : > { %3046 = vmatpush1.bf16.msra.mxu1 %v14559_v63  ;;  %3014 = vmatprep.mubr.bf16.mxu1 %v14565_v0  ;;  %v14616_v63 = vld [vmem:[#allocation12 + $0x104] ss:$8 sps:$4 sm:$0xff]   ;;  %v1692_v0 = vsel %vm16988_vm5, %v12550_v54, %v1691_v55  ;;  %v14644_v55 = vld [vmem:[#allocation12 + $0x1a0] ss:$8 sps:$4 sm:$0xff]  }
 0x2a7   : > { %3047 = vmatprep.subr.bf16.mxu1 %v14564_v2  ;;  %v14614_v2 = vld [vmem:[#allocation12 + $0x100] ss:$8 sps:$4 sm:$0xff]   ;;  %v12590_v3 = vcombine.low %v1692_v0, %v1696_v1  ;;  %v14646_v54 = vld [vmem:[#allocation12 + $0x1a4] ss:$8 sps:$4 sm:$0xff]   ;;  %v14661_v0 = vld [vmem:[#allocation12 + $0x1f4] ss:$8 sps:$4 sm:$0xff]  }
 0x2a8   : > { %v14659_v1 = vld [vmem:[#allocation12 + $0x1f0] ss:$8 sps:$4 sm:$0xff]  }
 0x2aa   : > { %3048 = vmatpush1.bf16.msra.mxu1 %v14562_v7  ;;  %v12553_v7 = vrot.slane %v1663_v61, 11  ;;  %v14653_v61 = vld [vmem:[#allocation12 + $0x1d0] ss:$8 sps:$4 sm:$0xff]  }
 0x2ab   : > { %3049 = vmatprep.subr.bf16.mxu1 %v14568_v9  ;;  %v1665_v9 = vld [vmem:[#allocation2 + $0x3c4] sm:$0x8] }
 0x2ac   : > { %v12554_v21 = vrot.slane %v1665_v9, 11  ;;  %v14703_v9 = vld [vmem:[#allocation9 + $0x6a4] ss:$8 sps:$4 sm:$0xff]  }
 0x2ad   : > { %3015 = vmatmul.mubr.bf16.gmra.mrb[4].mxu1 %v12583_v19  ;;  %v14620_v19 = vld [vmem:[#allocation12 + $0x120] ss:$8 sps:$4 sm:$0xff]  }
 0x2ae   : > { %3050 = vmatpush1.bf16.msra.mxu1 %v14566_v15  ;;  %3024 = vmatprep.mubr.bf16.mxu1 %v14572_v18  ;;  %v1700_v15 = vsel %vm16988_vm5, %v12552_v4, %v1699_v6  ;;  %v1704_v18 = vsel %vm16988_vm5, %v12553_v7, %v1703_v8  ;;  %v1708_v35 = vsel %vm16988_vm5, %v12554_v21, %v1707_v23  ;;  %v14691_v4 = vld [vmem:[#allocation9 + $0x684] ss:$8 sps:$4 sm:$0xff]   ;;  %v14697_v6 = vld [vmem:[#allocation9 + $0x694] ss:$8 sps:$4 sm:$0xff]   ;;  %v1195_v7 = vlaneseq  ;;  %v14701_v8 = vld [vmem:[#allocation9 + $0x6a0] ss:$8 sps:$4 sm:$0xff]  }
 0x2af   : > { %3051 = vmatprep.subr.bf16.mxu1 %v14571_v20  ;;  %v12591_v20 = vcombine.low %v1700_v15, %v1704_v18  ;;  %5259 = vmatprep.subr.bf16.mxu0 %v14691_v4  ;;  %v14713_v15 = vld [vmem:[#allocation9 + $0x6c0] ss:$8 sps:$4 sm:$0xff]   ;;  %v14715_v18 = vld [vmem:[#allocation9 + $0x6c4] ss:$8 sps:$4 sm:$0xff]  }
 0x2b0   : > { %v1221_v21 = vld [vmem:[#allocation15] ss:$8 sm:$0x3] }
 0x2b2   : > { %3052 = vmatpush1.bf16.msra.mxu1 %v14569_v25  ;;  %v1711_v25 = vrot.slane %v1668_v13, 7 }
 0x2b3   : > { %3053 = vmatprep.subr.bf16.mxu1 %v14575_v27  ;;  %v1670_v27 = vld [vmem:[#allocation2 + $0x400] sm:$0x7] }
 0x2b4   : > { %v1715_v28 = vrot.slane %v1670_v27, 7 }
 0x2b5   : > { %3025 = vmatmul.mubr.bf16.gmra.mrb[8].mxu1 %v12584_v39 }
 0x2b6   : > { %3054 = vmatpush1.bf16.msra.mxu1 %v14573_v36  ;;  %3034 = vmatprep.mubr.bf16.mxu1 %v14579_v37  ;;  %v1712_v36 = vsel %vm16988_vm5, %v12555_v24, %v1711_v25  ;;  %v14626_v37 = vld [vmem:[#allocation12 + $0x140] ss:$8 sps:$4 sm:$0xff]  }
 0x2b7   : > { %3055 = vmatprep.subr.bf16.mxu1 %v14578_v40  ;;  %v12592_v39 = vcombine.low %v1708_v35, %v1712_v36  ;;  %v12556_v40 = vrot.slane %v1669_v26, 11 }
 0x2ba   : > { %3056 = vmatpush1.bf16.msra.mxu1 %v14576_v45  ;;  %v14629_v45 = vld [vmem:[#allocation12 + $0x150] ss:$8 sps:$4 sm:$0xff]  }
 0x2bb   : > { %3057 = vmatprep.subr.bf16.mxu1 %v14582_v46  ;;  %v1716_v46 = vsel %vm16988_vm5, %v12556_v40, %v1715_v28 }
 0x2bc   : > { %v12593_v49 = vcombine.low %v1716_v46, %v1720_v47 }
 0x2bd   : > { %3035 = vmatmul.mubr.bf16.gmra.mrb[12].mxu1 %v12585_v42  ;;  %v14638_v42 = vld [vmem:[#allocation12 + $0x180] ss:$8 sps:$4 sm:$0xff]  }
 0x2be   : > { %3058 = vmatpush1.bf16.msra.mxu1 %v14580_v52  ;;  %3077 = vmatprep.mubr.bf16.mxu1 %v17059_v33  ;;  %v14640_v52 = vld [vmem:[#allocation12 + $0x184] ss:$8 sps:$4 sm:$0xff]  }
 0x2bf   : > { %3059 = vmatprep.subr.bf16.mxu1 %v14585_v53  ;;  %v14641_v53 = vld [vmem:[#allocation12 + $0x190] ss:$8 sps:$4 sm:$0xff]  }
 0x2c2   : > { %3060 = vmatpush1.bf16.msra.mxu1 %v14583_v58  ;;  %v14652_v58 = vld [vmem:[#allocation12 + $0x1c4] ss:$8 sps:$4 sm:$0xff]  }
 0x2c3   : > { %3393 = vmatprep.subr.bf16.mxu1 %v14616_v63  ;;  %v14656_v63 = vld [vmem:[#allocation12 + $0x1e0] ss:$8 sps:$4 sm:$0xff]  }
 0x2c5   : > { %3078 = vmatmul.mubr.bf16.vlgmr.msra.gmra.mrb[0].mxu1 %v12590_v3  ;;  %v14689_v3 = vld [vmem:[#allocation9 + $0x680] ss:$8 sps:$4 sm:$0xff]  }
 0x2c6   : > { %3087 = vmatprep.mubr.bf16.mxu1 %v17059_v33  ;;  %3394 = vmatpush1.bf16.msra.mxu1 %v14614_v2  ;;  %v14664_v2 = vld [vmem:[#allocation12 + $0x4] ss:$8 sps:$4 sm:$0xff]  }
 0x2c7   : > { %3395 = vmatprep.subr.bf16.mxu1 %v14619_v5  ;;  %5260 = vmatpush1.bf16.msra.mxu0 %v14689_v3  ;;  %v14695_v5 = vld [vmem:[#allocation9 + $0x690] ss:$8 sps:$4 sm:$0xff]  }
 0x2c8   : > { %5261 = vmatprep.subr.bf16.mxu0 %v14697_v6 }
 0x2ca   : > { %3396 = vmatpush1.bf16.msra.mxu1 %v14617_v10  ;;  %v1196_v10 = vshrl.u32 %v1195_v7, 7  ;;  %v14743_v7 = vld [vmem:[#allocation9 + $0x710] ss:$8 sps:$4 sm:$0xff]  }
 0x2cb   : > { %3397 = vmatprep.subr.bf16.mxu1 %v14622_v14  ;;  %5262 = vmatpush1.bf16.msra.mxu0 %v14695_v5 }
 0x2cc   : > { %5263 = vmatprep.subr.bf16.mxu0 %v14703_v9  ;;  %v17103_v13 = vsub.s32 0, %v1196_v10  ;;  %v17105_v14 = vsub.s32 1, %v1196_v10 }
 0x2cd   : > { %3088 = vmatmul.mubr.bf16.gmra.mrb[4].mxu1 %v12591_v20  ;;  %v1193_v20 = vld [vmem:[#allocation13] ss:$8 sm:$0x3] }
 0x2ce   : > { %3097 = vmatprep.mubr.bf16.mxu1 %v17059_v33  ;;  %3398 = vmatpush1.bf16.msra.mxu1 %v14620_v19  ;;  %18618 = vst [vmem:[#allocation35_spill] sm:$0xff] %v17103_v13  ;;  %18619 = vst [vmem:[#allocation36_spill] sm:$0xff] %v17105_v14  ;;  %v17111_v23 = vrot.slane %v1221_v21, %v17103_v13  ;;  %v17114_v25 = vrot.slane %v1193_v20, %v17105_v14 }
 0x2cf   : > { %3399 = vmatprep.subr.bf16.mxu1 %v14625_v22  ;;  %5264 = vmatpush1.bf16.msra.mxu0 %v14701_v8  ;;  %v17108_v22 = vrot.slane %v1193_v20, %v17103_v13  ;;  %v17117_v26 = vrot.slane %v1221_v21, %v17105_v14  ;;  %v14745_v8 = vld [vmem:[#allocation9 + $0x714] ss:$8 sps:$4 sm:$0xff]  }
 0x2d0   : > { %5265 = vmatprep.subr.bf16.mxu0 %v14709_v12 }
 0x2d2   : > { %3400 = vmatpush1.bf16.msra.mxu1 %v14623_v29 }
 0x2d3   : > { %3401 = vmatprep.subr.bf16.mxu1 %v14628_v32  ;;  %5266 = vmatpush1.bf16.msra.mxu0 %v14707_v11 }
 0x2d4   : > { %5267 = vmatprep.subr.bf16.mxu0 %v14715_v18 }
 0x2d5   : > { %3098 = vmatmul.mubr.bf16.gmra.mrb[8].mxu1 %v12592_v39 }
 0x2d6   : > { %3107 = vmatprep.mubr.bf16.mxu1 %v17059_v33  ;;  %3402 = vmatpush1.bf16.msra.mxu1 %v14626_v37  ;;  %v14643_v33 = vld [vmem:[#allocation12 + $0x194] ss:$8 sps:$4 sm:$0xff]  }
 0x2d7   : > { %3403 = vmatprep.subr.bf16.mxu1 %v14631_v41  ;;  %5268 = vmatpush1.bf16.msra.mxu0 %v14713_v15 }
 0x2d8   : > { %5269 = vmatprep.subr.bf16.mxu0 %v14721_v31 }
 0x2da   : > { %3404 = vmatpush1.bf16.msra.mxu1 %v14629_v45  ;;  %v14727_v45 = vld [vmem:[#allocation9 + $0x6e4] ss:$8 sps:$4 sm:$0xff]  }
 0x2db   : > { %3405 = vmatprep.subr.bf16.mxu1 %v14634_v34  ;;  %5270 = vmatpush1.bf16.msra.mxu0 %v14719_v30 }
 0x2dc   : > { %5271 = vmatprep.subr.bf16.mxu0 %v14727_v45 }
 0x2dd   : > { %3108 = vmatmul.mubr.bf16.gmra.mrb[12].mxu1 %v12593_v49 }
 0x2de   : > { %3406 = vmatpush1.bf16.msra.mxu1 %v14632_v48 }
 0x2df   : > { %3407 = vmatprep.subr.bf16.mxu1 %v14637_v50  ;;  %5272 = vmatpush1.bf16.msra.mxu0 %v14725_v44 }
 0x2e2   : > { %3408 = vmatpush1.bf16.msra.mxu1 %v14635_v51 }
 0x2e3   : > { %3409 = vmatprep.subr.bf16.mxu1 %v14640_v52  ;;  %v14731_v52 = vld [vmem:[#allocation9 + $0x6f0] ss:$8 sps:$4 sm:$0xff]  }
 0x2e6   : > { %3410 = vmatpush1.bf16.msra.mxu1 %v14638_v42  ;;  %v14733_v42 = vld [vmem:[#allocation9 + $0x6f4] ss:$8 sps:$4 sm:$0xff]  }
 0x2e7   : > { %3411 = vmatprep.subr.bf16.mxu1 %v14643_v33  ;;  %5273 = vmatprep.subr.bf16.mxu0 %v14733_v42  ;;  %v14763_v42 = vld [vmem:[#allocation9 + $0x744] ss:$8 sps:$4 sm:$0xff]  }
 0x2e8   : > { %5274 = vmatpush1.bf16.msra.mxu0 %v14731_v52 }
 0x2ea   : > { %3412 = vmatpush1.bf16.msra.mxu1 %v14641_v53 }
 0x2eb   : > { %3413 = vmatprep.subr.bf16.mxu1 %v14646_v54 }
 0x2ee   : > { %3414 = vmatpush1.bf16.msra.mxu1 %v14644_v55 }
 0x2ef   : > { %3415 = vmatprep.subr.bf16.mxu1 %v14649_v56 }
 0x2f2   : > { %3416 = vmatpush1.bf16.msra.mxu1 %v14647_v57 }
 0x2f3   : > { %3417 = vmatprep.subr.bf16.mxu1 %v14652_v58 }
 0x2f6   : > { %3418 = vmatpush1.bf16.msra.mxu1 %v14650_v59 }
 0x2f7   : > { %3419 = vmatprep.subr.bf16.mxu1 %v14655_v60 }
 0x2fa   : > { %3420 = vmatpush1.bf16.msra.mxu1 %v14653_v61  ;;  %v14739_v61 = vld [vmem:[#allocation9 + $0x704] ss:$8 sps:$4 sm:$0xff]  }
 0x2fb   : > { %3421 = vmatprep.subr.bf16.mxu1 %v14658_v62  ;;  %v14737_v62 = vld [vmem:[#allocation9 + $0x700] ss:$8 sps:$4 sm:$0xff]   ;;  %5275 = vmatprep.subr.bf16.mxu0 %v14739_v61 }
 0x2fc   : > { %5276 = vmatpush1.bf16.msra.mxu0 %v14737_v62  ;;  %v14779_v62 = vld [vmem:[#allocation9 + $0x770] ss:$8 sps:$4 sm:$0xff]  }
 0x2fd   : > { %5277 = vmatprep.subr.bf16.mxu0 %v14745_v8 }
 0x2fe   : > { %3422 = vmatpush1.bf16.msra.mxu1 %v14656_v63 }
 0x2ff   : > { %3423 = vmatprep.subr.bf16.mxu1 %v14661_v0 }
 0x300   : > { %5278 = vmatpush1.bf16.msra.mxu0 %v14743_v7 }
 0x302   : > { %3424 = vmatpush1.bf16.msra.mxu1 %v14659_v1 }
 0x303   : > { %3626 = vmatprep.subr.bf16.mxu1 %v14664_v2 }
 0x33f   : > { %v1154_v19 = vpop.f32.mrb[0].mxu0 }
 0x340   : > { %v1156_v24 = vpop.f32.mrb[1].mxu0  ;;  %v1205_v27 = vmul.f32 %v17108_v22, %v1154_v19 }
 0x341   : > { %v1158_v29 = vpop.f32.mrb[2].mxu0  ;;  %v1206_v32 = vmul.f32 %v17114_v25, %v1156_v24 }
 0x342   : > { %v1207_v35 = vmul.f32 %v17108_v22, %v1158_v29  ;;  %v1160_v36 = vpop.f32.mrb[3].mxu0  ;;  %v1233_v37 = vadd.f32 %v17111_v23, %v1205_v27  ;;  %v14751_v27 = vld [vmem:[#allocation9 + $0x724] ss:$8 sps:$4 sm:$0xff]   ;;  %v14749_v29 = vld [vmem:[#allocation9 + $0x720] ss:$8 sps:$4 sm:$0xff]  }
 0x343   : > { %v1208_v39 = vmul.f32 %v17114_v25, %v1160_v36  ;;  %v1234_v40 = vadd.f32 %v17117_v26, %v1206_v32  ;;  %5279 = vmatprep.subr.bf16.mxu0 %v14751_v27  ;;  %v14797_v27 = vld [vmem:[#allocation9 + $0x7a0] ss:$8 sps:$4 sm:$0xff]  }
 0x344   : > { %v1235_v28 = vadd.f32 %v17111_v23, %v1207_v35  ;;  %v1249_v41 = vmax.f32 %v1233_v37, 0.0  ;;  %5280 = vmatpush1.bf16.msra.mxu0 %v14749_v29  ;;  %v14805_v29 = vld [vmem:[#allocation9 + $0x7b4] ss:$8 sps:$4 sm:$0xff]  }
 0x345   : > { %v1236_v43 = vadd.f32 %v17117_v26, %v1208_v39  ;;  %v1250_v34 = vmax.f32 %v1234_v40, 0.0 }
 0x346   : > { %v1251_v46 = vmax.f32 %v1235_v28, 0.0  ;;  %v14755_v28 = vld [vmem:[#allocation9 + $0x730] ss:$8 sps:$4 sm:$0xff]  }
 0x347   : > { %v1252_v47 = vmax.f32 %v1236_v43, 0.0  ;;  %v1164_v49 = vpop.f32.mrb[4].mxu0 }
 0x348   : > { %v17127_v48 = vpack.c.bf16 %v1251_v46, %v1249_v41  ;;  %v1209_v50 = vmul.f32 %v17108_v22, %v1164_v49  ;;  %v1166_v51 = vpop.f32.mrb[5].mxu0  ;;  %v14757_v41 = vld [vmem:[#allocation9 + $0x734] ss:$8 sps:$4 sm:$0xff]  }
 0x349   : > { %v1210_v33 = vmul.f32 %v17114_v25, %v1166_v51  ;;  %v1168_v53 = vpop.f32.mrb[6].mxu0  ;;  %v17131_v54 = vpack.c.bf16 %v1252_v47, %v1250_v34  ;;  %5281 = vmatprep.subr.bf16.mxu0 %v14757_v41 }
 0x34a   : > { %v1211_v55 = vmul.f32 %v17108_v22, %v1168_v53  ;;  %v1237_v56 = vadd.f32 %v17111_v23, %v1209_v50  ;;  %v1170_v58 = vpop.f32.mrb[7].mxu0  ;;  %5282 = vmatpush1.bf16.msra.mxu0 %v14755_v28  ;;  %v14817_v28 = vld [vmem:[#allocation9 + $0x7d4] ss:$8 sps:$4 sm:$0xff]  }
 0x34b   : > { %v1238_v57 = vadd.f32 %v17117_v26, %v1210_v33  ;;  %v1212_v60 = vmul.f32 %v17114_v25, %v1170_v58  ;;  %v14761_v33 = vld [vmem:[#allocation9 + $0x740] ss:$8 sps:$4 sm:$0xff]   ;;  %5283 = vmatprep.subr.bf16.mxu0 %v14763_v42  ;;  %v14767_v58 = vld [vmem:[#allocation9 + $0x750] ss:$8 sps:$4 sm:$0xff]  }
 0x34c   : > { %v1239_v59 = vadd.f32 %v17111_v23, %v1211_v55  ;;  %v1253_v0 = vmax.f32 %v1237_v56, 0.0 }
 0x34d   : > { %v1240_v63 = vadd.f32 %v17117_v26, %v1212_v60  ;;  %v1254_v1 = vmax.f32 %v1238_v57, 0.0 }
 0x34e   : > { %v1255_v2 = vmax.f32 %v1239_v59, 0.0  ;;  %5284 = vmatpush1.bf16.msra.mxu0 %v14761_v33  ;;  %v14769_v59 = vld [vmem:[#allocation9 + $0x754] ss:$8 sps:$4 sm:$0xff]   ;;  %v14823_v33 = vld [vmem:[#allocation9 + $0x7e4] ss:$8 sps:$4 sm:$0xff]  }
 0x34f   : > { %v1174_v3 = vpop.f32.mrb[8].mxu0  ;;  %v1256_v4 = vmax.f32 %v1240_v63, 0.0  ;;  %5285 = vmatprep.subr.bf16.mxu0 %v14769_v59  ;;  %v3903_v63 = vld [vmem:[#allocation2 + $0x2b0] sm:$0xc] }
 0x350   : > { %v1213_v5 = vmul.f32 %v17108_v22, %v1174_v3  ;;  %v1176_v6 = vpop.f32.mrb[9].mxu0  ;;  %v17146_v20 = vpack.c.bf16 %v1255_v2, %v1253_v0  ;;  %v3904_v0 = vld [vmem:[#allocation2 + $0x2b4] sm:$0x3]  ;;  %v3906_v3 = vld [vmem:[#allocation2 + $0x2d0] sm:$0x3] }
 0x351   : > { %v1214_v9 = vmul.f32 %v17114_v25, %v1176_v6  ;;  %v1178_v10 = vpop.f32.mrb[10].mxu0  ;;  %v17144_v19 = vpack.c.bf16 %v1256_v4, %v1254_v1  ;;  %v3905_v1 = vld [vmem:[#allocation2 + $0x2cc] sm:$0xc]  ;;  %v12826_v4 = vrot.slane %v3903_v63, 10  ;;  %v3941_v7 = vrot.slane %v3906_v3, 6 }
 0x352   : > { %v1215_v11 = vmul.f32 %v17108_v22, %v1178_v10  ;;  %v1241_v12 = vadd.f32 %v17111_v23, %v1213_v5  ;;  %v1180_v18 = vpop.f32.mrb[11].mxu0  ;;  %5286 = vmatpush1.bf16.msra.mxu0 %v14767_v58  ;;  %v3937_v5 = vrot.slane %v3904_v0, 6  ;;  %v12827_v6 = vrot.slane %v3905_v1, 10  ;;  %v14827_v3 = vld [vmem:[#allocation9 + $0x7f0] ss:$8 sps:$4 sm:$0xff]  }
 0x353   : > { %v1242_v15 = vadd.f32 %v17117_v26, %v1214_v9  ;;  %v1216_v24 = vmul.f32 %v17114_v25, %v1180_v18  ;;  %v14787_v9 = vld [vmem:[#allocation9 + $0x784] ss:$8 sps:$4 sm:$0xff]  }
 0x354   : > { %v1243_v21 = vadd.f32 %v17111_v23, %v1215_v11  ;;  %v1257_v31 = vmax.f32 %v1241_v12, 0.0  ;;  %v3938_v8 = vsel %vm17167_vm8, %v12826_v4, %v3937_v5  ;;  %v3942_v10 = vsel %vm17167_vm8, %v12827_v6, %v3941_v7  ;;  %v14785_v12 = vld [vmem:[#allocation9 + $0x780] ss:$8 sps:$4 sm:$0xff]   ;;  %v15063_v2 = vld [vmem:[#allocation12 + $0x204] ss:$8 sps:$4 sm:$0xff]  }
 0x355   : > { %v1244_v30 = vadd.f32 %v17117_v26, %v1216_v24  ;;  %v1258_v32 = vmax.f32 %v1242_v15, 0.0  ;;  %v12866_v11 = vcombine.low %v3938_v8, %v3942_v10  ;;  %v14793_v15 = vld [vmem:[#allocation9 + $0x794] ss:$8 sps:$4 sm:$0xff]   ;;  %v15785_v18 = vld [vmem:[#allocation2 + $0x2ac] ss:$28 sps:$4 sm:$0xff]  }
 0x356   : > { %v1259_v35 = vmax.f32 %v1243_v21, 0.0  ;;  %v14791_v21 = vld [vmem:[#allocation9 + $0x790] ss:$8 sps:$4 sm:$0xff]   ;;  %v14799_v24 = vld [vmem:[#allocation9 + $0x7a4] ss:$8 sps:$4 sm:$0xff]  }
 0x357   : > { %v1184_v36 = vpop.f32.mrb[12].mxu0  ;;  %v1260_v37 = vmax.f32 %v1244_v30, 0.0  ;;  %5291 = vmatprep.mubr.bf16.mxu0 %v12866_v11  ;;  %v14803_v30 = vld [vmem:[#allocation9 + $0x7b0] ss:$8 sps:$4 sm:$0xff]   ;;  %v14662_v7 = vld [vmem:[#allocation12] ss:$8 sps:$4 sm:$0xff]  }
 0x358   : > { %v1217_v39 = vmul.f32 %v17108_v22, %v1184_v36  ;;  %v1186_v40 = vpop.f32.mrb[13].mxu0  ;;  %v17158_v50 = vpack.c.bf16 %v1259_v35, %v1257_v31  ;;  %v3119_v31 = vld [vmem:[#allocation13 + $0x1] ss:$8 sm:$0x3]  ;;  %v14667_v11 = vld [vmem:[#allocation12 + $0x14] ss:$8 sps:$4 sm:$0xff]  }
 0x359   : > { %v1218_v43 = vmul.f32 %v17114_v25, %v1186_v40  ;;  %v1188_v44 = vpop.f32.mrb[14].mxu0  ;;  %v17156_v49 = vpack.c.bf16 %v1260_v37, %v1258_v32  ;;  %v14811_v32 = vld [vmem:[#allocation9 + $0x7c4] ss:$8 sps:$4 sm:$0xff]   ;;  %v3148_v35 = vld [vmem:[#allocation15 + $0x1] ss:$8 sm:$0x3]  ;;  %v17176_v36 = vrot.slane %v3119_v31, %v17103_v13 }
 0x35a   : > { %v1219_v45 = vmul.f32 %v17108_v22, %v1188_v44  ;;  %v1245_v34 = vadd.f32 %v17111_v23, %v1217_v39  ;;  %v1190_v47 = vpop.f32.mrb[15].mxu0  ;;  %v14809_v37 = vld [vmem:[#allocation9 + $0x7c0] ss:$8 sps:$4 sm:$0xff]   ;;  %v17179_v39 = vrot.slane %v3119_v31, %v17105_v14  ;;  %v17182_v40 = vrot.slane %v3148_v35, %v17103_v13  ;;  %v14670_v31 = vld [vmem:[#allocation12 + $0x24] ss:$8 sps:$4 sm:$0xff]  }
 0x35b   : > { %v1246_v46 = vadd.f32 %v17117_v26, %v1218_v43  ;;  %v1220_v52 = vmul.f32 %v17114_v25, %v1190_v47  ;;  %v14773_v25 = vld [vmem:[#allocation9 + $0x760] ss:$8 sps:$4 sm:$0xff]   ;;  %v17185_v43 = vrot.slane %v3148_v35, %v17105_v14 }
 0x35c   : > { %v1247_v51 = vadd.f32 %v17111_v23, %v1219_v45  ;;  %v1261_v22 = vmax.f32 %v1245_v34, 0.0  ;;  %v14775_v23 = vld [vmem:[#allocation9 + $0x764] ss:$8 sps:$4 sm:$0xff]   ;;  %v14815_v34 = vld [vmem:[#allocation9 + $0x7d0] ss:$8 sps:$4 sm:$0xff]  }
 0x35d   : > { %v1248_v53 = vadd.f32 %v17117_v26, %v1220_v52  ;;  %v1262_v55 = vmax.f32 %v1246_v46, 0.0  ;;  %5287 = vmatprep.subr.bf16.mxu0 %v14775_v23  ;;  %v14781_v26 = vld [vmem:[#allocation9 + $0x774] ss:$8 sps:$4 sm:$0xff]  }
 0x35e   : > { %v1263_v56 = vmax.f32 %v1247_v51, 0.0  ;;  %5288 = vmatpush1.bf16.msra.mxu0 %v14773_v25  ;;  %v14829_v23 = vld [vmem:[#allocation9 + $0x7f4] ss:$8 sps:$4 sm:$0xff]  }
 0x35f   : > { %v1264_v57 = vmax.f32 %v1248_v53, 0.0  ;;  %5289 = vmatprep.subr.bf16.mxu0 %v14781_v26 }
 0x360   : > { %v17165_v61 = vpack.c.bf16 %v1263_v56, %v1261_v22  ;;  %v14821_v56 = vld [vmem:[#allocation9 + $0x7e0] ss:$8 sps:$4 sm:$0xff]  }
 0x361   : > { %v17163_v60 = vpack.c.bf16 %v1264_v57, %v1262_v55 }
 0x362   : > { %5290 = vmatpush1.bf16.msra.mxu0 %v14779_v62 }
 0x363   : > { %5332 = vmatprep.subr.bf16.mxu0 %v14787_v9 }
 0x365   : > { %5292 = vmatmul.mubr.bf16.vlgmr.msra.gmra.mrb[16].mxu0 %v15785_v18  ;;  %v14836_v18 = vld [vmem:[#allocation9 + $0x804] ss:$8 sps:$4 sm:$0xff]  }
 0x366   : > { %5333 = vmatpush1.bf16.msra.mxu0 %v14785_v12 }
 0x367   : > { %5334 = vmatprep.subr.bf16.mxu0 %v14793_v15 }
 0x36a   : > { %5335 = vmatpush1.bf16.msra.mxu0 %v14791_v21 }
 0x36b   : > { %5336 = vmatprep.subr.bf16.mxu0 %v14799_v24  ;;  %v14834_v24 = vld [vmem:[#allocation9 + $0x800] ss:$8 sps:$4 sm:$0xff]  }
 0x36e   : > { %5337 = vmatpush1.bf16.msra.mxu0 %v14797_v27 }
 0x36f   : > { %5338 = vmatprep.subr.bf16.mxu0 %v14805_v29 }
 0x372   : > { %5339 = vmatpush1.bf16.msra.mxu0 %v14803_v30  ;;  %v14665_v30 = vld [vmem:[#allocation12 + $0x10] ss:$8 sps:$4 sm:$0xff]  }
 0x373   : > { %5340 = vmatprep.subr.bf16.mxu0 %v14811_v32 }
 0x376   : > { %5341 = vmatpush1.bf16.msra.mxu0 %v14809_v37  ;;  %v14840_v37 = vld [vmem:[#allocation9 + $0x810] ss:$8 sps:$4 sm:$0xff]  }
 0x377   : > { %5342 = vmatprep.subr.bf16.mxu0 %v14817_v28  ;;  %v14842_v28 = vld [vmem:[#allocation9 + $0x814] ss:$8 sps:$4 sm:$0xff]  }
 0x37a   : > { %5343 = vmatpush1.bf16.msra.mxu0 %v14815_v34  ;;  %v3908_v34 = vld [vmem:[#allocation2 + $0x2ec] sm:$0x3] }
 0x37b   : > { %5344 = vmatprep.subr.bf16.mxu0 %v14823_v33 }
 0x37e   : > { %5345 = vmatpush1.bf16.msra.mxu0 %v14821_v56  ;;  %v14668_v56 = vld [vmem:[#allocation12 + $0x20] ss:$8 sps:$4 sm:$0xff]  }
 0x37f   : > { %5346 = vmatprep.subr.bf16.mxu0 %v14829_v23 }
 0x382   : > { %5347 = vmatpush1.bf16.msra.mxu0 %v14827_v3  ;;  %v14848_v3 = vld [vmem:[#allocation9 + $0x824] ss:$8 sps:$4 sm:$0xff]  }
 0x383   : > { %5348 = vmatprep.subr.bf16.mxu0 %v14836_v18  ;;  %v14854_v18 = vld [vmem:[#allocation9 + $0x834] ss:$8 sps:$4 sm:$0xff]  }
 0x386   : > { %5349 = vmatpush1.bf16.msra.mxu0 %v14834_v24 }
 0x387   : > { %5350 = vmatprep.subr.bf16.mxu0 %v14842_v28  ;;  %v3913_v28 = vld [vmem:[#allocation2 + $0x33c] sm:$0xc] }
 0x38a   : > { %5351 = vmatpush1.bf16.msra.mxu0 %v14840_v37  ;;  %v15786_v37 = vld [vmem:[#allocation2 + $0x2e4] ss:$28 sps:$4 sm:$0xff]  }
 0x38b   : > { %5352 = vmatprep.subr.bf16.mxu0 %v14848_v3  ;;  %v14866_v3 = vld [vmem:[#allocation9 + $0x854] ss:$8 sps:$4 sm:$0xff]  }
 0x398   : > { %v3079_v41 = vpop.f32.mrb[0].mxu1 }
 0x399   : > { %v3131_v44 = vmul.f32 %v17176_v36, %v3079_v41  ;;  %v3081_v45 = vpop.f32.mrb[1].mxu1 }
 0x39a   : > { %v3132_v46 = vmul.f32 %v17179_v39, %v3081_v45  ;;  %v3083_v47 = vpop.f32.mrb[2].mxu1  ;;  %v3907_v45 = vld [vmem:[#allocation2 + $0x2e8] sm:$0xc] }
 0x39b   : > { %v3160_v51 = vadd.f32 %v17182_v40, %v3131_v44  ;;  %v3133_v52 = vmul.f32 %v17176_v36, %v3083_v47  ;;  %v3085_v42 = vpop.f32.mrb[3].mxu1  ;;  %v12828_v33 = vrot.slane %v3907_v45, 10 }
 0x39c   : > { %v3161_v53 = vadd.f32 %v17185_v43, %v3132_v46  ;;  %v3134_v22 = vmul.f32 %v17179_v39, %v3085_v42  ;;  %v3910_v42 = vld [vmem:[#allocation2 + $0x308] sm:$0x3] }
 0x39d   : > { %v3162_v55 = vadd.f32 %v17182_v40, %v3133_v52  ;;  %v3176_v58 = vmax.f32 %v3160_v51, 0.0  ;;  %v3909_v52 = vld [vmem:[#allocation2 + $0x304] sm:$0xc] }
 0x39e   : > { %v3163_v57 = vadd.f32 %v17185_v43, %v3134_v22  ;;  %v3177_v25 = vmax.f32 %v3161_v53, 0.0 }
 0x39f   : > { %v3178_v59 = vmax.f32 %v3162_v55, 0.0 }
 0x3a0   : > { %v3179_v62 = vmax.f32 %v3163_v57, 0.0  ;;  %v3089_v26 = vpop.f32.mrb[4].mxu1  ;;  %v3945_v57 = vrot.slane %v3908_v34, 6 }
 0x3a1   : > { %v3192_v63 = vpack.c.bf16 %v3178_v59, %v3176_v58  ;;  %v3135_v0 = vmul.f32 %v17176_v36, %v3089_v26  ;;  %v3091_v1 = vpop.f32.mrb[5].mxu1  ;;  %v12829_v58 = vrot.slane %v3909_v52, 10  ;;  %v3949_v26 = vrot.slane %v3910_v42, 6 }
 0x3a2   : > { %v3136_v4 = vmul.f32 %v17179_v39, %v3091_v1  ;;  %v3093_v5 = vpop.f32.mrb[6].mxu1  ;;  %v3193_v6 = vpack.c.bf16 %v3179_v62, %v3177_v25  ;;  %v14673_v62 = vld [vmem:[#allocation12 + $0x34] ss:$8 sps:$4 sm:$0xff]   ;;  %v3946_v1 = vsel %vm17167_vm8, %v12828_v33, %v3945_v57  ;;  %v12831_v52 = vrot.slane %v3913_v28, 10  ;;  %v14870_v28 = vld [vmem:[#allocation9 + $0x860] ss:$8 sps:$4 sm:$0xff]  }
 0x3a3   : > { %v3164_v8 = vadd.f32 %v17182_v40, %v3135_v0  ;;  %v3137_v9 = vmul.f32 %v17176_v36, %v3093_v5  ;;  %v3095_v10 = vpop.f32.mrb[7].mxu1  ;;  %v3950_v5 = vsel %vm17167_vm8, %v12829_v58, %v3949_v26 }
 0x3a4   : > { %v3165_v12 = vadd.f32 %v17185_v43, %v3136_v4  ;;  %v3138_v15 = vmul.f32 %v17179_v39, %v3095_v10  ;;  %3425 = vmatprep.mubr.bf16.mxu1 %v3193_v6  ;;  %v14846_v10 = vld [vmem:[#allocation9 + $0x820] ss:$8 sps:$4 sm:$0xff]  }
 0x3a5   : > { %v3166_v21 = vadd.f32 %v17182_v40, %v3137_v9  ;;  %3426 = vmatmul.mubr.bf16.vlgmr.msra.gmra.mrb[16].mxu1 %v3192_v63  ;;  %v3180_v27 = vmax.f32 %v3164_v8, 0.0  ;;  %v14676_v8 = vld [vmem:[#allocation12 + $0x44] ss:$8 sps:$4 sm:$0xff]   ;;  %v12867_v9 = vcombine.low %v3946_v1, %v3950_v5  ;;  %5353 = vmatpush1.bf16.msra.mxu0 %v14846_v10 }
 0x3a6   : > { %v3167_v29 = vadd.f32 %v17185_v43, %v3138_v15  ;;  %3627 = vmatpush1.bf16.msra.mxu1 %v14662_v7  ;;  %v3181_v32 = vmax.f32 %v3165_v12, 0.0  ;;  %v14671_v7 = vld [vmem:[#allocation12 + $0x30] ss:$8 sps:$4 sm:$0xff]   ;;  %5354 = vmatprep.subr.bf16.mxu0 %v14854_v18  ;;  %v14682_v1 = vld [vmem:[#allocation12 + $0x64] ss:$8 sps:$4 sm:$0xff]  }
 0x3a7   : > { %v3182_v35 = vmax.f32 %v3166_v21, 0.0  ;;  %3628 = vmatprep.subr.bf16.mxu1 %v14667_v11  ;;  %5301 = vmatprep.mubr.bf16.mxu0 %v12867_v9  ;;  %v3918_v9 = vld [vmem:[#allocation2 + $0x378] sm:$0x3] }
 0x3a8   : > { %v3183_v41 = vmax.f32 %v3167_v29, 0.0  ;;  %v3099_v44 = vpop.f32.mrb[8].mxu1  ;;  %v3911_v29 = vld [vmem:[#allocation2 + $0x320] sm:$0xc]  ;;  %5302 = vmatmul.mubr.bf16.gmra.mrb[20].mxu0 %v15786_v37  ;;  %v14688_v37 = vld [vmem:[#allocation12 + $0x84] ss:$8 sps:$4 sm:$0xff]  }
 0x3a9   : > { %v3139_v46 = vmul.f32 %v17176_v36, %v3099_v44  ;;  %v3101_v47 = vpop.f32.mrb[9].mxu1  ;;  %v3194_v51 = vpack.c.bf16 %v3182_v35, %v3180_v27  ;;  %v14674_v27 = vld [vmem:[#allocation12 + $0x40] ss:$8 sps:$4 sm:$0xff]   ;;  %v12830_v44 = vrot.slane %v3911_v29, 10 }
 0x3aa   : > { %v3140_v53 = vmul.f32 %v17179_v39, %v3101_v47  ;;  %3629 = vmatpush1.bf16.msra.mxu1 %v14665_v30  ;;  %v3103_v22 = vpop.f32.mrb[10].mxu1  ;;  %v3195_v55 = vpack.c.bf16 %v3183_v41, %v3181_v32  ;;  %v3912_v30 = vld [vmem:[#allocation2 + $0x324] sm:$0x3]  ;;  %v3914_v41 = vld [vmem:[#allocation2 + $0x340] sm:$0x3] }
 0x3ab   : > { %v3168_v59 = vadd.f32 %v17182_v40, %v3139_v46  ;;  %v3141_v23 = vmul.f32 %v17176_v36, %v3103_v22  ;;  %v3105_v25 = vpop.f32.mrb[11].mxu1  ;;  %3630 = vmatprep.subr.bf16.mxu1 %v14670_v31  ;;  %v14852_v47 = vld [vmem:[#allocation9 + $0x830] ss:$8 sps:$4 sm:$0xff]   ;;  %v14679_v22 = vld [vmem:[#allocation12 + $0x54] ss:$8 sps:$4 sm:$0xff]  }
 0x3ac   : > { %v3169_v63 = vadd.f32 %v17185_v43, %v3140_v53  ;;  %v3142_v0 = vmul.f32 %v17179_v39, %v3105_v25  ;;  %3435 = vmatprep.mubr.bf16.mxu1 %v3195_v55  ;;  %v3957_v55 = vrot.slane %v3914_v41, 6  ;;  %5355 = vmatpush1.bf16.msra.mxu0 %v14852_v47  ;;  %v14878_v41 = vld [vmem:[#allocation9 + $0x874] ss:$8 sps:$4 sm:$0xff]  }
 0x3ad   : > { %v3170_v4 = vadd.f32 %v17182_v40, %v3141_v23  ;;  %3436 = vmatmul.mubr.bf16.gmra.mrb[20].mxu1 %v3194_v51  ;;  %v3184_v11 = vmax.f32 %v3168_v59, 0.0  ;;  %v3953_v51 = vrot.slane %v3912_v30, 6  ;;  %v14860_v59 = vld [vmem:[#allocation9 + $0x844] ss:$8 sps:$4 sm:$0xff]   ;;  %v15788_v47 = vld [vmem:[#allocation2 + $0x354] ss:$28 sps:$4 sm:$0xff]  }
 0x3ae   : > { %v3171_v6 = vadd.f32 %v17185_v43, %v3142_v0  ;;  %3631 = vmatpush1.bf16.msra.mxu1 %v14668_v56  ;;  %v3185_v12 = vmax.f32 %v3169_v63, 0.0  ;;  %v14858_v63 = vld [vmem:[#allocation9 + $0x840] ss:$8 sps:$4 sm:$0xff]   ;;  %5356 = vmatprep.subr.bf16.mxu0 %v14860_v59  ;;  %v14692_v59 = vld [vmem:[#allocation12 + $0x90] ss:$8 sps:$4 sm:$0xff]  }
 0x3af   : > { %v3186_v15 = vmax.f32 %v3170_v4, 0.0  ;;  %3632 = vmatprep.subr.bf16.mxu1 %v14673_v62  ;;  %v3954_v58 = vsel %vm17167_vm8, %v12830_v44, %v3953_v51  ;;  %v14677_v62 = vld [vmem:[#allocation12 + $0x50] ss:$8 sps:$4 sm:$0xff]   ;;  %v3968_v44 = vld [vmem:[#allocation2 + $0x3f4] sm:$0xc] }
 0x3b0   : > { %v3187_v21 = vmax.f32 %v3171_v6, 0.0  ;;  %v3109_v24 = vpop.f32.mrb[12].mxu1  ;;  %v3916_v6 = vld [vmem:[#allocation2 + $0x35c] sm:$0x3]  ;;  %5357 = vmatpush1.bf16.msra.mxu0 %v14858_v63  ;;  %v12834_v51 = vrot.slane %v3968_v44, 10 }
 0x3b1   : > { %v3143_v31 = vmul.f32 %v17176_v36, %v3109_v24  ;;  %v3111_v32 = vpop.f32.mrb[13].mxu1  ;;  %v3196_v35 = vpack.c.bf16 %v3186_v15, %v3184_v11  ;;  %v3961_v11 = vrot.slane %v3916_v6, 6  ;;  %v14680_v15 = vld [vmem:[#allocation12 + $0x60] ss:$8 sps:$4 sm:$0xff]   ;;  %v14685_v24 = vld [vmem:[#allocation12 + $0x74] ss:$8 sps:$4 sm:$0xff]   ;;  %5358 = vmatprep.subr.bf16.mxu0 %v14866_v3 }
 0x3b2   : > { %v3144_v45 = vmul.f32 %v17179_v39, %v3111_v32  ;;  %3633 = vmatpush1.bf16.msra.mxu1 %v14671_v7  ;;  %v3113_v34 = vpop.f32.mrb[14].mxu1  ;;  %v3197_v46 = vpack.c.bf16 %v3187_v21, %v3185_v12  ;;  %v3965_v21 = vrot.slane %v3918_v9, 6  ;;  %v14698_v63 = vld [vmem:[#allocation12 + $0xa0] ss:$8 sps:$4 sm:$0xff]   ;;  %v3973_v3 = vld [vmem:[#allocation2 + $0x430] sm:$0x3] }
 0x3b3   : > { %v3172_v42 = vadd.f32 %v17182_v40, %v3143_v31  ;;  %v3145_v33 = vmul.f32 %v17176_v36, %v3113_v34  ;;  %v3115_v53 = vpop.f32.mrb[15].mxu1  ;;  %3634 = vmatprep.subr.bf16.mxu1 %v14676_v8  ;;  %v3958_v36 = vsel %vm17167_vm8, %v12831_v52, %v3957_v55  ;;  %v15787_v8 = vld [vmem:[#allocation2 + $0x31c] ss:$28 sps:$4 sm:$0xff]   ;;  %v14872_v31 = vld [vmem:[#allocation9 + $0x864] ss:$8 sps:$4 sm:$0xff]   ;;  %v4010_v6 = vrot.slane %v3973_v3, 6 }
 0x3b4   : > { %v3173_v56 = vadd.f32 %v17185_v43, %v3144_v45  ;;  %v3146_v57 = vmul.f32 %v17179_v39, %v3115_v53  ;;  %3445 = vmatprep.mubr.bf16.mxu1 %v3197_v46  ;;  %v12868_v26 = vcombine.low %v3954_v58, %v3958_v36  ;;  %v3969_v45 = vld [vmem:[#allocation2 + $0x3f8] sm:$0x3]  ;;  %v3970_v34 = vld [vmem:[#allocation2 + $0x410] sm:$0xc]  ;;  %v3971_v46 = vld [vmem:[#allocation2 + $0x414] sm:$0x3] }
 0x3b5   : > { %v3174_v23 = vadd.f32 %v17182_v40, %v3145_v33  ;;  %3446 = vmatmul.mubr.bf16.gmra.mrb[24].mxu1 %v3196_v35  ;;  %v3188_v0 = vmax.f32 %v3172_v42, 0.0  ;;  %v3915_v40 = vld [vmem:[#allocation2 + $0x358] sm:$0xc]  ;;  %v4002_v52 = vrot.slane %v3969_v45, 6  ;;  %v12835_v42 = vrot.slane %v3970_v34, 10 }
 0x3b6   : > { %v3175_v25 = vadd.f32 %v17185_v43, %v3146_v57  ;;  %3635 = vmatpush1.bf16.msra.mxu1 %v14674_v27  ;;  %v3189_v4 = vmax.f32 %v3173_v56, 0.0  ;;  %5311 = vmatprep.mubr.bf16.mxu0 %v12868_v26  ;;  %v3917_v43 = vld [vmem:[#allocation2 + $0x374] sm:$0xc]  ;;  %v12832_v10 = vrot.slane %v3915_v40, 10  ;;  %v14864_v27 = vld [vmem:[#allocation9 + $0x850] ss:$8 sps:$4 sm:$0xff]  }
 0x3b7   : > { %v3190_v39 = vmax.f32 %v3174_v23, 0.0  ;;  %3636 = vmatprep.subr.bf16.mxu1 %v14679_v22  ;;  %5312 = vmatmul.mubr.bf16.gmra.mrb[24].mxu0 %v15787_v8  ;;  %v12833_v18 = vrot.slane %v3917_v43, 10  ;;  %v14683_v35 = vld [vmem:[#allocation12 + $0x70] ss:$8 sps:$4 sm:$0xff]   ;;  %v4006_v33 = vrot.slane %v3971_v46, 6  ;;  %v4003_v56 = vsel %vm17167_vm8, %v12834_v51, %v4002_v52 }
 0x3b8   : > { %v3191_v5 = vmax.f32 %v3175_v25, 0.0  ;;  %v3962_v29 = vsel %vm17167_vm8, %v12832_v10, %v3961_v11  ;;  %5359 = vmatpush1.bf16.msra.mxu0 %v14864_v27  ;;  %v14686_v53 = vld [vmem:[#allocation12 + $0x80] ss:$8 sps:$4 sm:$0xff]   ;;  %v14879_v22 = vld [vmem:[#allocation2 + $0x3fc] ss:$28 sps:$4 sm:$0xff]  }
 0x3b9   : > { %v3198_v7 = vpack.c.bf16 %v3190_v39, %v3188_v0  ;;  %v3966_v30 = vsel %vm17167_vm8, %v12833_v18, %v3965_v21  ;;  %5360 = vmatprep.subr.bf16.mxu0 %v14872_v31  ;;  %v14876_v55 = vld [vmem:[#allocation9 + $0x870] ss:$8 sps:$4 sm:$0xff]   ;;  %v4007_v57 = vsel %vm17167_vm8, %v12835_v42, %v4006_v33  ;;  %v14885_v58 = vld [vmem:[#allocation9 + $0x884] ss:$8 sps:$4 sm:$0xff]   ;;  %v14883_v25 = vld [vmem:[#allocation9 + $0x880] ss:$8 sps:$4 sm:$0xff]  }
 0x3ba   : > { %3637 = vmatpush1.bf16.msra.mxu1 %v14677_v62  ;;  %v3199_v12 = vpack.c.bf16 %v3191_v5, %v3189_v4  ;;  %v12869_v32 = vcombine.low %v3962_v29, %v3966_v30  ;;  %v12870_v23 = vcombine.low %v4003_v56, %v4007_v57  ;;  %v14700_v36 = vld [vmem:[#allocation12 + $0xa4] ss:$8 sps:$4 sm:$0xff]   ;;  %v14891_v62 = vld [vmem:[#allocation9 + $0x894] ss:$8 sps:$4 sm:$0xff]   ;;  %v3974_v4 = vld [vmem:[#allocation2 + $0x448] sm:$0xc] }
 0x3bb   : > { %3638 = vmatprep.subr.bf16.mxu1 %v14682_v1  ;;  %v3972_v26 = vld [vmem:[#allocation2 + $0x42c] sm:$0xc]  ;;  %v14706_v0 = vld [vmem:[#allocation12 + $0xb4] ss:$8 sps:$4 sm:$0xff]   ;;  %v14889_v1 = vld [vmem:[#allocation9 + $0x890] ss:$8 sps:$4 sm:$0xff]  }
 0x3bc   : > { %3455 = vmatprep.mubr.bf16.mxu1 %v3199_v12  ;;  %5321 = vmatprep.mubr.bf16.mxu0 %v12869_v32  ;;  %v14893_v39 = vld [vmem:[#allocation2 + $0x434] ss:$28 sps:$4 sm:$0xff]   ;;  %v3975_v5 = vld [vmem:[#allocation2 + $0x44c] sm:$0x3]  ;;  %v12836_v40 = vrot.slane %v3972_v26, 10 }
 0x3bd   : > { %3456 = vmatmul.mubr.bf16.gmra.mrb[28].mxu1 %v3198_v7  ;;  %5361 = vmatpush1.bf16.msra.mxu0 %v14870_v28  ;;  %v12837_v7 = vrot.slane %v3974_v4, 10  ;;  %v4014_v8 = vrot.slane %v3975_v5, 6  ;;  %v14899_v43 = vld [vmem:[#allocation9 + $0x8a4] ss:$8 sps:$4 sm:$0xff]   ;;  %v14704_v9 = vld [vmem:[#allocation12 + $0xb0] ss:$8 sps:$4 sm:$0xff]  }
 0x3be   : > { %3639 = vmatpush1.bf16.msra.mxu1 %v14680_v15  ;;  %3658 = vmatprep.mubr.bf16.mxu1 %v17131_v54  ;;  %v14694_v54 = vld [vmem:[#allocation12 + $0x94] ss:$8 sps:$4 sm:$0xff]   ;;  %v4011_v10 = vsel %vm17167_vm8, %v12836_v40, %v4010_v6  ;;  %v14712_v11 = vld [vmem:[#allocation12 + $0xc4] ss:$8 sps:$4 sm:$0xff]   ;;  %v14897_v15 = vld [vmem:[#allocation9 + $0x8a0] ss:$8 sps:$4 sm:$0xff]  }
 0x3bf   : > { %3640 = vmatprep.subr.bf16.mxu1 %v14685_v24  ;;  %5322 = vmatmul.mubr.bf16.gmra.mrb[28].mxu0 %v15788_v47  ;;  %v4015_v12 = vsel %vm17167_vm8, %v12837_v7, %v4014_v8  ;;  %v14905_v21 = vld [vmem:[#allocation9 + $0x8b4] ss:$8 sps:$4 sm:$0xff]   ;;  %v3976_v24 = vld [vmem:[#allocation2 + $0x464] sm:$0xc]  ;;  %v14710_v27 = vld [vmem:[#allocation12 + $0xc0] ss:$8 sps:$4 sm:$0xff]  }
 0x3c0   : > { %5362 = vmatprep.subr.bf16.mxu0 %v14878_v41  ;;  %5364 = vmatprep.mubr.bf16.mxu0 %v14879_v22  ;;  %v12871_v18 = vcombine.low %v4011_v10, %v4015_v12  ;;  %v14718_v29 = vld [vmem:[#allocation12 + $0xd4] ss:$8 sps:$4 sm:$0xff]   ;;  %v14907_v30 = vld [vmem:[#allocation2 + $0x46c] ss:$28 sps:$4 sm:$0xff]   ;;  %v14903_v31 = vld [vmem:[#allocation9 + $0x8b0] ss:$8 sps:$4 sm:$0xff]  }
 0x3c1   : > { %5363 = vmatpush1.bf16.msra.mxu0 %v14876_v55  ;;  %v3977_v32 = vld [vmem:[#allocation2 + $0x468] sm:$0x3]  ;;  %v12838_v28 = vrot.slane %v3976_v24, 10  ;;  %v14913_v34 = vld [vmem:[#allocation9 + $0x8c4] ss:$8 sps:$4 sm:$0xff]  }
 0x3c2   : > { %3641 = vmatpush1.bf16.msra.mxu1 %v14683_v35  ;;  %5405 = vmatprep.subr.bf16.mxu0 %v14885_v58  ;;  %v3978_v35 = vld [vmem:[#allocation2 + $0x480] sm:$0xc]  ;;  %v4018_v41 = vrot.slane %v3977_v32, 6  ;;  %v14716_v46 = vld [vmem:[#allocation12 + $0xd0] ss:$8 sps:$4 sm:$0xff]  }
 0x3c3   : > { %3642 = vmatprep.subr.bf16.mxu1 %v14688_v37  ;;  %v3979_v37 = vld [vmem:[#allocation2 + $0x484] sm:$0x3]  ;;  %v12839_v44 = vrot.slane %v3978_v35, 10  ;;  %v14911_v42 = vld [vmem:[#allocation9 + $0x8c0] ss:$8 sps:$4 sm:$0xff]  }
 0x3c4   : > { %v4022_v45 = vrot.slane %v3979_v37, 6  ;;  %v4019_v47 = vsel %vm17167_vm8, %v12838_v28, %v4018_v41  ;;  %v14724_v51 = vld [vmem:[#allocation12 + $0xe4] ss:$8 sps:$4 sm:$0xff]   ;;  %v3980_v22 = vld [vmem:[#allocation2 + $0x49c] sm:$0xc] }
 0x3c5   : > { %v14730_v55 = vld [vmem:[#allocation12 + $0xf4] ss:$8 sps:$4 sm:$0xff]   ;;  %v14921_v56 = vld [vmem:[#allocation2 + $0x4a4] ss:$28 sps:$4 sm:$0xff]   ;;  %v14917_v57 = vld [vmem:[#allocation9 + $0x8d0] ss:$8 sps:$4 sm:$0xff]  }
 0x3c6   : > { %3643 = vmatpush1.bf16.msra.mxu1 %v14686_v53  ;;  %v4023_v52 = vsel %vm17167_vm8, %v12839_v44, %v4022_v45  ;;  %v14919_v53 = vld [vmem:[#allocation9 + $0x8d4] ss:$8 sps:$4 sm:$0xff]   ;;  %v3981_v58 = vld [vmem:[#allocation2 + $0x4a0] sm:$0x3]  ;;  %v14931_v8 = vld [vmem:[#allocation9 + $0x8f0] ss:$8 sps:$4 sm:$0xff]  }
 0x3c7   : > { %3644 = vmatprep.subr.bf16.mxu1 %v14694_v54  ;;  %5365 = vmatmul.mubr.bf16.vlgmr.msra.gmra.mrb[16].mxu0 %v12870_v23  ;;  %v12872_v33 = vcombine.low %v4019_v47, %v4023_v52  ;;  %v14722_v54 = vld [vmem:[#allocation12 + $0xe0] ss:$8 sps:$4 sm:$0xff]   ;;  %v3983_v23 = vld [vmem:[#allocation2 + $0x4bc] sm:$0x3]  ;;  %v4047_v44 = vld [vmem:[#allocation2 + $0x458] sm:$0x3] }
 0x3c8   : > { %5406 = vmatpush1.bf16.msra.mxu0 %v14883_v25  ;;  %5374 = vmatprep.mubr.bf16.mxu0 %v14893_v39  ;;  %v4026_v25 = vrot.slane %v3981_v58, 6  ;;  %v4030_v26 = vrot.slane %v3983_v23, 6  ;;  %v14925_v4 = vld [vmem:[#allocation9 + $0x8e0] ss:$8 sps:$4 sm:$0xff]   ;;  %v14933_v40 = vld [vmem:[#allocation9 + $0x8f4] ss:$8 sps:$4 sm:$0xff]  }
 0x3c9   : > { %5407 = vmatprep.subr.bf16.mxu0 %v14891_v62  ;;  %v14734_v6 = vld [vmem:[#allocation9 + $0x480] ss:$8 sps:$4 sm:$0xff]   ;;  %v14742_v7 = vld [vmem:[#allocation9 + $0x494] ss:$8 sps:$4 sm:$0xff]   ;;  %v14752_v47 = vld [vmem:[#allocation9 + $0x4b0] ss:$8 sps:$4 sm:$0xff]  }
 0x3ca   : > { %3645 = vmatpush1.bf16.msra.mxu1 %v14692_v59  ;;  %v3982_v59 = vld [vmem:[#allocation2 + $0x4b8] sm:$0xc]  ;;  %v17248_v10 = vld [vmem:[#allocation3] sm:$0xff]  ;;  %v14754_v37 = vld [vmem:[#allocation9 + $0x4b4] ss:$8 sps:$4 sm:$0xff]  }
 0x3cb   : > { %3646 = vmatprep.subr.bf16.mxu1 %v14700_v36  ;;  %v12840_v36 = vrot.slane %v3980_v22, 10  ;;  %v12841_v62 = vrot.slane %v3982_v59, 10  ;;  %v4043_v12 = vld [vmem:[#allocation2 + $0x420] sm:$0x3]  ;;  %v4045_v28 = vld [vmem:[#allocation2 + $0x43c] sm:$0x3] }
 0x3cc   : > { %5408 = vmatpush1.bf16.msra.mxu0 %v14889_v1  ;;  %v14736_v1 = vld [vmem:[#allocation9 + $0x484] ss:$8 sps:$4 sm:$0xff]   ;;  %v4078_v24 = vrot.slane %v4043_v12, 6  ;;  %v14746_v35 = vld [vmem:[#allocation9 + $0x4a0] ss:$8 sps:$4 sm:$0xff]   ;;  %v4082_v45 = vrot.slane %v4045_v28, 6 }
 0x3cd   : > { %5409 = vmatprep.subr.bf16.mxu0 %v14899_v43  ;;  %v4027_v39 = vsel %vm17167_vm8, %v12840_v36, %v4026_v25  ;;  %v4031_v3 = vsel %vm17167_vm8, %v12841_v62, %v4030_v26  ;;  %v4040_v43 = vld [vmem:[#allocation2 + $0x400] sm:$0xc]  ;;  %v14760_v52 = vld [vmem:[#allocation9 + $0x4c4] ss:$8 sps:$4 sm:$0xff]   ;;  %v14766_v22 = vld [vmem:[#allocation9 + $0x4d4] ss:$8 sps:$4 sm:$0xff]  }
 0x3ce   : > { %3647 = vmatpush1.bf16.msra.mxu1 %v14698_v63  ;;  %v14927_v63 = vld [vmem:[#allocation9 + $0x8e4] ss:$8 sps:$4 sm:$0xff]   ;;  %v12873_v5 = vcombine.low %v4027_v39, %v4031_v3  ;;  %v14764_v23 = vld [vmem:[#allocation9 + $0x4d0] ss:$8 sps:$4 sm:$0xff]   ;;  %v14790_v12 = vld [vmem:[#allocation9 + $0x514] ss:$8 sps:$4 sm:$0xff]  }
 0x3cf   : > { %3648 = vmatprep.subr.bf16.mxu1 %v14706_v0  ;;  %5375 = vmatmul.mubr.bf16.gmra.mrb[20].mxu0 %v12871_v18  ;;  %v14728_v0 = vld [vmem:[#allocation12 + $0xf0] ss:$8 sps:$4 sm:$0xff]   ;;  %v14772_v25 = vld [vmem:[#allocation9 + $0x4e4] ss:$8 sps:$4 sm:$0xff]   ;;  %v3703_v28 = vld [vmem:[#allocation2 + $0x174] sm:$0x3] }
 0x3d0   : > { %5410 = vmatpush1.bf16.msra.mxu0 %v14897_v15  ;;  %5384 = vmatprep.mubr.bf16.mxu0 %v14907_v30  ;;  %v12842_v15 = vrot.slane %v4040_v43, 10  ;;  %v14748_v30 = vld [vmem:[#allocation9 + $0x4a4] ss:$8 sps:$4 sm:$0xff]   ;;  %v14830_v39 = vld [vmem:[#allocation2 + $0x15c] ss:$28 sps:$4 sm:$0xff]  }
 0x3d1   : > { %5411 = vmatprep.subr.bf16.mxu0 %v14905_v21  ;;  %v14784_v43 = vld [vmem:[#allocation9 + $0x504] ss:$8 sps:$4 sm:$0xff]  }
 0x3d2   : > { %3649 = vmatpush1.bf16.msra.mxu1 %v14704_v9  ;;  %v4041_v9 = vld [vmem:[#allocation2 + $0x404] sm:$0x3] }
 0x3d3   : > { %3650 = vmatprep.subr.bf16.mxu1 %v14712_v11  ;;  %v4042_v11 = vld [vmem:[#allocation2 + $0x41c] sm:$0xc]  ;;  %v4074_v18 = vrot.slane %v4041_v9, 6 }
 0x3d4   : > { %5412 = vmatpush1.bf16.msra.mxu0 %v14903_v31  ;;  %v12843_v21 = vrot.slane %v4042_v11, 10  ;;  %v14782_v11 = vld [vmem:[#allocation9 + $0x500] ss:$8 sps:$4 sm:$0xff]  }
 0x3d5   : > { %5413 = vmatprep.subr.bf16.mxu0 %v14913_v34 }
 0x3d6   : > { %3651 = vmatpush1.bf16.msra.mxu1 %v14710_v27  ;;  %v14740_v27 = vld [vmem:[#allocation9 + $0x490] ss:$8 sps:$4 sm:$0xff]   ;;  %v4079_v31 = vsel %vm17167_vm8, %v12843_v21, %v4078_v24  ;;  %v14802_v21 = vld [vmem:[#allocation9 + $0x534] ss:$8 sps:$4 sm:$0xff]  }
 0x3d7   : > { %3652 = vmatprep.subr.bf16.mxu1 %v14718_v29  ;;  %5385 = vmatmul.mubr.bf16.gmra.mrb[24].mxu0 %v12872_v33  ;;  %v4075_v29 = vsel %vm17167_vm8, %v12842_v15, %v4074_v18  ;;  %v14796_v15 = vld [vmem:[#allocation9 + $0x524] ss:$8 sps:$4 sm:$0xff]   ;;  %v14794_v18 = vld [vmem:[#allocation9 + $0x520] ss:$8 sps:$4 sm:$0xff]   ;;  %v14800_v24 = vld [vmem:[#allocation9 + $0x530] ss:$8 sps:$4 sm:$0xff]  }
 0x3d8   : > { %5414 = vmatpush1.bf16.msra.mxu0 %v14911_v42  ;;  %5394 = vmatprep.mubr.bf16.mxu0 %v14921_v56  ;;  %v12878_v32 = vcombine.low %v4075_v29, %v4079_v31  ;;  %v4051_v56 = vld [vmem:[#allocation2 + $0x490] sm:$0x3]  ;;  %v14806_v29 = vld [vmem:[#allocation9 + $0x540] ss:$8 sps:$4 sm:$0xff]  }
 0x3d9   : > { %5415 = vmatprep.subr.bf16.mxu0 %v14919_v53  ;;  %v14758_v53 = vld [vmem:[#allocation9 + $0x4c0] ss:$8 sps:$4 sm:$0xff]   ;;  %v4094_v59 = vrot.slane %v4051_v56, 6  ;;  %v14812_v31 = vld [vmem:[#allocation9 + $0x550] ss:$8 sps:$4 sm:$0xff]  }
 0x3da   : > { %3653 = vmatpush1.bf16.msra.mxu1 %v14716_v46  ;;  %v4086_v46 = vrot.slane %v4047_v44, 6 }
 0x3db   : > { %3654 = vmatprep.subr.bf16.mxu1 %v14724_v51 }
 0x3dc   : > { %5416 = vmatpush1.bf16.msra.mxu0 %v14917_v57 }
 0x3dd   : > { %5417 = vmatprep.subr.bf16.mxu0 %v14927_v63  ;;  %v14770_v63 = vld [vmem:[#allocation9 + $0x4e0] ss:$8 sps:$4 sm:$0xff]  }
 0x3de   : > { %3655 = vmatpush1.bf16.msra.mxu1 %v14722_v54  ;;  %v4048_v54 = vld [vmem:[#allocation2 + $0x470] sm:$0xc] }
 0x3df   : > { %3656 = vmatprep.subr.bf16.mxu1 %v14730_v55  ;;  %5395 = vmatmul.mubr.bf16.gmra.mrb[28].mxu0 %v12873_v5  ;;  %v4050_v55 = vld [vmem:[#allocation2 + $0x48c] sm:$0xc] }
 0x3e0   : > { %5418 = vmatpush1.bf16.msra.mxu0 %v14925_v4  ;;  %5437 = vmatprep.mubr.bf16.mxu0 %v17248_v10  ;;  %v12847_v58 = vrot.slane %v4050_v55, 10  ;;  %v4055_v4 = vld [vmem:[#allocation2 + $0x4c8] sm:$0x3] }
 0x3e1   : > { %5419 = vmatprep.subr.bf16.mxu0 %v14933_v40 }
 0x3e2   : > { %3657 = vmatpush1.bf16.msra.mxu1 %v14728_v0  ;;  %v4095_v62 = vsel %vm17167_vm8, %v12847_v58, %v4094_v59  ;;  %v14778_v0 = vld [vmem:[#allocation9 + $0x4f4] ss:$8 sps:$4 sm:$0xff]  }
 0x3e3   : > { %5113 = vmatprep.subr.bf16.mxu1 %v14736_v1  ;;  %v4053_v1 = vld [vmem:[#allocation2 + $0x4ac] sm:$0x3] }
 0x3e4   : > { %5420 = vmatpush1.bf16.msra.mxu0 %v14931_v8  ;;  %v4098_v5 = vrot.slane %v4053_v1, 6  ;;  %v14843_v1 = vld [vmem:[#allocation9 + $0x5a0] ss:$8 sps:$4 sm:$0xff]  }
 0x3e5   : > { %3659 = vmatmul.mubr.bf16.vlgmr.msra.gmra.mrb[16].mxu1 %v17127_v48  ;;  %v4044_v48 = vld [vmem:[#allocation2 + $0x438] sm:$0xc]  ;;  %5753 = vmatprep.subr.bf16.mxu0 %v15063_v2  ;;  %v14991_v2 = vld [vmem:[#allocation9 + $0xa24] ss:$8 sps:$4 sm:$0xff]  }
 0x3e6   : > { %5114 = vmatpush1.bf16.msra.mxu1 %v14734_v6  ;;  %3668 = vmatprep.mubr.bf16.mxu1 %v17144_v19  ;;  %v4046_v19 = vld [vmem:[#allocation2 + $0x454] sm:$0xc]  ;;  %v12844_v41 = vrot.slane %v4044_v48, 10  ;;  %v4102_v6 = vrot.slane %v4055_v4, 6  ;;  %v3702_v48 = vld [vmem:[#allocation2 + $0x170] sm:$0xc] }
 0x3e7   : > { %5115 = vmatprep.subr.bf16.mxu1 %v14742_v7  ;;  %5438 = vmatmul.mubr.bf16.vlgmr.msra.gmra.mrb[16].mxu0 %v12878_v32  ;;  %v12845_v34 = vrot.slane %v4046_v19, 10  ;;  %v14776_v7 = vld [vmem:[#allocation9 + $0x4f0] ss:$8 sps:$4 sm:$0xff]   ;;  %v14820_v32 = vld [vmem:[#allocation9 + $0x564] ss:$8 sps:$4 sm:$0xff]  }
 0x3e8   : > { %5447 = vmatprep.mubr.bf16.mxu0 %v17248_v10  ;;  %v4083_v51 = vsel %vm17167_vm8, %v12844_v41, %v4082_v45  ;;  %v14818_v19 = vld [vmem:[#allocation9 + $0x560] ss:$8 sps:$4 sm:$0xff]   ;;  %v12803_v45 = vrot.slane %v3702_v48, 10 }
 0x3e9   : > { %v4087_v42 = vsel %vm17167_vm8, %v12845_v34, %v4086_v46  ;;  %v3741_v34 = vrot.slane %v3703_v28, 6  ;;  %v14826_v46 = vld [vmem:[#allocation9 + $0x574] ss:$8 sps:$4 sm:$0xff]  }
 0x3ea   : > { %5116 = vmatpush1.bf16.msra.mxu1 %v14740_v27  ;;  %v12879_v33 = vcombine.low %v4083_v51, %v4087_v42  ;;  %v14808_v27 = vld [vmem:[#allocation9 + $0x544] ss:$8 sps:$4 sm:$0xff]   ;;  %v14863_v28 = vld [vmem:[#allocation9 + $0x5d4] ss:$8 sps:$4 sm:$0xff]  }
 0x3eb   : > { %5117 = vmatprep.subr.bf16.mxu1 %v14748_v30  ;;  %v14814_v30 = vld [vmem:[#allocation9 + $0x554] ss:$8 sps:$4 sm:$0xff]   ;;  %v14833_v51 = vld [vmem:[#allocation9 + $0x584] ss:$8 sps:$4 sm:$0xff]   ;;  %v3742_v42 = vsel %vm17167_vm8, %v12803_v45, %v3741_v34  ;;  %v14861_v34 = vld [vmem:[#allocation9 + $0x5d0] ss:$8 sps:$4 sm:$0xff]  }
 0x3ed   : > { %3669 = vmatmul.mubr.bf16.gmra.mrb[20].mxu1 %v17146_v20  ;;  %v4049_v20 = vld [vmem:[#allocation2 + $0x474] sm:$0x3] }
 0x3ee   : > { %5118 = vmatpush1.bf16.msra.mxu1 %v14746_v35  ;;  %3678 = vmatprep.mubr.bf16.mxu1 %v17156_v49  ;;  %v12846_v49 = vrot.slane %v4048_v54, 10  ;;  %v4090_v57 = vrot.slane %v4049_v20, 6  ;;  %v3700_v35 = vld [vmem:[#allocation2 + $0x154] sm:$0xc]  ;;  %v3707_v54 = vld [vmem:[#allocation2 + $0x1ac] sm:$0x3] }
 0x3ef   : > { %5119 = vmatprep.subr.bf16.mxu1 %v14754_v37  ;;  %5448 = vmatmul.mubr.bf16.gmra.mrb[20].mxu0 %v12879_v33  ;;  %v3701_v37 = vld [vmem:[#allocation2 + $0x158] sm:$0x3]  ;;  %v12802_v41 = vrot.slane %v3700_v35, 10  ;;  %v3704_v33 = vld [vmem:[#allocation2 + $0x18c] sm:$0xc]  ;;  %v3749_v59 = vrot.slane %v3707_v54, 6 }
 0x3f0   : > { %5457 = vmatprep.mubr.bf16.mxu0 %v17248_v10  ;;  %v4091_v36 = vsel %vm17167_vm8, %v12846_v49, %v4090_v57  ;;  %v3737_v44 = vrot.slane %v3701_v37, 6  ;;  %v14831_v20 = vld [vmem:[#allocation9 + $0x580] ss:$8 sps:$4 sm:$0xff]   ;;  %v14892_v49 = vld [vmem:[#allocation2 + $0x194] ss:$28 sps:$4 sm:$0xff]   ;;  %v12804_v56 = vrot.slane %v3704_v33, 10 }
 0x3f1   : > { %v12880_v26 = vcombine.low %v4091_v36, %v4095_v62  ;;  %v14837_v36 = vld [vmem:[#allocation9 + $0x590] ss:$8 sps:$4 sm:$0xff]   ;;  %v14875_v54 = vld [vmem:[#allocation9 + $0x5f4] ss:$8 sps:$4 sm:$0xff]  }
 0x3f2   : > { %5120 = vmatpush1.bf16.msra.mxu1 %v14752_v47  ;;  %v14824_v47 = vld [vmem:[#allocation9 + $0x570] ss:$8 sps:$4 sm:$0xff]  }
 0x3f3   : > { %5121 = vmatprep.subr.bf16.mxu1 %v14760_v52  ;;  %v3738_v52 = vsel %vm17167_vm8, %v12802_v41, %v3737_v44 }
 0x3f4   : > { %v12850_v55 = vcombine.low %v3738_v52, %v3742_v42 }
 0x3f5   : > { %3679 = vmatmul.mubr.bf16.gmra.mrb[24].mxu1 %v17158_v50  ;;  %v4052_v50 = vld [vmem:[#allocation2 + $0x4a8] sm:$0xc] }
 0x3f6   : > { %5122 = vmatpush1.bf16.msra.mxu1 %v14758_v53  ;;  %3688 = vmatprep.mubr.bf16.mxu1 %v17163_v60  ;;  %v4054_v60 = vld [vmem:[#allocation2 + $0x4c4] sm:$0xc]  ;;  %v12848_v3 = vrot.slane %v4052_v50, 10  ;;  %v3705_v53 = vld [vmem:[#allocation2 + $0x190] sm:$0x3] }
 0x3f7   : > { %5123 = vmatprep.subr.bf16.mxu1 %v14766_v22  ;;  %5458 = vmatmul.mubr.bf16.gmra.mrb[24].mxu0 %v12880_v26  ;;  %v12849_v40 = vrot.slane %v4054_v60, 10  ;;  %v3706_v22 = vld [vmem:[#allocation2 + $0x1a8] sm:$0xc]  ;;  %v3745_v57 = vrot.slane %v3705_v53, 6  ;;  %v3711_v50 = vld [vmem:[#allocation2 + $0x1e4] sm:$0x3] }
 0x3f8   : > { %5467 = vmatprep.mubr.bf16.mxu0 %v17248_v10  ;;  %v4099_v8 = vsel %vm17167_vm8, %v12848_v3, %v4098_v5  ;;  %v12805_v58 = vrot.slane %v3706_v22, 10  ;;  %v14906_v3 = vld [vmem:[#allocation2 + $0x1cc] ss:$28 sps:$4 sm:$0xff]  }
 0x3f9   : > { %v4103_v9 = vsel %vm17167_vm8, %v12849_v40, %v4102_v6  ;;  %v3746_v62 = vsel %vm17167_vm8, %v12804_v56, %v3745_v57  ;;  %v3757_v6 = vrot.slane %v3711_v50, 6  ;;  %v14867_v53 = vld [vmem:[#allocation9 + $0x5e0] ss:$8 sps:$4 sm:$0xff]   ;;  %v14888_v56 = vld [vmem:[#allocation9 + $0x614] ss:$8 sps:$4 sm:$0xff]  }
 0x3fa   : > { %5124 = vmatpush1.bf16.msra.mxu1 %v14764_v23  ;;  %v12881_v10 = vcombine.low %v4099_v8, %v4103_v9  ;;  %v14839_v23 = vld [vmem:[#allocation9 + $0x594] ss:$8 sps:$4 sm:$0xff]   ;;  %v3750_v26 = vsel %vm17167_vm8, %v12805_v58, %v3749_v59  ;;  %v14849_v8 = vld [vmem:[#allocation9 + $0x5b0] ss:$8 sps:$4 sm:$0xff]   ;;  %v14896_v58 = vld [vmem:[#allocation9 + $0x624] ss:$8 sps:$4 sm:$0xff]  }
 0x3fb   : > { %5125 = vmatprep.subr.bf16.mxu1 %v14772_v25  ;;  %v14845_v25 = vld [vmem:[#allocation9 + $0x5a4] ss:$8 sps:$4 sm:$0xff]   ;;  %v12851_v60 = vcombine.low %v3746_v62, %v3750_v26  ;;  %v14886_v57 = vld [vmem:[#allocation9 + $0x610] ss:$8 sps:$4 sm:$0xff]   ;;  %v14894_v59 = vld [vmem:[#allocation9 + $0x620] ss:$8 sps:$4 sm:$0xff]  }
 0x3fc   : > { %v14908_v62 = vld [vmem:[#allocation9 + $0x640] ss:$8 sps:$4 sm:$0xff]   ;;  %v14916_v26 = vld [vmem:[#allocation9 + $0x654] ss:$8 sps:$4 sm:$0xff]   ;;  %v3776_v50 = vld [vmem:[#allocation2 + $0x164] sm:$0x3] }
 0x3fd   : > { %3689 = vmatmul.mubr.bf16.gmra.mrb[28].mxu1 %v17165_v61  ;;  %v14788_v61 = vld [vmem:[#allocation9 + $0x510] ss:$8 sps:$4 sm:$0xff]  }
 0x3fe   : > { %5126 = vmatpush1.bf16.msra.mxu1 %v14770_v63  ;;  %5145 = vmatprep.mubr.bf16.mxu1 %v14830_v39  ;;  %v3708_v63 = vld [vmem:[#allocation2 + $0x1c4] sm:$0xc]  ;;  %v3710_v39 = vld [vmem:[#allocation2 + $0x1e0] sm:$0xc] }
 0x3ff   : > { %5127 = vmatprep.subr.bf16.mxu1 %v14778_v0  ;;  %5468 = vmatmul.mubr.bf16.gmra.mrb[28].mxu0 %v12881_v10  ;;  %v3709_v0 = vld [vmem:[#allocation2 + $0x1c8] sm:$0x3]  ;;  %v12806_v4 = vrot.slane %v3708_v63, 10  ;;  %v12807_v40 = vrot.slane %v3710_v39, 10  ;;  %v14914_v63 = vld [vmem:[#allocation9 + $0x650] ss:$8 sps:$4 sm:$0xff]  }
 0x400   : > { %v3753_v5 = vrot.slane %v3709_v0, 6  ;;  %v14924_v0 = vld [vmem:[#allocation9 + $0x664] ss:$8 sps:$4 sm:$0xff]   ;;  %v3775_v39 = vld [vmem:[#allocation2 + $0x160] sm:$0xc] }
 0x401   : > { %v3758_v10 = vsel %vm17167_vm8, %v12807_v40, %v3757_v6  ;;  %v3846_v40 = vld [vmem:[#allocation2 + $0x2fc] sm:$0x3]  ;;  %v14922_v6 = vld [vmem:[#allocation9 + $0x660] ss:$8 sps:$4 sm:$0xff]  }
 0x402   : > { %5128 = vmatpush1.bf16.msra.mxu1 %v14776_v7  ;;  %v14851_v7 = vld [vmem:[#allocation9 + $0x5b4] ss:$8 sps:$4 sm:$0xff]   ;;  %v3754_v9 = vsel %vm17167_vm8, %v12806_v4, %v3753_v5  ;;  %v3844_v4 = vld [vmem:[#allocation2 + $0x2e0] sm:$0x3]  ;;  %v3845_v5 = vld [vmem:[#allocation2 + $0x2f8] sm:$0xc] }
 0x403   : > { %5129 = vmatprep.subr.bf16.mxu1 %v14784_v43  ;;  %v14857_v43 = vld [vmem:[#allocation9 + $0x5c4] ss:$8 sps:$4 sm:$0xff]  }
 0x406   : > { %5130 = vmatpush1.bf16.msra.mxu1 %v14782_v11  ;;  %v3712_v11 = vld [vmem:[#allocation2 + $0x1fc] sm:$0xc] }
 0x407   : > { %5131 = vmatprep.subr.bf16.mxu1 %v14790_v12  ;;  %v3713_v12 = vld [vmem:[#allocation2 + $0x200] sm:$0x3] }
 0x408   : > { %v3761_v35 = vrot.slane %v3713_v12, 6  ;;  %v3881_v12 = vrot.slane %v3844_v4, 6 }
 0x40a   : > { %5132 = vmatpush1.bf16.msra.mxu1 %v14788_v61  ;;  %v3714_v61 = vld [vmem:[#allocation2 + $0x218] sm:$0xc] }
 0x40b   : > { %5133 = vmatprep.subr.bf16.mxu1 %v14796_v15  ;;  %v3715_v15 = vld [vmem:[#allocation2 + $0x21c] sm:$0x3]  ;;  %v12809_v37 = vrot.slane %v3714_v61, 10  ;;  %v12821_v61 = vrot.slane %v3845_v5, 10 }
 0x40c   : > { %v3765_v48 = vrot.slane %v3715_v15, 6  ;;  %v3885_v15 = vrot.slane %v3846_v40, 6  ;;  %v14945_v40 = vld [vmem:[#allocation9 + $0x934] ss:$8 sps:$4 sm:$0xff]  }
 0x40e   : > { %5134 = vmatpush1.bf16.msra.mxu1 %v14794_v18  ;;  %v3839_v18 = vld [vmem:[#allocation2 + $0x2a4] sm:$0xc] }
 0x40f   : > { %5135 = vmatprep.subr.bf16.mxu1 %v14802_v21  ;;  %v3840_v21 = vld [vmem:[#allocation2 + $0x2a8] sm:$0x3] }
 0x410   : > { %v3873_v41 = vrot.slane %v3840_v21, 6 }
 0x412   : > { %5136 = vmatpush1.bf16.msra.mxu1 %v14800_v24  ;;  %v3841_v24 = vld [vmem:[#allocation2 + $0x2c0] sm:$0xc] }
 0x413   : > { %5137 = vmatprep.subr.bf16.mxu1 %v14808_v27  ;;  %v3842_v27 = vld [vmem:[#allocation2 + $0x2c4] sm:$0x3]  ;;  %v12819_v44 = vrot.slane %v3841_v24, 10 }
 0x414   : > { %v3877_v45 = vrot.slane %v3842_v27, 6  ;;  %v14936_v27 = vld [vmem:[#allocation9 + $0x904] ss:$8 sps:$4 sm:$0xff]  }
 0x416   : > { %5138 = vmatpush1.bf16.msra.mxu1 %v14806_v29  ;;  %v14855_v29 = vld [vmem:[#allocation9 + $0x5c0] ss:$8 sps:$4 sm:$0xff]   ;;  %v3878_v42 = vsel %vm17167_vm8, %v12819_v44, %v3877_v45 }
 0x417   : > { %5139 = vmatprep.subr.bf16.mxu1 %v14814_v30  ;;  %v12852_v30 = vcombine.low %v3754_v9, %v3758_v10  ;;  %v14930_v10 = vld [vmem:[#allocation9 + $0x674] ss:$8 sps:$4 sm:$0xff]  }
 0x41a   : > { %5140 = vmatpush1.bf16.msra.mxu1 %v14812_v31  ;;  %v14920_v31 = vld [vmem:[#allocation2 + $0x204] ss:$28 sps:$4 sm:$0xff]  }
 0x41b   : > { %5141 = vmatprep.subr.bf16.mxu1 %v14820_v32  ;;  %v12808_v32 = vrot.slane %v3712_v11, 10 }
 0x41e   : > { %5142 = vmatpush1.bf16.msra.mxu1 %v14818_v19  ;;  %v12818_v19 = vrot.slane %v3839_v18, 10  ;;  %v14928_v18 = vld [vmem:[#allocation9 + $0x670] ss:$8 sps:$4 sm:$0xff]  }
 0x41f   : > { %5143 = vmatprep.subr.bf16.mxu1 %v14826_v46  ;;  %v3762_v46 = vsel %vm17167_vm8, %v12808_v32, %v3761_v35  ;;  %v3886_v32 = vsel %vm17167_vm8, %v12821_v61, %v3885_v15  ;;  %v3781_v35 = vld [vmem:[#allocation2 + $0x1b4] sm:$0xc]  ;;  %v3787_v61 = vld [vmem:[#allocation2 + $0x208] sm:$0xc] }
 0x420   : > { %v3874_v52 = vsel %vm17167_vm8, %v12818_v19, %v3873_v41  ;;  %v3849_v19 = vld [vmem:[#allocation2 + $0x330] sm:$0xc]  ;;  %v3850_v41 = vld [vmem:[#allocation2 + $0x334] sm:$0x3] }
 0x421   : > { %v12862_v22 = vcombine.low %v3874_v52, %v3878_v42  ;;  %v14939_v42 = vld [vmem:[#allocation9 + $0x914] ss:$8 sps:$4 sm:$0xff]  }
 0x422   : > { %5144 = vmatpush1.bf16.msra.mxu1 %v14824_v47  ;;  %v3766_v47 = vsel %vm17167_vm8, %v12809_v37, %v3765_v48  ;;  %v3782_v37 = vld [vmem:[#allocation2 + $0x1b8] sm:$0x3]  ;;  %v3847_v48 = vld [vmem:[#allocation2 + $0x314] sm:$0xc] }
 0x423   : > { %5186 = vmatprep.subr.bf16.mxu1 %v14833_v51  ;;  %v14869_v51 = vld [vmem:[#allocation9 + $0x5e4] ss:$8 sps:$4 sm:$0xff]   ;;  %v12853_v33 = vcombine.low %v3762_v46, %v3766_v47  ;;  %v3821_v52 = vrot.slane %v3782_v37, 6 }
 0x425   : > { %5146 = vmatmul.mubr.bf16.vlgmr.msra.gmra.mrb[32].mxu1 %v12850_v55  ;;  %v14882_v55 = vld [vmem:[#allocation9 + $0x604] ss:$8 sps:$4 sm:$0xff]  }
 0x426   : > { %5187 = vmatpush1.bf16.msra.mxu1 %v14831_v20  ;;  %5155 = vmatprep.mubr.bf16.mxu1 %v14892_v49  ;;  %v14873_v20 = vld [vmem:[#allocation9 + $0x5f0] ss:$8 sps:$4 sm:$0xff]   ;;  %v14880_v49 = vld [vmem:[#allocation9 + $0x600] ss:$8 sps:$4 sm:$0xff]  }
 0x427   : > { %5188 = vmatprep.subr.bf16.mxu1 %v14839_v23  ;;  %v14902_v23 = vld [vmem:[#allocation9 + $0x634] ss:$8 sps:$4 sm:$0xff]  }
 0x42a   : > { %5189 = vmatpush1.bf16.msra.mxu1 %v14837_v36  ;;  %v14900_v36 = vld [vmem:[#allocation9 + $0x630] ss:$8 sps:$4 sm:$0xff]  }
 0x42b   : > { %5190 = vmatprep.subr.bf16.mxu1 %v14845_v25  ;;  %v14910_v25 = vld [vmem:[#allocation9 + $0x644] ss:$8 sps:$4 sm:$0xff]  }
 0x42d   : > { %5156 = vmatmul.mubr.bf16.gmra.mrb[36].mxu1 %v12851_v60  ;;  %v3778_v60 = vld [vmem:[#allocation2 + $0x180] sm:$0x3] }
 0x42e   : > { %5191 = vmatpush1.bf16.msra.mxu1 %v14843_v1  ;;  %5165 = vmatprep.mubr.bf16.mxu1 %v14906_v3  ;;  %v3777_v1 = vld [vmem:[#allocation2 + $0x17c] sm:$0xc]  ;;  %v3813_v9 = vrot.slane %v3778_v60, 6 }
 0x42f   : > { %5192 = vmatprep.subr.bf16.mxu1 %v14851_v7  ;;  %v3843_v3 = vld [vmem:[#allocation2 + $0x2dc] sm:$0xc]  ;;  %v12810_v7 = vrot.slane %v3775_v39, 10 }
 0x430   : > { %v12820_v11 = vrot.slane %v3843_v3, 10 }
 0x432   : > { %5193 = vmatpush1.bf16.msra.mxu1 %v14849_v8  ;;  %v3809_v8 = vrot.slane %v3776_v50, 6 }
 0x433   : > { %5194 = vmatprep.subr.bf16.mxu1 %v14857_v43  ;;  %v12811_v43 = vrot.slane %v3777_v1, 10  ;;  %v14940_v1 = vld [vmem:[#allocation9 + $0x920] ss:$8 sps:$4 sm:$0xff]  }
 0x434   : > { %v3810_v21 = vsel %vm17167_vm8, %v12810_v7, %v3809_v8 }
 0x435   : > { %5166 = vmatmul.mubr.bf16.gmra.mrb[40].mxu1 %v12852_v30  ;;  %v3814_v24 = vsel %vm17167_vm8, %v12811_v43, %v3813_v9  ;;  %v3780_v30 = vld [vmem:[#allocation2 + $0x19c] sm:$0x3]  ;;  %v14943_v9 = vld [vmem:[#allocation9 + $0x930] ss:$8 sps:$4 sm:$0xff]  }
 0x436   : > { %5195 = vmatpush1.bf16.msra.mxu1 %v14855_v29  ;;  %5175 = vmatprep.mubr.bf16.mxu1 %v14920_v31  ;;  %v3779_v29 = vld [vmem:[#allocation2 + $0x198] sm:$0xc]  ;;  %v3882_v31 = vsel %vm17167_vm8, %v12820_v11, %v3881_v12  ;;  %v12858_v44 = vcombine.low %v3810_v21, %v3814_v24  ;;  %v3817_v47 = vrot.slane %v3780_v30, 6  ;;  %v14948_v12 = vld [vmem:[#allocation9 + $0x944] ss:$8 sps:$4 sm:$0xff]   ;;  %v12816_v30 = vrot.slane %v3787_v61, 10 }
 0x437   : > { %5196 = vmatprep.subr.bf16.mxu1 %v14863_v28  ;;  %v3848_v28 = vld [vmem:[#allocation2 + $0x318] sm:$0x3]  ;;  %v12812_v45 = vrot.slane %v3779_v29, 10  ;;  %v12863_v46 = vcombine.low %v3882_v31, %v3886_v32  ;;  %v3788_v21 = vld [vmem:[#allocation2 + $0x20c] sm:$0x3] }
 0x438   : > { %v3789_v24 = vld [vmem:[#allocation2 + $0x224] sm:$0xc]  ;;  %v14946_v31 = vld [vmem:[#allocation9 + $0x940] ss:$8 sps:$4 sm:$0xff]  }
 0x439   : > { %v12817_v37 = vrot.slane %v3789_v24, 10  ;;  %v15099_v61 = vld [vmem:[#allocation12 + $0x264] ss:$8 sps:$4 sm:$0xff]  }
 0x43a   : > { %5197 = vmatpush1.bf16.msra.mxu1 %v14861_v34  ;;  %v14934_v34 = vld [vmem:[#allocation9 + $0x900] ss:$8 sps:$4 sm:$0xff]   ;;  %v5848_v24 = vld [vmem:[#allocation2 + $0xe4] sm:$0x7] }
 0x43b   : > { %5198 = vmatprep.subr.bf16.mxu1 %v14869_v51  ;;  %v12813_v51 = vrot.slane %v3781_v35, 10  ;;  %v3833_v35 = vrot.slane %v3788_v21, 6  ;;  %v5847_v21 = vld [vmem:[#allocation2 + $0xe0] sm:$0x8] }
 0x43d   : > { %5176 = vmatmul.mubr.bf16.gmra.mrb[44].mxu1 %v12853_v33  ;;  %v12822_v33 = vrot.slane %v3847_v48, 10 }
 0x43e   : > { %5199 = vmatpush1.bf16.msra.mxu1 %v14867_v53  ;;  %5218 = vmatprep.mubr.bf16.mxu1 %v12862_v22  ;;  %v3889_v53 = vrot.slane %v3848_v28, 6  ;;  %v12823_v22 = vrot.slane %v3849_v19, 10  ;;  %v14951_v28 = vld [vmem:[#allocation9 + $0x954] ss:$8 sps:$4 sm:$0xff]   ;;  %v14949_v19 = vld [vmem:[#allocation9 + $0x950] ss:$8 sps:$4 sm:$0xff]  }
 0x43f   : > { %5200 = vmatprep.subr.bf16.mxu1 %v14875_v54  ;;  %v3893_v54 = vrot.slane %v3850_v41, 6  ;;  %v3834_v41 = vsel %vm17167_vm8, %v12816_v30, %v3833_v35  ;;  %v5849_v30 = vld [vmem:[#allocation2 + $0xfc] sm:$0x8] }
 0x442   : > { %5201 = vmatpush1.bf16.msra.mxu1 %v14873_v20  ;;  %v14937_v20 = vld [vmem:[#allocation9 + $0x910] ss:$8 sps:$4 sm:$0xff]  }
 0x443   : > { %5202 = vmatprep.subr.bf16.mxu1 %v14882_v55  ;;  %v3818_v55 = vsel %vm17167_vm8, %v12812_v45, %v3817_v47  ;;  %v14954_v45 = vld [vmem:[#allocation9 + $0x964] ss:$8 sps:$4 sm:$0xff]   ;;  %v14982_v47 = vld [vmem:[#allocation2 + $0xb4] ss:$28 sps:$4 sm:$0xff]  }
 0x446   : > { %5203 = vmatpush1.bf16.msra.mxu1 %v14880_v49  ;;  %v3822_v49 = vsel %vm17167_vm8, %v12813_v51, %v3821_v52  ;;  %v14957_v51 = vld [vmem:[#allocation9 + $0x974] ss:$8 sps:$4 sm:$0xff]   ;;  %v14955_v52 = vld [vmem:[#allocation9 + $0x970] ss:$8 sps:$4 sm:$0xff]  }
 0x447   : > { %5204 = vmatprep.subr.bf16.mxu1 %v14888_v56  ;;  %v14942_v56 = vld [vmem:[#allocation9 + $0x924] ss:$8 sps:$4 sm:$0xff]   ;;  %v12859_v39 = vcombine.low %v3818_v55, %v3822_v49  ;;  %v15069_v55 = vld [vmem:[#allocation12 + $0x214] ss:$8 sps:$4 sm:$0xff]   ;;  %v14964_v49 = vld [vmem:[#allocation9 + $0x9a0] ss:$8 sps:$4 sm:$0xff]  }
 0x44a   : > { %5205 = vmatpush1.bf16.msra.mxu1 %v14886_v57  ;;  %v3783_v57 = vld [vmem:[#allocation2 + $0x1d0] sm:$0xc] }
 0x44b   : > { %5206 = vmatprep.subr.bf16.mxu1 %v14896_v58  ;;  %v3784_v58 = vld [vmem:[#allocation2 + $0x1d4] sm:$0x3]  ;;  %v12814_v50 = vrot.slane %v3783_v57, 10 }
 0x44c   : > { %v3825_v3 = vrot.slane %v3784_v58, 6  ;;  %v14969_v57 = vld [vmem:[#allocation9 + $0x9b4] ss:$8 sps:$4 sm:$0xff]   ;;  %v15075_v58 = vld [vmem:[#allocation12 + $0x224] ss:$8 sps:$4 sm:$0xff]  }
 0x44e   : > { %5207 = vmatpush1.bf16.msra.mxu1 %v14894_v59  ;;  %v3890_v59 = vsel %vm17167_vm8, %v12822_v33, %v3889_v53  ;;  %v14958_v33 = vld [vmem:[#allocation9 + $0x980] ss:$8 sps:$4 sm:$0xff]   ;;  %v14963_v53 = vld [vmem:[#allocation9 + $0x994] ss:$8 sps:$4 sm:$0xff]  }
 0x44f   : > { %5208 = vmatprep.subr.bf16.mxu1 %v14902_v23  ;;  %v3894_v23 = vsel %vm17167_vm8, %v12823_v22, %v3893_v54  ;;  %v14961_v22 = vld [vmem:[#allocation9 + $0x990] ss:$8 sps:$4 sm:$0xff]   ;;  %v15061_v54 = vld [vmem:[#allocation12 + $0x200] ss:$8 sps:$4 sm:$0xff]  }
 0x450   : > { %v12864_v60 = vcombine.low %v3890_v59, %v3894_v23  ;;  %5754 = vmatpush1.bf16.msra.mxu0 %v15061_v54  ;;  %v14967_v59 = vld [vmem:[#allocation9 + $0x9b0] ss:$8 sps:$4 sm:$0xff]   ;;  %v15073_v23 = vld [vmem:[#allocation12 + $0x220] ss:$8 sps:$4 sm:$0xff]  }
 0x451   : > { %5755 = vmatprep.subr.bf16.mxu0 %v15069_v55  ;;  %v5854_v54 = vld [vmem:[#allocation2 + $0x138] sm:$0x7] }
 0x452   : > { %5209 = vmatpush1.bf16.msra.mxu1 %v14900_v36  ;;  %v3785_v36 = vld [vmem:[#allocation2 + $0x1ec] sm:$0xc] }
 0x453   : > { %5210 = vmatprep.subr.bf16.mxu1 %v14910_v25  ;;  %v3786_v25 = vld [vmem:[#allocation2 + $0x1f0] sm:$0x3]  ;;  %v12815_v4 = vrot.slane %v3785_v36, 10  ;;  %v14972_v36 = vld [vmem:[#allocation9 + $0x9c4] ss:$8 sps:$4 sm:$0xff]  }
 0x454   : > { %v3829_v5 = vrot.slane %v3786_v25, 6  ;;  %v15081_v25 = vld [vmem:[#allocation12 + $0x234] ss:$8 sps:$4 sm:$0xff]  }
 0x456   : > { %5211 = vmatpush1.bf16.msra.mxu1 %v14908_v62  ;;  %v3851_v62 = vld [vmem:[#allocation2 + $0x34c] sm:$0xc]  ;;  %v3830_v11 = vsel %vm17167_vm8, %v12815_v4, %v3829_v5  ;;  %v5845_v4 = vld [vmem:[#allocation2 + $0xc4] sm:$0x8]  ;;  %v5846_v5 = vld [vmem:[#allocation2 + $0xc8] sm:$0x7] }
 0x457   : > { %5212 = vmatprep.subr.bf16.mxu1 %v14916_v26  ;;  %v3852_v26 = vld [vmem:[#allocation2 + $0x350] sm:$0x3] }
 0x458   : > { %v3897_v7 = vrot.slane %v3852_v26, 6  ;;  %v15079_v26 = vld [vmem:[#allocation12 + $0x230] ss:$8 sps:$4 sm:$0xff]  }
 0x45a   : > { %5213 = vmatpush1.bf16.msra.mxu1 %v14914_v63  ;;  %v3853_v63 = vld [vmem:[#allocation2 + $0x368] sm:$0xc] }
 0x45b   : > { %5214 = vmatprep.subr.bf16.mxu1 %v14924_v0  ;;  %v3854_v0 = vld [vmem:[#allocation2 + $0x36c] sm:$0x3]  ;;  %v12825_v8 = vrot.slane %v3853_v63, 10  ;;  %v14975_v63 = vld [vmem:[#allocation9 + $0x9d4] ss:$8 sps:$4 sm:$0xff]  }
 0x45c   : > { %v3901_v43 = vrot.slane %v3854_v0, 6  ;;  %v14973_v0 = vld [vmem:[#allocation9 + $0x9d0] ss:$8 sps:$4 sm:$0xff]  }
 0x45e   : > { %5215 = vmatpush1.bf16.msra.mxu1 %v14922_v6  ;;  %v12824_v6 = vrot.slane %v3851_v62, 10  ;;  %v14970_v62 = vld [vmem:[#allocation9 + $0x9c0] ss:$8 sps:$4 sm:$0xff]  }
 0x45f   : > { %5216 = vmatprep.subr.bf16.mxu1 %v14930_v10  ;;  %v3826_v10 = vsel %vm17167_vm8, %v12814_v50, %v3825_v3  ;;  %v14978_v50 = vld [vmem:[#allocation9 + $0x9e4] ss:$8 sps:$4 sm:$0xff]  }
 0x460   : > { %v3898_v15 = vsel %vm17167_vm8, %v12824_v6, %v3897_v7  ;;  %v12860_v29 = vcombine.low %v3826_v10, %v3830_v11  ;;  %v5844_v3 = vld [vmem:[#allocation2 + $0xac] sm:$0x7]  ;;  %v15093_v6 = vld [vmem:[#allocation12 + $0x254] ss:$8 sps:$4 sm:$0xff]   ;;  %v15091_v10 = vld [vmem:[#allocation12 + $0x250] ss:$8 sps:$4 sm:$0xff]  }
 0x461   : > { %v14981_v11 = vld [vmem:[#allocation9 + $0x9f4] ss:$8 sps:$4 sm:$0xff]  }
 0x462   : > { %5217 = vmatpush1.bf16.msra.mxu1 %v14928_v18  ;;  %v3902_v18 = vsel %vm17167_vm8, %v12825_v8, %v3901_v43  ;;  %v5877_v8 = vrot.slane %v5844_v3, 7  ;;  %v13059_v43 = vrot.slane %v5845_v4, 11  ;;  %v5857_v3 = vld [vmem:[#allocation2 + $0x16c] sm:$0x8]  ;;  %v5858_v4 = vld [vmem:[#allocation2 + $0x170] sm:$0x7] }
 0x463   : > { %7253 = vmatprep.subr.bf16.mxu1 %v14936_v27  ;;  %v3790_v27 = vld [vmem:[#allocation2 + $0x228] sm:$0x3]  ;;  %v12865_v32 = vcombine.low %v3898_v15, %v3902_v18 }
 0x464   : > { %v3837_v48 = vrot.slane %v3790_v27, 6  ;;  %v15097_v27 = vld [vmem:[#allocation12 + $0x260] ss:$8 sps:$4 sm:$0xff]  }
 0x465   : > { %5219 = vmatmul.mubr.bf16.vlgmr.msra.gmra.mrb[32].mxu1 %v12858_v44 }
 0x466   : > { %7254 = vmatpush1.bf16.msra.mxu1 %v14934_v34  ;;  %5228 = vmatprep.mubr.bf16.mxu1 %v12863_v46  ;;  %v3838_v44 = vsel %vm17167_vm8, %v12817_v37, %v3837_v48  ;;  %v14952_v46 = vld [vmem:[#allocation9 + $0x960] ss:$8 sps:$4 sm:$0xff]   ;;  %v13060_v37 = vrot.slane %v5847_v21, 11  ;;  %v5885_v48 = vrot.slane %v5848_v24, 7  ;;  %v15000_v21 = vld [vmem:[#allocation9 + $0xa54] ss:$8 sps:$4 sm:$0xff]   ;;  %vm17776_vm8 = vmand %vm1413_vm3, %vm8676_vm0 }
 0x467   : > { %7255 = vmatprep.subr.bf16.mxu1 %v14939_v42  ;;  %v12861_v34 = vcombine.low %v3834_v41, %v3838_v44  ;;  %v14960_v42 = vld [vmem:[#allocation9 + $0x984] ss:$8 sps:$4 sm:$0xff]   ;;  %v13061_v41 = vrot.slane %v5849_v30, 11 }
 0x46a   : > { %7256 = vmatpush1.bf16.msra.mxu1 %v14937_v20  ;;  %v14966_v20 = vld [vmem:[#allocation9 + $0x9a4] ss:$8 sps:$4 sm:$0xff]  }
 0x46b   : > { %7257 = vmatprep.subr.bf16.mxu1 %v14942_v56  ;;  %v15067_v56 = vld [vmem:[#allocation12 + $0x210] ss:$8 sps:$4 sm:$0xff]  }
 0x46c   : > { %5756 = vmatpush1.bf16.msra.mxu0 %v15067_v56 }
 0x46d   : > { %5229 = vmatmul.mubr.bf16.gmra.mrb[36].mxu1 %v12859_v39  ;;  %5757 = vmatprep.subr.bf16.mxu0 %v15075_v58  ;;  %v15087_v39 = vld [vmem:[#allocation12 + $0x244] ss:$8 sps:$4 sm:$0xff]  }
 0x46e   : > { %7258 = vmatpush1.bf16.msra.mxu1 %v14940_v1  ;;  %5238 = vmatprep.mubr.bf16.mxu1 %v12864_v60  ;;  %v5843_v1 = vld [vmem:[#allocation2 + $0xa8] sm:$0x8]  ;;  %v15020_v58 = vld [vmem:[#allocation2 + $0x124] ss:$28 sps:$4 sm:$0xff]  }
 0x46f   : > { %7259 = vmatprep.subr.bf16.mxu1 %v14945_v40  ;;  %v15085_v60 = vld [vmem:[#allocation12 + $0x240] ss:$8 sps:$4 sm:$0xff]   ;;  %v13058_v7 = vrot.slane %v5843_v1, 11  ;;  %v5856_v1 = vld [vmem:[#allocation2 + $0x154] sm:$0x7] }
 0x470   : > { %5758 = vmatpush1.bf16.msra.mxu0 %v15073_v23  ;;  %v14976_v40 = vld [vmem:[#allocation9 + $0x9e0] ss:$8 sps:$4 sm:$0xff]   ;;  %v5897_v23 = vrot.slane %v5854_v54, 7  ;;  %v15004_v54 = vld [vmem:[#allocation9 + $0xa70] ss:$8 sps:$4 sm:$0xff]  }
 0x471   : > { %5759 = vmatprep.subr.bf16.mxu0 %v15081_v25  ;;  %v5878_v15 = vsel %vm16988_vm5, %v13058_v7, %v5877_v8  ;;  %v14994_v25 = vld [vmem:[#allocation9 + $0xa34] ss:$8 sps:$4 sm:$0xff]   ;;  %v5982_v7 = vld [vmem:[#allocation2 + $0x2c0] sm:$0x7] }
 0x472   : > { %7260 = vmatpush1.bf16.msra.mxu1 %v14943_v9  ;;  %v5881_v9 = vrot.slane %v5846_v5, 7  ;;  %v5979_v5 = vld [vmem:[#allocation2 + $0x2a0] sm:$0x8]  ;;  %v6017_v30 = vrot.slane %v5982_v7, 7 }
 0x473   : > { %7261 = vmatprep.subr.bf16.mxu1 %v14948_v12  ;;  %v14979_v12 = vld [vmem:[#allocation9 + $0x9f0] ss:$8 sps:$4 sm:$0xff]   ;;  %v14995_v8 = vld [vmem:[#allocation9 + $0xa40] ss:$8 sps:$4 sm:$0xff]   ;;  %v13074_v24 = vrot.slane %v5979_v5, 11 }
 0x474   : > { %5760 = vmatpush1.bf16.msra.mxu0 %v15079_v26  ;;  %v5882_v18 = vsel %vm16988_vm5, %v13059_v43, %v5881_v9  ;;  %v14997_v26 = vld [vmem:[#allocation9 + $0xa44] ss:$8 sps:$4 sm:$0xff]  }
 0x475   : > { %5239 = vmatmul.mubr.bf16.gmra.mrb[40].mxu1 %v12860_v29  ;;  %5761 = vmatprep.subr.bf16.mxu0 %v15087_v39  ;;  %v14985_v29 = vld [vmem:[#allocation9 + $0xa04] ss:$8 sps:$4 sm:$0xff]   ;;  %v13106_v35 = vcombine.low %v5878_v15, %v5882_v18  ;;  %v5905_v15 = vrot.slane %v5858_v4, 7  ;;  %v15127_v18 = vld [vmem:[#allocation12 + $0x2b0] ss:$8 sps:$4 sm:$0xff]  }
 0x476   : > { %7262 = vmatpush1.bf16.msra.mxu1 %v14946_v31  ;;  %5248 = vmatprep.mubr.bf16.mxu1 %v12865_v32  ;;  %v5850_v31 = vld [vmem:[#allocation2 + $0x100] sm:$0x7] }
 0x477   : > { %7263 = vmatprep.subr.bf16.mxu1 %v14951_v28  ;;  %v14983_v32 = vld [vmem:[#allocation9 + $0xa00] ss:$8 sps:$4 sm:$0xff]   ;;  %v15105_v28 = vld [vmem:[#allocation12 + $0x274] ss:$8 sps:$4 sm:$0xff]   ;;  %v5889_v44 = vrot.slane %v5850_v31, 7 }
 0x478   : > { %5762 = vmatpush1.bf16.msra.mxu0 %v15085_v60  ;;  %v15121_v60 = vld [vmem:[#allocation12 + $0x2a0] ss:$8 sps:$4 sm:$0xff]   ;;  %v15135_v31 = vld [vmem:[#allocation12 + $0x2c4] ss:$8 sps:$4 sm:$0xff]  }
 0x479   : > { %5763 = vmatprep.subr.bf16.mxu0 %v15093_v6  ;;  %v5981_v6 = vld [vmem:[#allocation2 + $0x2bc] sm:$0x8] }
 0x47a   : > { %7264 = vmatpush1.bf16.msra.mxu1 %v14949_v19  ;;  %v15013_v19 = vld [vmem:[#allocation2 + $0xec] ss:$28 sps:$4 sm:$0xff]  }
 0x47b   : > { %7265 = vmatprep.subr.bf16.mxu1 %v14954_v45  ;;  %v15103_v45 = vld [vmem:[#allocation12 + $0x270] ss:$8 sps:$4 sm:$0xff]  }
 0x47c   : > { %5764 = vmatpush1.bf16.msra.mxu0 %v15091_v10  ;;  %v5901_v10 = vrot.slane %v5856_v1, 7  ;;  %v15016_v1 = vld [vmem:[#allocation9 + $0xaa4] ss:$8 sps:$4 sm:$0xff]  }
 0x47d   : > { %5249 = vmatmul.mubr.bf16.gmra.mrb[44].mxu1 %v12861_v34  ;;  %5765 = vmatprep.subr.bf16.mxu0 %v15099_v61  ;;  %v14988_v34 = vld [vmem:[#allocation9 + $0xa14] ss:$8 sps:$4 sm:$0xff]   ;;  %v13065_v61 = vrot.slane %v5857_v3, 11 }
 0x47e   : > { %7266 = vmatpush1.bf16.msra.mxu1 %v14952_v46  ;;  %7285 = vmatprep.mubr.bf16.mxu1 %v14982_v47  ;;  %v14986_v46 = vld [vmem:[#allocation9 + $0xa10] ss:$8 sps:$4 sm:$0xff]   ;;  %v15111_v47 = vld [vmem:[#allocation12 + $0x284] ss:$8 sps:$4 sm:$0xff]  }
 0x47f   : > { %7267 = vmatprep.subr.bf16.mxu1 %v14957_v51  ;;  %v5886_v51 = vsel %vm16988_vm5, %v13060_v37, %v5885_v48  ;;  %v5906_v37 = vsel %vm16988_vm5, %v13065_v61, %v5905_v15  ;;  %v15133_v48 = vld [vmem:[#allocation12 + $0x2c0] ss:$8 sps:$4 sm:$0xff]  }
 0x480   : > { %5766 = vmatpush1.bf16.msra.mxu0 %v15097_v27 }
 0x481   : > { %5767 = vmatprep.subr.bf16.mxu0 %v15105_v28  ;;  %v15003_v28 = vld [vmem:[#allocation9 + $0xa64] ss:$8 sps:$4 sm:$0xff]  }
 0x482   : > { %7268 = vmatpush1.bf16.msra.mxu1 %v14955_v52  ;;  %v5890_v52 = vsel %vm16988_vm5, %v13061_v41, %v5889_v44 }
 0x483   : > { %7269 = vmatprep.subr.bf16.mxu1 %v14960_v42  ;;  %v5851_v42 = vld [vmem:[#allocation2 + $0x118] sm:$0x8]  ;;  %v13107_v55 = vcombine.low %v5886_v51, %v5890_v52  ;;  %v15001_v51 = vld [vmem:[#allocation9 + $0xa60] ss:$8 sps:$4 sm:$0xff]  }
 0x484   : > { %5768 = vmatpush1.bf16.msra.mxu0 %v15103_v45 }
 0x485   : > { %5769 = vmatprep.subr.bf16.mxu0 %v15111_v47 }
 0x486   : > { %7270 = vmatpush1.bf16.msra.mxu1 %v14958_v33  ;;  %v5852_v33 = vld [vmem:[#allocation2 + $0x11c] sm:$0x7] }
 0x487   : > { %7271 = vmatprep.subr.bf16.mxu1 %v14963_v53  ;;  %v15109_v53 = vld [vmem:[#allocation12 + $0x280] ss:$8 sps:$4 sm:$0xff]   ;;  %v5893_v56 = vrot.slane %v5852_v33, 7 }
 0x488   : > { %5770 = vmatpush1.bf16.msra.mxu0 %v15109_v53  ;;  %v15006_v53 = vld [vmem:[#allocation9 + $0xa74] ss:$8 sps:$4 sm:$0xff]  }
 0x48a   : > { %7272 = vmatpush1.bf16.msra.mxu1 %v14961_v22  ;;  %v5853_v22 = vld [vmem:[#allocation2 + $0x134] sm:$0x8] }
 0x48b   : > { %7273 = vmatprep.subr.bf16.mxu1 %v14966_v20  ;;  %v14989_v20 = vld [vmem:[#allocation9 + $0xa20] ss:$8 sps:$4 sm:$0xff]  }
 0x48e   : > { %7274 = vmatpush1.bf16.msra.mxu1 %v14964_v49  ;;  %v13062_v49 = vrot.slane %v5851_v42, 11  ;;  %v15139_v42 = vld [vmem:[#allocation12 + $0x2d0] ss:$8 sps:$4 sm:$0xff]  }
 0x48f   : > { %7275 = vmatprep.subr.bf16.mxu1 %v14969_v57  ;;  %v15117_v57 = vld [vmem:[#allocation12 + $0x294] ss:$8 sps:$4 sm:$0xff]  }
 0x490   : > { %5771 = vmatprep.subr.bf16.mxu0 %v15117_v57 }
 0x492   : > { %7276 = vmatpush1.bf16.msra.mxu1 %v14967_v59  ;;  %v13063_v59 = vrot.slane %v5853_v22, 11  ;;  %v15147_v22 = vld [vmem:[#allocation12 + $0x2e4] ss:$8 sps:$4 sm:$0xff]  }
 0x493   : > { %7277 = vmatprep.subr.bf16.mxu1 %v14972_v36  ;;  %v15115_v36 = vld [vmem:[#allocation12 + $0x290] ss:$8 sps:$4 sm:$0xff]  }
 0x494   : > { %5772 = vmatpush1.bf16.msra.mxu0 %v15115_v36  ;;  %v5898_v39 = vsel %vm16988_vm5, %v13063_v59, %v5897_v23  ;;  %v15153_v23 = vld [vmem:[#allocation12 + $0x2f4] ss:$8 sps:$4 sm:$0xff]  }
 0x496   : > { %7278 = vmatpush1.bf16.msra.mxu1 %v14970_v62  ;;  %v14992_v62 = vld [vmem:[#allocation9 + $0xa30] ss:$8 sps:$4 sm:$0xff]  }
 0x497   : > { %7279 = vmatprep.subr.bf16.mxu1 %v14975_v63  ;;  %v15123_v63 = vld [vmem:[#allocation12 + $0x2a4] ss:$8 sps:$4 sm:$0xff]  }
 0x498   : > { %5773 = vmatprep.subr.bf16.mxu0 %v15123_v63  ;;  %v15012_v63 = vld [vmem:[#allocation9 + $0xa94] ss:$8 sps:$4 sm:$0xff]  }
 0x499   : > { %5774 = vmatpush1.bf16.msra.mxu0 %v15121_v60 }
 0x49a   : > { %7280 = vmatpush1.bf16.msra.mxu1 %v14973_v0  ;;  %v5894_v0 = vsel %vm16988_vm5, %v13062_v49, %v5893_v56  ;;  %v15009_v49 = vld [vmem:[#allocation9 + $0xa84] ss:$8 sps:$4 sm:$0xff]  }
 0x49b   : > { %7281 = vmatprep.subr.bf16.mxu1 %v14978_v50  ;;  %v5855_v50 = vld [vmem:[#allocation2 + $0x150] sm:$0x8]  ;;  %v13108_v43 = vcombine.low %v5894_v0, %v5898_v39 }
 0x49c   : > { %v13064_v9 = vrot.slane %v5855_v50, 11  ;;  %v15010_v39 = vld [vmem:[#allocation9 + $0xa90] ss:$8 sps:$4 sm:$0xff]  }
 0x49e   : > { %7282 = vmatpush1.bf16.msra.mxu1 %v14976_v40  ;;  %v5980_v40 = vld [vmem:[#allocation2 + $0x2a4] sm:$0x7] }
 0x49f   : > { %7283 = vmatprep.subr.bf16.mxu1 %v14981_v11  ;;  %v15129_v11 = vld [vmem:[#allocation12 + $0x2b4] ss:$8 sps:$4 sm:$0xff]   ;;  %v6013_v27 = vrot.slane %v5980_v40, 7 }
 0x4a0   : > { %5775 = vmatprep.subr.bf16.mxu0 %v15129_v11  ;;  %v15023_v11 = vld [vmem:[#allocation9 + $0xac4] ss:$8 sps:$4 sm:$0xff]  }
 0x4a1   : > { %5776 = vmatpush1.bf16.msra.mxu0 %v15127_v18 }
 0x4a2   : > { %7284 = vmatpush1.bf16.msra.mxu1 %v14979_v12  ;;  %v15027_v12 = vld [vmem:[#allocation2 + $0x15c] ss:$28 sps:$4 sm:$0xff]   ;;  %5777 = vmatprep.subr.bf16.mxu0 %v15135_v31  ;;  %v5916_v31 = vld [vmem:[#allocation2 + $0xc0] sm:$0x1] }
 0x4a3   : > { %7326 = vmatprep.subr.bf16.mxu1 %v14985_v29  ;;  %v13075_v29 = vrot.slane %v5981_v6, 11  ;;  %v15014_v6 = vld [vmem:[#allocation9 + $0xaa0] ss:$8 sps:$4 sm:$0xff]  }
 0x4a5   : > { %7286 = vmatmul.mubr.bf16.vlgmr.msra.gmra.mrb[48].mxu1 %v13106_v35  ;;  %v5902_v35 = vsel %vm16988_vm5, %v13064_v9, %v5901_v10  ;;  %v6018_v41 = vsel %vm16988_vm5, %v13075_v29, %v6017_v30  ;;  %5778 = vmatpush1.bf16.msra.mxu0 %v15133_v48  ;;  %v15017_v9 = vld [vmem:[#allocation9 + $0xab0] ss:$8 sps:$4 sm:$0xff]   ;;  %v5915_v30 = vld [vmem:[#allocation2 + $0xbc] sm:$0xe] }
 0x4a6   : > { %7327 = vmatpush1.bf16.msra.mxu1 %v14983_v32  ;;  %7295 = vmatprep.mubr.bf16.mxu1 %v15013_v19  ;;  %v14998_v32 = vld [vmem:[#allocation9 + $0xa50] ss:$8 sps:$4 sm:$0xff]   ;;  %v6014_v19 = vsel %vm16988_vm5, %v13074_v24, %v6013_v27  ;;  %v15021_v24 = vld [vmem:[#allocation9 + $0xac0] ss:$8 sps:$4 sm:$0xff]   ;;  %v15026_v27 = vld [vmem:[#allocation9 + $0xad4] ss:$8 sps:$4 sm:$0xff]  }
 0x4a7   : > { %7328 = vmatprep.subr.bf16.mxu1 %v14988_v34  ;;  %v13109_v34 = vcombine.low %v5902_v35, %v5906_v37  ;;  %v13118_v52 = vcombine.low %v6014_v19, %v6018_v41  ;;  %v15024_v35 = vld [vmem:[#allocation9 + $0xad0] ss:$8 sps:$4 sm:$0xff]   ;;  %v5918_v37 = vld [vmem:[#allocation2 + $0xdc] sm:$0x1]  ;;  %v13066_v19 = vrot.slane %v5915_v30, 9  ;;  %v5949_v41 = vrot.slane %v5916_v31, 5 }
 0x4a8   : > { %v5987_v30 = vld [vmem:[#allocation2 + $0x310] sm:$0x8]  ;;  %v5988_v31 = vld [vmem:[#allocation2 + $0x314] sm:$0x7] }
 0x4aa   : > { %7329 = vmatpush1.bf16.msra.mxu1 %v14986_v46  ;;  %v15141_v46 = vld [vmem:[#allocation12 + $0x2d4] ss:$8 sps:$4 sm:$0xff]  }
 0x4ab   : > { %7330 = vmatprep.subr.bf16.mxu1 %v14991_v2  ;;  %5779 = vmatprep.subr.bf16.mxu0 %v15141_v46 }
 0x4ac   : > { %5780 = vmatpush1.bf16.msra.mxu0 %v15139_v42 }
 0x4ad   : > { %7296 = vmatmul.mubr.bf16.gmra.mrb[52].mxu1 %v13107_v55  ;;  %v15145_v55 = vld [vmem:[#allocation12 + $0x2e0] ss:$8 sps:$4 sm:$0xff]   ;;  %5781 = vmatprep.subr.bf16.mxu0 %v15147_v22  ;;  %v5985_v22 = vld [vmem:[#allocation2 + $0x2f4] sm:$0x8] }
 0x4ae   : > { %7331 = vmatpush1.bf16.msra.mxu1 %v14989_v20  ;;  %7305 = vmatprep.mubr.bf16.mxu1 %v15020_v58 }
 0x4af   : > { %7332 = vmatprep.subr.bf16.mxu1 %v14994_v25  ;;  %v15007_v25 = vld [vmem:[#allocation9 + $0xa80] ss:$8 sps:$4 sm:$0xff]  }
 0x4b0   : > { %5782 = vmatpush1.bf16.msra.mxu0 %v15145_v55 }
 0x4b1   : > { %5783 = vmatprep.subr.bf16.mxu0 %v15153_v23  ;;  %v15033_v23 = vld [vmem:[#allocation9 + $0xaf4] ss:$8 sps:$4 sm:$0xff]  }
 0x4b2   : > { %7333 = vmatpush1.bf16.msra.mxu1 %v14992_v62  ;;  %v15151_v62 = vld [vmem:[#allocation12 + $0x2f0] ss:$8 sps:$4 sm:$0xff]  }
 0x4b3   : > { %7334 = vmatprep.subr.bf16.mxu1 %v14997_v26 }
 0x4b4   : > { %5784 = vmatpush1.bf16.msra.mxu0 %v15151_v62 }
 0x4b5   : > { %7306 = vmatmul.mubr.bf16.gmra.mrb[56].mxu1 %v13108_v43 }
 0x4b6   : > { %7335 = vmatpush1.bf16.msra.mxu1 %v14995_v8  ;;  %7315 = vmatprep.mubr.bf16.mxu1 %v15027_v12  ;;  %v15019_v8 = vld [vmem:[#allocation9 + $0xab4] ss:$8 sps:$4 sm:$0xff]  }
 0x4b7   : > { %7336 = vmatprep.subr.bf16.mxu1 %v15000_v21 }
 0x4b8   : > { %v17345_v44 = vpop.f32.mrb[16].mxu1 }
 0x4b9   : > { %v17347_v45 = vpop.f32.mrb[17].mxu1 }
 0x4ba   : > { %v17349_v47 = vpop.f32.mrb[18].mxu1  ;;  %7337 = vmatpush1.bf16.msra.mxu1 %v14998_v32  ;;  %v17353_v2 = vpop.f32.mrb[16].mxu0  ;;  %v5917_v32 = vld [vmem:[#allocation2 + $0xd8] sm:$0xe] }
 0x4bb   : > { %v17351_v33 = vpop.f32.mrb[19].mxu1  ;;  %7338 = vmatprep.subr.bf16.mxu1 %v15003_v28  ;;  %v17355_v20 = vpop.f32.mrb[17].mxu0  ;;  %v15030_v28 = vld [vmem:[#allocation9 + $0xae4] ss:$8 sps:$4 sm:$0xff]   ;;  %v13067_v46 = vrot.slane %v5917_v32, 9 }
 0x4bc   : > { %v17357_v56 = vpop.f32.mrb[18].mxu0  ;;  %v5989_v32 = vld [vmem:[#allocation2 + $0x32c] sm:$0x8] }
 0x4bd   : > { %7316 = vmatmul.mubr.bf16.gmra.mrb[60].mxu1 %v13109_v34  ;;  %v17361_v58 = vpop.f32.mrb[19].mxu0 }
 0x4be   : > { %7339 = vmatpush1.bf16.msra.mxu1 %v15001_v51  ;;  %7358 = vmatprep.mubr.bf16.mxu1 %v13118_v52  ;;  %v5983_v51 = vld [vmem:[#allocation2 + $0x2d8] sm:$0x8]  ;;  %v5984_v52 = vld [vmem:[#allocation2 + $0x2dc] sm:$0x7] }
 0x4bf   : > { %7340 = vmatprep.subr.bf16.mxu1 %v15006_v53  ;;  %v5953_v53 = vrot.slane %v5918_v37, 5  ;;  %v6021_v62 = vrot.slane %v5984_v52, 7  ;;  %v15036_v37 = vld [vmem:[#allocation9 + $0xb04] ss:$8 sps:$4 sm:$0xff]  }
 0x4c0   : > { %v17359_v57 = vpop.f32.mrb[20].mxu1 }
 0x4c1   : > { %v17363_v59 = vpop.f32.mrb[21].mxu1 }
 0x4c2   : > { %v17365_v36 = vpop.f32.mrb[22].mxu1  ;;  %7341 = vmatpush1.bf16.msra.mxu1 %v15004_v54  ;;  %v17369_v0 = vpop.f32.mrb[20].mxu0  ;;  %v5986_v54 = vld [vmem:[#allocation2 + $0x2f8] sm:$0x7] }
 0x4c3   : > { %v17367_v26 = vpop.f32.mrb[23].mxu1  ;;  %7342 = vmatprep.subr.bf16.mxu1 %v15009_v49  ;;  %v17371_v50 = vpop.f32.mrb[21].mxu0  ;;  %v15028_v49 = vld [vmem:[#allocation9 + $0xae0] ss:$8 sps:$4 sm:$0xff]  }
 0x4c4   : > { %v17373_v60 = vpop.f32.mrb[22].mxu0 }
 0x4c5   : > { %v17377_v4 = vpop.f32.mrb[23].mxu0 }
 0x4c6   : > { %7343 = vmatpush1.bf16.msra.mxu1 %v15007_v25  ;;  %v13076_v25 = vrot.slane %v5983_v51, 11 }
 0x4c7   : > { %7344 = vmatprep.subr.bf16.mxu1 %v15012_v63  ;;  %v13077_v63 = vrot.slane %v5985_v22, 11  ;;  %v13078_v22 = vrot.slane %v5987_v30, 11  ;;  %v5992_v30 = vld [vmem:[#allocation2 + $0x34c] sm:$0x7] }
 0x4c8   : > { %v17375_v3 = vpop.f32.mrb[24].mxu1  ;;  %v6022_v51 = vsel %vm16988_vm5, %v13076_v25, %v6021_v62 }
 0x4c9   : > { %v17379_v5 = vpop.f32.mrb[25].mxu1 }
 0x4ca   : > { %v17381_v40 = vpop.f32.mrb[26].mxu1  ;;  %7345 = vmatpush1.bf16.msra.mxu1 %v15010_v39  ;;  %v17385_v43 = vpop.f32.mrb[24].mxu0  ;;  %v6025_v39 = vrot.slane %v5986_v54, 7  ;;  %v6029_v54 = vrot.slane %v5988_v31, 7  ;;  %v5993_v31 = vld [vmem:[#allocation2 + $0x364] sm:$0x8] }
 0x4cb   : > { %v17383_v7 = vpop.f32.mrb[27].mxu1  ;;  %7346 = vmatprep.subr.bf16.mxu1 %v15016_v1  ;;  %v17387_v10 = vpop.f32.mrb[25].mxu0  ;;  %v15031_v1 = vld [vmem:[#allocation9 + $0xaf0] ss:$8 sps:$4 sm:$0xff]  }
 0x4cc   : > { %v17389_v12 = vpop.f32.mrb[26].mxu0 }
 0x4cd   : > { %v17393_v15 = vpop.f32.mrb[27].mxu0 }
 0x4ce   : > { %7347 = vmatpush1.bf16.msra.mxu1 %v15014_v6  ;;  %v5950_v6 = vsel %vm16956_vm2, %v13066_v19, %v5949_v41  ;;  %v6026_v19 = vsel %vm16988_vm5, %v13077_v63, %v6025_v39  ;;  %v6030_v63 = vsel %vm16988_vm5, %v13078_v22, %v6029_v54  ;;  %v15043_v22 = vld [vmem:[#allocation9 + $0xb30] ss:$8 sps:$4 sm:$0xff]  }
 0x4cf   : > { %7348 = vmatprep.subr.bf16.mxu1 %v15019_v8  ;;  %v5954_v8 = vsel %vm16956_vm2, %v13067_v46, %v5953_v53 }
 0x4d0   : > { %v17391_v61 = vpop.f32.mrb[28].mxu1 }
 0x4d1   : > { %v17395_v18 = vpop.f32.mrb[29].mxu1 }
 0x4d2   : > { %18622 = vst [vmem:[#allocation37_spill] sm:$0xff] %v17395_v18  ;;  %v17397_v21 = vpop.f32.mrb[30].mxu1  ;;  %7349 = vmatpush1.bf16.msra.mxu1 %v15017_v9  ;;  %v17401_v48 = vpop.f32.mrb[28].mxu0  ;;  %v5919_v9 = vld [vmem:[#allocation2 + $0xf4] sm:$0xe]  ;;  %v13119_v18 = vcombine.low %v6022_v51, %v6026_v19 }
 0x4d3   : > { %18623 = vst [vmem:[#allocation38_spill] sm:$0xff] %v17397_v21  ;;  %v17399_v29 = vpop.f32.mrb[31].mxu1  ;;  %7350 = vmatprep.subr.bf16.mxu1 %v15023_v11  ;;  %v17403_v34 = vpop.f32.mrb[29].mxu0  ;;  %v5920_v11 = vld [vmem:[#allocation2 + $0xf8] sm:$0x1]  ;;  %v13068_v41 = vrot.slane %v5919_v9, 9 }
 0x4d4   : > { %18624 = vst [vmem:[#allocation39_spill] sm:$0xff] %v17399_v29  ;;  %v17405_v42 = vpop.f32.mrb[30].mxu0  ;;  %v5957_v46 = vrot.slane %v5920_v11, 5  ;;  %v13079_v29 = vrot.slane %v5989_v32, 11  ;;  %v15034_v21 = vld [vmem:[#allocation9 + $0xb00] ss:$8 sps:$4 sm:$0xff]  }
 0x4d5   : > { %v17407_v55 = vpop.f32.mrb[31].mxu0  ;;  %v5924_v9 = vld [vmem:[#allocation2 + $0x130] sm:$0x1]  ;;  %v5925_v11 = vld [vmem:[#allocation2 + $0x148] sm:$0xe] }
 0x4d6   : > { %7351 = vmatpush1.bf16.msra.mxu1 %v15021_v24  ;;  %v5921_v24 = vld [vmem:[#allocation2 + $0x110] sm:$0xe]  ;;  %v5958_v25 = vsel %vm16956_vm2, %v13068_v41, %v5957_v46  ;;  %v5994_v32 = vld [vmem:[#allocation2 + $0x368] sm:$0x7]  ;;  %v5965_v51 = vrot.slane %v5924_v9, 5  ;;  %v13071_v19 = vrot.slane %v5925_v11, 9 }
 0x4d7   : > { %7352 = vmatprep.subr.bf16.mxu1 %v15026_v27  ;;  %v5922_v27 = vld [vmem:[#allocation2 + $0x114] sm:$0x1]  ;;  %v13069_v52 = vrot.slane %v5921_v24, 9  ;;  %v5926_v24 = vld [vmem:[#allocation2 + $0x14c] sm:$0x1] }
 0x4d8   : > { %v5961_v53 = vrot.slane %v5922_v27, 5  ;;  %v5991_v27 = vld [vmem:[#allocation2 + $0x348] sm:$0x8]  ;;  %v5969_v41 = vrot.slane %v5926_v24, 5  ;;  %v6044_v9 = vld [vmem:[#allocation2 + $0x2b8] sm:$0x1] }
 0x4d9   : > { %v15040_v46 = vld [vmem:[#allocation9 + $0xb20] ss:$8 sps:$4 sm:$0xff]   ;;  %v6045_v11 = vld [vmem:[#allocation2 + $0x2d0] sm:$0xe]  ;;  %v6046_v24 = vld [vmem:[#allocation2 + $0x2d4] sm:$0x1] }
 0x4da   : > { %7353 = vmatpush1.bf16.msra.mxu1 %v15024_v35  ;;  %v5990_v35 = vld [vmem:[#allocation2 + $0x330] sm:$0x7]  ;;  %v5962_v62 = vsel %vm16956_vm2, %v13069_v52, %v5961_v53  ;;  %v6037_v52 = vrot.slane %v5992_v30, 7  ;;  %v13081_v53 = vrot.slane %v5993_v31, 11  ;;  %v15046_v31 = vld [vmem:[#allocation9 + $0xb40] ss:$8 sps:$4 sm:$0xff]  }
 0x4db   : > { %7354 = vmatprep.subr.bf16.mxu1 %v15030_v28  ;;  %v13114_v28 = vcombine.low %v5950_v6, %v5954_v8  ;;  %v15037_v6 = vld [vmem:[#allocation9 + $0xb10] ss:$8 sps:$4 sm:$0xff]   ;;  %v15042_v8 = vld [vmem:[#allocation9 + $0xb24] ss:$8 sps:$4 sm:$0xff]  }
 0x4de   : > { %7355 = vmatpush1.bf16.msra.mxu1 %v15028_v49  ;;  %v6033_v49 = vrot.slane %v5990_v35, 7  ;;  %v13115_v35 = vcombine.low %v5958_v25, %v5962_v62  ;;  %v5927_v62 = vld [vmem:[#allocation2 + $0x164] sm:$0xe] }
 0x4df   : > { %7356 = vmatprep.subr.bf16.mxu1 %v15033_v23  ;;  %v15039_v23 = vld [vmem:[#allocation9 + $0xb14] ss:$8 sps:$4 sm:$0xff]  }
 0x4e0   : > { %v6034_v39 = vsel %vm16988_vm5, %v13079_v29, %v6033_v49  ;;  %v13080_v29 = vrot.slane %v5991_v27, 11  ;;  %v15048_v49 = vld [vmem:[#allocation9 + $0xb44] ss:$8 sps:$4 sm:$0xff]  }
 0x4e2   : > { %7357 = vmatpush1.bf16.msra.mxu1 %v15031_v1  ;;  %v5923_v1 = vld [vmem:[#allocation2 + $0x12c] sm:$0xe] }
 0x4e3   : > { %7399 = vmatprep.subr.bf16.mxu1 %v15036_v37  ;;  %v13120_v37 = vcombine.low %v6030_v63, %v6034_v39  ;;  %v5929_v63 = vld [vmem:[#allocation2 + $0x180] sm:$0xe]  ;;  %v5930_v39 = vld [vmem:[#allocation2 + $0x184] sm:$0x1] }
 0x4e5   : > { %7359 = vmatmul.mubr.bf16.vlgmr.msra.gmra.mrb[48].mxu1 %v13114_v28  ;;  %v13070_v28 = vrot.slane %v5923_v1, 9  ;;  %v6043_v1 = vld [vmem:[#allocation2 + $0x2b4] sm:$0xe] }
 0x4e6   : > { %7400 = vmatpush1.bf16.msra.mxu1 %v15034_v21  ;;  %7368 = vmatprep.mubr.bf16.mxu1 %v13119_v18  ;;  %v6041_v21 = vrot.slane %v5994_v32, 7  ;;  %v15045_v18 = vld [vmem:[#allocation9 + $0xb34] ss:$8 sps:$4 sm:$0xff]   ;;  %v13072_v32 = vrot.slane %v5927_v62, 9  ;;  %v15055_v62 = vld [vmem:[#allocation9 + $0xb70] ss:$8 sps:$4 sm:$0xff]  }
 0x4e7   : > { %7401 = vmatprep.subr.bf16.mxu1 %v15039_v23  ;;  %v5966_v54 = vsel %vm16956_vm2, %v13070_v28, %v5965_v51  ;;  %v5970_v23 = vsel %vm16956_vm2, %v13071_v19, %v5969_v41  ;;  %v5977_v28 = vrot.slane %v5930_v39, 5  ;;  %v15051_v51 = vld [vmem:[#allocation9 + $0xb54] ss:$8 sps:$4 sm:$0xff]   ;;  %v13082_v19 = vrot.slane %v6043_v1, 9  ;;  %v15064_v1 = vld [vmem:[#allocation9 + $0xb90] ss:$8 sps:$4 sm:$0xff]  }
 0x4e8   : > { %v6042_v25 = vsel %vm16988_vm5, %v13081_v53, %v6041_v21  ;;  %v13116_v27 = vcombine.low %v5966_v54, %v5970_v23  ;;  %v6077_v41 = vrot.slane %v6044_v9, 5  ;;  %v15052_v23 = vld [vmem:[#allocation9 + $0xb60] ss:$8 sps:$4 sm:$0xff]   ;;  %v15066_v39 = vld [vmem:[#allocation9 + $0xb94] ss:$8 sps:$4 sm:$0xff]  }
 0x4e9   : > { %v15072_v9 = vld [vmem:[#allocation9 + $0xba4] ss:$8 sps:$4 sm:$0xff]  }
 0x4ea   : > { %7402 = vmatpush1.bf16.msra.mxu1 %v15037_v6  ;;  %v6038_v6 = vsel %vm16988_vm5, %v13080_v29, %v6037_v52  ;;  %v6081_v29 = vrot.slane %v6046_v24, 5  ;;  %v15049_v52 = vld [vmem:[#allocation9 + $0xb50] ss:$8 sps:$4 sm:$0xff]   ;;  %v15078_v24 = vld [vmem:[#allocation9 + $0xbb4] ss:$8 sps:$4 sm:$0xff]  }
 0x4eb   : > { %7403 = vmatprep.subr.bf16.mxu1 %v15042_v8  ;;  %v5928_v8 = vld [vmem:[#allocation2 + $0x168] sm:$0x1]  ;;  %v13121_v30 = vcombine.low %v6038_v6, %v6042_v25  ;;  %v15057_v25 = vld [vmem:[#allocation9 + $0xb74] ss:$8 sps:$4 sm:$0xff]  }
 0x4ed   : > { %7369 = vmatmul.mubr.bf16.gmra.mrb[52].mxu1 %v13115_v35  ;;  %v5973_v35 = vrot.slane %v5928_v8, 5  ;;  %v15060_v8 = vld [vmem:[#allocation9 + $0xb84] ss:$8 sps:$4 sm:$0xff]  }
 0x4ee   : > { %7404 = vmatpush1.bf16.msra.mxu1 %v15040_v46  ;;  %7378 = vmatprep.mubr.bf16.mxu1 %v13120_v37  ;;  %v13073_v37 = vrot.slane %v5929_v63, 9  ;;  %v13083_v46 = vrot.slane %v6045_v11, 9  ;;  %v15058_v63 = vld [vmem:[#allocation9 + $0xb80] ss:$8 sps:$4 sm:$0xff]  }
 0x4ef   : > { %7405 = vmatprep.subr.bf16.mxu1 %v15045_v18  ;;  %v5974_v53 = vsel %vm16956_vm2, %v13072_v32, %v5973_v35  ;;  %v15054_v18 = vld [vmem:[#allocation9 + $0xb64] ss:$8 sps:$4 sm:$0xff]   ;;  %v15070_v11 = vld [vmem:[#allocation9 + $0xba0] ss:$8 sps:$4 sm:$0xff]   ;;  %v15090_v32 = vld [vmem:[#allocation9 + $0xbd4] ss:$8 sps:$4 sm:$0xff]  }
 0x4f0   : > { %v5978_v21 = vsel %vm16956_vm2, %v13073_v37, %v5977_v28  ;;  %v6082_v54 = vsel %vm16956_vm2, %v13083_v46, %v6081_v29  ;;  %v15088_v35 = vld [vmem:[#allocation9 + $0xbd0] ss:$8 sps:$4 sm:$0xff]   ;;  %v15096_v37 = vld [vmem:[#allocation9 + $0xbe4] ss:$8 sps:$4 sm:$0xff]   ;;  %v15094_v46 = vld [vmem:[#allocation9 + $0xbe0] ss:$8 sps:$4 sm:$0xff]  }
 0x4f1   : > { %v6047_v28 = vld [vmem:[#allocation2 + $0x2ec] sm:$0xe]  ;;  %v15102_v29 = vld [vmem:[#allocation9 + $0xbf4] ss:$8 sps:$4 sm:$0xff]  }
 0x4f2   : > { %7406 = vmatpush1.bf16.msra.mxu1 %v15043_v22  ;;  %v6078_v22 = vsel %vm16956_vm2, %v13082_v19, %v6077_v41  ;;  %v6049_v19 = vld [vmem:[#allocation2 + $0x308] sm:$0xe]  ;;  %v6050_v41 = vld [vmem:[#allocation2 + $0x30c] sm:$0x1] }
 0x4f3   : > { %7407 = vmatprep.subr.bf16.mxu1 %v15048_v49  ;;  %v13117_v49 = vcombine.low %v5974_v53, %v5978_v21  ;;  %v13122_v6 = vcombine.low %v6078_v22, %v6082_v54  ;;  %v13085_v21 = vrot.slane %v6049_v19, 9  ;;  %v15208_v22 = vld [vmem:[#allocation12 + $0x304] ss:$8 sps:$4 sm:$0xff]   ;;  %v15100_v54 = vld [vmem:[#allocation9 + $0xbf0] ss:$8 sps:$4 sm:$0xff]  }
 0x4f4   : > { %7893 = vmatprep.subr.bf16.mxu0 %v15208_v22  ;;  %v6056_v19 = vld [vmem:[#allocation2 + $0x360] sm:$0x1] }
 0x4f5   : > { %7379 = vmatmul.mubr.bf16.gmra.mrb[56].mxu1 %v13116_v27  ;;  %v15076_v27 = vld [vmem:[#allocation9 + $0xbb0] ss:$8 sps:$4 sm:$0xff]  }
 0x4f6   : > { %7408 = vmatpush1.bf16.msra.mxu1 %v15046_v31  ;;  %7388 = vmatprep.mubr.bf16.mxu1 %v13121_v30  ;;  %v15084_v30 = vld [vmem:[#allocation9 + $0xbc4] ss:$8 sps:$4 sm:$0xff]   ;;  %v15082_v31 = vld [vmem:[#allocation9 + $0xbc0] ss:$8 sps:$4 sm:$0xff]  }
 0x4f7   : > { %7409 = vmatprep.subr.bf16.mxu1 %v15051_v51  ;;  %v6048_v51 = vld [vmem:[#allocation2 + $0x2f0] sm:$0x1] }
 0x4f8   : > { %v6085_v53 = vrot.slane %v6048_v51, 5  ;;  %v6055_v51 = vld [vmem:[#allocation2 + $0x35c] sm:$0xe] }
 0x4fa   : > { %7410 = vmatpush1.bf16.msra.mxu1 %v15049_v52  ;;  %v13084_v52 = vrot.slane %v6047_v28, 9 }
 0x4fb   : > { %7411 = vmatprep.subr.bf16.mxu1 %v15054_v18  ;;  %v6089_v18 = vrot.slane %v6050_v41, 5  ;;  %v6057_v41 = vld [vmem:[#allocation2 + $0x378] sm:$0xe] }
 0x4fc   : > { %v13089_v22 = vrot.slane %v6057_v41, 9 }
 0x4fd   : > { %7389 = vmatmul.mubr.bf16.gmra.mrb[60].mxu1 %v13117_v49  ;;  %v15108_v49 = vld [vmem:[#allocation9 + $0xc04] ss:$8 sps:$4 sm:$0xff]  }
 0x4fe   : > { %7412 = vmatpush1.bf16.msra.mxu1 %v15052_v23  ;;  %7431 = vmatprep.mubr.bf16.mxu1 %v13122_v6  ;;  %v6086_v23 = vsel %vm16956_vm2, %v13084_v52, %v6085_v53  ;;  %v6090_v6 = vsel %vm16956_vm2, %v13085_v21, %v6089_v18  ;;  %v15126_v53 = vld [vmem:[#allocation9 + $0xc34] ss:$8 sps:$4 sm:$0xff]   ;;  %v13088_v21 = vrot.slane %v6055_v51, 9  ;;  %v6101_v18 = vrot.slane %v6056_v19, 5 }
 0x4ff   : > { %7413 = vmatprep.subr.bf16.mxu1 %v15057_v25  ;;  %v6051_v25 = vld [vmem:[#allocation2 + $0x324] sm:$0xe] }
 0x502   : > { %7414 = vmatpush1.bf16.msra.mxu1 %v15055_v62  ;;  %v6052_v62 = vld [vmem:[#allocation2 + $0x328] sm:$0x1] }
 0x503   : > { %7415 = vmatprep.subr.bf16.mxu1 %v15060_v8  ;;  %v6053_v8 = vld [vmem:[#allocation2 + $0x340] sm:$0xe] }
 0x506   : > { %7416 = vmatpush1.bf16.msra.mxu1 %v15058_v63  ;;  %v6054_v63 = vld [vmem:[#allocation2 + $0x344] sm:$0x1] }
 0x507   : > { %7417 = vmatprep.subr.bf16.mxu1 %v15066_v39  ;;  %v15106_v39 = vld [vmem:[#allocation9 + $0xc00] ss:$8 sps:$4 sm:$0xff]  }
 0x50a   : > { %7418 = vmatpush1.bf16.msra.mxu1 %v15064_v1  ;;  %v13123_v1 = vcombine.low %v6086_v23, %v6090_v6  ;;  %v15124_v23 = vld [vmem:[#allocation9 + $0xc30] ss:$8 sps:$4 sm:$0xff]   ;;  %v15132_v6 = vld [vmem:[#allocation9 + $0xc44] ss:$8 sps:$4 sm:$0xff]  }
 0x50b   : > { %7419 = vmatprep.subr.bf16.mxu1 %v15072_v9  ;;  %v15114_v9 = vld [vmem:[#allocation9 + $0xc14] ss:$8 sps:$4 sm:$0xff]  }
 0x50e   : > { %7420 = vmatpush1.bf16.msra.mxu1 %v15070_v11  ;;  %v13086_v11 = vrot.slane %v6051_v25, 9  ;;  %v6102_v25 = vsel %vm16956_vm2, %v13088_v21, %v6101_v18 }
 0x50f   : > { %7421 = vmatprep.subr.bf16.mxu1 %v15078_v24  ;;  %v6093_v24 = vrot.slane %v6052_v62, 5 }
 0x512   : > { %7422 = vmatpush1.bf16.msra.mxu1 %v15076_v27  ;;  %v13087_v27 = vrot.slane %v6053_v8, 9  ;;  %v15130_v8 = vld [vmem:[#allocation9 + $0xc40] ss:$8 sps:$4 sm:$0xff]  }
 0x513   : > { %7423 = vmatprep.subr.bf16.mxu1 %v15084_v30  ;;  %v6097_v30 = vrot.slane %v6054_v63, 5 }
 0x515   : > { %v6098_v28 = vsel %vm16956_vm2, %v13087_v27, %v6097_v30  ;;  %v15144_v30 = vld [vmem:[#allocation9 + $0xc64] ss:$8 sps:$4 sm:$0xff]  }
 0x516   : > { %7424 = vmatpush1.bf16.msra.mxu1 %v15082_v31  ;;  %v15790_v31 = vld [vmem:[#allocation2 + $0x2ac] ss:$28 sps:$4 sm:$0xff]  }
 0x517   : > { %7425 = vmatprep.subr.bf16.mxu1 %v15090_v32  ;;  %v15112_v32 = vld [vmem:[#allocation9 + $0xc10] ss:$8 sps:$4 sm:$0xff]  }
 0x51a   : > { %7426 = vmatpush1.bf16.msra.mxu1 %v15088_v35  ;;  %v15120_v35 = vld [vmem:[#allocation9 + $0xc24] ss:$8 sps:$4 sm:$0xff]  }
 0x51b   : > { %7427 = vmatprep.subr.bf16.mxu1 %v15096_v37  ;;  %v6094_v37 = vsel %vm16956_vm2, %v13086_v11, %v6093_v24  ;;  %v5508_v11 = vld [vmem:[#allocation15 + $0x2] ss:$8 sm:$0x3] }
 0x51c   : > { %v13124_v52 = vcombine.low %v6094_v37, %v6098_v28  ;;  %v15136_v24 = vld [vmem:[#allocation9 + $0xc50] ss:$8 sps:$4 sm:$0xff]   ;;  %v17461_v37 = vrot.slane %v5508_v11, %v17103_v13  ;;  %v17465_v19 = vrot.slane %v5508_v11, %v17105_v14 }
 0x51e   : > { %7428 = vmatpush1.bf16.msra.mxu1 %v15094_v46  ;;  %v6058_v46 = vld [vmem:[#allocation2 + $0x37c] sm:$0x1] }
 0x51f   : > { %7429 = vmatprep.subr.bf16.mxu1 %v15102_v29  ;;  %v15118_v29 = vld [vmem:[#allocation9 + $0xc20] ss:$8 sps:$4 sm:$0xff]  }
 0x522   : > { %7430 = vmatpush1.bf16.msra.mxu1 %v15100_v54  ;;  %v6105_v54 = vrot.slane %v6058_v46, 5  ;;  %v15142_v46 = vld [vmem:[#allocation9 + $0xc60] ss:$8 sps:$4 sm:$0xff]  }
 0x523   : > { %7472 = vmatprep.subr.bf16.mxu1 %v15108_v49  ;;  %v15791_v49 = vld [vmem:[#allocation2 + $0x2e4] ss:$28 sps:$4 sm:$0xff]  }
 0x524   : > { %v6106_v62 = vsel %vm16956_vm2, %v13089_v22, %v6105_v54 }
 0x525   : > { %7432 = vmatmul.mubr.bf16.vlgmr.msra.gmra.mrb[48].mxu1 %v15790_v31  ;;  %v13125_v63 = vcombine.low %v6102_v25, %v6106_v62  ;;  %v15148_v25 = vld [vmem:[#allocation9 + $0xc70] ss:$8 sps:$4 sm:$0xff]   ;;  %v15156_v62 = vld [vmem:[#allocation9 + $0xc84] ss:$8 sps:$4 sm:$0xff]  }
 0x526   : > { %7473 = vmatpush1.bf16.msra.mxu1 %v15106_v39  ;;  %7441 = vmatprep.mubr.bf16.mxu1 %v13123_v1  ;;  %v15138_v39 = vld [vmem:[#allocation9 + $0xc54] ss:$8 sps:$4 sm:$0xff]   ;;  %v5479_v1 = vld [vmem:[#allocation13 + $0x2] ss:$8 sm:$0x3] }
 0x527   : > { %7474 = vmatprep.subr.bf16.mxu1 %v15114_v9  ;;  %v15792_v9 = vld [vmem:[#allocation2 + $0x31c] ss:$28 sps:$4 sm:$0xff]   ;;  %v17454_v27 = vrot.slane %v5479_v1, %v17103_v13 }
 0x52a   : > { %7475 = vmatpush1.bf16.msra.mxu1 %v15112_v32  ;;  %v17457_v32 = vrot.slane %v5479_v1, %v17105_v14 }
 0x52b   : > { %7476 = vmatprep.subr.bf16.mxu1 %v15120_v35 }
 0x52d   : > { %7442 = vmatmul.mubr.bf16.gmra.mrb[52].mxu1 %v15791_v49  ;;  %v15793_v49 = vld [vmem:[#allocation2 + $0x354] ss:$28 sps:$4 sm:$0xff]  }
 0x52e   : > { %7477 = vmatpush1.bf16.msra.mxu1 %v15118_v29  ;;  %7451 = vmatprep.mubr.bf16.mxu1 %v13124_v52  ;;  %v15178_v29 = vld [vmem:[#allocation2 + $0x4a4] ss:$28 sps:$4 sm:$0xff]  }
 0x52f   : > { %7478 = vmatprep.subr.bf16.mxu1 %v15126_v53 }
 0x532   : > { %7479 = vmatpush1.bf16.msra.mxu1 %v15124_v23 }
 0x533   : > { %7480 = vmatprep.subr.bf16.mxu1 %v15132_v6 }
 0x535   : > { %7452 = vmatmul.mubr.bf16.gmra.mrb[56].mxu1 %v15792_v9 }
 0x536   : > { %7481 = vmatpush1.bf16.msra.mxu1 %v15130_v8  ;;  %7461 = vmatprep.mubr.bf16.mxu1 %v13125_v63 }
 0x537   : > { %7482 = vmatprep.subr.bf16.mxu1 %v15138_v39 }
 0x538   : > { %v5220_v31 = vpop.f32.mrb[32].mxu1 }
 0x539   : > { %v13842_v35 = vadd.f32 %v17353_v2, %v5220_v31  ;;  %v5222_v28 = vpop.f32.mrb[33].mxu1  ;;  %v15150_v2 = vld [vmem:[#allocation9 + $0xc74] ss:$8 sps:$4 sm:$0xff]  }
 0x53a   : > { %v13843_v51 = vadd.f32 %v17355_v20, %v5222_v28  ;;  %v5224_v41 = vpop.f32.mrb[34].mxu1  ;;  %7483 = vmatpush1.bf16.msra.mxu1 %v15136_v24 }
 0x53b   : > { %v5491_v52 = vmul.f32 %v13842_v35, %v17454_v27  ;;  %v13844_v53 = vadd.f32 %v17357_v56, %v5224_v41  ;;  %v5226_v21 = vpop.f32.mrb[35].mxu1  ;;  %7484 = vmatprep.subr.bf16.mxu1 %v15144_v30  ;;  %v15154_v35 = vld [vmem:[#allocation9 + $0xc80] ss:$8 sps:$4 sm:$0xff]  }
 0x53c   : > { %v5492_v18 = vmul.f32 %v13843_v51, %v17457_v32  ;;  %v13845_v22 = vadd.f32 %v17361_v58, %v5226_v21  ;;  %v15206_v21 = vld [vmem:[#allocation12 + $0x300] ss:$8 sps:$4 sm:$0xff]  }
 0x53d   : > { %v5520_v20 = vadd.f32 %v17461_v37, %v5491_v52  ;;  %v5493_v54 = vmul.f32 %v13844_v53, %v17454_v27  ;;  %7462 = vmatmul.mubr.bf16.gmra.mrb[60].mxu1 %v15793_v49  ;;  %v15162_v49 = vld [vmem:[#allocation9 + $0xca4] ss:$8 sps:$4 sm:$0xff]  }
 0x53e   : > { %v5521_v23 = vadd.f32 %v17465_v19, %v5492_v18  ;;  %v5494_v6 = vmul.f32 %v13845_v22, %v17457_v32  ;;  %7485 = vmatpush1.bf16.msra.mxu1 %v15142_v46  ;;  %7504 = vmatprep.mubr.bf16.mxu1 %v15178_v29  ;;  %v15159_v29 = vld [vmem:[#allocation9 + $0xc94] ss:$8 sps:$4 sm:$0xff]  }
 0x53f   : > { %v5522_v56 = vadd.f32 %v17461_v37, %v5493_v54  ;;  %7486 = vmatprep.subr.bf16.mxu1 %v15150_v2  ;;  %v5536_v63 = vmax.f32 %v5520_v20, 0.0  ;;  %v15211_v18 = vld [vmem:[#allocation12 + $0x314] ss:$8 sps:$4 sm:$0xff]  }
 0x540   : > { %v5523_v8 = vadd.f32 %v17465_v19, %v5494_v6  ;;  %v5230_v58 = vpop.f32.mrb[36].mxu1  ;;  %v5537_v11 = vmax.f32 %v5521_v23, 0.0  ;;  %v15209_v6 = vld [vmem:[#allocation12 + $0x310] ss:$8 sps:$4 sm:$0xff]  }
 0x541   : > { %v5538_v39 = vmax.f32 %v5522_v56, 0.0  ;;  %v13846_v1 = vadd.f32 %v17369_v0, %v5230_v58  ;;  %v5232_v9 = vpop.f32.mrb[37].mxu1  ;;  %v15214_v58 = vld [vmem:[#allocation12 + $0x324] ss:$8 sps:$4 sm:$0xff]  }
 0x542   : > { %v5539_v24 = vmax.f32 %v5523_v8, 0.0  ;;  %v13847_v30 = vadd.f32 %v17371_v50, %v5232_v9  ;;  %v5234_v31 = vpop.f32.mrb[38].mxu1  ;;  %7487 = vmatpush1.bf16.msra.mxu1 %v15148_v25 }
 0x543   : > { %v5552_v28 = vpack.c.bf16 %v5538_v39, %v5536_v63  ;;  %v5495_v51 = vmul.f32 %v13846_v1, %v17454_v27  ;;  %v13848_v41 = vadd.f32 %v17373_v60, %v5234_v31  ;;  %v5236_v46 = vpop.f32.mrb[39].mxu1  ;;  %7488 = vmatprep.subr.bf16.mxu1 %v15156_v62  ;;  %v15157_v60 = vld [vmem:[#allocation9 + $0xc90] ss:$8 sps:$4 sm:$0xff]  }
 0x544   : > { %v5496_v52 = vmul.f32 %v13847_v30, %v17457_v32  ;;  %v13849_v0 = vadd.f32 %v17377_v4, %v5236_v46  ;;  %v5553_v53 = vpack.c.bf16 %v5539_v24, %v5537_v11  ;;  %v15160_v11 = vld [vmem:[#allocation9 + $0xca0] ss:$8 sps:$4 sm:$0xff]  }
 0x545   : > { %v5524_v2 = vadd.f32 %v17461_v37, %v5495_v51  ;;  %v5497_v50 = vmul.f32 %v13848_v41, %v17454_v27  ;;  %v15212_v46 = vld [vmem:[#allocation12 + $0x320] ss:$8 sps:$4 sm:$0xff]  }
 0x546   : > { %v5525_v22 = vadd.f32 %v17465_v19, %v5496_v52  ;;  %v5498_v20 = vmul.f32 %v13849_v0, %v17457_v32  ;;  %5785 = vmatprep.mubr.bf16.mxu0 %v5553_v53  ;;  %7489 = vmatpush1.bf16.msra.mxu1 %v15154_v35  ;;  %v15217_v52 = vld [vmem:[#allocation12 + $0x334] ss:$8 sps:$4 sm:$0xff]   ;;  %v15163_v53 = vld [vmem:[#allocation9 + $0xcb0] ss:$8 sps:$4 sm:$0xff]  }
 0x547   : > { %v5526_v54 = vadd.f32 %v17461_v37, %v5497_v50  ;;  %5786 = vmatmul.mubr.bf16.vlgmr.msra.gmra.mrb[32].mxu0 %v5552_v28  ;;  %7490 = vmatprep.subr.bf16.mxu1 %v15159_v29  ;;  %v5540_v25 = vmax.f32 %v5524_v2, 0.0  ;;  %v15165_v28 = vld [vmem:[#allocation9 + $0xcb4] ss:$8 sps:$4 sm:$0xff]  }
 0x548   : > { %v5527_v4 = vadd.f32 %v17465_v19, %v5498_v20  ;;  %v5240_v23 = vpop.f32.mrb[40].mxu1  ;;  %7894 = vmatpush1.bf16.msra.mxu0 %v15206_v21  ;;  %v5541_v63 = vmax.f32 %v5525_v22, 0.0 }
 0x549   : > { %v5542_v56 = vmax.f32 %v5526_v54, 0.0  ;;  %v13850_v62 = vadd.f32 %v17385_v43, %v5240_v23  ;;  %v5242_v8 = vpop.f32.mrb[41].mxu1  ;;  %7895 = vmatprep.subr.bf16.mxu0 %v15211_v18  ;;  %v15215_v18 = vld [vmem:[#allocation12 + $0x330] ss:$8 sps:$4 sm:$0xff]  }
 0x54a   : > { %v5543_v39 = vmax.f32 %v5527_v4, 0.0  ;;  %v13851_v1 = vadd.f32 %v17387_v10, %v5242_v8  ;;  %v5244_v9 = vpop.f32.mrb[42].mxu1  ;;  %7491 = vmatpush1.bf16.msra.mxu1 %v15157_v60 }
 0x54b   : > { %v5499_v24 = vmul.f32 %v13850_v62, %v17454_v27  ;;  %v13852_v30 = vadd.f32 %v17389_v12, %v5244_v9  ;;  %v5246_v31 = vpop.f32.mrb[43].mxu1  ;;  %7492 = vmatprep.subr.bf16.mxu1 %v15162_v49  ;;  %v5554_v35 = vpack.c.bf16 %v5542_v56, %v5540_v25  ;;  %v15220_v49 = vld [vmem:[#allocation12 + $0x344] ss:$8 sps:$4 sm:$0xff]   ;;  %v15166_v56 = vld [vmem:[#allocation9 + $0xcc0] ss:$8 sps:$4 sm:$0xff]  }
 0x54c   : > { %v5500_v43 = vmul.f32 %v13851_v1, %v17457_v32  ;;  %v13853_v51 = vadd.f32 %v17393_v15, %v5246_v31  ;;  %v5555_v41 = vpack.c.bf16 %v5543_v39, %v5541_v63  ;;  %7896 = vmatpush1.bf16.msra.mxu0 %v15209_v6  ;;  %v15168_v15 = vld [vmem:[#allocation9 + $0xcc4] ss:$8 sps:$4 sm:$0xff]   ;;  %v15171_v39 = vld [vmem:[#allocation9 + $0xcd4] ss:$8 sps:$4 sm:$0xff]  }
 0x54d   : > { %v5528_v10 = vadd.f32 %v17461_v37, %v5499_v24  ;;  %v5501_v29 = vmul.f32 %v13852_v30, %v17454_v27  ;;  %7897 = vmatprep.subr.bf16.mxu0 %v15214_v58  ;;  %v15223_v30 = vld [vmem:[#allocation12 + $0x354] ss:$8 sps:$4 sm:$0xff]  }
 0x54e   : > { %v5529_v0 = vadd.f32 %v17465_v19, %v5500_v43  ;;  %v5502_v12 = vmul.f32 %v13853_v51, %v17457_v32  ;;  %5795 = vmatprep.mubr.bf16.mxu0 %v5555_v41  ;;  %7493 = vmatpush1.bf16.msra.mxu1 %v15160_v11  ;;  %v15218_v11 = vld [vmem:[#allocation12 + $0x340] ss:$8 sps:$4 sm:$0xff]   ;;  %v6109_v43 = vld [vmem:[#allocation2 + $0x49c] sm:$0x7]  ;;  %v15174_v51 = vld [vmem:[#allocation9 + $0xce4] ss:$8 sps:$4 sm:$0xff]  }
 0x54f   : > { %v5530_v21 = vadd.f32 %v17461_v37, %v5501_v29  ;;  %5796 = vmatmul.mubr.bf16.gmra.mrb[36].mxu0 %v5554_v35  ;;  %7494 = vmatprep.subr.bf16.mxu1 %v15165_v28  ;;  %v5544_v22 = vmax.f32 %v5528_v10, 0.0  ;;  %v15169_v35 = vld [vmem:[#allocation9 + $0xcd0] ss:$8 sps:$4 sm:$0xff]   ;;  %v6110_v41 = vld [vmem:[#allocation2 + $0x4b4] sm:$0x8] }
 0x550   : > { %v5531_v2 = vadd.f32 %v17465_v19, %v5502_v12  ;;  %v5250_v50 = vpop.f32.mrb[44].mxu1  ;;  %7898 = vmatpush1.bf16.msra.mxu0 %v15212_v46  ;;  %v5545_v4 = vmax.f32 %v5529_v0, 0.0  ;;  %v6108_v28 = vld [vmem:[#allocation2 + $0x498] sm:$0x8]  ;;  %v6111_v46 = vld [vmem:[#allocation2 + $0x4b8] sm:$0x7] }
 0x551   : > { %v5546_v20 = vmax.f32 %v5530_v21, 0.0  ;;  %v13854_v60 = vadd.f32 %v17401_v48, %v5250_v50  ;;  %v5252_v54 = vpop.f32.mrb[45].mxu1  ;;  %7899 = vmatprep.subr.bf16.mxu0 %v15217_v52  ;;  %v15221_v10 = vld [vmem:[#allocation12 + $0x350] ss:$8 sps:$4 sm:$0xff]   ;;  %v13090_v0 = vrot.slane %v6108_v28, 11 }
 0x552   : > { %v5547_v23 = vmax.f32 %v5531_v2, 0.0  ;;  %v13855_v6 = vadd.f32 %v17403_v34, %v5252_v54  ;;  %v5254_v25 = vpop.f32.mrb[46].mxu1  ;;  %7495 = vmatpush1.bf16.msra.mxu1 %v15163_v53  ;;  %v15226_v12 = vld [vmem:[#allocation12 + $0x364] ss:$8 sps:$4 sm:$0xff]   ;;  %v6146_v2 = vrot.slane %v6111_v46, 7 }
 0x553   : > { %v5503_v62 = vmul.f32 %v13854_v60, %v17454_v27  ;;  %v13856_v8 = vadd.f32 %v17405_v42, %v5254_v25  ;;  %v5256_v58 = vpop.f32.mrb[47].mxu1  ;;  %7496 = vmatprep.subr.bf16.mxu1 %v15168_v15  ;;  %v5556_v63 = vpack.c.bf16 %v5546_v20, %v5544_v22  ;;  %v15172_v15 = vld [vmem:[#allocation9 + $0xce0] ss:$8 sps:$4 sm:$0xff]   ;;  %v15229_v20 = vld [vmem:[#allocation12 + $0x374] ss:$8 sps:$4 sm:$0xff]  }
 0x554   : > { %v5504_v48 = vmul.f32 %v13855_v6, %v17457_v32  ;;  %v13857_v1 = vadd.f32 %v17407_v55, %v5256_v58  ;;  %v5557_v9 = vpack.c.bf16 %v5547_v23, %v5545_v4  ;;  %7900 = vmatpush1.bf16.msra.mxu0 %v15215_v18  ;;  %v15177_v18 = vld [vmem:[#allocation9 + $0xcf4] ss:$8 sps:$4 sm:$0xff]   ;;  %v15175_v60 = vld [vmem:[#allocation9 + $0xcf0] ss:$8 sps:$4 sm:$0xff]   ;;  %v15181_v4 = vld [vmem:[#allocation9 + $0xd04] ss:$8 sps:$4 sm:$0xff]  }
 0x555   : > { %v5532_v34 = vadd.f32 %v17461_v37, %v5503_v62  ;;  %v5505_v24 = vmul.f32 %v13856_v8, %v17454_v27  ;;  %7901 = vmatprep.subr.bf16.mxu0 %v15220_v49  ;;  %v6112_v23 = vld [vmem:[#allocation2 + $0x4d0] sm:$0x8]  ;;  %v6113_v6 = vld [vmem:[#allocation2 + $0x4d4] sm:$0x7]  ;;  %v6114_v25 = vld [vmem:[#allocation2 + $0x4ec] sm:$0x8] }
 0x556   : > { %v5533_v31 = vadd.f32 %v17465_v19, %v5504_v48  ;;  %v5506_v42 = vmul.f32 %v13857_v1, %v17457_v32  ;;  %5805 = vmatprep.mubr.bf16.mxu0 %v5557_v9  ;;  %7497 = vmatpush1.bf16.msra.mxu1 %v15166_v56  ;;  %v6142_v32 = vrot.slane %v6109_v43, 7  ;;  %v6115_v56 = vld [vmem:[#allocation2 + $0x4f0] sm:$0x7]  ;;  %v15179_v58 = vld [vmem:[#allocation9 + $0xd00] ss:$8 sps:$4 sm:$0xff]   ;;  %v13092_v48 = vrot.slane %v6112_v23, 11 }
 0x557   : > { %v5534_v55 = vadd.f32 %v17461_v37, %v5505_v24  ;;  %5806 = vmatmul.mubr.bf16.gmra.mrb[40].mxu0 %v5556_v63  ;;  %7498 = vmatprep.subr.bf16.mxu1 %v15171_v39  ;;  %v5548_v29 = vmax.f32 %v5532_v34, 0.0  ;;  %v13091_v37 = vrot.slane %v6110_v41, 11  ;;  %v15227_v62 = vld [vmem:[#allocation12 + $0x370] ss:$8 sps:$4 sm:$0xff]   ;;  %v15232_v63 = vld [vmem:[#allocation12 + $0x384] ss:$8 sps:$4 sm:$0xff]  }
 0x558   : > { %v5535_v27 = vadd.f32 %v17465_v19, %v5506_v42  ;;  %7902 = vmatpush1.bf16.msra.mxu0 %v15218_v11  ;;  %v5549_v53 = vmax.f32 %v5533_v31, 0.0  ;;  %v15224_v19 = vld [vmem:[#allocation12 + $0x360] ss:$8 sps:$4 sm:$0xff]   ;;  %v6143_v54 = vsel %vm16988_vm5, %v13090_v0, %v6142_v32  ;;  %v15185_v39 = vld [vmem:[#allocation2 + $0x4dc] ss:$28 sps:$4 sm:$0xff]   ;;  %v6150_v1 = vrot.slane %v6113_v6, 7 }
 0x559   : > { %v5550_v52 = vmax.f32 %v5534_v55, 0.0  ;;  %7903 = vmatprep.subr.bf16.mxu0 %v15223_v30  ;;  %v6147_v49 = vsel %vm16988_vm5, %v13091_v37, %v6146_v2  ;;  %v13093_v9 = vrot.slane %v6114_v25, 11  ;;  %v6154_v11 = vrot.slane %v6115_v56, 7  ;;  %v15184_v34 = vld [vmem:[#allocation9 + $0xd14] ss:$8 sps:$4 sm:$0xff]  }
 0x55a   : > { %v5551_v21 = vmax.f32 %v5535_v27, 0.0  ;;  %7499 = vmatpush1.bf16.msra.mxu1 %v15169_v35  ;;  %v13126_v8 = vcombine.low %v6143_v54, %v6147_v49  ;;  %v15230_v24 = vld [vmem:[#allocation12 + $0x380] ss:$8 sps:$4 sm:$0xff]   ;;  %v15235_v30 = vld [vmem:[#allocation12 + $0x394] ss:$8 sps:$4 sm:$0xff]   ;;  %v6151_v42 = vsel %vm16988_vm5, %v13092_v48, %v6150_v1 }
 0x55b   : > { %7500 = vmatprep.subr.bf16.mxu1 %v15174_v51  ;;  %v5558_v50 = vpack.c.bf16 %v5550_v52, %v5548_v29  ;;  %v15182_v31 = vld [vmem:[#allocation9 + $0xd10] ss:$8 sps:$4 sm:$0xff]   ;;  %v6155_v35 = vsel %vm16988_vm5, %v13093_v9, %v6154_v11  ;;  %v15188_v28 = vld [vmem:[#allocation9 + $0xd24] ss:$8 sps:$4 sm:$0xff]   ;;  %v6116_v43 = vld [vmem:[#allocation2 + $0x508] sm:$0x8] }
 0x55c   : > { %v5559_v22 = vpack.c.bf16 %v5551_v21, %v5549_v53  ;;  %7904 = vmatpush1.bf16.msra.mxu0 %v15221_v10  ;;  %v6117_v55 = vld [vmem:[#allocation2 + $0x50c] sm:$0x7]  ;;  %v6118_v51 = vld [vmem:[#allocation2 + $0x524] sm:$0x8]  ;;  %v6119_v41 = vld [vmem:[#allocation2 + $0x528] sm:$0x7]  ;;  %v13127_v27 = vcombine.low %v6151_v42, %v6155_v35 }
 0x55d   : > { %7905 = vmatprep.subr.bf16.mxu0 %v15226_v12  ;;  %v15233_v46 = vld [vmem:[#allocation12 + $0x390] ss:$8 sps:$4 sm:$0xff]   ;;  %v15186_v10 = vld [vmem:[#allocation9 + $0xd20] ss:$8 sps:$4 sm:$0xff]   ;;  %v15238_v29 = vld [vmem:[#allocation12 + $0x3a4] ss:$8 sps:$4 sm:$0xff]  }
 0x55e   : > { %5815 = vmatprep.mubr.bf16.mxu0 %v5559_v22  ;;  %7501 = vmatpush1.bf16.msra.mxu1 %v15172_v15  ;;  %v15192_v52 = vld [vmem:[#allocation2 + $0x514] ss:$28 sps:$4 sm:$0xff]   ;;  %v13094_v0 = vrot.slane %v6116_v43, 11  ;;  %v6158_v32 = vrot.slane %v6117_v55, 7  ;;  %v13095_v12 = vrot.slane %v6118_v51, 11  ;;  %v6162_v53 = vrot.slane %v6119_v41, 7 }
 0x55f   : > { %5816 = vmatmul.mubr.bf16.gmra.mrb[44].mxu0 %v5558_v50  ;;  %7502 = vmatprep.subr.bf16.mxu1 %v15177_v18  ;;  %v15191_v21 = vld [vmem:[#allocation9 + $0xd34] ss:$8 sps:$4 sm:$0xff]   ;;  %v15236_v15 = vld [vmem:[#allocation12 + $0x3a0] ss:$8 sps:$4 sm:$0xff]   ;;  %v15189_v2 = vld [vmem:[#allocation9 + $0xd30] ss:$8 sps:$4 sm:$0xff]  }
 0x560   : > { %7906 = vmatpush1.bf16.msra.mxu0 %v15224_v19  ;;  %v15241_v37 = vld [vmem:[#allocation12 + $0x3b4] ss:$8 sps:$4 sm:$0xff]   ;;  %v6159_v50 = vsel %vm16988_vm5, %v13094_v0, %v6158_v32  ;;  %v6163_v18 = vsel %vm16988_vm5, %v13095_v12, %v6162_v53  ;;  %v15195_v22 = vld [vmem:[#allocation9 + $0xd44] ss:$8 sps:$4 sm:$0xff]   ;;  %v6120_v19 = vld [vmem:[#allocation2 + $0x540] sm:$0x8] }
 0x561   : > { %7907 = vmatprep.subr.bf16.mxu0 %v15229_v20  ;;  %v6121_v20 = vld [vmem:[#allocation2 + $0x544] sm:$0x7]  ;;  %v6123_v54 = vld [vmem:[#allocation2 + $0x560] sm:$0x7]  ;;  %v15239_v49 = vld [vmem:[#allocation12 + $0x3b0] ss:$8 sps:$4 sm:$0xff]  }
 0x562   : > { %7503 = vmatpush1.bf16.msra.mxu1 %v15175_v60  ;;  %v6122_v60 = vld [vmem:[#allocation2 + $0x55c] sm:$0x8]  ;;  %v15193_v23 = vld [vmem:[#allocation9 + $0xd40] ss:$8 sps:$4 sm:$0xff]   ;;  %v15244_v6 = vld [vmem:[#allocation12 + $0x3c4] ss:$8 sps:$4 sm:$0xff]  }
 0x563   : > { %7545 = vmatprep.subr.bf16.mxu1 %v15181_v4  ;;  %v13128_v4 = vcombine.low %v6159_v50, %v6163_v18  ;;  %v15199_v25 = vld [vmem:[#allocation2 + $0x54c] ss:$28 sps:$4 sm:$0xff]   ;;  %v13096_v56 = vrot.slane %v6120_v19, 11  ;;  %v15196_v48 = vld [vmem:[#allocation9 + $0xd50] ss:$8 sps:$4 sm:$0xff]  }
 0x564   : > { %7908 = vmatpush1.bf16.msra.mxu0 %v15227_v62  ;;  %v6166_v62 = vrot.slane %v6121_v20, 7  ;;  %v15202_v11 = vld [vmem:[#allocation9 + $0xd64] ss:$8 sps:$4 sm:$0xff]   ;;  %v15200_v35 = vld [vmem:[#allocation9 + $0xd60] ss:$8 sps:$4 sm:$0xff]  }
 0x565   : > { %7505 = vmatmul.mubr.bf16.vlgmr.msra.gmra.mrb[48].mxu1 %v13126_v8  ;;  %7909 = vmatprep.subr.bf16.mxu0 %v15232_v63  ;;  %v13097_v8 = vrot.slane %v6122_v60, 11  ;;  %v15198_v63 = vld [vmem:[#allocation9 + $0xd54] ss:$8 sps:$4 sm:$0xff]   ;;  %v6186_v0 = vld [vmem:[#allocation2 + $0x500] sm:$0xe] }
 0x566   : > { %7546 = vmatpush1.bf16.msra.mxu1 %v15179_v58  ;;  %7514 = vmatprep.mubr.bf16.mxu1 %v15185_v39  ;;  %v6170_v58 = vrot.slane %v6123_v54, 7  ;;  %v15242_v39 = vld [vmem:[#allocation12 + $0x3c0] ss:$8 sps:$4 sm:$0xff]   ;;  %v6167_v1 = vsel %vm16988_vm5, %v13096_v56, %v6166_v62  ;;  %v15205_v41 = vld [vmem:[#allocation9 + $0xd74] ss:$8 sps:$4 sm:$0xff]  }
 0x567   : > { %7547 = vmatprep.subr.bf16.mxu1 %v15184_v34  ;;  %v6180_v34 = vld [vmem:[#allocation2 + $0x4ac] sm:$0xe]  ;;  %v6187_v32 = vld [vmem:[#allocation2 + $0x504] sm:$0x1]  ;;  %v6188_v18 = vld [vmem:[#allocation2 + $0x51c] sm:$0xe] }
 0x568   : > { %7910 = vmatpush1.bf16.msra.mxu0 %v15230_v24  ;;  %v6171_v9 = vsel %vm16988_vm5, %v13097_v8, %v6170_v58  ;;  %v6181_v24 = vld [vmem:[#allocation2 + $0x4b0] sm:$0x1]  ;;  %v6190_v19 = vld [vmem:[#allocation2 + $0x538] sm:$0xe]  ;;  %v6191_v20 = vld [vmem:[#allocation2 + $0x53c] sm:$0x1] }
 0x569   : > { %7911 = vmatprep.subr.bf16.mxu0 %v15235_v30  ;;  %v6182_v30 = vld [vmem:[#allocation2 + $0x4c8] sm:$0xe]  ;;  %v13129_v42 = vcombine.low %v6167_v1, %v6171_v9  ;;  %v6214_v43 = vrot.slane %v6181_v24, 5  ;;  %v13102_v54 = vrot.slane %v6188_v18, 9  ;;  %v6192_v56 = vld [vmem:[#allocation2 + $0x554] sm:$0xe] }
 0x56a   : > { %7548 = vmatpush1.bf16.msra.mxu1 %v15182_v31  ;;  %v6183_v31 = vld [vmem:[#allocation2 + $0x4cc] sm:$0x1]  ;;  %v13099_v55 = vrot.slane %v6182_v30, 9  ;;  %v6193_v62 = vld [vmem:[#allocation2 + $0x558] sm:$0x1] }
 0x56b   : > { %7549 = vmatprep.subr.bf16.mxu1 %v15188_v28  ;;  %v13098_v28 = vrot.slane %v6180_v34, 9  ;;  %v6218_v51 = vrot.slane %v6183_v31, 5  ;;  %v6194_v8 = vld [vmem:[#allocation2 + $0x570] sm:$0xe]  ;;  %v6195_v58 = vld [vmem:[#allocation2 + $0x574] sm:$0x1] }
 0x56c   : > { %7912 = vmatpush1.bf16.msra.mxu0 %v15233_v46  ;;  %v17529_v46 = vld [vmem:[#allocation3] sm:$0xff]  ;;  %v13105_v1 = vrot.slane %v6194_v8, 9  ;;  %v6242_v9 = vrot.slane %v6195_v58, 5  ;;  %v15247_v30 = vld [vmem:[#allocation12 + $0x3d4] ss:$8 sps:$4 sm:$0xff]  }
 0x56d   : > { %7515 = vmatmul.mubr.bf16.gmra.mrb[52].mxu1 %v13127_v27  ;;  %7913 = vmatprep.subr.bf16.mxu0 %v15238_v29  ;;  %v6215_v27 = vsel %vm16956_vm2, %v13098_v28, %v6214_v43  ;;  %v6184_v29 = vld [vmem:[#allocation2 + $0x4e4] sm:$0xe]  ;;  %v15245_v31 = vld [vmem:[#allocation12 + $0x3d0] ss:$8 sps:$4 sm:$0xff]   ;;  %v15253_v28 = vld [vmem:[#allocation12 + $0x3f4] ss:$8 sps:$4 sm:$0xff]  }
 0x56e   : > { %7550 = vmatpush1.bf16.msra.mxu1 %v15186_v10  ;;  %7524 = vmatprep.mubr.bf16.mxu1 %v15192_v52  ;;  %v6219_v10 = vsel %vm16956_vm2, %v13099_v55, %v6218_v51  ;;  %v6185_v52 = vld [vmem:[#allocation2 + $0x4e8] sm:$0x1]  ;;  %v13100_v53 = vrot.slane %v6184_v29, 9  ;;  %v6243_v34 = vsel %vm16956_vm2, %v13105_v1, %v6242_v9  ;;  %v15251_v43 = vld [vmem:[#allocation12 + $0x3f0] ss:$8 sps:$4 sm:$0xff]  }
 0x56f   : > { %7551 = vmatprep.subr.bf16.mxu1 %v15191_v21  ;;  %v13134_v12 = vcombine.low %v6215_v27, %v6219_v10  ;;  %v6222_v21 = vrot.slane %v6185_v52, 5  ;;  %v15256_v55 = vld [vmem:[#allocation10 + $0x4] ss:$8 sps:$4 sm:$0xff]   ;;  %v15278_v51 = vld [vmem:[#allocation12 + $0x400] ss:$8 sps:$4 sm:$0xff]  }
 0x570   : > { %7914 = vmatpush1.bf16.msra.mxu0 %v15236_v15  ;;  %v13101_v15 = vrot.slane %v6186_v0, 9  ;;  %v15281_v27 = vld [vmem:[#allocation12 + $0x410] ss:$8 sps:$4 sm:$0xff]   ;;  %v15286_v10 = vld [vmem:[#allocation12 + $0x424] ss:$8 sps:$4 sm:$0xff]  }
 0x571   : > { %7915 = vmatprep.subr.bf16.mxu0 %v15241_v37  ;;  %v6226_v37 = vrot.slane %v6187_v32, 5  ;;  %v15284_v29 = vld [vmem:[#allocation12 + $0x420] ss:$8 sps:$4 sm:$0xff]   ;;  %v15289_v52 = vld [vmem:[#allocation12 + $0x434] ss:$8 sps:$4 sm:$0xff]  }
 0x572   : > { %7552 = vmatpush1.bf16.msra.mxu1 %v15189_v2  ;;  %v6223_v2 = vsel %vm16956_vm2, %v13100_v53, %v6222_v21  ;;  %v15287_v0 = vld [vmem:[#allocation12 + $0x430] ss:$8 sps:$4 sm:$0xff]   ;;  %v15292_v32 = vld [vmem:[#allocation12 + $0x444] ss:$8 sps:$4 sm:$0xff]   ;;  %v15295_v53 = vld [vmem:[#allocation12 + $0x454] ss:$8 sps:$4 sm:$0xff]  }
 0x573   : > { %7553 = vmatprep.subr.bf16.mxu1 %v15195_v22  ;;  %v6227_v50 = vsel %vm16956_vm2, %v13101_v15, %v6226_v37  ;;  %v6189_v22 = vld [vmem:[#allocation2 + $0x520] sm:$0x1]  ;;  %v15293_v21 = vld [vmem:[#allocation12 + $0x450] ss:$8 sps:$4 sm:$0xff]   ;;  %vm8678_vm5 = vsmask.f32 4352 }
 0x574   : > { %7916 = vmatpush1.bf16.msra.mxu0 %v15239_v49  ;;  %v13135_v60 = vcombine.low %v6223_v2, %v6227_v50  ;;  %v6230_v49 = vrot.slane %v6189_v22, 5  ;;  %v7619_v15 = vld [vmem:[#allocation13 + $0x3] ss:$8 sm:$0x3]  ;;  %vm17789_vm9 = vmand %vm1414_vm4, %vm8678_vm5 }
 0x575   : > { %7525 = vmatmul.mubr.bf16.gmra.mrb[56].mxu1 %v13128_v4  ;;  %7917 = vmatprep.subr.bf16.mxu0 %v15244_v6  ;;  %v13103_v4 = vrot.slane %v6190_v19, 9  ;;  %v7648_v37 = vld [vmem:[#allocation15 + $0x3] ss:$8 sm:$0x3]  ;;  %v17552_v2 = vrot.slane %v7619_v15, %v17103_v13  ;;  %v17555_v50 = vrot.slane %v7619_v15, %v17105_v14  ;;  %vm17826_vm3 = vmor %vm17789_vm9, %vm17776_vm8 }
 0x576   : > { %7554 = vmatpush1.bf16.msra.mxu1 %v15193_v23  ;;  %7534 = vmatprep.mubr.bf16.mxu1 %v15199_v25  ;;  %v6234_v23 = vrot.slane %v6191_v20, 5  ;;  %v6231_v6 = vsel %vm16956_vm2, %v13102_v54, %v6230_v49  ;;  %v17558_v18 = vrot.slane %v7648_v37, %v17103_v13  ;;  %v17561_v19 = vrot.slane %v7648_v37, %v17105_v14 }
 0x577   : > { %7555 = vmatprep.subr.bf16.mxu1 %v15198_v63 }
 0x578   : > { %7918 = vmatpush1.bf16.msra.mxu0 %v15242_v39  ;;  %v6235_v25 = vsel %vm16956_vm2, %v13103_v4, %v6234_v23  ;;  %v13104_v39 = vrot.slane %v6192_v56, 9 }
 0x579   : > { %v13136_v63 = vcombine.low %v6231_v6, %v6235_v25  ;;  %7919 = vmatprep.subr.bf16.mxu0 %v15247_v30 }
 0x57a   : > { %7556 = vmatpush1.bf16.msra.mxu1 %v15196_v48  ;;  %v6238_v48 = vrot.slane %v6193_v62, 5 }
 0x57b   : > { %7557 = vmatprep.subr.bf16.mxu1 %v15202_v11 }
 0x57c   : > { %v6239_v11 = vsel %vm16956_vm2, %v13104_v39, %v6238_v48  ;;  %7920 = vmatpush1.bf16.msra.mxu0 %v15245_v31 }
 0x57d   : > { %7535 = vmatmul.mubr.bf16.gmra.mrb[60].mxu1 %v13129_v42  ;;  %v13137_v24 = vcombine.low %v6239_v11, %v6243_v34  ;;  %v15250_v42 = vld [vmem:[#allocation12 + $0x3e4] ss:$8 sps:$4 sm:$0xff]  }
 0x57e   : > { %7558 = vmatpush1.bf16.msra.mxu1 %v15200_v35  ;;  %7577 = vmatprep.mubr.bf16.mxu1 %v17529_v46  ;;  %v15248_v35 = vld [vmem:[#allocation12 + $0x3e0] ss:$8 sps:$4 sm:$0xff]  }
 0x57f   : > { %7559 = vmatprep.subr.bf16.mxu1 %v15205_v41  ;;  %7921 = vmatprep.subr.bf16.mxu0 %v15250_v42  ;;  %v15280_v41 = vld [vmem:[#allocation12 + $0x404] ss:$8 sps:$4 sm:$0xff]   ;;  %v15254_v42 = vld [vmem:[#allocation10] ss:$8 sps:$4 sm:$0xff]  }
 0x580   : > { %7922 = vmatpush1.bf16.msra.mxu0 %v15248_v35 }
 0x581   : > { %7923 = vmatprep.subr.bf16.mxu0 %v15253_v28 }
 0x582   : > { %7560 = vmatpush1.bf16.msra.mxu1 %v15203_v16  ;;  %v15283_v16 = vld [vmem:[#allocation12 + $0x414] ss:$8 sps:$4 sm:$0xff]  }
 0x583   : > { %8370 = vmatprep.subr.bf16.mxu1 %v15280_v41 }
 0x584   : > { %7924 = vmatpush1.bf16.msra.mxu0 %v15251_v43 }
 0x585   : > { %7578 = vmatmul.mubr.bf16.vlgmr.msra.gmra.mrb[48].mxu1 %v13134_v12  ;;  %8102 = vmatprep.subr.bf16.mxu0 %v15256_v55  ;;  %v15290_v12 = vld [vmem:[#allocation12 + $0x440] ss:$8 sps:$4 sm:$0xff]   ;;  %v15259_v55 = vld [vmem:[#allocation10 + $0x14] ss:$8 sps:$4 sm:$0xff]  }
 0x586   : > { %7587 = vmatprep.mubr.bf16.mxu1 %v17529_v46  ;;  %8371 = vmatpush1.bf16.msra.mxu1 %v15278_v51 }
 0x587   : > { %8372 = vmatprep.subr.bf16.mxu1 %v15283_v16  ;;  %v7997_v16 = vrot.slane %v17056_v17, 4 }
 0x589   : > { %v7998_v15 = vadd.f32 %v7997_v16, %v17056_v17 }
 0x58a   : > { %8373 = vmatpush1.bf16.msra.mxu1 %v15281_v27 }
 0x58b   : > { %8374 = vmatprep.subr.bf16.mxu1 %v15286_v10 }
 0x58d   : > { %7588 = vmatmul.mubr.bf16.gmra.mrb[52].mxu1 %v13135_v60 }
 0x58e   : > { %7597 = vmatprep.mubr.bf16.mxu1 %v17529_v46  ;;  %8375 = vmatpush1.bf16.msra.mxu1 %v15284_v29  ;;  %v15257_v29 = vld [vmem:[#allocation10 + $0x10] ss:$8 sps:$4 sm:$0xff]  }
 0x58f   : > { %8376 = vmatprep.subr.bf16.mxu1 %v15289_v52 }
 0x592   : > { %8377 = vmatpush1.bf16.msra.mxu1 %v15287_v0 }
 0x593   : > { %8378 = vmatprep.subr.bf16.mxu1 %v15292_v32  ;;  %v15262_v32 = vld [vmem:[#allocation10 + $0x24] ss:$8 sps:$4 sm:$0xff]  }
 0x595   : > { %7598 = vmatmul.mubr.bf16.gmra.mrb[56].mxu1 %v13136_v63 }
 0x596   : > { %7607 = vmatprep.mubr.bf16.mxu1 %v17529_v46  ;;  %8379 = vmatpush1.bf16.msra.mxu1 %v15290_v12 }
 0x597   : > { %8380 = vmatprep.subr.bf16.mxu1 %v15295_v53 }
 0x59a   : > { %8381 = vmatpush1.bf16.msra.mxu1 %v15293_v21 }
 0x59d   : > { %7608 = vmatmul.mubr.bf16.gmra.mrb[60].mxu1 %v13137_v24 }
 0x658   : > { %v7579_v22 = vpop.f32.mrb[48].mxu1 }
 0x659   : > { %v7631_v20 = vmul.f32 %v17552_v2, %v7579_v22  ;;  %v7581_v60 = vpop.f32.mrb[49].mxu1 }
 0x65a   : > { %v7632_v54 = vmul.f32 %v17555_v50, %v7581_v60  ;;  %v7583_v49 = vpop.f32.mrb[50].mxu1 }
 0x65b   : > { %v7660_v4 = vadd.f32 %v17558_v18, %v7631_v20  ;;  %v7633_v23 = vmul.f32 %v17552_v2, %v7583_v49  ;;  %v7585_v6 = vpop.f32.mrb[51].mxu1 }
 0x65c   : > { %v7661_v25 = vadd.f32 %v17561_v19, %v7632_v54  ;;  %v7634_v56 = vmul.f32 %v17555_v50, %v7585_v6 }
 0x65d   : > { %v7662_v62 = vadd.f32 %v17558_v18, %v7633_v23  ;;  %v7676_v58 = vmax.f32 %v7660_v4, 0.0  ;;  %v15260_v4 = vld [vmem:[#allocation10 + $0x20] ss:$8 sps:$4 sm:$0xff]  }
 0x65e   : > { %v7663_v8 = vadd.f32 %v17561_v19, %v7634_v56  ;;  %v7677_v39 = vmax.f32 %v7661_v25, 0.0  ;;  %v15265_v56 = vld [vmem:[#allocation10 + $0x34] ss:$8 sps:$4 sm:$0xff]  }
 0x65f   : > { %v7678_v63 = vmax.f32 %v7662_v62, 0.0 }
 0x660   : > { %v7679_v48 = vmax.f32 %v7663_v8, 0.0  ;;  %v7589_v1 = vpop.f32.mrb[52].mxu1  ;;  %v7999_v8 = vrot.slane %v7998_v15, 2 }
 0x661   : > { %v7692_v9 = vpack.c.bf16 %v7678_v63, %v7676_v58  ;;  %v7635_v11 = vmul.f32 %v17552_v2, %v7589_v1  ;;  %v7591_v34 = vpop.f32.mrb[53].mxu1 }
 0x662   : > { %v7636_v24 = vmul.f32 %v17555_v50, %v7591_v34  ;;  %v7593_v30 = vpop.f32.mrb[54].mxu1  ;;  %v7693_v31 = vpack.c.bf16 %v7679_v48, %v7677_v39  ;;  %v15263_v39 = vld [vmem:[#allocation10 + $0x30] ss:$8 sps:$4 sm:$0xff]  }
 0x663   : > { %v7664_v35 = vadd.f32 %v17558_v18, %v7635_v11  ;;  %v7637_v28 = vmul.f32 %v17552_v2, %v7593_v30  ;;  %v7595_v43 = vpop.f32.mrb[55].mxu1  ;;  %v8000_v30 = vadd.f32 %v7999_v8, %v7998_v15  ;;  %v15305_v8 = vld [vmem:[#allocation12 + $0x490] ss:$8 sps:$4 sm:$0xff]  }
 0x664   : > { %v7665_v51 = vadd.f32 %v17561_v19, %v7636_v24  ;;  %v7638_v41 = vmul.f32 %v17555_v50, %v7595_v43  ;;  %7925 = vmatprep.mubr.bf16.mxu0 %v7693_v31 }
 0x665   : > { %v7666_v27 = vadd.f32 %v17558_v18, %v7637_v28  ;;  %7926 = vmatmul.mubr.bf16.vlgmr.msra.gmra.mrb[32].mxu0 %v7692_v9  ;;  %v7680_v52 = vmax.f32 %v7664_v35, 0.0  ;;  %v15268_v9 = vld [vmem:[#allocation10 + $0x44] ss:$8 sps:$4 sm:$0xff]  }
 0x666   : > { %v7667_v10 = vadd.f32 %v17561_v19, %v7638_v41  ;;  %8103 = vmatpush1.bf16.msra.mxu0 %v15254_v42  ;;  %v7681_v12 = vmax.f32 %v7665_v51, 0.0  ;;  %v15266_v51 = vld [vmem:[#allocation10 + $0x40] ss:$8 sps:$4 sm:$0xff]  }
 0x667   : > { %v7682_v0 = vmax.f32 %v7666_v27, 0.0  ;;  %8104 = vmatprep.subr.bf16.mxu0 %v15259_v55 }
 0x668   : > { %v7683_v53 = vmax.f32 %v7667_v10, 0.0  ;;  %v7599_v21 = vpop.f32.mrb[56].mxu1  ;;  %v15271_v10 = vld [vmem:[#allocation10 + $0x54] ss:$8 sps:$4 sm:$0xff]  }
 0x669   : > { %v7639_v37 = vmul.f32 %v17552_v2, %v7599_v21  ;;  %v7601_v22 = vpop.f32.mrb[57].mxu1  ;;  %v7694_v20 = vpack.c.bf16 %v7682_v0, %v7680_v52  ;;  %v8001_v0 = vrot.slane %v8000_v30, 1 }
 0x66a   : > { %v7640_v60 = vmul.f32 %v17555_v50, %v7601_v22  ;;  %v7603_v54 = vpop.f32.mrb[58].mxu1  ;;  %8105 = vmatpush1.bf16.msra.mxu0 %v15257_v29  ;;  %v7695_v49 = vpack.c.bf16 %v7683_v53, %v7681_v12  ;;  %v15269_v53 = vld [vmem:[#allocation10 + $0x50] ss:$8 sps:$4 sm:$0xff]  }
 0x66b   : > { %v7668_v23 = vadd.f32 %v17558_v18, %v7639_v37  ;;  %v7641_v6 = vmul.f32 %v17552_v2, %v7603_v54  ;;  %v7605_v25 = vpop.f32.mrb[59].mxu1  ;;  %8106 = vmatprep.subr.bf16.mxu0 %v15262_v32 }
 0x66c   : > { %v7669_v62 = vadd.f32 %v17561_v19, %v7640_v60  ;;  %v7642_v17 = vmul.f32 %v17555_v50, %v7605_v25  ;;  %7935 = vmatprep.mubr.bf16.mxu0 %v7695_v49  ;;  %v8002_v60 = vadd.f32 %v8001_v0, %v8000_v30  ;;  %v15277_v49 = vld [vmem:[#allocation10 + $0x74] ss:$8 sps:$4 sm:$0xff]   ;;  %v15299_v25 = vld [vmem:[#allocation12 + $0x470] ss:$8 sps:$4 sm:$0xff]   ;;  %v15322_v30 = vld [vmem:[#allocation12 + $0x4e4] ss:$8 sps:$4 sm:$0xff]  }
 0x66d   : > { %v7670_v58 = vadd.f32 %v17558_v18, %v7641_v6  ;;  %7936 = vmatmul.mubr.bf16.gmra.mrb[36].mxu0 %v7694_v20  ;;  %v7684_v48 = vmax.f32 %v7668_v23, 0.0  ;;  %v15298_v23 = vld [vmem:[#allocation12 + $0x464] ss:$8 sps:$4 sm:$0xff]   ;;  %v15296_v6 = vld [vmem:[#allocation12 + $0x460] ss:$8 sps:$4 sm:$0xff]  }
 0x66e   : > { %v7671_v63 = vadd.f32 %v17561_v19, %v7642_v17  ;;  %8107 = vmatpush1.bf16.msra.mxu0 %v15260_v4  ;;  %v7685_v11 = vmax.f32 %v7669_v62, 0.0  ;;  %8382 = vmatprep.subr.bf16.mxu1 %v15298_v23  ;;  %v15304_v62 = vld [vmem:[#allocation12 + $0x484] ss:$8 sps:$4 sm:$0xff]   ;;  %v15302_v17 = vld [vmem:[#allocation12 + $0x480] ss:$8 sps:$4 sm:$0xff]  }
 0x66f   : > { %v7686_v1 = vmax.f32 %v7670_v58, 0.0  ;;  %8108 = vmatprep.subr.bf16.mxu0 %v15265_v56  ;;  %8383 = vmatpush1.bf16.msra.mxu1 %v15296_v6  ;;  %v15301_v56 = vld [vmem:[#allocation12 + $0x474] ss:$8 sps:$4 sm:$0xff]  }
 0x670   : > { %v7687_v34 = vmax.f32 %v7671_v63, 0.0  ;;  %v7609_v24 = vpop.f32.mrb[60].mxu1  ;;  %8384 = vmatprep.subr.bf16.mxu1 %v15301_v56  ;;  %v15307_v58 = vld [vmem:[#allocation12 + $0x494] ss:$8 sps:$4 sm:$0xff]   ;;  %v15310_v63 = vld [vmem:[#allocation12 + $0x4a4] ss:$8 sps:$4 sm:$0xff]  }
 0x671   : > { %v7643_v31 = vmul.f32 %v17552_v2, %v7609_v24  ;;  %v7611_v42 = vpop.f32.mrb[61].mxu1  ;;  %v7696_v35 = vpack.c.bf16 %v7686_v1, %v7684_v48  ;;  %v15311_v48 = vld [vmem:[#allocation12 + $0x4b0] ss:$8 sps:$4 sm:$0xff]   ;;  %v15313_v1 = vld [vmem:[#allocation12 + $0x4b4] ss:$8 sps:$4 sm:$0xff]  }
 0x672   : > { %v7644_v28 = vmul.f32 %v17555_v50, %v7611_v42  ;;  %v7613_v43 = vpop.f32.mrb[62].mxu1  ;;  %8109 = vmatpush1.bf16.msra.mxu0 %v15263_v39  ;;  %v7697_v55 = vpack.c.bf16 %v7687_v34, %v7685_v11  ;;  %v15308_v39 = vld [vmem:[#allocation12 + $0x4a0] ss:$8 sps:$4 sm:$0xff]   ;;  %v15317_v34 = vld [vmem:[#allocation12 + $0x4d0] ss:$8 sps:$4 sm:$0xff]  }
 0x673   : > { %v7672_v41 = vadd.f32 %v17558_v18, %v7643_v31  ;;  %v7645_v16 = vmul.f32 %v17552_v2, %v7613_v43  ;;  %v7615_v27 = vpop.f32.mrb[63].mxu1  ;;  %8110 = vmatprep.subr.bf16.mxu0 %v15268_v9  ;;  %v15274_v2 = vld [vmem:[#allocation10 + $0x64] ss:$8 sps:$4 sm:$0xff]   ;;  %8385 = vmatpush1.bf16.msra.mxu1 %v15299_v25  ;;  %v15314_v11 = vld [vmem:[#allocation12 + $0x4c0] ss:$8 sps:$4 sm:$0xff]  }
 0x674   : > { %v7673_v29 = vadd.f32 %v17561_v19, %v7644_v28  ;;  %v7646_v52 = vmul.f32 %v17555_v50, %v7615_v27  ;;  %7945 = vmatprep.mubr.bf16.mxu0 %v7697_v55  ;;  %v15272_v50 = vld [vmem:[#allocation10 + $0x60] ss:$8 sps:$4 sm:$0xff]   ;;  %8386 = vmatprep.subr.bf16.mxu1 %v15304_v62  ;;  %v15316_v9 = vld [vmem:[#allocation12 + $0x4c4] ss:$8 sps:$4 sm:$0xff]   ;;  %v15319_v24 = vld [vmem:[#allocation12 + $0x4d4] ss:$8 sps:$4 sm:$0xff]  }
 0x675   : > { %v7674_v32 = vadd.f32 %v17558_v18, %v7645_v16  ;;  %7946 = vmatmul.mubr.bf16.gmra.mrb[40].mxu0 %v7696_v35  ;;  %v7688_v21 = vmax.f32 %v7672_v41, 0.0  ;;  %v8004_v18 = vmul.f32 0.015625, %v8002_v60  ;;  %v15320_v31 = vld [vmem:[#allocation12 + $0x4e0] ss:$8 sps:$4 sm:$0xff]   ;;  %v15325_v42 = vld [vmem:[#allocation12 + $0x4f4] ss:$8 sps:$4 sm:$0xff]  }
 0x676   : > { %v7675_v12 = vadd.f32 %v17561_v19, %v7646_v52  ;;  %8111 = vmatpush1.bf16.msra.mxu0 %v15266_v51  ;;  %v7689_v37 = vmax.f32 %v7673_v29, 0.0  ;;  %v15275_v19 = vld [vmem:[#allocation10 + $0x70] ss:$8 sps:$4 sm:$0xff]   ;;  %v15326_v28 = vld [vmem:[#allocation16] ss:$8 sps:$4 sm:$0xff]  }
 0x677   : > { %v7690_v15 = vmax.f32 %v7674_v32, 0.0  ;;  %8112 = vmatprep.subr.bf16.mxu0 %v15271_v10  ;;  %v8005_v4 = vpack.c.bf16 %v8004_v18, %v8004_v18  ;;  %8387 = vmatpush1.bf16.msra.mxu1 %v15302_v17  ;;  %v15323_v35 = vld [vmem:[#allocation12 + $0x4f0] ss:$8 sps:$4 sm:$0xff]   ;;  %v15328_v43 = vld [vmem:[#allocation16 + $0x4] ss:$8 sps:$4 sm:$0xff]  }
 0x678   : > { %v7691_v22 = vmax.f32 %v7675_v12, 0.0  ;;  %8388 = vmatprep.subr.bf16.mxu1 %v15307_v58  ;;  %v15331_v55 = vld [vmem:[#allocation16 + $0x14] ss:$8 sps:$4 sm:$0xff]   ;;  %v15329_v51 = vld [vmem:[#allocation16 + $0x10] ss:$8 sps:$4 sm:$0xff]  }
 0x679   : > { %v7698_v20 = vpack.c.bf16 %v7690_v15, %v7688_v21  ;;  %v15334_v41 = vld [vmem:[#allocation16 + $0x24] ss:$8 sps:$4 sm:$0xff]   ;;  %v15332_v16 = vld [vmem:[#allocation16 + $0x20] ss:$8 sps:$4 sm:$0xff]   ;;  %v15337_v27 = vld [vmem:[#allocation16 + $0x34] ss:$8 sps:$4 sm:$0xff]  }
 0x67a   : > { %8113 = vmatpush1.bf16.msra.mxu0 %v15269_v53  ;;  %v7699_v54 = vpack.c.bf16 %v7691_v22, %v7689_v37  ;;  %v15335_v10 = vld [vmem:[#allocation16 + $0x30] ss:$8 sps:$4 sm:$0xff]   ;;  %v15340_v29 = vld [vmem:[#allocation16 + $0x44] ss:$8 sps:$4 sm:$0xff]   ;;  %v15338_v52 = vld [vmem:[#allocation16 + $0x40] ss:$8 sps:$4 sm:$0xff]  }
 0x67b   : > { %8114 = vmatprep.subr.bf16.mxu0 %v15274_v2  ;;  %8389 = vmatpush1.bf16.msra.mxu1 %v15305_v8  ;;  %v15343_v0 = vld [vmem:[#allocation16 + $0x54] ss:$8 sps:$4 sm:$0xff]   ;;  %v15341_v32 = vld [vmem:[#allocation16 + $0x50] ss:$8 sps:$4 sm:$0xff]   ;;  %v15346_v12 = vld [vmem:[#allocation16 + $0x64] ss:$8 sps:$4 sm:$0xff]  }
 0x67c   : > { %7955 = vmatprep.mubr.bf16.mxu0 %v7699_v54  ;;  %8390 = vmatprep.subr.bf16.mxu1 %v15310_v63  ;;  %v15344_v53 = vld [vmem:[#allocation16 + $0x60] ss:$8 sps:$4 sm:$0xff]   ;;  %v15349_v21 = vld [vmem:[#allocation16 + $0x74] ss:$8 sps:$4 sm:$0xff]   ;;  %v15347_v15 = vld [vmem:[#allocation16 + $0x70] ss:$8 sps:$4 sm:$0xff]  }
 0x67d   : > { %7956 = vmatmul.mubr.bf16.gmra.mrb[44].mxu0 %v7698_v20  ;;  %v15352_v2 = vld [vmem:[#allocation16 + $0x84] ss:$8 sps:$4 sm:$0xff]   ;;  %v15350_v37 = vld [vmem:[#allocation16 + $0x80] ss:$8 sps:$4 sm:$0xff]  }
 0x67e   : > { %8115 = vmatpush1.bf16.msra.mxu0 %v15272_v50  ;;  %8134 = vmatprep.mubr.bf16.mxu0 %v17529_v46 }
 0x67f   : > { %8116 = vmatprep.subr.bf16.mxu0 %v15277_v49  ;;  %8391 = vmatpush1.bf16.msra.mxu1 %v15308_v39 }
 0x680   : > { %8392 = vmatprep.subr.bf16.mxu1 %v15313_v1 }
 0x682   : > { %8117 = vmatpush1.bf16.msra.mxu0 %v15275_v19 }
 0x683   : > { %8393 = vmatpush1.bf16.msra.mxu1 %v15311_v48  ;;  %11322 = vmatprep.subr.bf16.mxu0 %v15328_v43  ;;  %v18625_v48 = vld [vmem:[#allocation37_spill] sm:$0xff] }
 0x684   : > { %8394 = vmatprep.subr.bf16.mxu1 %v15316_v9  ;;  %v8144_v9 = vld [vmem:[#allocation13 + $0x4] ss:$8 sm:$0x3] }
 0x685   : > { %8135 = vmatmul.mubr.bf16.vlgmr.msra.gmra.mrb[48].mxu0 %v8005_v4 }
 0x686   : > { %11323 = vmatpush1.bf16.msra.mxu0 %v15326_v28 }
 0x687   : > { %8395 = vmatpush1.bf16.msra.mxu1 %v15314_v11  ;;  %11324 = vmatprep.subr.bf16.mxu0 %v15331_v55 }
 0x688   : > { %8396 = vmatprep.subr.bf16.mxu1 %v15319_v24 }
 0x68a   : > { %11325 = vmatpush1.bf16.msra.mxu0 %v15329_v51 }
 0x68b   : > { %8397 = vmatpush1.bf16.msra.mxu1 %v15317_v34  ;;  %11326 = vmatprep.subr.bf16.mxu0 %v15334_v41 }
 0x68c   : > { %8398 = vmatprep.subr.bf16.mxu1 %v15322_v30  ;;  %v8159_v30 = vld [vmem:[#allocation15 + $0x4] ss:$8 sm:$0x3] }
 0x68e   : > { %11327 = vmatpush1.bf16.msra.mxu0 %v15332_v16 }
 0x68f   : > { %8399 = vmatpush1.bf16.msra.mxu1 %v15320_v31  ;;  %11328 = vmatprep.subr.bf16.mxu0 %v15337_v27  ;;  %v8153_v31 = vrot.slane %v8144_v9, %v17105_v14 }
 0x690   : > { %8400 = vmatprep.subr.bf16.mxu1 %v15325_v42 }
 0x692   : > { %11329 = vmatpush1.bf16.msra.mxu0 %v15335_v10 }
 0x693   : > { %8401 = vmatpush1.bf16.msra.mxu1 %v15323_v35  ;;  %11330 = vmatprep.subr.bf16.mxu0 %v15340_v29  ;;  %v8168_v35 = vrot.slane %v8159_v30, %v17105_v14 }
 0x696   : > { %11331 = vmatpush1.bf16.msra.mxu0 %v15338_v52 }
 0x697   : > { %11332 = vmatprep.subr.bf16.mxu0 %v15343_v0 }
 0x69a   : > { %11333 = vmatpush1.bf16.msra.mxu0 %v15341_v32  ;;  %v15355_v32 = vld [vmem:[#allocation16 + $0x94] ss:$8 sps:$4 sm:$0xff]  }
 0x69b   : > { %11334 = vmatprep.subr.bf16.mxu0 %v15346_v12  ;;  %v15353_v12 = vld [vmem:[#allocation16 + $0x90] ss:$8 sps:$4 sm:$0xff]  }
 0x69e   : > { %11335 = vmatpush1.bf16.msra.mxu0 %v15344_v53  ;;  %v15358_v53 = vld [vmem:[#allocation16 + $0xa4] ss:$8 sps:$4 sm:$0xff]  }
 0x69f   : > { %11336 = vmatprep.subr.bf16.mxu0 %v15349_v21  ;;  %v15356_v21 = vld [vmem:[#allocation16 + $0xa0] ss:$8 sps:$4 sm:$0xff]  }
 0x6a2   : > { %11337 = vmatpush1.bf16.msra.mxu0 %v15347_v15  ;;  %v15361_v15 = vld [vmem:[#allocation16 + $0xb4] ss:$8 sps:$4 sm:$0xff]  }
 0x6a3   : > { %11338 = vmatprep.subr.bf16.mxu0 %v15352_v2  ;;  %v15359_v2 = vld [vmem:[#allocation16 + $0xb0] ss:$8 sps:$4 sm:$0xff]  }
 0x6a6   : > { %11339 = vmatpush1.bf16.msra.mxu0 %v15350_v37  ;;  %v15364_v37 = vld [vmem:[#allocation16 + $0xc4] ss:$8 sps:$4 sm:$0xff]  }
 0x6a7   : > { %11340 = vmatprep.subr.bf16.mxu0 %v15355_v32 }
 0x6aa   : > { %11341 = vmatpush1.bf16.msra.mxu0 %v15353_v12 }
 0x6ab   : > { %11342 = vmatprep.subr.bf16.mxu0 %v15358_v53 }
 0x6ae   : > { %11343 = vmatpush1.bf16.msra.mxu0 %v15356_v21 }
 0x6af   : > { %11344 = vmatprep.subr.bf16.mxu0 %v15361_v15 }
 0x6b2   : > { %11345 = vmatpush1.bf16.msra.mxu0 %v15359_v2 }
 0x6b3   : > { %11346 = vmatprep.subr.bf16.mxu0 %v15364_v37 }
 0x738   : > { %v7927_v22 = vpop.f32.mrb[32].mxu0 }
 0x739   : > { %v17599_v20 = vadd.f32 %v7927_v22, %v17345_v44  ;;  %v7929_v60 = vpop.f32.mrb[33].mxu0  ;;  %v15362_v22 = vld [vmem:[#allocation16 + $0xc0] ss:$8 sps:$4 sm:$0xff]  }
 0x73a   : > { %v17602_v54 = vadd.f32 %v7929_v60, %v17347_v45  ;;  %v7931_v50 = vpop.f32.mrb[34].mxu0  ;;  %11347 = vmatpush1.bf16.msra.mxu0 %v15362_v22  ;;  %v15367_v60 = vld [vmem:[#allocation16 + $0xd4] ss:$8 sps:$4 sm:$0xff]  }
 0x73b   : > { %v17605_v49 = vadd.f32 %v7931_v50, %v17349_v47  ;;  %v7933_v18 = vpop.f32.mrb[35].mxu0  ;;  %v15365_v50 = vld [vmem:[#allocation16 + $0xd0] ss:$8 sps:$4 sm:$0xff]   ;;  %11348 = vmatprep.subr.bf16.mxu0 %v15367_v60 }
 0x73c   : > { %v17608_v19 = vadd.f32 %v7933_v18, %v17351_v33  ;;  %v15370_v18 = vld [vmem:[#allocation16 + $0xe4] ss:$8 sps:$4 sm:$0xff]  }
 0x73e   : > { %11349 = vmatpush1.bf16.msra.mxu0 %v15365_v50 }
 0x73f   : > { %11350 = vmatprep.subr.bf16.mxu0 %v15370_v18 }
 0x740   : > { %v7937_v4 = vpop.f32.mrb[36].mxu0 }
 0x741   : > { %v17611_v23 = vadd.f32 %v7937_v4, %v17359_v57  ;;  %v7939_v6 = vpop.f32.mrb[37].mxu0  ;;  %v15368_v4 = vld [vmem:[#allocation16 + $0xe0] ss:$8 sps:$4 sm:$0xff]  }
 0x742   : > { %v17614_v44 = vadd.f32 %v7939_v6, %v17363_v59  ;;  %v7941_v25 = vpop.f32.mrb[38].mxu0  ;;  %11351 = vmatpush1.bf16.msra.mxu0 %v15368_v4  ;;  %v15373_v6 = vld [vmem:[#allocation16 + $0xf4] ss:$8 sps:$4 sm:$0xff]  }
 0x743   : > { %v17617_v45 = vadd.f32 %v7941_v25, %v17365_v36  ;;  %v7943_v56 = vpop.f32.mrb[39].mxu0  ;;  %v15371_v25 = vld [vmem:[#allocation16 + $0xf0] ss:$8 sps:$4 sm:$0xff]   ;;  %11352 = vmatprep.subr.bf16.mxu0 %v15373_v6 }
 0x744   : > { %v17620_v47 = vadd.f32 %v7943_v56, %v17367_v26  ;;  %v15376_v56 = vld [vmem:[#allocation16 + $0x104] ss:$8 sps:$4 sm:$0xff]  }
 0x746   : > { %11353 = vmatpush1.bf16.msra.mxu0 %v15371_v25 }
 0x747   : > { %11395 = vmatprep.subr.bf16.mxu0 %v15376_v56 }
 0x748   : > { %v7947_v62 = vpop.f32.mrb[40].mxu0 }
 0x749   : > { %v17623_v33 = vadd.f32 %v7947_v62, %v17375_v3  ;;  %v7949_v17 = vpop.f32.mrb[41].mxu0  ;;  %v8746_v62 = vshrl.u32 %v17529_v46, 16 }
 0x74a   : > { %v17626_v57 = vadd.f32 %v7949_v17, %v17379_v5  ;;  %v7951_v8 = vpop.f32.mrb[42].mxu0  ;;  %v18626_v5 = vld [vmem:[#allocation38_spill] sm:$0xff]  ;;  %v8749_v17 = vshll.u32 %v17529_v46, 16 }
 0x74b   : > { %v17629_v59 = vadd.f32 %v7951_v8, %v17381_v40  ;;  %v7953_v58 = vpop.f32.mrb[43].mxu0  ;;  %v18627_v40 = vld [vmem:[#allocation39_spill] sm:$0xff]  ;;  %v8748_v8 = vrot.slane %v8746_v62, 4 }
 0x74c   : > { %v17632_v36 = vadd.f32 %v7953_v58, %v17383_v7  ;;  %v8149_v7 = vrot.slane %v8144_v9, %v17103_v13  ;;  %v8751_v58 = vrot.slane %v8749_v17, 5  ;;  %v8465_v9 = vld [vmem:[#allocation15 + $0x5] ss:$8 sm:$0x3] }
 0x750   : > { %v7957_v63 = vpop.f32.mrb[44].mxu0 }
 0x751   : > { %v17635_v26 = vadd.f32 %v7957_v63, %v17391_v61  ;;  %v7959_v39 = vpop.f32.mrb[45].mxu0  ;;  %v8164_v61 = vrot.slane %v8159_v30, %v17103_v13  ;;  %v17652_v63 = vld [vmem:[#allocation3 + $0x8] sm:$0x11]  ;;  %v17659_v30 = vld [vmem:[#allocation3] sm:$0xee] }
 0x752   : > { %v17638_v3 = vadd.f32 %v7959_v39, %v18625_v48  ;;  %v7961_v1 = vpop.f32.mrb[46].mxu0  ;;  %v8752_v39 = vor.u32 %v8751_v58, %v8748_v8  ;;  %v8755_v48 = vshll.u32 %v17652_v63, 16 }
 0x753   : > { %v17641_v11 = vadd.f32 %v7961_v1, %v18626_v5  ;;  %v7963_v34 = vpop.f32.mrb[47].mxu0  ;;  %v8436_v1 = vld [vmem:[#allocation13 + $0x5] ss:$8 sm:$0x3] }
 0x754   : > { %v17644_v24 = vadd.f32 %v7963_v34, %v18627_v40  ;;  %v8753_v5 = vrot.slane %v8752_v39, 4  ;;  %v8757_v34 = vrot.slane %v8755_v48, 5  ;;  %v18628_v40 = vmov 0 }
 0x755   : > { %v18629_v40 = vsel %vm17655_vm11, 4294967295, %v18628_v40 }
 0x756   : > { %18630 = vst [vmem:[#allocation37_spill] sm:$0xff] %v18629_v40 }
 0x758   : > { %v8136_v42 = vpop.f32.mrb[48].mxu0 }
 0x759   : > { %v8156_v28 = vmul.f32 %v8149_v7, %v8136_v42  ;;  %v8138_v43 = vpop.f32.mrb[49].mxu0  ;;  %v8470_v42 = vrot.slane %v8465_v9, %v17103_v13 }
 0x75a   : > { %v8157_v55 = vmul.f32 %v8153_v31, %v8138_v43  ;;  %v8140_v51 = vpop.f32.mrb[50].mxu0  ;;  %v8441_v31 = vrot.slane %v8436_v1, %v17103_v13  ;;  %v17666_v43 = vrot.slane %v8465_v9, %v17105_v14 }
 0x75b   : > { %v8171_v41 = vadd.f32 %v8164_v61, %v8156_v28  ;;  %v8141_v16 = vpop.f32.mrb[51].mxu0  ;;  %v8445_v28 = vrot.slane %v8436_v1, %v17105_v14 }
 0x75c   : > { %v8172_v27 = vadd.f32 %v8168_v35, %v8157_v55  ;;  %v13370_v16 = vrot.slane %v17659_v30, 9 }
 0x75d   : > { %v8173_v10 = vmax.f32 %v8171_v41, 0.0  ;;  %v17671_v41 = vsel %vm17655_vm11, %v8753_v5, %v8757_v34 }
 0x75e   : > { %v8174_v29 = vmax.f32 %v8172_v27, 0.0  ;;  %v8883_v27 = vrot.slane %v17652_v63, 5 }
 0x75f   : > { %v8175_v0 = vpack.c.bf16 %v8173_v10, %v8173_v10 }
 0x760   : > { %v8176_v52 = vpack.c.bf16 %v8174_v29, %v8174_v29 }
 0x762   : > { %8402 = vmatprep.mubr.bf16.mxu1 %v8176_v52 }
 0x763   : > { %8403 = vmatmul.mubr.bf16.vlgmr.msra.gmra.mrb[64].mxu1 %v8175_v0 }
 0x836   : > { %v8404_v7 = vpop.f32.mrb[64].mxu1 }
 0x837   : > { %v8414_v61 = vrot.slane %v8404_v7, %v17103_v13  ;;  %v8406_v35 = vpop.f32.mrb[65].mxu1 }
 0x838   : > { %v8418_v55 = vrot.slane %v8406_v35, %v17103_v13  ;;  %v8408_v51 = vpop.f32.mrb[66].mxu1 }
 0x839   : > { %v8419_v10 = vadd.f32 %v17599_v20, %v8414_v61  ;;  %v8421_v29 = vadd.f32 %v17605_v49, %v8414_v61  ;;  %v8423_v52 = vadd.f32 %v17611_v23, %v8414_v61  ;;  %v8425_v0 = vadd.f32 %v17617_v45, %v8414_v61  ;;  %v8409_v32 = vpop.f32.mrb[67].mxu1 }
 0x83a   : > { %v8427_v12 = vadd.f32 %v17623_v33, %v8414_v61  ;;  %v8429_v53 = vadd.f32 %v17629_v59, %v8414_v61  ;;  %v8431_v21 = vadd.f32 %v17635_v26, %v8414_v61  ;;  %v8433_v15 = vadd.f32 %v17641_v11, %v8414_v61 }
 0x83b   : > { %v8448_v2 = vmul.f32 %v8441_v31, %v8419_v10  ;;  %v8450_v37 = vmul.f32 %v8441_v31, %v8421_v29  ;;  %v8452_v22 = vmul.f32 %v8441_v31, %v8423_v52  ;;  %v8454_v60 = vmul.f32 %v8441_v31, %v8425_v0 }
 0x83c   : > { %v8456_v20 = vmul.f32 %v8441_v31, %v8427_v12  ;;  %v8458_v50 = vmul.f32 %v8441_v31, %v8429_v53  ;;  %v8460_v49 = vmul.f32 %v8441_v31, %v8431_v21  ;;  %v8462_v18 = vmul.f32 %v8441_v31, %v8433_v15 }
 0x83d   : > { %v8477_v23 = vadd.f32 %v8470_v42, %v8448_v2  ;;  %v8479_v4 = vadd.f32 %v8470_v42, %v8450_v37  ;;  %v8481_v45 = vadd.f32 %v8470_v42, %v8452_v22  ;;  %v8483_v6 = vadd.f32 %v8470_v42, %v8454_v60 }
 0x83e   : > { %v8485_v25 = vadd.f32 %v8470_v42, %v8456_v20  ;;  %v8487_v33 = vadd.f32 %v8470_v42, %v8458_v50  ;;  %v8489_v56 = vadd.f32 %v8470_v42, %v8460_v49  ;;  %v8491_v59 = vadd.f32 %v8470_v42, %v8462_v18 }
 0x83f   : > { %v8493_v62 = vmax.f32 %v8477_v23, 0.0  ;;  %v8495_v26 = vmax.f32 %v8479_v4, 0.0  ;;  %v8497_v17 = vmax.f32 %v8481_v45, 0.0  ;;  %v8499_v11 = vmax.f32 %v8483_v6, 0.0 }
 0x840   : > { %v8501_v8 = vmax.f32 %v8485_v25, 0.0  ;;  %v8503_v58 = vmax.f32 %v8487_v33, 0.0  ;;  %v8505_v39 = vmax.f32 %v8489_v56, 0.0  ;;  %v8507_v48 = vmax.f32 %v8491_v59, 0.0 }
 0x841   : > { %v8420_v1 = vadd.f32 %v17602_v54, %v8418_v55  ;;  %v8422_v9 = vadd.f32 %v17608_v19, %v8418_v55  ;;  %v8424_v5 = vadd.f32 %v17614_v44, %v8418_v55  ;;  %v8426_v34 = vadd.f32 %v17620_v47, %v8418_v55 }
 0x842   : > { %v8428_v7 = vadd.f32 %v17626_v57, %v8418_v55  ;;  %v8430_v31 = vadd.f32 %v17632_v36, %v8418_v55  ;;  %v8432_v61 = vadd.f32 %v17638_v3, %v8418_v55  ;;  %v8434_v42 = vadd.f32 %v17644_v24, %v8418_v55 }
 0x843   : > { %v8449_v35 = vmul.f32 %v8445_v28, %v8420_v1  ;;  %v8451_v51 = vmul.f32 %v8445_v28, %v8422_v9  ;;  %v8453_v10 = vmul.f32 %v8445_v28, %v8424_v5  ;;  %v8455_v54 = vmul.f32 %v8445_v28, %v8426_v34 }
 0x844   : > { %v8457_v29 = vmul.f32 %v8445_v28, %v8428_v7  ;;  %v8459_v19 = vmul.f32 %v8445_v28, %v8430_v31  ;;  %v8461_v52 = vmul.f32 %v8445_v28, %v8432_v61  ;;  %v8463_v44 = vmul.f32 %v8445_v28, %v8434_v42 }
 0x845   : > { %v8478_v47 = vadd.f32 %v17666_v43, %v8449_v35  ;;  %v8480_v0 = vadd.f32 %v17666_v43, %v8451_v51  ;;  %v8482_v57 = vadd.f32 %v17666_v43, %v8453_v10  ;;  %v8484_v36 = vadd.f32 %v17666_v43, %v8455_v54 }
 0x846   : > { %v8486_v3 = vadd.f32 %v17666_v43, %v8457_v29  ;;  %v8488_v24 = vadd.f32 %v17666_v43, %v8459_v19  ;;  %v8490_v55 = vadd.f32 %v17666_v43, %v8461_v52  ;;  %v8492_v32 = vadd.f32 %v17666_v43, %v8463_v44 }
 0x847   : > { %v8494_v12 = vmax.f32 %v8478_v47, 0.0  ;;  %v8496_v53 = vmax.f32 %v8480_v0, 0.0  ;;  %v8498_v21 = vmax.f32 %v8482_v57, 0.0  ;;  %v8500_v28 = vmax.f32 %v8484_v36, 0.0 }
 0x848   : > { %v8502_v15 = vmax.f32 %v8486_v3, 0.0  ;;  %v8504_v2 = vmax.f32 %v8488_v24, 0.0  ;;  %v8506_v37 = vmax.f32 %v8490_v55, 0.0  ;;  %v8508_v22 = vmax.f32 %v8492_v32, 0.0 }
 0x849   : > { %v13777_v60 = vpack.c.bf16 %v8494_v12, %v8493_v62  ;;  %v13778_v20 = vpack.c.bf16 %v8496_v53, %v8495_v26  ;;  %v13779_v50 = vpack.c.bf16 %v8498_v21, %v8497_v17  ;;  %v13780_v49 = vpack.c.bf16 %v8500_v28, %v8499_v11  ;;  %v17763_v12 = vld [vmem:[#allocation3] sm:$0xff] }
 0x84a   : > { %v13781_v18 = vpack.c.bf16 %v8502_v15, %v8501_v8  ;;  %v13782_v23 = vpack.c.bf16 %v8504_v2, %v8503_v58  ;;  %v13783_v4 = vpack.c.bf16 %v8506_v37, %v8505_v39  ;;  %v13784_v45 = vpack.c.bf16 %v8508_v22, %v8507_v48  ;;  %v15374_v21 = vld [vmem:[#allocation16 + $0x100] ss:$8 sps:$4 sm:$0xff]  }
 0x84b   : > { %v8586_v6 = vshrl.u32 %v13777_v60, 16  ;;  %v8589_v25 = vshll.u32 %v13777_v60, 16  ;;  %v8594_v43 = vshrl.u32 %v13778_v20, 16  ;;  %v17711_v56 = vsel %vm16956_vm2, %v13370_v16, %v8883_v27 }
 0x84c   : > { %v8597_v59 = vshll.u32 %v13778_v20, 16  ;;  %v8602_v62 = vshrl.u32 %v13779_v50, 16  ;;  %v8605_v26 = vshll.u32 %v13779_v50, 16  ;;  %v8610_v17 = vshrl.u32 %v13780_v49, 16  ;;  %v15379_v50 = vld [vmem:[#allocation16 + $0x114] ss:$8 sps:$4 sm:$0xff]  }
 0x84d   : > { %v17715_v11 = vrot.slane %v8586_v6, 7  ;;  %v17717_v8 = vrot.slane %v8594_v43, 7  ;;  %v8613_v58 = vshll.u32 %v13780_v49, 16  ;;  %v8618_v39 = vshrl.u32 %v13781_v18, 16  ;;  %v15377_v6 = vld [vmem:[#allocation16 + $0x110] ss:$8 sps:$4 sm:$0xff]  }
 0x84e   : > { %v17719_v63 = vrot.slane %v8602_v62, 7  ;;  %v17721_v30 = vrot.slane %v8610_v17, 7  ;;  %v8621_v48 = vshll.u32 %v13781_v18, 16  ;;  %v8626_v16 = vshrl.u32 %v13782_v23, 16  ;;  %v8681_v62 = vld [vmem:[#allocation3 + $0x18] sm:$0x11] }
 0x84f   : > { %v8591_v27 = vor.u32 %v8589_v25, %v17715_v11  ;;  %v8592_v1 = vrot.slane %v17715_v11, 4  ;;  %v8599_v9 = vor.u32 %v8597_v59, %v17717_v8  ;;  %v8629_v5 = vshll.u32 %v13782_v23, 16 }
 0x850   : > { %v8600_v7 = vrot.slane %v17717_v8, 4  ;;  %v8607_v31 = vor.u32 %v8605_v26, %v17719_v63  ;;  %v8608_v61 = vrot.slane %v17719_v63, 4  ;;  %v8615_v42 = vor.u32 %v8613_v58, %v17721_v30 }
 0x851   : > { %v8616_v35 = vrot.slane %v17721_v30, 4  ;;  %v17737_v51 = vrot.slane %v8618_v39, 7  ;;  %v17739_v10 = vrot.slane %v8626_v16, 7  ;;  %v8634_v54 = vshrl.u32 %v13783_v4, 16  ;;  %v8687_v16 = vld [vmem:[#allocation3 + $0x28] sm:$0x11] }
 0x852   : > { %v8637_v29 = vshll.u32 %v13783_v4, 16  ;;  %v8642_v19 = vshrl.u32 %v13784_v45, 16  ;;  %v17744_v52 = vsel %vm17728_vm7, %v8591_v27, %v17529_v46  ;;  %v17749_v44 = vsel %vm17728_vm7, %v8599_v9, %v17529_v46  ;;  %v15382_v27 = vld [vmem:[#allocation16 + $0x124] ss:$8 sps:$4 sm:$0xff]  }
 0x853   : > { %v8623_v47 = vor.u32 %v8621_v48, %v17737_v51  ;;  %v8624_v0 = vrot.slane %v17737_v51, 4  ;;  %v8631_v57 = vor.u32 %v8629_v5, %v17739_v10  ;;  %v8645_v36 = vshll.u32 %v13784_v45, 16  ;;  %8675 = vst [vmem:[#allocation3 + $0x10] sm:$0xff] %v17744_v52  ;;  %8686 = vst [vmem:[#allocation3 + $0x20] sm:$0xff] %v17749_v44 }
 0x854   : > { %v8632_v3 = vrot.slane %v17739_v10, 4  ;;  %v17757_v24 = vrot.slane %v8634_v54, 7  ;;  %v17759_v55 = vrot.slane %v8642_v19, 7  ;;  %v8760_v46 = vshrl.u32 %v17744_v52, 16  ;;  %v8693_v54 = vld [vmem:[#allocation3 + $0x38] sm:$0x11] }
 0x855   : > { %v8763_v32 = vshll.u32 %v17744_v52, 16  ;;  %v13395_v53 = vcombine.high %v17763_v12, %v17744_v52  ;;  %v13394_v28 = vcombine.low %v17763_v12, %v17744_v52  ;;  %v17772_v15 = vsel %vm17728_vm7, %v8607_v31, %v17763_v12 }
 0x856   : > { %v8639_v37 = vor.u32 %v8637_v29, %v17757_v24  ;;  %v8640_v22 = vrot.slane %v17757_v24, 4  ;;  %v17783_v60 = vor.u32 %v8645_v36, %v17759_v55  ;;  %8692 = vst [vmem:[#allocation3 + $0x30] sm:$0xff] %v17772_v15  ;;  %v8774_v20 = vshrl.u32 %v17749_v44, 16  ;;  %v8699_v36 = vld [vmem:[#allocation3 + $0x48] sm:$0x11] }
 0x857   : > { %11354 = vmatprep.mubr.bf16.mxu0 %v13395_v53  ;;  %v8777_v18 = vshll.u32 %v17749_v44, 16  ;;  %v8788_v23 = vshrl.u32 %v17772_v15, 16  ;;  %v8791_v4 = vshll.u32 %v17772_v15, 16  ;;  %v13397_v45 = vcombine.high %v17749_v44, %v17772_v15 }
 0x858   : > { %11355 = vmatmul.mubr.bf16.vlgmr.msra.gmra.mrb[52].mxu0 %v13394_v28  ;;  %v13396_v25 = vcombine.low %v17749_v44, %v17772_v15  ;;  %v17803_v43 = vsel %vm17728_vm7, %v8615_v42, %v17763_v12  ;;  %v17808_v33 = vsel %vm17728_vm7, %v8623_v47, %v17763_v12  ;;  %v17813_v59 = vsel %vm17728_vm7, %v8631_v57, %v17763_v12  ;;  %v8711_v57 = vld [vmem:[#allocation3 + $0x68] sm:$0x11] }
 0x859   : > { %11396 = vmatpush1.bf16.msra.mxu0 %v15374_v21  ;;  %11364 = vmatprep.mubr.bf16.mxu0 %v13397_v45  ;;  %8698 = vst [vmem:[#allocation3 + $0x40] sm:$0xff] %v17803_v43  ;;  %8704 = vst [vmem:[#allocation3 + $0x50] sm:$0xff] %v17808_v33  ;;  %v8802_v26 = vshrl.u32 %v17803_v43, 16  ;;  %v8805_v17 = vshll.u32 %v17803_v43, 16  ;;  %v8816_v58 = vshrl.u32 %v17808_v33, 16  ;;  %v8819_v39 = vshll.u32 %v17808_v33, 16 }
 0x85a   : > { %8710 = vst [vmem:[#allocation3 + $0x60] sm:$0xff] %v17813_v59  ;;  %11397 = vmatprep.subr.bf16.mxu0 %v15379_v50  ;;  %v13399_v9 = vcombine.high %v17803_v43, %v17808_v33  ;;  %v13398_v5 = vcombine.low %v17803_v43, %v17808_v33  ;;  %v17837_v31 = vsel %vm17728_vm7, %v8639_v37, %v17763_v12  ;;  %v8830_v42 = vshrl.u32 %v17813_v59, 16  ;;  %v8705_v37 = vld [vmem:[#allocation3 + $0x58] sm:$0x11]  ;;  %v15380_v50 = vld [vmem:[#allocation16 + $0x120] ss:$8 sps:$4 sm:$0xff]  }
 0x85b   : > { %8716 = vst [vmem:[#allocation3 + $0x70] sm:$0xff] %v17837_v31  ;;  %v8833_v29 = vshll.u32 %v17813_v59, 16  ;;  %v8844_v19 = vshrl.u32 %v17837_v31, 16  ;;  %v8847_v47 = vshll.u32 %v17837_v31, 16  ;;  %v8682_v21 = vsel %vm17826_vm3, %v8592_v1, %v8681_v62  ;;  %v15385_v1 = vld [vmem:[#allocation16 + $0x134] ss:$8 sps:$4 sm:$0xff]  }
 0x85c   : > { %v8762_v28 = vrot.slane %v8760_v46, 4  ;;  %v8765_v2 = vrot.slane %v8763_v32, 5  ;;  %8683 = vst [vmem:[#allocation3 + $0x18] sm:$0x11] %v8682_v21  ;;  %v8688_v49 = vsel %vm17826_vm3, %v8600_v7, %v8687_v16  ;;  %v8694_v45 = vsel %vm17826_vm3, %v8608_v61, %v8693_v54  ;;  %v8717_v7 = vld [vmem:[#allocation3 + $0x78] sm:$0x11] }
 0x85d   : > { %11398 = vmatpush1.bf16.msra.mxu0 %v15377_v6  ;;  %v8776_v11 = vrot.slane %v8774_v20, 4  ;;  %v8779_v53 = vrot.slane %v8777_v18, 5  ;;  %8689 = vst [vmem:[#allocation3 + $0x28] sm:$0x11] %v8688_v49  ;;  %8695 = vst [vmem:[#allocation3 + $0x38] sm:$0x11] %v8694_v45  ;;  %v8700_v8 = vsel %vm17826_vm3, %v8616_v35, %v8699_v36  ;;  %v8706_v61 = vsel %vm17826_vm3, %v8624_v0, %v8705_v37 }
 0x85e   : > { %11399 = vmatprep.subr.bf16.mxu0 %v15382_v27  ;;  %v8766_v46 = vor.u32 %v8765_v2, %v8762_v28  ;;  %v8790_v32 = vrot.slane %v8788_v23, 4  ;;  %v8793_v6 = vrot.slane %v8791_v4, 5  ;;  %8701 = vst [vmem:[#allocation3 + $0x48] sm:$0x11] %v8700_v8  ;;  %v8804_v20 = vrot.slane %v8802_v26, 4 }
 0x85f   : > { %v8780_v63 = vor.u32 %v8779_v53, %v8776_v11  ;;  %v8807_v18 = vrot.slane %v8805_v17, 5  ;;  %v8648_v62 = vrot.slane %v17759_v55, 4  ;;  %8707 = vst [vmem:[#allocation3 + $0x58] sm:$0x11] %v8706_v61  ;;  %v8818_v4 = vrot.slane %v8816_v58, 4 }
 0x860   : > { %11365 = vmatmul.mubr.bf16.gmra.mrb[56].mxu0 %v13396_v25  ;;  %v8794_v23 = vor.u32 %v8793_v6, %v8790_v32  ;;  %v8821_v30 = vrot.slane %v8819_v39, 5  ;;  %v8858_v16 = vld [vmem:[#allocation3 + $0x10] sm:$0xee]  ;;  %v17869_v27 = vrot.slane %v8766_v46, 4  ;;  %v8712_v51 = vsel %vm17826_vm3, %v8632_v3, %v8711_v57  ;;  %v8859_v25 = vld [vmem:[#allocation3 + $0x20] sm:$0xee] }
 0x861   : > { %11400 = vmatpush1.bf16.msra.mxu0 %v15380_v50  ;;  %11374 = vmatprep.mubr.bf16.mxu0 %v13399_v9  ;;  %v15383_v35 = vld [vmem:[#allocation16 + $0x130] ss:$8 sps:$4 sm:$0xff]   ;;  %v8808_v54 = vor.u32 %v8807_v18, %v8804_v20  ;;  %v8718_v0 = vsel %vm17826_vm3, %v8640_v22, %v8717_v7  ;;  %v15388_v26 = vld [vmem:[#allocation16 + $0x144] ss:$8 sps:$4 sm:$0xff]   ;;  %v17879_v17 = vrot.slane %v8780_v63, 4  ;;  %v8832_v39 = vrot.slane %v8830_v42, 4 }
 0x862   : > { %11401 = vmatprep.subr.bf16.mxu0 %v15385_v1  ;;  %v8822_v58 = vor.u32 %v8821_v30, %v8818_v4  ;;  %8713 = vst [vmem:[#allocation3 + $0x68] sm:$0x11] %v8712_v51  ;;  %8719 = vst [vmem:[#allocation3 + $0x78] sm:$0x11] %v8718_v0  ;;  %v8835_v9 = vrot.slane %v8833_v29, 5  ;;  %v17881_v10 = vrot.slane %v8794_v23, 4 }
 0x863   : > { %v15386_v36 = vld [vmem:[#allocation16 + $0x140] ss:$8 sps:$4 sm:$0xff]   ;;  %v8846_v53 = vrot.slane %v8844_v19, 4  ;;  %v8849_v3 = vrot.slane %v8847_v47, 5  ;;  %v13371_v57 = vrot.slane %v8858_v16, 9  ;;  %v17885_v28 = vrot.slane %v8808_v54, 4 }
 0x864   : > { %v17883_v24 = vld [vmem:[#allocation3 + $0x30] sm:$0xee]  ;;  %v8735_v22 = vld [vmem:[#allocation3 + $0x18] sm:$0x11]  ;;  %v17887_v2 = vrot.slane %v8822_v58, 4  ;;  %v8836_v37 = vor.u32 %v8835_v9, %v8832_v39  ;;  %v13372_v50 = vrot.slane %v8859_v25, 9  ;;  %v18641_v54 = vcombine.high %v17813_v59, %v17837_v31 }
 0x865   : > { %v15391_v21 = vld [vmem:[#allocation16 + $0x154] ss:$8 sps:$4 sm:$0xff]   ;;  %11402 = vmatpush1.bf16.msra.mxu0 %v15383_v35  ;;  %v8769_v49 = vshll.u32 %v8735_v22, 16  ;;  %v8736_v42 = vld [vmem:[#allocation3 + $0x28] sm:$0x11]  ;;  %v8850_v45 = vor.u32 %v8849_v3, %v8846_v53  ;;  %v8887_v11 = vrot.slane %v8735_v22, 5 }
 0x866   : > { %v8737_v29 = vld [vmem:[#allocation3 + $0x38] sm:$0x11]  ;;  %11403 = vmatprep.subr.bf16.mxu0 %v15388_v26  ;;  %v8783_v47 = vshll.u32 %v8736_v42, 16  ;;  %v8738_v46 = vld [vmem:[#allocation3 + $0x48] sm:$0x11]  ;;  %v8891_v32 = vrot.slane %v8736_v42, 5 }
 0x867   : > { %v8797_v1 = vshll.u32 %v8737_v29, 16  ;;  %v13373_v6 = vrot.slane %v17883_v24, 9  ;;  %v15389_v8 = vld [vmem:[#allocation16 + $0x150] ss:$8 sps:$4 sm:$0xff]   ;;  %v8771_v7 = vrot.slane %v8769_v49, 5  ;;  %v8811_v61 = vshll.u32 %v8738_v46, 16 }
 0x868   : > { %v8739_v63 = vld [vmem:[#allocation3 + $0x58] sm:$0x11]  ;;  %v17892_v20 = vrot.slane %v8836_v37, 4  ;;  %v17896_v18 = vsel %vm16956_vm2, %v13371_v57, %v8887_v11  ;;  %11375 = vmatmul.mubr.bf16.gmra.mrb[60].mxu0 %v13398_v5  ;;  %v8785_v23 = vrot.slane %v8783_v47, 5  ;;  %v8861_v35 = vld [vmem:[#allocation3 + $0x40] sm:$0xee]  ;;  %v17931_v3 = vsel %vm16956_vm2, %v13372_v50, %v8891_v32 }
 0x869   : > { %v8799_v4 = vrot.slane %v8797_v1, 5  ;;  %v8825_v30 = vshll.u32 %v8739_v63, 16  ;;  %11404 = vmatpush1.bf16.msra.mxu0 %v15386_v36  ;;  %11384 = vmatprep.mubr.bf16.mxu0 %v18641_v54  ;;  %v17909_v51 = vsel %vm17655_vm11, %v17869_v27, %v8771_v7  ;;  %v8813_v0 = vrot.slane %v8811_v61, 5  ;;  %v8740_v25 = vld [vmem:[#allocation3 + $0x68] sm:$0x11] }
 0x86a   : > { %v17911_v5 = vld [vmem:[#allocation3 + $0x78] sm:$0x11]  ;;  %v17913_v26 = vrot.slane %v8850_v45, 4  ;;  %11405 = vmatprep.subr.bf16.mxu0 %v15391_v21  ;;  %v15394_v39 = vld [vmem:[#allocation16 + $0x164] ss:$8 sps:$4 sm:$0xff]   ;;  %v13403_v9 = vcombine.high %v17671_v41, %v17909_v51  ;;  %v17922_v36 = vsel %vm17655_vm11, %v17879_v17, %v8785_v23  ;;  %v8839_v49 = vshll.u32 %v8740_v25, 16 }
 0x86b   : > { %v17927_v53 = vsel %vm17655_vm11, %v17881_v10, %v8799_v4  ;;  %v8862_v57 = vld [vmem:[#allocation3 + $0x50] sm:$0xee]  ;;  %v17940_v22 = vsel %vm17655_vm11, %v17885_v28, %v8813_v0  ;;  %v8827_v37 = vrot.slane %v8825_v30, 5  ;;  %v8853_v42 = vshll.u32 %v17911_v5, 16  ;;  %v8863_v50 = vld [vmem:[#allocation3 + $0x60] sm:$0xee] }
 0x86c   : > { %v8895_v45 = vrot.slane %v8737_v29, 5  ;;  %v13374_v11 = vrot.slane %v8861_v35, 9  ;;  %v15392_v47 = vld [vmem:[#allocation16 + $0x160] ss:$8 sps:$4 sm:$0xff]   ;;  %v8899_v32 = vrot.slane %v8738_v46, 5  ;;  %v13375_v7 = vrot.slane %v8862_v57, 9 }
 0x86d   : > { %11406 = vmatpush1.bf16.msra.mxu0 %v15389_v8  ;;  %v17946_v1 = vsel %vm17655_vm11, %v17887_v2, %v8827_v37  ;;  %v8903_v61 = vrot.slane %v8739_v63, 5  ;;  %v15397_v23 = vld [vmem:[#allocation16 + $0x174] ss:$8 sps:$4 sm:$0xff]   ;;  %v8841_v30 = vrot.slane %v8839_v49, 5  ;;  %v8855_v35 = vrot.slane %v8853_v42, 5 }
 0x86e   : > { %11407 = vmatprep.subr.bf16.mxu0 %v15394_v39  ;;  %v17954_v8 = vsel %vm16956_vm2, %v13373_v6, %v8895_v45  ;;  %v17958_v54 = vsel %vm16956_vm2, %v13374_v11, %v8899_v32  ;;  %v8864_v63 = vld [vmem:[#allocation3 + $0x70] sm:$0xee]  ;;  %v13376_v0 = vrot.slane %v8863_v50, 9  ;;  %v18642_v39 = vcombine.low %v17813_v59, %v17837_v31  ;;  %v15398_v50 = vld [vmem:[#allocation16 + $0x180] ss:$8 sps:$4 sm:$0xff]  }
 0x86f   : > { %v17962_v46 = vsel %vm16956_vm2, %v13375_v7, %v8903_v61  ;;  %v17970_v57 = vsel %vm17655_vm11, %v17892_v20, %v8841_v30  ;;  %v17975_v6 = vsel %vm17655_vm11, %v17913_v26, %v8855_v35  ;;  %v15395_v42 = vld [vmem:[#allocation16 + $0x170] ss:$8 sps:$4 sm:$0xff]   ;;  %v8907_v32 = vrot.slane %v8740_v25, 5  ;;  %v15400_v61 = vld [vmem:[#allocation16 + $0x184] ss:$8 sps:$4 sm:$0xff]  }
 0x870   : > { %11385 = vmatmul.mubr.bf16.gmra.mrb[64].mxu0 %v18642_v39  ;;  %v17987_v7 = vld [vmem:[#allocation3 + $0x18] sm:$0x11]  ;;  %v18004_v30 = vld [vmem:[#allocation3 + $0x28] sm:$0x11] }
 0x871   : > { %11408 = vmatpush1.bf16.msra.mxu0 %v15392_v47  ;;  %11427 = vmatprep.mubr.bf16.mxu0 %v13403_v9  ;;  %v13377_v47 = vrot.slane %v8864_v63, 9  ;;  %v8911_v9 = vrot.slane %v17911_v5, 5  ;;  %v17996_v39 = vsel %vm16956_vm2, %v13376_v0, %v8907_v32  ;;  %v18006_v63 = vld [vmem:[#allocation3 + $0x38] sm:$0x11]  ;;  %v18008_v5 = vld [vmem:[#allocation3 + $0x48] sm:$0x11]  ;;  %v18020_v32 = vsel %vm17728_vm7, %v17783_v60, %v17763_v12 }
 0x872   : > { %11409 = vmatprep.subr.bf16.mxu0 %v15397_v23  ;;  %v8939_v19 = vshll.u32 %v17987_v7, 16  ;;  %v18023_v23 = vld [vmem:[#allocation3 + $0x58] sm:$0x11]  ;;  %v18025_v25 = vld [vmem:[#allocation3 + $0x68] sm:$0x11]  ;;  %8722 = vst [vmem:[#allocation3 + $0x80] sm:$0xff] %v18020_v32 }
 0x873   : > { %v18012_v35 = vsel %vm16956_vm2, %v13377_v47, %v8911_v9  ;;  %v8723_v0 = vld [vmem:[#allocation3 + $0x88] sm:$0x11]  ;;  %v18032_v34 = vld [vmem:[#allocation3 + $0x78] sm:$0x11]  ;;  %v8953_v37 = vshll.u32 %v18004_v30, 16  ;;  %v8967_v47 = vshll.u32 %v18006_v63, 16 }
 0x874   : > { %v15403_v12 = vld [vmem:[#allocation16 + $0x194] ss:$8 sps:$4 sm:$0xff]   ;;  %v8941_v49 = vrot.slane %v8939_v19, 5  ;;  %v8981_v9 = vshll.u32 %v18008_v5, 16  ;;  %v8995_v16 = vshll.u32 %v18023_v23, 16  ;;  %v9009_v58 = vshll.u32 %v18025_v25, 16 }
 0x875   : > { %11410 = vmatpush1.bf16.msra.mxu0 %v15395_v42  ;;  %v8955_v60 = vrot.slane %v8953_v37, 5  ;;  %v8724_v19 = vsel %vm17826_vm3, %v8648_v62, %v8723_v0  ;;  %v9023_v42 = vshll.u32 %v18032_v34, 16  ;;  %v15401_v11 = vld [vmem:[#allocation16 + $0x190] ss:$8 sps:$4 sm:$0xff]   ;;  %v9028_v45 = vshrl.u32 %v18020_v32, 16 }
 0x876   : > { %11411 = vmatprep.subr.bf16.mxu0 %v15400_v61  ;;  %v18046_v61 = vsel %vm17655_vm11, %v17869_v27, %v8941_v49  ;;  %v9031_v29 = vshll.u32 %v18020_v32, 16  ;;  %v8969_v4 = vrot.slane %v8967_v47, 5  ;;  %v8983_v21 = vrot.slane %v8981_v9, 5  ;;  %8725 = vst [vmem:[#allocation3 + $0x88] sm:$0x11] %v8724_v19 }
 0x877   : > { %v15406_v27 = vld [vmem:[#allocation16 + $0x1a4] ss:$8 sps:$4 sm:$0xff]   ;;  %v18058_v55 = vsel %vm17655_vm11, %v17879_v17, %v8955_v60  ;;  %v8997_v48 = vrot.slane %v8995_v16, 5  ;;  %v9011_v62 = vrot.slane %v9009_v58, 5  ;;  %v9025_v37 = vrot.slane %v9023_v42, 5 }
 0x878   : > { %v18067_v0 = vsel %vm17655_vm11, %v17881_v10, %v8969_v4  ;;  %v18072_v47 = vsel %vm17655_vm11, %v17885_v28, %v8983_v21  ;;  %v9041_v17 = vld [vmem:[#allocation3 + $0x10] sm:$0xee]  ;;  %v9042_v16 = vld [vmem:[#allocation3 + $0x20] sm:$0xee]  ;;  %v9030_v19 = vrot.slane %v9028_v45, 4  ;;  %v9071_v49 = vrot.slane %v18004_v30, 5 }
 0x879   : > { %11412 = vmatpush1.bf16.msra.mxu0 %v15398_v50  ;;  %v18086_v10 = vsel %vm17655_vm11, %v17892_v20, %v9011_v62  ;;  %v9043_v28 = vld [vmem:[#allocation3 + $0x30] sm:$0xee]  ;;  %v9044_v21 = vld [vmem:[#allocation3 + $0x40] sm:$0xee]  ;;  %v9033_v62 = vrot.slane %v9031_v29, 5  ;;  %v13378_v9 = vrot.slane %v9041_v17, 9 }
 0x87a   : > { %11413 = vmatprep.subr.bf16.mxu0 %v15403_v12  ;;  %v18081_v12 = vsel %vm17655_vm11, %v17887_v2, %v8997_v48  ;;  %v15404_v4 = vld [vmem:[#allocation16 + $0x1a0] ss:$8 sps:$4 sm:$0xff]   ;;  %v18095_v2 = vsel %vm17655_vm11, %v17913_v26, %v9025_v37  ;;  %v9045_v48 = vld [vmem:[#allocation3 + $0x50] sm:$0xee]  ;;  %v13379_v58 = vrot.slane %v9042_v16, 9  ;;  %v13380_v60 = vrot.slane %v9043_v28, 9 }
 0x87b   : > { %v15409_v20 = vld [vmem:[#allocation16 + $0x1b4] ss:$8 sps:$4 sm:$0xff]   ;;  %v9075_v50 = vrot.slane %v18006_v63, 5  ;;  %v13381_v42 = vrot.slane %v9044_v21, 9  ;;  %v15407_v24 = vld [vmem:[#allocation16 + $0x1b0] ss:$8 sps:$4 sm:$0xff]   ;;  %v9034_v13 = vor.u32 %v9033_v62, %v9030_v19 }
 0x87c   : > { %v9079_v45 = vrot.slane %v18008_v5, 5  ;;  %v13382_v29 = vrot.slane %v9045_v48, 9  ;;  %v9046_v63 = vld [vmem:[#allocation3 + $0x60] sm:$0xee]  ;;  %v9083_v37 = vrot.slane %v18023_v23, 5  ;;  %v9091_v48 = vrot.slane %v18032_v34, 5 }
 0x87d   : > { %11414 = vmatpush1.bf16.msra.mxu0 %v15401_v11  ;;  %v9067_v11 = vrot.slane %v17987_v7, 5  ;;  %v8928_v14 = vld [vmem:[#allocation3 + $0x88] sm:$0x11]  ;;  %v18107_v7 = vsel %vm16956_vm2, %v13379_v58, %v9071_v49  ;;  %v18111_v30 = vsel %vm16956_vm2, %v13380_v60, %v9075_v50  ;;  %v9047_v17 = vld [vmem:[#allocation3 + $0x70] sm:$0xee]  ;;  %v9087_v60 = vrot.slane %v18025_v25, 5 }
 0x87e   : > { %11415 = vmatprep.subr.bf16.mxu0 %v15406_v27  ;;  %v9037_v27 = vshll.u32 %v8928_v14, 16  ;;  %v15412_v16 = vld [vmem:[#allocation16 + $0x1c4] ss:$8 sps:$4 sm:$0xff]   ;;  %v18122_v49 = vsel %vm16956_vm2, %v13381_v42, %v9079_v45  ;;  %v13384_v19 = vrot.slane %v9047_v17, 9  ;;  %v15410_v42 = vld [vmem:[#allocation16 + $0x1c0] ss:$8 sps:$4 sm:$0xff]  }
 0x87f   : > { %v18102_v26 = vsel %vm16956_vm2, %v13378_v9, %v9067_v11  ;;  %v18114_v9 = vrot.slane %v9034_v13, 4  ;;  %v9048_v50 = vld [vmem:[#allocation3 + $0x80] sm:$0xee]  ;;  %v18130_v13 = vsel %vm16956_vm2, %v13382_v29, %v9083_v37  ;;  %v9095_v11 = vrot.slane %v8928_v14, 5  ;;  %v15415_v45 = vld [vmem:[#allocation16 + $0x1d4] ss:$8 sps:$4 sm:$0xff]  }
 0x880   : > { %v9039_v58 = vrot.slane %v9037_v27, 5  ;;  %18644 = vst [vmem:[#allocation39_spill] sm:$0xff] %v18130_v13  ;;  %v13385_v62 = vrot.slane %v9048_v50, 9  ;;  %v15418_v50 = vld [vmem:[#allocation16 + $0x1e4] ss:$8 sps:$4 sm:$0xff]  }
 0x881   : > { %11416 = vmatpush1.bf16.msra.mxu0 %v15404_v4  ;;  %18643 = vst [vmem:[#allocation38_spill] sm:$0xff] %v18114_v9  ;;  %v13383_v4 = vrot.slane %v9046_v63, 9  ;;  %v9113_v17 = vld [vmem:[#allocation3 + $0x98] sm:$0x11]  ;;  %v9233_v37 = vld [vmem:[#allocation3 + $0x90] sm:$0xee] }
 0x882   : > { %11417 = vmatprep.subr.bf16.mxu0 %v15409_v20  ;;  %v18137_v20 = vsel %vm17655_vm11, %v18114_v9, %v9039_v58  ;;  %v18157_v63 = vsel %vm16956_vm2, %v13385_v62, %v9095_v11  ;;  %v15416_v58 = vld [vmem:[#allocation16 + $0x1e0] ss:$8 sps:$4 sm:$0xff]   ;;  %v13402_v62 = vcombine.low %v17671_v41, %v17909_v51  ;;  %v15427_v11 = vld [vmem:[#allocation16 + $0x214] ss:$8 sps:$4 sm:$0xff]   ;;  %v13393_v25 = vrot.slane %v9233_v37, 9 }
 0x883   : > { %v18145_v34 = vsel %vm16956_vm2, %v13383_v4, %v9087_v60  ;;  %18647 = vst [vmem:[#allocation42_spill] sm:$0xff] %v18157_v63  ;;  %v15421_v4 = vld [vmem:[#allocation16 + $0x1f4] ss:$8 sps:$4 sm:$0xff]   ;;  %v15419_v60 = vld [vmem:[#allocation16 + $0x1f0] ss:$8 sps:$4 sm:$0xff]   ;;  %v9280_v40 = vrot.slane %v9113_v17, 5  ;;  %v18651_v37 = vcombine.low %v17922_v36, %v17927_v53 }
 0x884   : > { %18645 = vst [vmem:[#allocation40_spill] sm:$0xff] %v18145_v34  ;;  %v18165_v14 = vld [vmem:[#allocation3 + $0x28] sm:$0x11]  ;;  %v9228_v27 = vld [vmem:[#allocation3 + $0x40] sm:$0xee] }
 0x885   : > { %11418 = vmatpush1.bf16.msra.mxu0 %v15407_v24  ;;  %v18149_v24 = vsel %vm16956_vm2, %v13384_v19, %v9091_v48  ;;  %v15424_v19 = vld [vmem:[#allocation16 + $0x204] ss:$8 sps:$4 sm:$0xff]   ;;  %v15422_v48 = vld [vmem:[#allocation16 + $0x200] ss:$8 sps:$4 sm:$0xff]   ;;  %18648 = vst [vmem:[#allocation43_spill] sm:$0xff] %v18165_v14  ;;  %v9252_v21 = vrot.slane %v18165_v14, 5 }
 0x886   : > { %11419 = vmatprep.subr.bf16.mxu0 %v15412_v16  ;;  %18646 = vst [vmem:[#allocation41_spill] sm:$0xff] %v18149_v24  ;;  %v15413_v16 = vld [vmem:[#allocation16 + $0x1d0] ss:$8 sps:$4 sm:$0xff]   ;;  %v9110_v51 = vld [vmem:[#allocation3 + $0x68] sm:$0x11] }
 0x887   : > { %v9109_v41 = vld [vmem:[#allocation3 + $0x58] sm:$0x11]  ;;  %v9229_v28 = vld [vmem:[#allocation3 + $0x50] sm:$0xee]  ;;  %v9230_v29 = vld [vmem:[#allocation3 + $0x60] sm:$0xee] }
 0x888   : > { %v9231_v9 = vld [vmem:[#allocation3 + $0x70] sm:$0xee]  ;;  %v9111_v63 = vld [vmem:[#allocation3 + $0x78] sm:$0x11]  ;;  %v9112_v24 = vld [vmem:[#allocation3 + $0x88] sm:$0x11] }
 0x889   : > { %11420 = vmatpush1.bf16.msra.mxu0 %v15410_v42  ;;  %v9226_v42 = vld [vmem:[#allocation3 + $0x20] sm:$0xee]  ;;  %v9264_v14 = vrot.slane %v9109_v41, 5  ;;  %v13391_v34 = vrot.slane %v9231_v9, 9  ;;  %v9276_v13 = vrot.slane %v9112_v24, 5  ;;  %v18203_v9 = vsel %vm16956_vm2, %v13393_v25, %v9280_v40 }
 0x88a   : > { %11421 = vmatprep.subr.bf16.mxu0 %v15415_v45  ;;  %v15425_v45 = vld [vmem:[#allocation16 + $0x210] ss:$8 sps:$4 sm:$0xff]  }
 0x88b   : > { %v15431_v24 = vld [vmem:[#allocation16 + $0x230] ss:$8 sps:$4 sm:$0xff]  }
 0x88d   : > { %11422 = vmatpush1.bf16.msra.mxu0 %v15413_v16  ;;  %v18167_v16 = vld [vmem:[#allocation3 + $0x38] sm:$0x11] }
 0x88e   : > { %11423 = vmatprep.subr.bf16.mxu0 %v15418_v50  ;;  %18649 = vst [vmem:[#allocation44_spill] sm:$0xff] %v18167_v16  ;;  %v9227_v50 = vld [vmem:[#allocation3 + $0x30] sm:$0xee]  ;;  %v9256_v5 = vrot.slane %v18167_v16, 5 }
 0x88f   : > { %v13387_v23 = vrot.slane %v9227_v50, 9  ;;  %v15428_v50 = vld [vmem:[#allocation16 + $0x220] ss:$8 sps:$4 sm:$0xff]   ;;  %v15433_v16 = vld [vmem:[#allocation16 + $0x234] ss:$8 sps:$4 sm:$0xff]  }
 0x891   : > { %11424 = vmatpush1.bf16.msra.mxu0 %v15416_v58  ;;  %v15430_v58 = vld [vmem:[#allocation16 + $0x224] ss:$8 sps:$4 sm:$0xff]  }
 0x892   : > { %11425 = vmatprep.subr.bf16.mxu0 %v15421_v4  ;;  %v9108_v4 = vld [vmem:[#allocation3 + $0x48] sm:$0x11] }
 0x893   : > { %v9260_v17 = vrot.slane %v9108_v4, 5 }
 0x895   : > { %11426 = vmatpush1.bf16.msra.mxu0 %v15419_v60  ;;  %v18650_v60 = vcombine.high %v17922_v36, %v17927_v53 }
 0x896   : > { %11468 = vmatprep.subr.bf16.mxu0 %v15424_v19  ;;  %v13386_v19 = vrot.slane %v9226_v42, 9  ;;  %v9232_v42 = vld [vmem:[#allocation3 + $0x80] sm:$0xee] }
 0x898   : > { %11428 = vmatmul.mubr.bf16.vlgmr.msra.gmra.mrb[52].mxu0 %v13402_v62  ;;  %v13388_v62 = vrot.slane %v9228_v27, 9 }
 0x899   : > { %11437 = vmatprep.mubr.bf16.mxu0 %v18650_v60  ;;  %11469 = vmatpush1.bf16.msra.mxu0 %v15422_v48  ;;  %v18176_v48 = vsel %vm16956_vm2, %v13386_v19, %v9252_v21  ;;  %v13389_v60 = vrot.slane %v9229_v28, 9  ;;  %v13390_v21 = vrot.slane %v9230_v29, 9  ;;  %v9268_v19 = vrot.slane %v9110_v51, 5 }
 0x89a   : > { %11470 = vmatprep.subr.bf16.mxu0 %v15427_v11  ;;  %v18180_v11 = vsel %vm16956_vm2, %v13387_v23, %v9256_v5  ;;  %v18188_v5 = vsel %vm16956_vm2, %v13388_v62, %v9260_v17  ;;  %v9272_v23 = vrot.slane %v9111_v63, 5  ;;  %v18652_v63 = vcombine.high %v17940_v22, %v17946_v1 }
 0x89b   : > { %v13459_v27 = vcombine.high %v18176_v48, %v18180_v11  ;;  %v18195_v28 = vsel %vm16956_vm2, %v13389_v60, %v9264_v14  ;;  %v18199_v29 = vsel %vm16956_vm2, %v13390_v21, %v9268_v19  ;;  %v18653_v62 = vcombine.low %v17940_v22, %v17946_v1  ;;  %v15443_v1 = vld [vmem:[#allocation16 + $0x270] ss:$8 sps:$4 sm:$0xff]   ;;  %v15448_v60 = vld [vmem:[#allocation16 + $0x284] ss:$8 sps:$4 sm:$0xff]   ;;  %v15446_v21 = vld [vmem:[#allocation16 + $0x280] ss:$8 sps:$4 sm:$0xff]  }
 0x89c   : > { %v13461_v36 = vcombine.high %v18188_v5, %v18195_v28  ;;  %v13460_v53 = vcombine.low %v18188_v5, %v18195_v28  ;;  %v18214_v14 = vsel %vm16956_vm2, %v13391_v34, %v9272_v23  ;;  %v15434_v34 = vld [vmem:[#allocation16 + $0x240] ss:$8 sps:$4 sm:$0xff]   ;;  %v18655_v17 = vcombine.low %v17970_v57, %v17975_v6  ;;  %v15451_v19 = vld [vmem:[#allocation16 + $0x294] ss:$8 sps:$4 sm:$0xff]   ;;  %v15449_v23 = vld [vmem:[#allocation16 + $0x290] ss:$8 sps:$4 sm:$0xff]  }
 0x89d   : > { %11471 = vmatpush1.bf16.msra.mxu0 %v15425_v45  ;;  %v13392_v45 = vrot.slane %v9232_v42, 9  ;;  %v13463_v40 = vcombine.high %v18199_v29, %v18214_v14  ;;  %v13462_v25 = vcombine.low %v18199_v29, %v18214_v14  ;;  %v18654_v42 = vcombine.high %v17970_v57, %v17975_v6  ;;  %v15457_v57 = vld [vmem:[#allocation16 + $0x2b4] ss:$8 sps:$4 sm:$0xff]   ;;  %v15455_v6 = vld [vmem:[#allocation16 + $0x2b0] ss:$8 sps:$4 sm:$0xff]  }
 0x89e   : > { %11472 = vmatprep.subr.bf16.mxu0 %v15430_v58  ;;  %v15436_v58 = vld [vmem:[#allocation16 + $0x244] ss:$8 sps:$4 sm:$0xff]   ;;  %v18656_v22 = vcombine.high %v17711_v56, %v17896_v18  ;;  %v15776_v5 = vld [vmem:[#allocation21 + $0x70] sm:$0xff]   ;;  %v11979_v29 = vld [vmem:[#allocation18] sm:$0x3] }
 0x89f   : > { %v18222_v4 = vsel %vm16956_vm2, %v13392_v45, %v9276_v13  ;;  %v15442_v13 = vld [vmem:[#allocation16 + $0x264] ss:$8 sps:$4 sm:$0xff]   ;;  %v15777_v28 = vld [vmem:[#allocation21 + $0x30] sm:$0xff]   ;;  %v12007_v14 = vld [vmem:[#allocation19] sm:$0x3] }
 0x8a0   : > { %11438 = vmatmul.mubr.bf16.gmra.mrb[56].mxu0 %v18651_v37  ;;  %v13465_v41 = vcombine.high %v18222_v4, %v18203_v9  ;;  %v13464_v51 = vcombine.low %v18222_v4, %v18203_v9  ;;  %v15445_v37 = vld [vmem:[#allocation16 + $0x274] ss:$8 sps:$4 sm:$0xff]   ;;  %v15454_v45 = vld [vmem:[#allocation16 + $0x2a4] ss:$8 sps:$4 sm:$0xff]  }
 0x8a1   : > { %11447 = vmatprep.mubr.bf16.mxu0 %v18652_v63  ;;  %11473 = vmatpush1.bf16.msra.mxu0 %v15428_v50  ;;  %v15440_v50 = vld [vmem:[#allocation16 + $0x260] ss:$8 sps:$4 sm:$0xff]  }
 0x8a2   : > { %11474 = vmatprep.subr.bf16.mxu0 %v15433_v16  ;;  %v15439_v16 = vld [vmem:[#allocation16 + $0x254] ss:$8 sps:$4 sm:$0xff]   ;;  %v15452_v63 = vld [vmem:[#allocation16 + $0x2a0] ss:$8 sps:$4 sm:$0xff]  }
 0x8a5   : > { %11475 = vmatpush1.bf16.msra.mxu0 %v15431_v24  ;;  %v15460_v24 = vld [vmem:[#allocation16 + $0x2c4] ss:$8 sps:$4 sm:$0xff]  }
 0x8a6   : > { %11476 = vmatprep.subr.bf16.mxu0 %v15436_v58  ;;  %v15458_v58 = vld [vmem:[#allocation16 + $0x2c0] ss:$8 sps:$4 sm:$0xff]  }
 0x8a8   : > { %11448 = vmatmul.mubr.bf16.gmra.mrb[60].mxu0 %v18653_v62  ;;  %v15466_v62 = vld [vmem:[#allocation16 + $0x2e4] ss:$8 sps:$4 sm:$0xff]  }
 0x8a9   : > { %11457 = vmatprep.mubr.bf16.mxu0 %v18654_v42  ;;  %11477 = vmatpush1.bf16.msra.mxu0 %v15434_v34  ;;  %v15463_v34 = vld [vmem:[#allocation16 + $0x2d4] ss:$8 sps:$4 sm:$0xff]   ;;  %v15464_v42 = vld [vmem:[#allocation16 + $0x2e0] ss:$8 sps:$4 sm:$0xff]  }
 0x8aa   : > { %11478 = vmatprep.subr.bf16.mxu0 %v15439_v16  ;;  %v15461_v16 = vld [vmem:[#allocation16 + $0x2d0] ss:$8 sps:$4 sm:$0xff]  }
 0x8ad   : > { %11479 = vmatpush1.bf16.msra.mxu0 %v15437_v38  ;;  %v15469_v38 = vld [vmem:[#allocation16 + $0x2f4] ss:$8 sps:$4 sm:$0xff]  }
 0x8ae   : > { %11480 = vmatprep.subr.bf16.mxu0 %v15442_v13  ;;  %v15467_v13 = vld [vmem:[#allocation16 + $0x2f0] ss:$8 sps:$4 sm:$0xff]  }
 0x8b0   : > { %11458 = vmatmul.mubr.bf16.gmra.mrb[64].mxu0 %v18655_v17  ;;  %v15475_v17 = vld [vmem:[#allocation16 + $0x314] ss:$8 sps:$4 sm:$0xff]  }
 0x8b1   : > { %11481 = vmatpush1.bf16.msra.mxu0 %v15440_v50  ;;  %11500 = vmatprep.mubr.bf16.mxu0 %v18656_v22  ;;  %v15472_v50 = vld [vmem:[#allocation16 + $0x304] ss:$8 sps:$4 sm:$0xff]   ;;  %v18657_v22 = vcombine.low %v17711_v56, %v17896_v18  ;;  %v18660_v56 = vcombine.high %v17958_v54, %v17962_v46  ;;  %v15479_v18 = vld [vmem:[#allocation16 + $0x330] ss:$8 sps:$4 sm:$0xff]  }
 0x8b2   : > { %11482 = vmatprep.subr.bf16.mxu0 %v15445_v37  ;;  %v15470_v37 = vld [vmem:[#allocation16 + $0x300] ss:$8 sps:$4 sm:$0xff]  }
 0x8b5   : > { %11483 = vmatpush1.bf16.msra.mxu0 %v15443_v1  ;;  %v18658_v1 = vcombine.high %v17931_v3, %v17954_v8 }
 0x8b6   : > { %11484 = vmatprep.subr.bf16.mxu0 %v15448_v60  ;;  %v15473_v60 = vld [vmem:[#allocation16 + $0x310] ss:$8 sps:$4 sm:$0xff]  }
 0x8b9   : > { %11485 = vmatpush1.bf16.msra.mxu0 %v15446_v21  ;;  %v15478_v21 = vld [vmem:[#allocation16 + $0x324] ss:$8 sps:$4 sm:$0xff]  }
 0x8ba   : > { %11486 = vmatprep.subr.bf16.mxu0 %v15451_v19  ;;  %v15476_v19 = vld [vmem:[#allocation16 + $0x320] ss:$8 sps:$4 sm:$0xff]  }
 0x8bd   : > { %11487 = vmatpush1.bf16.msra.mxu0 %v15449_v23  ;;  %v15481_v23 = vld [vmem:[#allocation16 + $0x334] ss:$8 sps:$4 sm:$0xff]  }
 0x8be   : > { %11488 = vmatprep.subr.bf16.mxu0 %v15454_v45  ;;  %v18659_v45 = vcombine.low %v17931_v3, %v17954_v8  ;;  %v18662_v3 = vcombine.high %v17996_v39, %v18012_v35  ;;  %v15485_v8 = vld [vmem:[#allocation16 + $0x350] ss:$8 sps:$4 sm:$0xff]  }
 0x8c1   : > { %11489 = vmatpush1.bf16.msra.mxu0 %v15452_v63  ;;  %v15484_v63 = vld [vmem:[#allocation16 + $0x344] ss:$8 sps:$4 sm:$0xff]  }
 0x8c2   : > { %11490 = vmatprep.subr.bf16.mxu0 %v15457_v57  ;;  %v15482_v57 = vld [vmem:[#allocation16 + $0x340] ss:$8 sps:$4 sm:$0xff]  }
 0x8c5   : > { %11491 = vmatpush1.bf16.msra.mxu0 %v15455_v6  ;;  %v15487_v6 = vld [vmem:[#allocation16 + $0x354] ss:$8 sps:$4 sm:$0xff]  }
 0x8c6   : > { %11492 = vmatprep.subr.bf16.mxu0 %v15460_v24  ;;  %v18661_v24 = vcombine.low %v17958_v54, %v17962_v46  ;;  %v18664_v54 = vcombine.high %v17744_v52, %v17749_v44  ;;  %v15491_v46 = vld [vmem:[#allocation16 + $0x370] ss:$8 sps:$4 sm:$0xff]  }
 0x8c9   : > { %11493 = vmatpush1.bf16.msra.mxu0 %v15458_v58  ;;  %v15490_v58 = vld [vmem:[#allocation16 + $0x364] ss:$8 sps:$4 sm:$0xff]  }
 0x8ca   : > { %11494 = vmatprep.subr.bf16.mxu0 %v15463_v34  ;;  %v15488_v34 = vld [vmem:[#allocation16 + $0x360] ss:$8 sps:$4 sm:$0xff]  }
 0x8cd   : > { %11495 = vmatpush1.bf16.msra.mxu0 %v15461_v16  ;;  %v15493_v16 = vld [vmem:[#allocation16 + $0x374] ss:$8 sps:$4 sm:$0xff]  }
 0x8ce   : > { %11496 = vmatprep.subr.bf16.mxu0 %v15466_v62  ;;  %v18663_v62 = vcombine.low %v17996_v39, %v18012_v35  ;;  %v15505_v35 = vld [vmem:[#allocation16 + $0x3b4] ss:$8 sps:$4 sm:$0xff]   ;;  %v15503_v39 = vld [vmem:[#allocation16 + $0x3b0] ss:$8 sps:$4 sm:$0xff]  }
 0x8d1   : > { %11497 = vmatpush1.bf16.msra.mxu0 %v15464_v42  ;;  %v15496_v42 = vld [vmem:[#allocation16 + $0x384] ss:$8 sps:$4 sm:$0xff]  }
 0x8d2   : > { %11498 = vmatprep.subr.bf16.mxu0 %v15469_v38  ;;  %v15494_v38 = vld [vmem:[#allocation16 + $0x380] ss:$8 sps:$4 sm:$0xff]  }
 0x8d5   : > { %11499 = vmatpush1.bf16.msra.mxu0 %v15467_v13  ;;  %v15499_v13 = vld [vmem:[#allocation16 + $0x394] ss:$8 sps:$4 sm:$0xff]  }
 0x8d6   : > { %11541 = vmatprep.subr.bf16.mxu0 %v15472_v50  ;;  %v15497_v50 = vld [vmem:[#allocation16 + $0x390] ss:$8 sps:$4 sm:$0xff]  }
 0x8d8   : > { %11501 = vmatmul.mubr.bf16.vlgmr.msra.gmra.mrb[52].mxu0 %v18657_v22  ;;  %v15508_v22 = vld [vmem:[#allocation16 + $0x3c4] ss:$8 sps:$4 sm:$0xff]  }
 0x8d9   : > { %11510 = vmatprep.mubr.bf16.mxu0 %v18658_v1  ;;  %11542 = vmatpush1.bf16.msra.mxu0 %v15470_v37  ;;  %v15502_v37 = vld [vmem:[#allocation16 + $0x3a4] ss:$8 sps:$4 sm:$0xff]   ;;  %v15506_v1 = vld [vmem:[#allocation16 + $0x3c0] ss:$8 sps:$4 sm:$0xff]  }
 0x8da   : > { %11543 = vmatprep.subr.bf16.mxu0 %v15475_v17  ;;  %v15500_v17 = vld [vmem:[#allocation16 + $0x3a0] ss:$8 sps:$4 sm:$0xff]  }
 0x8dd   : > { %11544 = vmatpush1.bf16.msra.mxu0 %v15473_v60  ;;  %v15511_v60 = vld [vmem:[#allocation16 + $0x3d4] ss:$8 sps:$4 sm:$0xff]  }
 0x8de   : > { %11545 = vmatprep.subr.bf16.mxu0 %v15478_v21  ;;  %v15509_v21 = vld [vmem:[#allocation16 + $0x3d0] ss:$8 sps:$4 sm:$0xff]  }
 0x8e0   : > { %11511 = vmatmul.mubr.bf16.gmra.mrb[56].mxu0 %v18659_v45  ;;  %v15517_v45 = vld [vmem:[#allocation16 + $0x3f4] ss:$8 sps:$4 sm:$0xff]  }
 0x8e1   : > { %11520 = vmatprep.mubr.bf16.mxu0 %v18660_v56  ;;  %11546 = vmatpush1.bf16.msra.mxu0 %v15476_v19  ;;  %v15514_v19 = vld [vmem:[#allocation16 + $0x3e4] ss:$8 sps:$4 sm:$0xff]   ;;  %v15515_v56 = vld [vmem:[#allocation16 + $0x3f0] ss:$8 sps:$4 sm:$0xff]  }
 0x8e2   : > { %11547 = vmatprep.subr.bf16.mxu0 %v15481_v23  ;;  %v15512_v23 = vld [vmem:[#allocation16 + $0x3e0] ss:$8 sps:$4 sm:$0xff]  }
 0x8e5   : > { %11548 = vmatpush1.bf16.msra.mxu0 %v15479_v18  ;;  %v15520_v18 = vld [vmem:[#allocation16 + $0x404] ss:$8 sps:$4 sm:$0xff]  }
 0x8e6   : > { %11549 = vmatprep.subr.bf16.mxu0 %v15484_v63  ;;  %v15518_v63 = vld [vmem:[#allocation16 + $0x400] ss:$8 sps:$4 sm:$0xff]  }
 0x8e8   : > { %11521 = vmatmul.mubr.bf16.gmra.mrb[60].mxu0 %v18661_v24  ;;  %v18666_v24 = vcombine.high %v17772_v15, %v17803_v43 }
 0x8e9   : > { %11530 = vmatprep.mubr.bf16.mxu0 %v18662_v3  ;;  %11550 = vmatpush1.bf16.msra.mxu0 %v15482_v57  ;;  %v15523_v57 = vld [vmem:[#allocation16 + $0x414] ss:$8 sps:$4 sm:$0xff]   ;;  %v15521_v3 = vld [vmem:[#allocation16 + $0x410] ss:$8 sps:$4 sm:$0xff]  }
 0x8ea   : > { %11551 = vmatprep.subr.bf16.mxu0 %v15487_v6  ;;  %v18665_v6 = vcombine.low %v17744_v52, %v17749_v44  ;;  %v18668_v52 = vcombine.high %v17808_v33, %v17813_v59  ;;  %v15527_v44 = vld [vmem:[#allocation16 + $0x430] ss:$8 sps:$4 sm:$0xff]  }
 0x8ed   : > { %11552 = vmatpush1.bf16.msra.mxu0 %v15485_v8  ;;  %v15526_v8 = vld [vmem:[#allocation16 + $0x424] ss:$8 sps:$4 sm:$0xff]  }
 0x8ee   : > { %11553 = vmatprep.subr.bf16.mxu0 %v15490_v58  ;;  %v15524_v58 = vld [vmem:[#allocation16 + $0x420] ss:$8 sps:$4 sm:$0xff]  }
 0x8f0   : > { %11531 = vmatmul.mubr.bf16.gmra.mrb[64].mxu0 %v18663_v62  ;;  %v15532_v62 = vld [vmem:[#allocation16 + $0x444] ss:$8 sps:$4 sm:$0xff]  }
 0x8f1   : > { %11554 = vmatpush1.bf16.msra.mxu0 %v15488_v34  ;;  %11573 = vmatprep.mubr.bf16.mxu0 %v18664_v54  ;;  %v15529_v34 = vld [vmem:[#allocation16 + $0x434] ss:$8 sps:$4 sm:$0xff]   ;;  %v15530_v54 = vld [vmem:[#allocation16 + $0x440] ss:$8 sps:$4 sm:$0xff]  }
 0x8f2   : > { %11555 = vmatprep.subr.bf16.mxu0 %v15493_v16  ;;  %v18667_v16 = vcombine.low %v17772_v15, %v17803_v43  ;;  %v18670_v15 = vcombine.high %v17837_v31, %v18020_v32  ;;  %v15533_v43 = vld [vmem:[#allocation16 + $0x450] ss:$8 sps:$4 sm:$0xff]  }
 0x8f5   : > { %11556 = vmatpush1.bf16.msra.mxu0 %v15491_v46  ;;  %v15535_v46 = vld [vmem:[#allocation16 + $0x454] ss:$8 sps:$4 sm:$0xff]  }
 0x8f6   : > { %11557 = vmatprep.subr.bf16.mxu0 %v15496_v42  ;;  %v18669_v42 = vcombine.low %v17808_v33, %v17813_v59  ;;  %v18672_v33 = vcombine.high %v18046_v61, %v18058_v55  ;;  %v15539_v59 = vld [vmem:[#allocation16 + $0x470] ss:$8 sps:$4 sm:$0xff]  }
 0x8f9   : > { %11558 = vmatpush1.bf16.msra.mxu0 %v15494_v38  ;;  %v15538_v38 = vld [vmem:[#allocation16 + $0x464] ss:$8 sps:$4 sm:$0xff]  }
 0x8fa   : > { %11559 = vmatprep.subr.bf16.mxu0 %v15499_v13  ;;  %v15536_v13 = vld [vmem:[#allocation16 + $0x460] ss:$8 sps:$4 sm:$0xff]  }
 0x8fd   : > { %11560 = vmatpush1.bf16.msra.mxu0 %v15497_v50  ;;  %v15541_v50 = vld [vmem:[#allocation16 + $0x474] ss:$8 sps:$4 sm:$0xff]  }
 0x8fe   : > { %11561 = vmatprep.subr.bf16.mxu0 %v15502_v37  ;;  %v18671_v37 = vcombine.low %v17837_v31, %v18020_v32  ;;  %v15553_v31 = vld [vmem:[#allocation16 + $0x4b4] ss:$8 sps:$4 sm:$0xff]   ;;  %v15551_v32 = vld [vmem:[#allocation16 + $0x4b0] ss:$8 sps:$4 sm:$0xff]  }
 0x901   : > { %11562 = vmatpush1.bf16.msra.mxu0 %v15500_v17  ;;  %v15544_v17 = vld [vmem:[#allocation16 + $0x484] ss:$8 sps:$4 sm:$0xff]  }
 0x902   : > { %11563 = vmatprep.subr.bf16.mxu0 %v15505_v35  ;;  %v15542_v35 = vld [vmem:[#allocation16 + $0x480] ss:$8 sps:$4 sm:$0xff]  }
 0x905   : > { %11564 = vmatpush1.bf16.msra.mxu0 %v15503_v39  ;;  %v15547_v39 = vld [vmem:[#allocation16 + $0x494] ss:$8 sps:$4 sm:$0xff]  }
 0x906   : > { %11565 = vmatprep.subr.bf16.mxu0 %v15508_v22  ;;  %v15545_v22 = vld [vmem:[#allocation16 + $0x490] ss:$8 sps:$4 sm:$0xff]  }
 0x909   : > { %11566 = vmatpush1.bf16.msra.mxu0 %v15506_v1  ;;  %v15550_v1 = vld [vmem:[#allocation16 + $0x4a4] ss:$8 sps:$4 sm:$0xff]  }
 0x90a   : > { %11567 = vmatprep.subr.bf16.mxu0 %v15511_v60  ;;  %v15548_v60 = vld [vmem:[#allocation16 + $0x4a0] ss:$8 sps:$4 sm:$0xff]  }
 0x90d   : > { %11568 = vmatpush1.bf16.msra.mxu0 %v15509_v21  ;;  %v15556_v21 = vld [vmem:[#allocation16 + $0x4c4] ss:$8 sps:$4 sm:$0xff]  }
 0x90e   : > { %11569 = vmatprep.subr.bf16.mxu0 %v15514_v19  ;;  %v15554_v19 = vld [vmem:[#allocation16 + $0x4c0] ss:$8 sps:$4 sm:$0xff]  }
 0x911   : > { %11570 = vmatpush1.bf16.msra.mxu0 %v15512_v23  ;;  %v15559_v23 = vld [vmem:[#allocation16 + $0x4d4] ss:$8 sps:$4 sm:$0xff]  }
 0x912   : > { %11571 = vmatprep.subr.bf16.mxu0 %v15517_v45  ;;  %v15557_v45 = vld [vmem:[#allocation16 + $0x4d0] ss:$8 sps:$4 sm:$0xff]  }
 0x915   : > { %11572 = vmatpush1.bf16.msra.mxu0 %v15515_v56  ;;  %v15562_v56 = vld [vmem:[#allocation16 + $0x4e4] ss:$8 sps:$4 sm:$0xff]  }
 0x916   : > { %11614 = vmatprep.subr.bf16.mxu0 %v15520_v18  ;;  %v15560_v18 = vld [vmem:[#allocation16 + $0x4e0] ss:$8 sps:$4 sm:$0xff]  }
 0x918   : > { %11574 = vmatmul.mubr.bf16.vlgmr.msra.gmra.mrb[52].mxu0 %v18665_v6  ;;  %v15568_v6 = vld [vmem:[#allocation16 + $0x504] ss:$8 sps:$4 sm:$0xff]  }
 0x919   : > { %11583 = vmatprep.mubr.bf16.mxu0 %v18666_v24  ;;  %11615 = vmatpush1.bf16.msra.mxu0 %v15518_v63  ;;  %v15565_v63 = vld [vmem:[#allocation16 + $0x4f4] ss:$8 sps:$4 sm:$0xff]   ;;  %v15566_v24 = vld [vmem:[#allocation16 + $0x500] ss:$8 sps:$4 sm:$0xff]  }
 0x91a   : > { %11616 = vmatprep.subr.bf16.mxu0 %v15523_v57  ;;  %v15563_v57 = vld [vmem:[#allocation16 + $0x4f0] ss:$8 sps:$4 sm:$0xff]  }
 0x91d   : > { %11617 = vmatpush1.bf16.msra.mxu0 %v15521_v3  ;;  %v15571_v3 = vld [vmem:[#allocation16 + $0x514] ss:$8 sps:$4 sm:$0xff]  }
 0x91e   : > { %11618 = vmatprep.subr.bf16.mxu0 %v15526_v8  ;;  %v18673_v8 = vcombine.low %v18046_v61, %v18058_v55  ;;  %v18676_v61 = vcombine.high %v18081_v12, %v18086_v10  ;;  %v15575_v55 = vld [vmem:[#allocation16 + $0x530] ss:$8 sps:$4 sm:$0xff]  }
 0x920   : > { %11584 = vmatmul.mubr.bf16.gmra.mrb[56].mxu0 %v18667_v16  ;;  %v15574_v16 = vld [vmem:[#allocation16 + $0x524] ss:$8 sps:$4 sm:$0xff]  }
 0x921   : > { %11593 = vmatprep.mubr.bf16.mxu0 %v18668_v52  ;;  %11619 = vmatpush1.bf16.msra.mxu0 %v15524_v58  ;;  %v18674_v58 = vcombine.high %v18067_v0, %v18072_v47  ;;  %v15572_v52 = vld [vmem:[#allocation16 + $0x520] ss:$8 sps:$4 sm:$0xff]  }
 0x922   : > { %11620 = vmatprep.subr.bf16.mxu0 %v15529_v34  ;;  %v15569_v34 = vld [vmem:[#allocation16 + $0x510] ss:$8 sps:$4 sm:$0xff]  }
 0x925   : > { %11621 = vmatpush1.bf16.msra.mxu0 %v15527_v44  ;;  %v15577_v44 = vld [vmem:[#allocation16 + $0x534] ss:$8 sps:$4 sm:$0xff]  }
 0x926   : > { %11622 = vmatprep.subr.bf16.mxu0 %v15532_v62  ;;  %v18675_v62 = vcombine.low %v18067_v0, %v18072_v47  ;;  %v18678_v0 = vcombine.high %v18095_v2, %v18137_v20  ;;  %v15581_v47 = vld [vmem:[#allocation16 + $0x550] ss:$8 sps:$4 sm:$0xff]  }
 0x928   : > { %11594 = vmatmul.mubr.bf16.gmra.mrb[60].mxu0 %v18669_v42  ;;  %v15583_v42 = vld [vmem:[#allocation16 + $0x554] ss:$8 sps:$4 sm:$0xff]  }
 0x929   : > { %11603 = vmatprep.mubr.bf16.mxu0 %v18670_v15  ;;  %11623 = vmatpush1.bf16.msra.mxu0 %v15530_v54  ;;  %v15580_v54 = vld [vmem:[#allocation16 + $0x544] ss:$8 sps:$4 sm:$0xff]   ;;  %v18677_v15 = vcombine.low %v18081_v12, %v18086_v10  ;;  %v18680_v12 = vcombine.high %v18102_v26, %v18107_v7  ;;  %v15587_v10 = vld [vmem:[#allocation16 + $0x570] ss:$8 sps:$4 sm:$0xff]  }
 0x92a   : > { %11624 = vmatprep.subr.bf16.mxu0 %v15535_v46  ;;  %v15578_v46 = vld [vmem:[#allocation16 + $0x540] ss:$8 sps:$4 sm:$0xff]  }
 0x92d   : > { %11625 = vmatpush1.bf16.msra.mxu0 %v15533_v43  ;;  %v15586_v43 = vld [vmem:[#allocation16 + $0x564] ss:$8 sps:$4 sm:$0xff]  }
 0x92e   : > { %11626 = vmatprep.subr.bf16.mxu0 %v15538_v38  ;;  %v15584_v38 = vld [vmem:[#allocation16 + $0x560] ss:$8 sps:$4 sm:$0xff]  }
 0x930   : > { %11604 = vmatmul.mubr.bf16.gmra.mrb[64].mxu0 %v18671_v37  ;;  %v15592_v37 = vld [vmem:[#allocation16 + $0x584] ss:$8 sps:$4 sm:$0xff]  }
 0x931   : > { %11627 = vmatpush1.bf16.msra.mxu0 %v15536_v13  ;;  %11646 = vmatprep.mubr.bf16.mxu0 %v18672_v33  ;;  %v15589_v13 = vld [vmem:[#allocation16 + $0x574] ss:$8 sps:$4 sm:$0xff]   ;;  %v15590_v33 = vld [vmem:[#allocation16 + $0x580] ss:$8 sps:$4 sm:$0xff]  }
 0x932   : > { %11628 = vmatprep.subr.bf16.mxu0 %v15541_v50  ;;  %v18679_v50 = vcombine.low %v18095_v2, %v18137_v20  ;;  %v15601_v2 = vld [vmem:[#allocation16 + $0x5b4] ss:$8 sps:$4 sm:$0xff]   ;;  %v15599_v20 = vld [vmem:[#allocation16 + $0x5b0] ss:$8 sps:$4 sm:$0xff]  }
 0x935   : > { %11629 = vmatpush1.bf16.msra.mxu0 %v15539_v59  ;;  %v15595_v59 = vld [vmem:[#allocation16 + $0x594] ss:$8 sps:$4 sm:$0xff]  }
 0x936   : > { %11630 = vmatprep.subr.bf16.mxu0 %v15544_v17  ;;  %v15593_v17 = vld [vmem:[#allocation16 + $0x590] ss:$8 sps:$4 sm:$0xff]  }
 0x939   : > { %11631 = vmatpush1.bf16.msra.mxu0 %v15542_v35  ;;  %v15598_v35 = vld [vmem:[#allocation16 + $0x5a4] ss:$8 sps:$4 sm:$0xff]  }
 0x93a   : > { %11632 = vmatprep.subr.bf16.mxu0 %v15547_v39  ;;  %v15596_v39 = vld [vmem:[#allocation16 + $0x5a0] ss:$8 sps:$4 sm:$0xff]  }
 0x93d   : > { %11633 = vmatpush1.bf16.msra.mxu0 %v15545_v22  ;;  %v15604_v22 = vld [vmem:[#allocation16 + $0x5c4] ss:$8 sps:$4 sm:$0xff]  }
 0x93e   : > { %11634 = vmatprep.subr.bf16.mxu0 %v15550_v1  ;;  %v15602_v1 = vld [vmem:[#allocation16 + $0x5c0] ss:$8 sps:$4 sm:$0xff]  }
 0x941   : > { %11635 = vmatpush1.bf16.msra.mxu0 %v15548_v60  ;;  %v15607_v60 = vld [vmem:[#allocation16 + $0x5d4] ss:$8 sps:$4 sm:$0xff]  }
 0x942   : > { %11636 = vmatprep.subr.bf16.mxu0 %v15553_v31  ;;  %v15605_v31 = vld [vmem:[#allocation16 + $0x5d0] ss:$8 sps:$4 sm:$0xff]  }
 0x945   : > { %11637 = vmatpush1.bf16.msra.mxu0 %v15551_v32  ;;  %v15610_v32 = vld [vmem:[#allocation16 + $0x5e4] ss:$8 sps:$4 sm:$0xff]  }
 0x946   : > { %11638 = vmatprep.subr.bf16.mxu0 %v15556_v21  ;;  %v15608_v21 = vld [vmem:[#allocation16 + $0x5e0] ss:$8 sps:$4 sm:$0xff]  }
 0x949   : > { %11639 = vmatpush1.bf16.msra.mxu0 %v15554_v19  ;;  %v15613_v19 = vld [vmem:[#allocation16 + $0x5f4] ss:$8 sps:$4 sm:$0xff]  }
 0x94a   : > { %11640 = vmatprep.subr.bf16.mxu0 %v15559_v23  ;;  %v15611_v23 = vld [vmem:[#allocation16 + $0x5f0] ss:$8 sps:$4 sm:$0xff]  }
 0x94d   : > { %11641 = vmatpush1.bf16.msra.mxu0 %v15557_v45  ;;  %v15616_v45 = vld [vmem:[#allocation16 + $0x604] ss:$8 sps:$4 sm:$0xff]  }
 0x94e   : > { %11642 = vmatprep.subr.bf16.mxu0 %v15562_v56  ;;  %v15614_v56 = vld [vmem:[#allocation16 + $0x600] ss:$8 sps:$4 sm:$0xff]  }
 0x951   : > { %11643 = vmatpush1.bf16.msra.mxu0 %v15560_v18  ;;  %v15619_v18 = vld [vmem:[#allocation16 + $0x614] ss:$8 sps:$4 sm:$0xff]  }
 0x952   : > { %11644 = vmatprep.subr.bf16.mxu0 %v15565_v63  ;;  %v18681_v63 = vcombine.low %v18102_v26, %v18107_v7  ;;  %v15623_v7 = vld [vmem:[#allocation16 + $0x630] ss:$8 sps:$4 sm:$0xff]  }
 0x955   : > { %11645 = vmatpush1.bf16.msra.mxu0 %v15563_v57  ;;  %v18682_v57 = vcombine.high %v18111_v30, %v18122_v49 }
 0x956   : > { %11687 = vmatprep.subr.bf16.mxu0 %v15568_v6  ;;  %v15617_v6 = vld [vmem:[#allocation16 + $0x610] ss:$8 sps:$4 sm:$0xff]  }
 0x958   : > { %11647 = vmatmul.mubr.bf16.vlgmr.msra.gmra.mrb[52].mxu0 %v18673_v8  ;;  %v15625_v8 = vld [vmem:[#allocation16 + $0x634] ss:$8 sps:$4 sm:$0xff]  }
 0x959   : > { %11656 = vmatprep.mubr.bf16.mxu0 %v18674_v58  ;;  %11688 = vmatpush1.bf16.msra.mxu0 %v15566_v24  ;;  %v15622_v24 = vld [vmem:[#allocation16 + $0x624] ss:$8 sps:$4 sm:$0xff]   ;;  %v18683_v58 = vcombine.low %v18111_v30, %v18122_v49  ;;  %v15629_v49 = vld [vmem:[#allocation16 + $0x650] ss:$8 sps:$4 sm:$0xff]  }
 0x95a   : > { %11689 = vmatprep.subr.bf16.mxu0 %v15571_v3  ;;  %v15620_v3 = vld [vmem:[#allocation16 + $0x620] ss:$8 sps:$4 sm:$0xff]  }
 0x95d   : > { %11690 = vmatpush1.bf16.msra.mxu0 %v15569_v34  ;;  %v18684_v34 = vld [vmem:[#allocation39_spill] sm:$0xff] }
 0x95e   : > { %11691 = vmatprep.subr.bf16.mxu0 %v15574_v16  ;;  %v18685_v16 = vld [vmem:[#allocation40_spill] sm:$0xff] }
 0x95f   : > { %v18686_v26 = vcombine.high %v18684_v34, %v18685_v16 }
 0x960   : > { %11657 = vmatmul.mubr.bf16.gmra.mrb[56].mxu0 %v18675_v62  ;;  %v15631_v62 = vld [vmem:[#allocation16 + $0x654] ss:$8 sps:$4 sm:$0xff]  }
 0x961   : > { %11666 = vmatprep.mubr.bf16.mxu0 %v18676_v61  ;;  %11692 = vmatpush1.bf16.msra.mxu0 %v15572_v52  ;;  %v15628_v52 = vld [vmem:[#allocation16 + $0x644] ss:$8 sps:$4 sm:$0xff]   ;;  %v18687_v61 = vcombine.low %v18684_v34, %v18685_v16  ;;  %v18353_v16 = vld [vmem:[#allocation3 + $0x70] sm:$0xff] }
 0x962   : > { %11693 = vmatprep.subr.bf16.mxu0 %v15577_v44  ;;  %v15626_v44 = vld [vmem:[#allocation16 + $0x640] ss:$8 sps:$4 sm:$0xff]  }
 0x963   : > { %v18351_v34 = vld [vmem:[#allocation3 + $0x60] sm:$0xff] }
 0x965   : > { %11694 = vmatpush1.bf16.msra.mxu0 %v15575_v55  ;;  %v18688_v55 = vld [vmem:[#allocation41_spill] sm:$0xff] }
 0x966   : > { %11695 = vmatprep.subr.bf16.mxu0 %v15580_v54  ;;  %v18689_v54 = vld [vmem:[#allocation42_spill] sm:$0xff] }
 0x967   : > { %v18690_v30 = vcombine.high %v18688_v55, %v18689_v54 }
 0x968   : > { %11667 = vmatmul.mubr.bf16.gmra.mrb[60].mxu0 %v18677_v15  ;;  %v18332_v15 = vld [vmem:[#allocation3 + $0x30] sm:$0xff] }
 0x969   : > { %11676 = vmatprep.mubr.bf16.mxu0 %v18678_v0  ;;  %11696 = vmatpush1.bf16.msra.mxu0 %v15578_v46  ;;  %v15634_v46 = vld [vmem:[#allocation16 + $0x664] ss:$8 sps:$4 sm:$0xff]   ;;  %v15632_v0 = vld [vmem:[#allocation16 + $0x660] ss:$8 sps:$4 sm:$0xff]  }
 0x96a   : > { %11697 = vmatprep.subr.bf16.mxu0 %v15583_v42  ;;  %v18330_v42 = vld [vmem:[#allocation3 + $0x20] sm:$0xff] }
 0x96d   : > { %11698 = vmatpush1.bf16.msra.mxu0 %v15581_v47  ;;  %v15638_v47 = vld [vmem:[#allocation16 + $0x674] ss:$8 sps:$4 sm:$0xff]  }
 0x96e   : > { %11699 = vmatprep.subr.bf16.mxu0 %v15586_v43  ;;  %v13443_v43 = vcombine.high %v18330_v42, %v18332_v15 }
 0x970   : > { %11677 = vmatmul.mubr.bf16.gmra.mrb[64].mxu0 %v18679_v50  ;;  %v15641_v50 = vld [vmem:[#allocation16 + $0x684] ss:$8 sps:$4 sm:$0xff]  }
 0x971   : > { %11700 = vmatpush1.bf16.msra.mxu0 %v15584_v38  ;;  %11719 = vmatprep.mubr.bf16.mxu0 %v18680_v12  ;;  %v18691_v38 = vcombine.low %v18688_v55, %v18689_v54  ;;  %v15639_v12 = vld [vmem:[#allocation16 + $0x680] ss:$8 sps:$4 sm:$0xff]  }
 0x972   : > { %11701 = vmatprep.subr.bf16.mxu0 %v15589_v13  ;;  %v15636_v13 = vld [vmem:[#allocation16 + $0x670] ss:$8 sps:$4 sm:$0xff]  }
 0x975   : > { %11702 = vmatpush1.bf16.msra.mxu0 %v15587_v10  ;;  %v15644_v10 = vld [vmem:[#allocation16 + $0x694] ss:$8 sps:$4 sm:$0xff]  }
 0x976   : > { %11703 = vmatprep.subr.bf16.mxu0 %v15592_v37  ;;  %v15642_v37 = vld [vmem:[#allocation16 + $0x690] ss:$8 sps:$4 sm:$0xff]  }
 0x979   : > { %11704 = vmatpush1.bf16.msra.mxu0 %v15590_v33  ;;  %v15647_v33 = vld [vmem:[#allocation16 + $0x6a4] ss:$8 sps:$4 sm:$0xff]  }
 0x97a   : > { %11705 = vmatprep.subr.bf16.mxu0 %v15595_v59  ;;  %v15645_v59 = vld [vmem:[#allocation16 + $0x6a0] ss:$8 sps:$4 sm:$0xff]  }
 0x97d   : > { %11706 = vmatpush1.bf16.msra.mxu0 %v15593_v17  ;;  %v15650_v17 = vld [vmem:[#allocation16 + $0x6b4] ss:$8 sps:$4 sm:$0xff]  }
 0x97e   : > { %11707 = vmatprep.subr.bf16.mxu0 %v15598_v35  ;;  %v15648_v35 = vld [vmem:[#allocation16 + $0x6b0] ss:$8 sps:$4 sm:$0xff]  }
 0x981   : > { %11708 = vmatpush1.bf16.msra.mxu0 %v15596_v39  ;;  %v15653_v39 = vld [vmem:[#allocation16 + $0x6c4] ss:$8 sps:$4 sm:$0xff]  }
 0x982   : > { %11709 = vmatprep.subr.bf16.mxu0 %v15601_v2  ;;  %v15651_v2 = vld [vmem:[#allocation16 + $0x6c0] ss:$8 sps:$4 sm:$0xff]  }
 0x985   : > { %11710 = vmatpush1.bf16.msra.mxu0 %v15599_v20  ;;  %v15656_v20 = vld [vmem:[#allocation16 + $0x6d4] ss:$8 sps:$4 sm:$0xff]  }
 0x986   : > { %11711 = vmatprep.subr.bf16.mxu0 %v15604_v22  ;;  %v15654_v22 = vld [vmem:[#allocation16 + $0x6d0] ss:$8 sps:$4 sm:$0xff]  }
 0x989   : > { %11712 = vmatpush1.bf16.msra.mxu0 %v15602_v1  ;;  %v15659_v1 = vld [vmem:[#allocation16 + $0x6e4] ss:$8 sps:$4 sm:$0xff]  }
 0x98a   : > { %11713 = vmatprep.subr.bf16.mxu0 %v15607_v60  ;;  %v15657_v60 = vld [vmem:[#allocation16 + $0x6e0] ss:$8 sps:$4 sm:$0xff]  }
 0x98d   : > { %11714 = vmatpush1.bf16.msra.mxu0 %v15605_v31  ;;  %v15662_v31 = vld [vmem:[#allocation16 + $0x6f4] ss:$8 sps:$4 sm:$0xff]  }
 0x98e   : > { %11715 = vmatprep.subr.bf16.mxu0 %v15610_v32  ;;  %v15660_v32 = vld [vmem:[#allocation16 + $0x6f0] ss:$8 sps:$4 sm:$0xff]  }
 0x991   : > { %11716 = vmatpush1.bf16.msra.mxu0 %v15608_v21  ;;  %v15666_v21 = vld [vmem:[#allocation16 + $0x704] ss:$8 sps:$4 sm:$0xff]  }
 0x992   : > { %11717 = vmatprep.subr.bf16.mxu0 %v15613_v19  ;;  %v18339_v19 = vld [vmem:[#allocation3 + $0x40] sm:$0xff] }
 0x995   : > { %11718 = vmatpush1.bf16.msra.mxu0 %v15611_v23  ;;  %v18341_v23 = vld [vmem:[#allocation3 + $0x50] sm:$0xff] }
 0x996   : > { %11760 = vmatprep.subr.bf16.mxu0 %v15616_v45  ;;  %v15664_v45 = vld [vmem:[#allocation16 + $0x700] ss:$8 sps:$4 sm:$0xff]  }
 0x998   : > { %11720 = vmatmul.mubr.bf16.vlgmr.msra.gmra.mrb[52].mxu0 %v18681_v63  ;;  %v13445_v63 = vcombine.high %v18339_v19, %v18341_v23 }
 0x999   : > { %11729 = vmatprep.mubr.bf16.mxu0 %v18682_v57  ;;  %11761 = vmatpush1.bf16.msra.mxu0 %v15614_v56  ;;  %v13442_v56 = vcombine.low %v18330_v42, %v18332_v15  ;;  %v15668_v57 = vld [vmem:[#allocation16 + $0x710] ss:$8 sps:$4 sm:$0xff]  }
 0x99a   : > { %11762 = vmatprep.subr.bf16.mxu0 %v15619_v18  ;;  %v15670_v18 = vld [vmem:[#allocation16 + $0x714] ss:$8 sps:$4 sm:$0xff]  }
 0x99d   : > { %11763 = vmatpush1.bf16.msra.mxu0 %v15617_v6  ;;  %v15674_v6 = vld [vmem:[#allocation16 + $0x724] ss:$8 sps:$4 sm:$0xff]  }
 0x99e   : > { %11764 = vmatprep.subr.bf16.mxu0 %v15622_v24  ;;  %v9115_v24 = vshrl.u32 %v18330_v42, 16 }
 0x9a0   : > { %11730 = vmatmul.mubr.bf16.gmra.mrb[56].mxu0 %v18683_v58  ;;  %v9132_v58 = vshll.u32 %v18332_v15, 16 }
 0x9a1   : > { %11739 = vmatprep.mubr.bf16.mxu0 %v18686_v26  ;;  %11765 = vmatpush1.bf16.msra.mxu0 %v15620_v3  ;;  %v9118_v3 = vshll.u32 %v18330_v42, 16  ;;  %v15672_v26 = vld [vmem:[#allocation16 + $0x720] ss:$8 sps:$4 sm:$0xff]  }
 0x9a2   : > { %11766 = vmatprep.subr.bf16.mxu0 %v15625_v8  ;;  %v9129_v8 = vshrl.u32 %v18332_v15, 16  ;;  %v9134_v54 = vrot.slane %v9132_v58, 5  ;;  %v15680_v15 = vld [vmem:[#allocation16 + $0x740] ss:$8 sps:$4 sm:$0xff]   ;;  %v15769_v58 = vld [vmem:[#allocation21 + $0x10] sm:$0xff]  }
 0x9a4   : > { %v9131_v55 = vrot.slane %v9129_v8, 4  ;;  %v15697_v8 = vld [vmem:[#allocation16 + $0x794] ss:$8 sps:$4 sm:$0xff]  }
 0x9a5   : > { %11767 = vmatpush1.bf16.msra.mxu0 %v15623_v7  ;;  %v13444_v7 = vcombine.low %v18339_v19, %v18341_v23 }
 0x9a6   : > { %11768 = vmatprep.subr.bf16.mxu0 %v15628_v52  ;;  %v15678_v52 = vld [vmem:[#allocation16 + $0x734] ss:$8 sps:$4 sm:$0xff]   ;;  %v9135_v42 = vor.u32 %v9134_v54, %v9131_v55  ;;  %v15773_v54 = vld [vmem:[#allocation21 + $0x20] sm:$0xff]  }
 0x9a7   : > { %v15703_v55 = vld [vmem:[#allocation16 + $0x7b4] ss:$8 sps:$4 sm:$0xff]  }
 0x9a8   : > { %11740 = vmatmul.mubr.bf16.gmra.mrb[60].mxu0 %v18687_v61  ;;  %v9120_v61 = vrot.slane %v9118_v3, 5  ;;  %v15692_v3 = vld [vmem:[#allocation16 + $0x780] ss:$8 sps:$4 sm:$0xff]  }
 0x9a9   : > { %11749 = vmatprep.mubr.bf16.mxu0 %v18690_v30  ;;  %11769 = vmatpush1.bf16.msra.mxu0 %v15626_v44  ;;  %v13447_v44 = vcombine.high %v18351_v34, %v18353_v16  ;;  %v15676_v30 = vld [vmem:[#allocation16 + $0x730] ss:$8 sps:$4 sm:$0xff]  }
 0x9aa   : > { %11770 = vmatprep.subr.bf16.mxu0 %v15631_v62  ;;  %v9117_v62 = vrot.slane %v9115_v24, 4  ;;  %v15768_v24 = vld [vmem:[#allocation21 + $0x50] sm:$0xff]  }
 0x9ad   : > { %11771 = vmatpush1.bf16.msra.mxu0 %v15629_v49  ;;  %v15682_v49 = vld [vmem:[#allocation16 + $0x744] ss:$8 sps:$4 sm:$0xff]  }
 0x9ae   : > { %11772 = vmatprep.subr.bf16.mxu0 %v15634_v46  ;;  %v9121_v46 = vor.u32 %v9120_v61, %v9117_v62  ;;  %v15772_v62 = vld [vmem:[#allocation21 + $0x60] sm:$0xff]  }
 0x9af   : > { %v15698_v61 = vld [vmem:[#allocation16 + $0x7a0] ss:$8 sps:$4 sm:$0xff]  }
 0x9b0   : > { %11750 = vmatmul.mubr.bf16.gmra.mrb[64].mxu0 %v18691_v38 }
 0x9b1   : > { %11773 = vmatpush1.bf16.msra.mxu0 %v15632_v0  ;;  %11792 = vmatprep.mubr.bf16.mxu0 %v13443_v43  ;;  %v13446_v0 = vcombine.low %v18351_v34, %v18353_v16  ;;  %v18692_v43 = vld [vmem:[#allocation43_spill] sm:$0xff] }
 0x9b2   : > { %11774 = vmatprep.subr.bf16.mxu0 %v15638_v47  ;;  %v15685_v47 = vld [vmem:[#allocation16 + $0x754] ss:$8 sps:$4 sm:$0xff]   ;;  %v9124_v38 = vshll.u32 %v18692_v43, 16 }
 0x9b3   : > { %v15709_v43 = vld [vmem:[#allocation16 + $0x7d4] ss:$8 sps:$4 sm:$0xff]  }
 0x9b5   : > { %11775 = vmatpush1.bf16.msra.mxu0 %v15636_v13  ;;  %v18693_v13 = vld [vmem:[#allocation44_spill] sm:$0xff] }
 0x9b6   : > { %11776 = vmatprep.subr.bf16.mxu0 %v15641_v50  ;;  %v9138_v50 = vshll.u32 %v18693_v13, 16 }
 0x9b9   : > { %11777 = vmatpush1.bf16.msra.mxu0 %v15639_v12  ;;  %v18363_v12 = vld [vmem:[#allocation3] sm:$0xff] }
 0x9ba   : > { %11778 = vmatprep.subr.bf16.mxu0 %v15644_v10  ;;  %v15797_v10 = vld [vmem:[#allocation3 + $0x80] sm:$0xff] }
 0x9bd   : > { %11779 = vmatpush1.bf16.msra.mxu0 %v15642_v37  ;;  %v13449_v37 = vcombine.high %v15797_v10, %v18363_v12 }
 0x9be   : > { %11780 = vmatprep.subr.bf16.mxu0 %v15647_v33  ;;  %v9122_v33 = vrot.slane %v9121_v46, 4  ;;  %v9143_v46 = vshrl.u32 %v18339_v19, 16 }
 0x9c1   : > { %11781 = vmatpush1.bf16.msra.mxu0 %v15645_v59  ;;  %v9136_v59 = vrot.slane %v9135_v42, 4  ;;  %v9146_v42 = vshll.u32 %v18339_v19, 16 }
 0x9c2   : > { %11782 = vmatprep.subr.bf16.mxu0 %v15650_v17  ;;  %v15683_v17 = vld [vmem:[#allocation16 + $0x750] ss:$8 sps:$4 sm:$0xff]  }
 0x9c3   : > { %v9148_v13 = vrot.slane %v9146_v42, 5 }
 0x9c5   : > { %11783 = vmatpush1.bf16.msra.mxu0 %v15648_v35  ;;  %v15688_v35 = vld [vmem:[#allocation16 + $0x764] ss:$8 sps:$4 sm:$0xff]  }
 0x9c6   : > { %11784 = vmatprep.subr.bf16.mxu0 %v15653_v39  ;;  %v9126_v39 = vrot.slane %v9124_v38, 5  ;;  %v9145_v38 = vrot.slane %v9143_v46, 4  ;;  %v15801_v46 = vld [vmem:[#allocation3 + $0x78] sm:$0x11] }
 0x9c7   : > { %v9194_v42 = vshll.u32 %v15801_v46, 16  ;;  %v15757_v46 = vld [vmem:[#allocation16 + $0x8d4] ss:$8 sps:$4 sm:$0xff]  }
 0x9c8   : > { %v9149_v19 = vor.u32 %v9148_v13, %v9145_v38  ;;  %v15719_v38 = vld [vmem:[#allocation16 + $0x810] ss:$8 sps:$4 sm:$0xff]   ;;  %v15724_v13 = vld [vmem:[#allocation16 + $0x824] ss:$8 sps:$4 sm:$0xff]  }
 0x9c9   : > { %11785 = vmatpush1.bf16.msra.mxu0 %v15651_v2  ;;  %v9140_v2 = vrot.slane %v9138_v50, 5 }
 0x9ca   : > { %11786 = vmatprep.subr.bf16.mxu0 %v15656_v20  ;;  %v15737_v20 = vld [vmem:[#allocation16 + $0x870] ss:$8 sps:$4 sm:$0xff]  }
 0x9cd   : > { %11787 = vmatpush1.bf16.msra.mxu0 %v15654_v22  ;;  %v18368_v22 = vsel %vm17655_vm11, %v9122_v33, %v9126_v39  ;;  %v15712_v33 = vld [vmem:[#allocation16 + $0x7e4] ss:$8 sps:$4 sm:$0xff]  }
 0x9ce   : > { %11788 = vmatprep.subr.bf16.mxu0 %v15659_v1  ;;  %v18372_v1 = vsel %vm17655_vm11, %v9136_v59, %v9140_v2  ;;  %v9171_v59 = vshrl.u32 %v18351_v34, 16  ;;  %v15710_v2 = vld [vmem:[#allocation16 + $0x7e0] ss:$8 sps:$4 sm:$0xff]  }
 0x9d1   : > { %11789 = vmatpush1.bf16.msra.mxu0 %v15657_v60  ;;  %v15686_v60 = vld [vmem:[#allocation16 + $0x760] ss:$8 sps:$4 sm:$0xff]  }
 0x9d2   : > { %11790 = vmatprep.subr.bf16.mxu0 %v15662_v31  ;;  %v13448_v31 = vcombine.low %v15797_v10, %v18363_v12 }
 0x9d5   : > { %11791 = vmatpush1.bf16.msra.mxu0 %v15660_v32  ;;  %v15691_v32 = vld [vmem:[#allocation16 + $0x774] ss:$8 sps:$4 sm:$0xff]  }
 0x9d6   : > { %11833 = vmatprep.subr.bf16.mxu0 %v15666_v21  ;;  %v13451_v21 = vcombine.high %v18368_v22, %v18372_v1 }
 0x9d8   : > { %11793 = vmatmul.mubr.bf16.vlgmr.msra.gmra.mrb[52].mxu0 %v13442_v56  ;;  %v15765_v56 = vld [vmem:[#allocation21] sm:$0xff]  }
 0x9d9   : > { %11802 = vmatprep.mubr.bf16.mxu0 %v13445_v63  ;;  %11834 = vmatpush1.bf16.msra.mxu0 %v15664_v45  ;;  %v15764_v45 = vld [vmem:[#allocation21 + $0x40] sm:$0xff]   ;;  %v15689_v63 = vld [vmem:[#allocation16 + $0x770] ss:$8 sps:$4 sm:$0xff]  }
 0x9da   : > { %11835 = vmatprep.subr.bf16.mxu0 %v15670_v18  ;;  %v15766_v18 = vld [vmem:[#allocation21 + $0x48] sm:$0xff]   ;;  %13786 = vmatprep.subr.bf16.mxu1 %v15764_v45 }
 0x9db   : > { %13787 = vmatpush3.bf16.msra.mxu1 %v15765_v56  ;;  %v9150_v56 = vrot.slane %v9149_v19, 4  ;;  %v15803_v19 = vld [vmem:[#allocation3 + $0x98] sm:$0x11] }
 0x9dc   : > { %13788 = vmatprep.subr.bf16.mxu1 %v15766_v18  ;;  %v9173_v18 = vrot.slane %v9171_v59, 4 }
 0x9dd   : > { %11836 = vmatpush1.bf16.msra.mxu0 %v15668_v57  ;;  %v15694_v57 = vld [vmem:[#allocation16 + $0x784] ss:$8 sps:$4 sm:$0xff]  }
 0x9de   : > { %11837 = vmatprep.subr.bf16.mxu0 %v15674_v6  ;;  %v15767_v6 = vld [vmem:[#allocation21 + $0x8] sm:$0xff]  }
 0x9df   : > { %13789 = vmatpush3.bf16.msra.mxu1 %v15767_v6 }
 0x9e0   : > { %11803 = vmatmul.mubr.bf16.gmra.mrb[56].mxu0 %v13444_v7  ;;  %13790 = vmatprep.subr.bf16.mxu1 %v15768_v24  ;;  %v15695_v7 = vld [vmem:[#allocation16 + $0x790] ss:$8 sps:$4 sm:$0xff]  }
 0x9e1   : > { %11812 = vmatprep.mubr.bf16.mxu0 %v13447_v44  ;;  %11838 = vmatpush1.bf16.msra.mxu0 %v15672_v26  ;;  %v15770_v26 = vld [vmem:[#allocation21 + $0x58] sm:$0xff]  }
 0x9e2   : > { %11839 = vmatprep.subr.bf16.mxu0 %v15678_v52  ;;  %v15700_v52 = vld [vmem:[#allocation16 + $0x7a4] ss:$8 sps:$4 sm:$0xff]   ;;  %v15771_v44 = vld [vmem:[#allocation21 + $0x18] sm:$0xff]  }
 0x9e3   : > { %13791 = vmatpush3.bf16.msra.mxu1 %v15769_v58  ;;  %v9213_v58 = vshrl.u32 %v18363_v12, 16 }
 0x9e4   : > { %13792 = vmatprep.subr.bf16.mxu1 %v15770_v26  ;;  %v9216_v26 = vshll.u32 %v18363_v12, 16 }
 0x9e5   : > { %11840 = vmatpush1.bf16.msra.mxu0 %v15676_v30  ;;  %v15701_v30 = vld [vmem:[#allocation16 + $0x7b0] ss:$8 sps:$4 sm:$0xff]  }
 0x9e6   : > { %11841 = vmatprep.subr.bf16.mxu0 %v15682_v49  ;;  %v15706_v49 = vld [vmem:[#allocation16 + $0x7c4] ss:$8 sps:$4 sm:$0xff]  }
 0x9e7   : > { %13793 = vmatpush3.bf16.msra.mxu1 %v15771_v44 }
 0x9e8   : > { %11813 = vmatmul.mubr.bf16.gmra.mrb[60].mxu0 %v13446_v0  ;;  %13794 = vmatprep.subr.bf16.mxu1 %v15772_v62  ;;  %v9160_v0 = vshll.u32 %v18341_v23, 16 }
 0x9e9   : > { %11822 = vmatprep.mubr.bf16.mxu0 %v13449_v37  ;;  %11842 = vmatpush1.bf16.msra.mxu0 %v15680_v15  ;;  %v9157_v15 = vshrl.u32 %v18341_v23, 16  ;;  %v15707_v37 = vld [vmem:[#allocation16 + $0x7d0] ss:$8 sps:$4 sm:$0xff]   ;;  %v9188_v23 = vshll.u32 %v18353_v16, 16 }
 0x9ea   : > { %11843 = vmatprep.subr.bf16.mxu0 %v15685_v47  ;;  %v15704_v47 = vld [vmem:[#allocation16 + $0x7c0] ss:$8 sps:$4 sm:$0xff]   ;;  %v9162_v10 = vrot.slane %v9160_v0, 5  ;;  %v9218_v0 = vrot.slane %v9216_v26, 5  ;;  %v15739_v26 = vld [vmem:[#allocation16 + $0x874] ss:$8 sps:$4 sm:$0xff]  }
 0x9eb   : > { %13795 = vmatpush3.bf16.msra.mxu1 %v15773_v54  ;;  %v9159_v50 = vrot.slane %v9157_v15, 4  ;;  %v9190_v24 = vrot.slane %v9188_v23, 5  ;;  %v15721_v54 = vld [vmem:[#allocation16 + $0x814] ss:$8 sps:$4 sm:$0xff]   ;;  %v9215_v15 = vrot.slane %v9213_v58, 4 }
 0x9ed   : > { %11844 = vmatpush1.bf16.msra.mxu0 %v15683_v17  ;;  %v9174_v17 = vshll.u32 %v18351_v34, 16  ;;  %v9163_v39 = vor.u32 %v9162_v10, %v9159_v50  ;;  %v15713_v34 = vld [vmem:[#allocation16 + $0x7f0] ss:$8 sps:$4 sm:$0xff]   ;;  %v9196_v10 = vrot.slane %v9194_v42, 5 }
 0x9ee   : > { %11845 = vmatprep.subr.bf16.mxu0 %v15688_v35  ;;  %v9185_v35 = vshrl.u32 %v18353_v16, 16  ;;  %v15755_v42 = vld [vmem:[#allocation16 + $0x8d0] ss:$8 sps:$4 sm:$0xff]  }
 0x9f0   : > { %11823 = vmatmul.mubr.bf16.gmra.mrb[64].mxu0 %v13448_v31  ;;  %v15798_v31 = vld [vmem:[#allocation3 + $0x48] sm:$0x11]  ;;  %v9187_v6 = vrot.slane %v9185_v35, 4 }
 0x9f1   : > { %11846 = vmatpush1.bf16.msra.mxu0 %v15686_v60  ;;  %11865 = vmatprep.mubr.bf16.mxu0 %v13451_v21  ;;  %v15715_v60 = vld [vmem:[#allocation16 + $0x7f4] ss:$8 sps:$4 sm:$0xff]   ;;  %v15722_v35 = vld [vmem:[#allocation16 + $0x820] ss:$8 sps:$4 sm:$0xff]  }
 0x9f2   : > { %11847 = vmatprep.subr.bf16.mxu0 %v15691_v32  ;;  %v9152_v32 = vshll.u32 %v15798_v31, 16  ;;  %v15799_v21 = vld [vmem:[#allocation3 + $0x58] sm:$0x11]  ;;  %v9191_v62 = vor.u32 %v9190_v24, %v9187_v6 }
 0x9f3   : > { %v9166_v45 = vshll.u32 %v15799_v21, 16  ;;  %v15725_v21 = vld [vmem:[#allocation16 + $0x830] ss:$8 sps:$4 sm:$0xff]   ;;  %v15733_v24 = vld [vmem:[#allocation16 + $0x854] ss:$8 sps:$4 sm:$0xff]  }
 0x9f4   : > { %v9154_v16 = vrot.slane %v9152_v32, 5 }
 0x9f5   : > { %11848 = vmatpush1.bf16.msra.mxu0 %v15689_v63  ;;  %v9164_v63 = vrot.slane %v9163_v39, 4  ;;  %v15727_v39 = vld [vmem:[#allocation16 + $0x834] ss:$8 sps:$4 sm:$0xff]  }
 0x9f6   : > { %11849 = vmatprep.subr.bf16.mxu0 %v15694_v57  ;;  %v9176_v57 = vrot.slane %v9174_v17, 5  ;;  %v9222_v17 = vshll.u32 %v15803_v19, 16 }
 0x9f8   : > { %v9177_v44 = vor.u32 %v9176_v57, %v9173_v18  ;;  %v9224_v32 = vrot.slane %v9222_v17, 5  ;;  %v15728_v57 = vld [vmem:[#allocation16 + $0x840] ss:$8 sps:$4 sm:$0xff]  }
 0x9f9   : > { %11850 = vmatpush1.bf16.msra.mxu0 %v15692_v3  ;;  %v15718_v3 = vld [vmem:[#allocation16 + $0x804] ss:$8 sps:$4 sm:$0xff]  }
 0x9fa   : > { %11851 = vmatprep.subr.bf16.mxu0 %v15697_v8  ;;  %v9168_v8 = vrot.slane %v9166_v45, 5  ;;  %v15730_v45 = vld [vmem:[#allocation16 + $0x844] ss:$8 sps:$4 sm:$0xff]  }
 0x9fd   : > { %11852 = vmatpush1.bf16.msra.mxu0 %v15695_v7  ;;  %v9155_v7 = vsel %vm17655_vm11, %v9150_v56, %v9154_v16  ;;  %v18695_v56 = vld [vmem:[#allocation38_spill] sm:$0xff] }
 0x9fe   : > { %11853 = vmatprep.subr.bf16.mxu0 %v15700_v52  ;;  %v9169_v52 = vsel %vm17655_vm11, %v9164_v63, %v9168_v8  ;;  %v15736_v16 = vld [vmem:[#allocation16 + $0x864] ss:$8 sps:$4 sm:$0xff]   ;;  %v15734_v8 = vld [vmem:[#allocation16 + $0x860] ss:$8 sps:$4 sm:$0xff]  }
 0x9ff   : > { %v13453_v12 = vcombine.high %v9155_v7, %v9169_v52  ;;  %v13452_v23 = vcombine.low %v9155_v7, %v9169_v52  ;;  %v15742_v7 = vld [vmem:[#allocation16 + $0x884] ss:$8 sps:$4 sm:$0xff]   ;;  %v15740_v52 = vld [vmem:[#allocation16 + $0x880] ss:$8 sps:$4 sm:$0xff]  }
 0xa01   : > { %11854 = vmatpush1.bf16.msra.mxu0 %v15698_v61  ;;  %v15716_v61 = vld [vmem:[#allocation16 + $0x800] ss:$8 sps:$4 sm:$0xff]  }
 0xa02   : > { %11855 = vmatprep.subr.bf16.mxu0 %v15703_v55  ;;  %v13450_v55 = vcombine.low %v18368_v22, %v18372_v1  ;;  %v9219_v22 = vor.u32 %v9218_v0, %v9215_v15  ;;  %v15758_v15 = vld [vmem:[#allocation16 + $0x8e0] ss:$8 sps:$4 sm:$0xff]   ;;  %v15763_v0 = vld [vmem:[#allocation16 + $0x8f4] ss:$8 sps:$4 sm:$0xff]  }
 0xa04   : > { %v9220_v31 = vrot.slane %v9219_v22, 4 }
 0xa05   : > { %11856 = vmatpush1.bf16.msra.mxu0 %v15701_v30  ;;  %v15800_v30 = vld [vmem:[#allocation3 + $0x68] sm:$0x11] }
 0xa06   : > { %11857 = vmatprep.subr.bf16.mxu0 %v15706_v49  ;;  %v9180_v49 = vshll.u32 %v15800_v30, 16  ;;  %v9225_v63 = vsel %vm17655_vm11, %v9220_v31, %v9224_v32  ;;  %v15749_v30 = vld [vmem:[#allocation16 + $0x8b0] ss:$8 sps:$4 sm:$0xff]  }
 0xa08   : > { %v9182_v50 = vrot.slane %v9180_v49, 5  ;;  %v15754_v49 = vld [vmem:[#allocation16 + $0x8c4] ss:$8 sps:$4 sm:$0xff]  }
 0xa09   : > { %11858 = vmatpush1.bf16.msra.mxu0 %v15704_v47  ;;  %v9178_v47 = vrot.slane %v9177_v44, 4  ;;  %v15745_v44 = vld [vmem:[#allocation16 + $0x894] ss:$8 sps:$4 sm:$0xff]  }
 0xa0a   : > { %11859 = vmatprep.subr.bf16.mxu0 %v15709_v43  ;;  %v9192_v43 = vrot.slane %v9191_v62, 4  ;;  %v15743_v62 = vld [vmem:[#allocation16 + $0x890] ss:$8 sps:$4 sm:$0xff]  }
 0xa0b   : > { %v9183_v1 = vsel %vm17655_vm11, %v9178_v47, %v9182_v50  ;;  %v15761_v47 = vld [vmem:[#allocation16 + $0x8f0] ss:$8 sps:$4 sm:$0xff]  }
 0xa0d   : > { %11860 = vmatpush1.bf16.msra.mxu0 %v15707_v37  ;;  %v9197_v37 = vsel %vm17655_vm11, %v9192_v43, %v9196_v10  ;;  %v18696_v43 = vcombine.low %v18176_v48, %v18180_v11  ;;  %v15774_v48 = vld [vmem:[#allocation21 + $0x68] sm:$0xff]  }
 0xa0e   : > { %11861 = vmatprep.subr.bf16.mxu0 %v15712_v33  ;;  %v15802_v33 = vld [vmem:[#allocation3 + $0x88] sm:$0x11]  ;;  %v13454_v6 = vcombine.low %v9183_v1, %v9197_v37  ;;  %13796 = vmatprep.subr.bf16.mxu1 %v15774_v48 }
 0xa0f   : > { %v9208_v59 = vshll.u32 %v15802_v33, 16  ;;  %v15775_v11 = vld [vmem:[#allocation21 + $0x28] sm:$0xff]  }
 0xa10   : > { %13797 = vmatpush3.bf16.msra.mxu1 %v15775_v11 }
 0xa11   : > { %11862 = vmatpush1.bf16.msra.mxu0 %v15710_v2  ;;  %v13455_v2 = vcombine.high %v9183_v1, %v9197_v37  ;;  %13798 = vmatprep.subr.bf16.mxu1 %v15776_v5 }
 0xa12   : > { %11863 = vmatprep.subr.bf16.mxu0 %v15715_v60  ;;  %v9210_v60 = vrot.slane %v9208_v59, 5 }
 0xa14   : > { %v9211_v18 = vsel %vm17655_vm11, %v18695_v56, %v9210_v60  ;;  %13799 = vmatpush3.bf16.msra.mxu1 %v15777_v28 }
 0xa15   : > { %11864 = vmatpush1.bf16.msra.mxu0 %v15713_v34  ;;  %v13457_v34 = vcombine.high %v9211_v18, %v9225_v63  ;;  %v13456_v58 = vcombine.low %v9211_v18, %v9225_v63 }
 0xa16   : > { %11906 = vmatprep.subr.bf16.mxu0 %v15718_v3  ;;  %v15731_v3 = vld [vmem:[#allocation16 + $0x850] ss:$8 sps:$4 sm:$0xff]  }
 0xa18   : > { %11866 = vmatmul.mubr.bf16.vlgmr.msra.gmra.mrb[52].mxu0 %v13450_v55  ;;  %v15746_v55 = vld [vmem:[#allocation16 + $0x8a0] ss:$8 sps:$4 sm:$0xff]  }
 0xa19   : > { %11875 = vmatprep.mubr.bf16.mxu0 %v13453_v12  ;;  %11907 = vmatpush1.bf16.msra.mxu0 %v15716_v61  ;;  %v15748_v61 = vld [vmem:[#allocation16 + $0x8a4] ss:$8 sps:$4 sm:$0xff]  }
 0xa1a   : > { %11908 = vmatprep.subr.bf16.mxu0 %v15721_v54  ;;  %v15751_v54 = vld [vmem:[#allocation16 + $0x8b4] ss:$8 sps:$4 sm:$0xff]   ;;  %v15760_v12 = vld [vmem:[#allocation16 + $0x8e4] ss:$8 sps:$4 sm:$0xff]  }
 0xa1d   : > { %11909 = vmatpush1.bf16.msra.mxu0 %v15719_v38 }
 0xa1e   : > { %11910 = vmatprep.subr.bf16.mxu0 %v15724_v13 }
 0xa20   : > { %11876 = vmatmul.mubr.bf16.gmra.mrb[56].mxu0 %v13452_v23 }
 0xa21   : > { %11885 = vmatprep.mubr.bf16.mxu0 %v13455_v2  ;;  %11911 = vmatpush1.bf16.msra.mxu0 %v15722_v35 }
 0xa22   : > { %11912 = vmatprep.subr.bf16.mxu0 %v15727_v39 }
 0xa25   : > { %11913 = vmatpush1.bf16.msra.mxu0 %v15725_v21 }
 0xa26   : > { %11914 = vmatprep.subr.bf16.mxu0 %v15730_v45 }
 0xa28   : > { %11886 = vmatmul.mubr.bf16.gmra.mrb[60].mxu0 %v13454_v6 }
 0xa29   : > { %11895 = vmatprep.mubr.bf16.mxu0 %v13457_v34  ;;  %11915 = vmatpush1.bf16.msra.mxu0 %v15728_v57 }
 0xa2a   : > { %11916 = vmatprep.subr.bf16.mxu0 %v15733_v24 }
 0xa2d   : > { %11917 = vmatpush1.bf16.msra.mxu0 %v15731_v3 }
 0xa2e   : > { %11918 = vmatprep.subr.bf16.mxu0 %v15736_v16 }
 0xa30   : > { %11896 = vmatmul.mubr.bf16.gmra.mrb[64].mxu0 %v13456_v58 }
 0xa31   : > { %11919 = vmatpush1.bf16.msra.mxu0 %v15734_v8  ;;  %11938 = vmatprep.mubr.bf16.mxu0 %v13459_v27  ;;  %v15752_v27 = vld [vmem:[#allocation16 + $0x8c0] ss:$8 sps:$4 sm:$0xff]  }
 0xa32   : > { %11920 = vmatprep.subr.bf16.mxu0 %v15739_v26 }
 0xa35   : > { %11921 = vmatpush1.bf16.msra.mxu0 %v15737_v20 }
 0xa36   : > { %11922 = vmatprep.subr.bf16.mxu0 %v15742_v7 }
 0xa39   : > { %11923 = vmatpush1.bf16.msra.mxu0 %v15740_v52 }
 0xa3a   : > { %11924 = vmatprep.subr.bf16.mxu0 %v15745_v44 }
 0xa3d   : > { %11925 = vmatpush1.bf16.msra.mxu0 %v15743_v62 }
 0xa3e   : > { %11926 = vmatprep.subr.bf16.mxu0 %v15748_v61 }
 0xa41   : > { %11927 = vmatpush1.bf16.msra.mxu0 %v15746_v55 }
 0xa42   : > { %11928 = vmatprep.subr.bf16.mxu0 %v15751_v54 }
 0xa45   : > { %11929 = vmatpush1.bf16.msra.mxu0 %v15749_v30 }
 0xa46   : > { %11930 = vmatprep.subr.bf16.mxu0 %v15754_v49 }
 0xa49   : > { %11931 = vmatpush1.bf16.msra.mxu0 %v15752_v27 }
 0xa4a   : > { %11932 = vmatprep.subr.bf16.mxu0 %v15757_v46 }
 0xa4d   : > { %11933 = vmatpush1.bf16.msra.mxu0 %v15755_v42 }
 0xa4e   : > { %11934 = vmatprep.subr.bf16.mxu0 %v15760_v12 }
 0xa51   : > { %11935 = vmatpush1.bf16.msra.mxu0 %v15758_v15 }
 0xa52   : > { %11936 = vmatprep.subr.bf16.mxu0 %v15763_v0 }
 0xa55   : > { %11937 = vmatpush1.bf16.msra.mxu0 %v15761_v47 }
 0xa58   : > { %11939 = vmatmul.mubr.bf16.vlgmr.msra.gmra.mrb[52].mxu0 %v18696_v43 }
 0xa59   : > { %11948 = vmatprep.mubr.bf16.mxu0 %v13461_v36  ;;  %v15778_v36 = vld [vmem:[#allocation21 + $0x78] sm:$0xff]  }
 0xa5a   : > { %13800 = vmatprep.subr.bf16.mxu1 %v15778_v36 }
 0xa60   : > { %11949 = vmatmul.mubr.bf16.gmra.mrb[56].mxu0 %v13460_v53  ;;  %v15779_v53 = vld [vmem:[#allocation21 + $0x38] sm:$0xff]  }
 0xa61   : > { %11958 = vmatprep.mubr.bf16.mxu0 %v13463_v40  ;;  %13801 = vmatpush3.bf16.msra.mxu1 %v15779_v53  ;;  %v18697_v40 = vld [vmem:[#allocation35_spill] sm:$0xff] }
 0xa62   : > { %v18433_v4 = vrot.slane %v12007_v14, %v18697_v40 }
 0xa68   : > { %11959 = vmatmul.mubr.bf16.gmra.mrb[60].mxu0 %v13462_v25  ;;  %v18427_v25 = vrot.slane %v11979_v29, %v18697_v40 }
 0xa69   : > { %11968 = vmatprep.mubr.bf16.mxu0 %v13465_v41  ;;  %v18698_v41 = vld [vmem:[#allocation36_spill] sm:$0xff] }
 0xa6a   : > { %v18430_v9 = vrot.slane %v11979_v29, %v18698_v41  ;;  %v18436_v38 = vrot.slane %v12007_v14, %v18698_v41 }
 0xa70   : > { %11969 = vmatmul.mubr.bf16.gmra.mrb[64].mxu0 %v13464_v51 }
 0xb2b   : > { %v11940_v51 = vpop.f32.mrb[52].mxu0 }
 0xb2c   : > { %v11991_v13 = vmul.f32 %v18427_v25, %v11940_v51  ;;  %v11942_v50 = vpop.f32.mrb[53].mxu0 }
 0xb2d   : > { %v11992_v10 = vmul.f32 %v18430_v9, %v11942_v50  ;;  %v11944_v22 = vpop.f32.mrb[54].mxu0 }
 0xb2e   : > { %v12019_v1 = vadd.f32 %v18433_v4, %v11991_v13  ;;  %v11993_v37 = vmul.f32 %v18427_v25, %v11944_v22  ;;  %v11946_v33 = vpop.f32.mrb[55].mxu0 }
 0xb2f   : > { %v12020_v59 = vadd.f32 %v18436_v38, %v11992_v10  ;;  %v11994_v19 = vmul.f32 %v18430_v9, %v11946_v33 }
 0xb30   : > { %v12021_v17 = vadd.f32 %v18433_v4, %v11993_v37  ;;  %v12035_v23 = vmax.f32 %v12019_v1, 0.0 }
 0xb31   : > { %v12022_v35 = vadd.f32 %v18436_v38, %v11994_v19  ;;  %v12036_v2 = vmax.f32 %v12020_v59, 0.0 }
 0xb32   : > { %v12037_v39 = vmax.f32 %v12021_v17, 0.0 }
 0xb33   : > { %v12038_v60 = vmax.f32 %v12022_v35, 0.0  ;;  %v11950_v31 = vpop.f32.mrb[56].mxu0 }
 0xb34   : > { %v12051_v32 = vpack.c.bf16 %v12037_v39, %v12035_v23  ;;  %v11995_v21 = vmul.f32 %v18427_v25, %v11950_v31  ;;  %v11952_v45 = vpop.f32.mrb[57].mxu0  ;;  %v13754_v23 = vld [vmem:[#allocation22] ss:$0 sm:$0xff] }
 0xb35   : > { %v11996_v56 = vmul.f32 %v18430_v9, %v11952_v45  ;;  %v11954_v18 = vpop.f32.mrb[58].mxu0  ;;  %v12052_v63 = vpack.c.bf16 %v12038_v60, %v12036_v2 }
 0xb36   : > { %v12023_v57 = vadd.f32 %v18433_v4, %v11995_v21  ;;  %v11997_v6 = vmul.f32 %v18427_v25, %v11954_v18  ;;  %v11956_v24 = vpop.f32.mrb[59].mxu0 }
 0xb37   : > { %v12024_v34 = vadd.f32 %v18436_v38, %v11996_v56  ;;  %v11998_v3 = vmul.f32 %v18430_v9, %v11956_v24  ;;  %12226 = vmatprep.mubr.bf16.mxu1 %v12052_v63 }
 0xb38   : > { %v12025_v16 = vadd.f32 %v18433_v4, %v11997_v6  ;;  %12227 = vmatmul.mubr.bf16.vlgmr.msra.gmra.mrb[68].mxu1 %v12051_v32  ;;  %v12039_v58 = vmax.f32 %v12023_v57, 0.0 }
 0xb39   : > { %v12026_v8 = vadd.f32 %v18436_v38, %v11998_v3  ;;  %v12040_v20 = vmax.f32 %v12024_v34, 0.0 }
 0xb3a   : > { %v12041_v26 = vmax.f32 %v12025_v16, 0.0 }
 0xb3b   : > { %v12042_v7 = vmax.f32 %v12026_v8, 0.0  ;;  %v11960_v52 = vpop.f32.mrb[60].mxu0 }
 0xb3c   : > { %v11999_v44 = vmul.f32 %v18427_v25, %v11960_v52  ;;  %v11962_v62 = vpop.f32.mrb[61].mxu0  ;;  %v12053_v61 = vpack.c.bf16 %v12041_v26, %v12039_v58 }
 0xb3d   : > { %v12000_v55 = vmul.f32 %v18430_v9, %v11962_v62  ;;  %v11964_v54 = vpop.f32.mrb[62].mxu0  ;;  %v12054_v30 = vpack.c.bf16 %v12042_v7, %v12040_v20 }
 0xb3e   : > { %v12027_v49 = vadd.f32 %v18433_v4, %v11999_v44  ;;  %v12001_v27 = vmul.f32 %v18427_v25, %v11964_v54  ;;  %v11966_v46 = vpop.f32.mrb[63].mxu0 }
 0xb3f   : > { %v12028_v42 = vadd.f32 %v18436_v38, %v12000_v55  ;;  %v12002_v12 = vmul.f32 %v18430_v9, %v11966_v46  ;;  %12234 = vmatprep.mubr.bf16.mxu1 %v12054_v30 }
 0xb40   : > { %v12029_v15 = vadd.f32 %v18433_v4, %v12001_v27  ;;  %12235 = vmatmul.mubr.bf16.gmra.mrb[72].mxu1 %v12053_v61  ;;  %v12043_v47 = vmax.f32 %v12027_v49, 0.0 }
 0xb41   : > { %v12030_v0 = vadd.f32 %v18436_v38, %v12002_v12  ;;  %v12044_v48 = vmax.f32 %v12028_v42, 0.0 }
 0xb42   : > { %v12045_v43 = vmax.f32 %v12029_v15, 0.0 }
 0xb43   : > { %v12046_v11 = vmax.f32 %v12030_v0, 0.0  ;;  %v11970_v5 = vpop.f32.mrb[64].mxu0 }
 0xb44   : > { %v12003_v28 = vmul.f32 %v18427_v25, %v11970_v5  ;;  %v11972_v36 = vpop.f32.mrb[65].mxu0  ;;  %v12055_v53 = vpack.c.bf16 %v12045_v43, %v12043_v47 }
 0xb45   : > { %v12004_v29 = vmul.f32 %v18430_v9, %v11972_v36  ;;  %v11974_v14 = vpop.f32.mrb[66].mxu0  ;;  %v12056_v40 = vpack.c.bf16 %v12046_v11, %v12044_v48 }
 0xb46   : > { %v12031_v41 = vadd.f32 %v18433_v4, %v12003_v28  ;;  %v12005_v51 = vmul.f32 %v18427_v25, %v11974_v14  ;;  %v11976_v13 = vpop.f32.mrb[67].mxu0 }
 0xb47   : > { %v12032_v50 = vadd.f32 %v18436_v38, %v12004_v29  ;;  %v12006_v10 = vmul.f32 %v18430_v9, %v11976_v13  ;;  %12242 = vmatprep.mubr.bf16.mxu1 %v12056_v40 }
 0xb48   : > { %v12033_v22 = vadd.f32 %v18433_v4, %v12005_v51  ;;  %12243 = vmatmul.mubr.bf16.gmra.mrb[76].mxu1 %v12055_v53  ;;  %v12047_v37 = vmax.f32 %v12031_v41, 0.0 }
 0xb49   : > { %v12034_v1 = vadd.f32 %v18436_v38, %v12006_v10  ;;  %v12048_v59 = vmax.f32 %v12032_v50, 0.0 }
 0xb4a   : > { %v12049_v33 = vmax.f32 %v12033_v22, 0.0 }
 0xb4b   : > { %v12050_v19 = vmax.f32 %v12034_v1, 0.0 }
 0xb4c   : > { %v12057_v17 = vpack.c.bf16 %v12049_v33, %v12047_v37 }
 0xb4d   : > { %v12058_v35 = vpack.c.bf16 %v12050_v19, %v12048_v59 }
 0xb4f   : > { %12250 = vmatprep.mubr.bf16.mxu1 %v12058_v35 }
 0xb50   : > { %12251 = vmatmul.mubr.bf16.gmra.mrb[80].mxu1 %v12057_v17 }
 0xc0b   : > { %v13802_v25 = vpop.f32.mrb[68].mxu1 }
 0xc0c   : > { %v13803_v39 = vpop.f32.mrb[69].mxu1 }
 0xc0d   : > { %v13804_v2 = vadd.f32 %v13803_v39, %v13802_v25  ;;  %v13805_v9 = vpop.f32.mrb[70].mxu1 }
 0xc0e   : > { %v13806_v60 = vpop.f32.mrb[71].mxu1 }
 0xc0f   : > { %v12229_v31 = vadd.f32 %v13804_v2, %v13754_v23  ;;  %v13807_v4 = vadd.f32 %v13806_v60, %v13805_v9 }
 0xc11   : > { %12259 = vst [vmem:[%s18471_s18] sm:$0xff] %v12229_v31  ;;  %v12232_v38 = vadd.f32 %v13807_v4, %v13754_v23 }
 0xc13   : > { %12260 = vst [vmem:[%s18471_s18 + $0x8] sm:$0xff] %v12232_v38  ;;  %v13808_v32 = vpop.f32.mrb[72].mxu1 }
 0xc14   : > { %v13809_v21 = vpop.f32.mrb[73].mxu1 }
 0xc15   : > { %v13810_v45 = vadd.f32 %v13809_v21, %v13808_v32  ;;  %v13811_v56 = vpop.f32.mrb[74].mxu1 }
 0xc16   : > { %v13812_v18 = vpop.f32.mrb[75].mxu1 }
 0xc17   : > { %v12237_v63 = vadd.f32 %v13810_v45, %v13754_v23  ;;  %v13813_v57 = vadd.f32 %v13812_v18, %v13811_v56 }
 0xc19   : > { %12261 = vst [vmem:[%s18471_s18 + $0x10] sm:$0xff] %v12237_v63  ;;  %v12240_v6 = vadd.f32 %v13813_v57, %v13754_v23 }
 0xc1b   : > { %12262 = vst [vmem:[%s18471_s18 + $0x18] sm:$0xff] %v12240_v6  ;;  %v13814_v24 = vpop.f32.mrb[76].mxu1 }
 0xc1c   : > { %v13815_v34 = vpop.f32.mrb[77].mxu1 }
 0xc1d   : > { %v13816_v3 = vadd.f32 %v13815_v34, %v13814_v24  ;;  %v13817_v16 = vpop.f32.mrb[78].mxu1 }
 0xc1e   : > { %v13818_v8 = vpop.f32.mrb[79].mxu1 }
 0xc1f   : > { %v12245_v58 = vadd.f32 %v13816_v3, %v13754_v23  ;;  %v13819_v26 = vadd.f32 %v13818_v8, %v13817_v16 }
 0xc21   : > { %12263 = vst [vmem:[%s18471_s18 + $0x20] sm:$0xff] %v12245_v58  ;;  %v12248_v20 = vadd.f32 %v13819_v26, %v13754_v23 }
 0xc23   : > { %12264 = vst [vmem:[%s18471_s18 + $0x28] sm:$0xff] %v12248_v20  ;;  %v13820_v7 = vpop.f32.mrb[80].mxu1 }
 0xc24   : > { %v13821_v52 = vpop.f32.mrb[81].mxu1 }
 0xc25   : > { %v13822_v44 = vadd.f32 %v13821_v52, %v13820_v7  ;;  %v13823_v62 = vpop.f32.mrb[82].mxu1 }
 0xc26   : > { %v13824_v61 = vpop.f32.mrb[83].mxu1 }
 0xc27   : > { %v12253_v55 = vadd.f32 %v13822_v44, %v13754_v23  ;;  %v13825_v54 = vadd.f32 %v13824_v61, %v13823_v62 }
 0xc29   : > { %12265 = vst [vmem:[%s18471_s18 + $0x30] sm:$0xff] %v12253_v55  ;;  %v12256_v30 = vadd.f32 %v13825_v54, %v13754_v23 }
 0xc2b   : > { %12266 = vst [vmem:[%s18471_s18 + $0x38] sm:$0xff] %v12256_v30 }
 0xc2c   : > { %16155 = shalt.err (!%p16152_p9)
}
 0xc2d   : > { %s16156_s18 = scalar_lea.hbm %s18486_s12, 1024  ;;  %s16160_s16 = scalar_lea.hbm %s18699_s29, 2048 }
 0xc2e   : > { %p16157_p7 = scmp.ne.s32.totalorder %s18486_s12, %s16156_s18  ;;  %p16161_p1 = scmp.lt.u32.totalorder %s18486_s12, %s18699_s29 }
 0xc2f   : > { %p16162_p13 = scmp.lt.u32.totalorder %s16160_s16, %s16156_s18  ;;  %p16164_p2 = scmp.lt.u32.totalorder %s16156_s18, %s18486_s12 }
 0xc30   : > { %p16158_p4 = pnand %p16157_p7, %p18700_p8 }
 0xc31   : > { %p16163_p0 = por %p16162_p13, %p16161_p1 }
 0xc32   : > { %p16159_p12 = pneg %p16158_p4 }
 0xc33   : > { %p16165_p6 = por %p16164_p2, %p16163_p0 }
 0xc35   : > { %p16166_p10 = pnand %p16165_p6, %p16159_p12 }
 0xc37   : > { %16169 = shalt.err (!%p16166_p10)
}
 0xc38   : > { %s16252_s2 = smov 128   ;;  %s16253_s27 = smov 8  }
 0xc39   : > { %14240 = dma.vmem_to_hbm [thread:$0]  (%p18700_p8), %s18481_s25, 1024, %s18486_s12, %s12268_s0, %s16252_s2, %s16252_s2, %s16253_s27  }
 0xc3a PF: > { %s12296_s17 = sand.u32 1, %s16220_s21   ;;  %p18701_p11 = scmp.ne.s32.totalorder %s18594_s14, 0 }
 0xc3b   : > { %p18702_p3 = scmp.ge.s32.totalorder %s16232_s24, 2  ;;  %s12297_s18 = scalar_lea.sflag [#allocation6], %s12296_s17 }
 0xc3d   : > { %p14281_p5 = pnand %p18702_p3, %p18701_p11 }
 0xc3f   : > { %16215 = dma.done.wait (!%p14281_p5), %s12297_s18, 1024  }
 0xc40   : > { %16217 = vsyncadd (!%p14281_p5), %s12297_s18, 4294966272  ;;  %p31_p9 = scmp.ge.s32.totalorder %s16603_s13, 4   ;;  %s18703_s21 = smov %s16224_s22 }
 0xc41   : > { %s18704_s22 = smov %s16228_s23  ;;  %s18705_s23 = smov %s16615_s1 }
 0xc42   : > { %s18706_s24 = smov %s16603_s13  ;;  %33 = sbr.rel (!%p31_p9) target bundleno = 16 (0x10), region = 182 }
 0xc49   :  { %12302 = vsyncpa [#allocation5], 1 }
 0xc4a   :  { %12304 = vsyncpa [#allocation5 + $0x1], 1 }
 0xc4b   :  { %12305 = vsyncpa [#allocation8], 1 }
 0xc4c   :  { %12306 = vsyncpa [#allocation11], 1 }
 0xc4d   :  { %12307 = vsyncpa [#allocation14], 1 }
 0xc4e   :  { %12308 = vsyncpa [#allocation17], 1 }
 0xc4f   :  { %12309 = vsyncpa [#allocation20], 1 }
 0xc50   :  { %12310 = vsyncpa [#allocation23], 1 }
 0xc51   :  { %12311 = vsyncpa [#allocation6], 1 }
 0xc52   :  { %12313 = vsyncpa [#allocation6 + $0x1], 1 }

</bundles_post_ra>
